<compile_context>
chip_gen: v5e
topology: v5e:2x2
jax: 0.10.0
libtpu: 0.0.40
codegen_flags: <defaults>
</compile_context>

<pallas_src>
import functools
import math

import numpy as np
import jax
import jax.numpy as jnp
from jax.experimental import pallas as pl
from jax.experimental.pallas import tpu as pltpu

_LANE = 128      # per-gate band padded width (lane tile)
_SUBLANE = 8     # batch padded to a multiple of 8 sublanes
_BIG = 3.0e4     # sigmoid(_BIG) == 1.0 exactly in f32 -> padded timesteps are exact identity steps


def _round_up(x, m):
    return (x + m - 1) // m * m


# --------------------------- recurrent Pallas kernel ---------------------------

def _gru_bidir_kernel(gif_ref, gib_ref, whh_ref, bhn_ref,
                      outf_ref, outb_ref, hn_ref, *, tc, gp):
    """grid = (time_block,).  One grid step runs tc timesteps of BOTH directions, interleaved.

    gif_ref : (1, tc, Bp, 3*Gp) bf16 -- precomputed x@W_ih + b_ih (fwd), forward time order
    gib_ref : (1, tc, Bp, 3*Gp) bf16 -- same for bwd; index_map already reversed the block order
    whh_ref : (2, Gp, 3*Gp)     bf16 -- gate-fused recurrent weights [fwd, bwd] (grid-constant)
    bhn_ref : (2, 1, Gp)        f32  -- n-gate hidden bias only (b_hr/b_hz folded into b_ih)
    outf_ref: (tc, Bp, Gp)      f32
    outb_ref: (tc, Bp, Gp)      f32
    hn_ref  : (2, Bp, Gp)       f32  -- resident across the grid; doubles as the hidden carry
    """
    i = pl.program_id(0)

    @pl.when(i == 0)
    def _():
        hn_ref[...] = jnp.zeros_like(hn_ref)          # h0 = 0 (PyTorch default)

    bp = outf_ref.shape[1]

    # Loop-invariant loads / broadcasts, done once per time block (not once per step).
    whh_f = whh_ref[0]                                 # (Gp, 3Gp) bf16
    whh_b = whh_ref[1]
    bhn_f = jnp.broadcast_to(bhn_ref[0], (bp, gp))     # pre-broadcast: no per-step broadcast_in_dim
    bhn_b = jnp.broadcast_to(bhn_ref[1], (bp, gp))

    def cell(gi_bf16, h_prev, whh, bhn):
        gi = gi_bf16.astype(jnp.float32)                               # (Bp, 3Gp)
        gh = jnp.dot(h_prev.astype(jnp.bfloat16), whh,
                     preferred_element_type=jnp.float32)               # one fused (Bp,Gp)@(Gp,3Gp)
        # Gate bands are 128-lane aligned -> these slices are free views.
        r = jax.nn.sigmoid(gi[:, :gp] + gh[:, :gp])
        z = jax.nn.sigmoid(gi[:, gp:2 * gp] + gh[:, gp:2 * gp])
        n = jnp.tanh(gi[:, 2 * gp:] + r * (gh[:, 2 * gp:] + bhn))      # b_hn stays inside r*(...)
        return (1.0 - z) * n + z * h_prev                              # f32 carry

    h_f = hn_ref[0]
    h_b = hn_ref[1]

    # Static python loop -> compile-time, sublane-aligned indices; the two independent
    # direction chains interleave on MXU/EUP to hide each other's latency.
    for s in range(tc):
        h_f = cell(gif_ref[0, s], h_f, whh_f, bhn_f)
        outf_ref[s] = h_f
        h_b = cell(gib_ref[0, tc - 1 - s], h_b, whh_b, bhn_b)
        outb_ref[tc - 1 - s] = h_b

    hn_ref[0] = h_f                                    # cheap (8,128) stores every step: the
    hn_ref[1] = h_b                                    # carry never relies on revisit semantics


def _pick_time_block(T, max_tc=32):
    """Pick (tc, Tp): time block tc and padded length Tp (multiple of tc).

    Full unroll is capped at max_tc timesteps per block to bound instruction count / vreg
    pressure; for T > max_tc we pad T up to a multiple of 8 and take the largest divisor.
    """
    if T <= max_tc:
        return T, T
    Tp = _round_up(T, 8)
    for cand in range(max_tc, 7, -1):
        if Tp % cand == 0:
            return cand, Tp
    return 8, Tp


def _run_layer_recurrence(gi, whh, bhn, tc, nt):
    """gi: (2, Tp, Bp, 3Gp) bf16. Returns (out_f, out_b, h_n) with padded shapes."""
    _, Tp, Bp, G3 = gi.shape
    Gp = G3 // 3

    kernel = functools.partial(_gru_bidir_kernel, tc=tc, gp=Gp)

    out_f, out_b, hn = pl.pallas_call(
        kernel,
        grid=(nt,),
        in_specs=[
            # gi is passed twice: forward blocks in order, backward blocks reversed.
            pl.BlockSpec((1, tc, Bp, G3), lambda i: (0, i, 0, 0)),
            pl.BlockSpec((1, tc, Bp, G3), lambda i: (1, nt - 1 - i, 0, 0)),
            # Grid-constant weight/bias blocks -> fetched once.
            # TODO(synk): for very large H on v7x (64 MiB VMEM), single-buffer these
            # (pl.Buffered(1)) so the resident weights are not double-buffered.
            pl.BlockSpec((2, Gp, G3), lambda i: (0, 0, 0)),
            pl.BlockSpec((2, 1, Gp), lambda i: (0, 0, 0)),
        ],
        out_specs=[
            pl.BlockSpec((tc, Bp, Gp), lambda i: (i, 0, 0)),
            pl.BlockSpec((tc, Bp, Gp), lambda i: (nt - 1 - i, 0, 0)),
            pl.BlockSpec((2, Bp, Gp), lambda i: (0, 0, 0)),   # resident hidden carry / h_n
        ],
        out_shape=[
            jax.ShapeDtypeStruct((Tp, Bp, Gp), jnp.float32),
            jax.ShapeDtypeStruct((Tp, Bp, Gp), jnp.float32),
            jax.ShapeDtypeStruct((2, Bp, Gp), jnp.float32),
        ],
        compiler_params=pltpu.CompilerParams(
            dimension_semantics=("arbitrary",),      # time is a serial recurrence
            vmem_limit_bytes=32 * 1024 * 1024,
        ),
    )(gi, gi, whh, bhn)
    return out_f, out_b, hn


def gru_layer_forward(x, packed_params, hidden_size):
    """Bidirectional multi-layer GRU forward (inference semantics).

    x: (T, B, input_size) f32.  packed_params: output of pack_gru_params.
    Returns (output, h_n) matching torch.nn.GRU(..., bidirectional=True).
    """
    T, B, _ = x.shape
    H = hidden_size
    Bp = _round_up(B, _SUBLANE)
    tc, Tp = _pick_time_block(T)
    nt = Tp // tc

    # Pad batch (sublanes) and time once, up front; everything stays padded between layers.
    x_p = jnp.pad(x, ((0, Tp - T), (0, Bp - B), (0, 0)))

    out_f = out_b = None
    h_ns = []
    for li, p in enumerate(packed_params):
        Gp = p["whh"].shape[1]

        # Hoisted, time-parallel input projection (gate-fused, bf16 MXU, f32 accumulation).
        if li == 0:
            gi = jnp.einsum("tbi,dig->dtbg", x_p.astype(jnp.bfloat16), p["wih"],
                            preferred_element_type=jnp.float32)
        else:
            # Split einsum consumes the previous layer's fwd/bwd slabs directly — no
            # inter-layer concatenate / interleaving HBM copy.
            gi = (jnp.einsum("tbh,dhg->dtbg", out_f.astype(jnp.bfloat16), p["wih"][:, 0],
                             preferred_element_type=jnp.float32)
                  + jnp.einsum("tbh,dhg->dtbg", out_b.astype(jnp.bfloat16), p["wih"][:, 1],
                               preferred_element_type=jnp.float32))
        gi = gi + p["bih"][:, None, None, :]

        if Tp > T:
            # Padded timesteps become exact identity steps: z-gate pre-activation saturated
            # (sigmoid == 1.0 in f32), all other bands zero -> h_new == h_prev exactly.
            pad_pat = jnp.zeros((3 * Gp,), jnp.float32).at[Gp:2 * Gp].set(_BIG)
            tmask = (jnp.arange(Tp) < T)[None, :, None, None]
            gi = jnp.where(tmask, gi, pad_pat)

        gi = gi.astype(jnp.bfloat16)   # halve HBM write + per-block DMA of the streamed operand

        out_f, out_b, hn = _run_layer_recurrence(gi, p["whh"], p["bhn"], tc, nt)
        h_ns.append(hn[:, :B, :H])
        # TODO(synk): inter-layer dropout (p=0.3) applies only in training mode; eval path skips it.
        # TODO(synk): for large T*B*H, fuse the input projection into the kernel (stream x blocks,
        #             keep W_ih resident) instead of materializing gi in HBM.

    output = jnp.concatenate([out_f[:T, :B, :H], out_b[:T, :B, :H]], axis=-1)   # (T, B, 2H)
    h_n = jnp.concatenate(h_ns, axis=0)                                         # (2L, B, H)
    return output, h_n


# ---------------- one-time parameter repacking (the analogue of flatten_parameters) ----------------

def pack_gru_params(params):
    """Repack PyTorch-layout GRU weights into kernel layout. Done once, outside the forward path.

    - transpose to gate-fused (in, 3H) / (H, 3H) matrices (gate order stays [r, z, n])
    - pad each gate band to a 128-lane tile (Gp) and the hidden axis to Gp (zeros)
    - fold b_hr, b_hz into b_ih (only b_hn must stay inside r*(...)); keep b_hn separately
    - for layers > 0, reshape W_ih to (2_src_dir, H, 3Gp) so the next layer consumes the
      previous layer's fwd/bwd output slabs without concatenation
    """
    packed = []
    for li, layer in enumerate(params):
        H = layer["fwd"][0].shape[0] // 3
        Gp = max(_LANE, _round_up(H, _LANE))

        def pad_gate_cols(m):   # (..., 3H) -> (..., 3Gp), zero-padding each gate band
            parts = jnp.split(m, 3, axis=-1)
            parts = [jnp.pad(pm, [(0, 0)] * (pm.ndim - 1) + [(0, Gp - H)]) for pm in parts]
            return jnp.concatenate(parts, axis=-1)

        wih_l, whh_l, bih_l, bhn_l = [], [], [], []
        for dname in ("fwd", "bwd"):
            w_ih, w_hh, b_ih, b_hh = layer[dname]
            b_fold = b_ih + jnp.concatenate([b_hh[:2 * H], jnp.zeros((H,), b_hh.dtype)])
            b_hn = b_hh[2 * H:]

            whh_p = jnp.pad(pad_gate_cols(w_hh.T), ((0, Gp - H), (0, 0)))     # (Gp, 3Gp)
            bih_p = pad_gate_cols(b_fold[None, :])[0]                         # (3Gp,)
            bhn_p = jnp.pad(b_hn, (0, Gp - H))[None, :]                       # (1, Gp)

            if li == 0:
                wih_p = pad_gate_cols(w_ih.T)                                 # (I, 3Gp)
            else:
                w = pad_gate_cols(w_ih.T)                                     # (2H, 3Gp)
                w = w.reshape(2, H, 3 * Gp)                                   # (2_src, H, 3Gp)
                wih_p = jnp.pad(w, ((0, 0), (0, Gp - H), (0, 0)))             # (2_src, Gp, 3Gp)

            wih_l.append(wih_p); whh_l.append(whh_p)
            bih_l.append(bih_p); bhn_l.append(bhn_p)

        packed.append({
            "wih": jnp.stack(wih_l).astype(jnp.bfloat16),   # (2, I, 3Gp) or (2, 2, Gp, 3Gp)
            "whh": jnp.stack(whh_l).astype(jnp.bfloat16),   # (2, Gp, 3Gp)
            "bih": jnp.stack(bih_l).astype(jnp.float32),    # (2, 3Gp)
            "bhn": jnp.stack(bhn_l).astype(jnp.float32),    # (2, 1, Gp)
        })
    return packed


# ---------------- pure-JAX reference (PyTorch semantics, f32) ----------------

def _gru_dir_ref(x, w_ih, w_hh, b_ih, b_hh):
    T, B, _ = x.shape
    H = w_hh.shape[1]

    def cell(h, x_t):
        gi = x_t @ w_ih.T + b_ih
        gh = h @ w_hh.T + b_hh
        i_r, i_z, i_n = jnp.split(gi, 3, axis=-1)
        h_r, h_z, h_n = jnp.split(gh, 3, axis=-1)
        r = jax.nn.sigmoid(i_r + h_r)
        z = jax.nn.sigmoid(i_z + h_z)
        n = jnp.tanh(i_n + r * h_n)
        h_new = (1.0 - z) * n + z * h
        return h_new, h_new

    h_last, outs = jax.lax.scan(cell, jnp.zeros((B, H), jnp.float32), x)
    return outs, h_last


def _gru_ref(x, params):
    h_ns = []
    inp = x
    for layer in params:
        out_f, h_f = _gru_dir_ref(inp, *layer["fwd"])
        out_b, h_b = _gru_dir_ref(jnp.flip(inp, axis=0), *layer["bwd"])
        out_b = jnp.flip(out_b, axis=0)
        inp = jnp.concatenate([out_f, out_b], axis=-1)
        h_ns.extend([h_f, h_b])
    return inp, jnp.stack(h_ns, axis=0)


# ---------------- deterministic parameter construction ----------------

def make_gru_params(key, input_size, hidden_size, n_layers, bidirectional=True):
    """PyTorch default init: U(-1/sqrt(H), 1/sqrt(H)) for all weights/biases."""
    num_dirs = 2 if bidirectional else 1
    k = 1.0 / math.sqrt(hidden_size)
    params = []
    for layer in range(n_layers):
        in_sz = input_size if layer == 0 else hidden_size * num_dirs
        layer_p = {}
        for dname in (["fwd", "bwd"] if bidirectional else ["fwd"]):
            key, k1, k2, k3, k4 = jax.random.split(key, 5)
            layer_p[dname] = (
                jax.random.uniform(k1, (3 * hidden_size, in_sz), jnp.float32, -k, k),
                jax.random.uniform(k2, (3 * hidden_size, hidden_size), jnp.float32, -k, k),
                jax.random.uniform(k3, (3 * hidden_size,), jnp.float32, -k, k),
                jax.random.uniform(k4, (3 * hidden_size,), jnp.float32, -k, k),
            )
        params.append(layer_p)
    return params


if __name__ == "__main__":
    SEQ, BATCH, INPUT, HIDDEN, LAYERS = 8, 4, 16, 32, 2

    key = jax.random.PRNGKey(0)
    kx, kp = jax.random.split(key)
    x = jax.random.normal(kx, (SEQ, BATCH, INPUT), jnp.float32)
    params = make_gru_params(kp, INPUT, HIDDEN, LAYERS, bidirectional=True)
    packed = pack_gru_params(params)            # one-time repack, not in the per-forward path

    fwd = jax.jit(gru_layer_forward, static_argnums=(2,))
    output, h_n = fwd(x, packed, HIDDEN)
    output = jax.block_until_ready(output)
    h_n = jax.block_until_ready(h_n)

    assert output.shape == (SEQ, BATCH, 2 * HIDDEN)
    assert h_n.shape == (LAYERS * 2, BATCH, HIDDEN)

    out_ref, hn_ref = _gru_ref(x, params)
    # bf16 MXU inputs (weights / streamed gi / recurrent LHS cast) with f32 accumulation and
    # an f32 hidden carry; the f32 reference keeps PyTorch semantics.
    np.testing.assert_allclose(np.asarray(output), np.asarray(out_ref), atol=3e-2, rtol=3e-2)
    np.testing.assert_allclose(np.asarray(h_n), np.asarray(hn_ref), atol=3e-2, rtol=3e-2)

    print("KERNEL_OK")
</pallas_src>

<mosaic_0001>
module attributes {stable_mosaic.version = 11 : i64} {
  func.func @_gru_bidir_kernel(%arg0: i32, %arg1: memref<1x8x8x384xbf16, #tpu.memory_space<vmem>>, %arg2: memref<1x8x8x384xbf16, #tpu.memory_space<vmem>>, %arg3: memref<2x128x384xbf16, #tpu.memory_space<vmem>>, %arg4: memref<2x1x128xf32, #tpu.memory_space<vmem>>, %arg5: memref<8x8x128xf32, #tpu.memory_space<vmem>>, %arg6: memref<8x8x128xf32, #tpu.memory_space<vmem>>, %arg7: memref<2x8x128xf32, #tpu.memory_space<vmem>>) attributes {dimension_semantics = [#tpu.dimension_semantics<arbitrary>], iteration_bounds = array<i64: 1>, scalar_prefetch = 0 : i64, scratch_operands = 0 : i64, tpu.core_type = #tpu.core_type<tc>, window_params = [{transform_indices = @transform_0, window_bounds = array<i64: 1, 8, 8, 384>}, {transform_indices = @transform_1, window_bounds = array<i64: 1, 8, 8, 384>}, {pipeline_mode = #tpu.pipeline_mode<synchronous>, transform_indices = @transform_2, window_bounds = array<i64: 2, 128, 384>}, {pipeline_mode = #tpu.pipeline_mode<synchronous>, transform_indices = @transform_3, window_bounds = array<i64: 2, 1, 128>}, {transform_indices = @transform_4, window_bounds = array<i64: 8, 8, 128>}, {transform_indices = @transform_5, window_bounds = array<i64: 8, 8, 128>}, {pipeline_mode = #tpu.pipeline_mode<synchronous>, transform_indices = @transform_6, window_bounds = array<i64: 2, 8, 128>}]} {
    %c0_i32 = arith.constant 0 : i32
    %0 = arith.cmpi eq, %arg0, %c0_i32 : i32
    %1 = arith.extui %0 : i1 to i32
    %c0_i32_0 = arith.constant 0 : i32
    %2 = arith.cmpi ne, %1, %c0_i32_0 : i32
    scf.if %2 {
      %cst_192 = arith.constant 0.000000e+00 : f32
      %585 = vector.broadcast %cst_192 : f32 to vector<2x8x128xf32>
      %c0_193 = arith.constant 0 : index
      %c0_194 = arith.constant 0 : index
      %c0_195 = arith.constant 0 : index
      %586 = vector.load %arg7[%c0_193, %c0_194, %c0_195] : memref<2x8x128xf32, #tpu.memory_space<vmem>>, vector<2x8x128xf32>
      tpu.vector_store %arg7[%c0_193, %c0_194, %c0_195], %585 {strides = array<i32>} : memref<2x8x128xf32, #tpu.memory_space<vmem>>, vector<2x8x128xf32>,
    } else {
    }
    %c0 = arith.constant 0 : index
    %c0_1 = arith.constant 0 : index
    %c0_2 = arith.constant 0 : index
    %3 = vector.load %arg3[%c0, %c0_1, %c0_2] : memref<2x128x384xbf16, #tpu.memory_space<vmem>>, vector<1x128x384xbf16>
    %4 = vector.shape_cast %3 : vector<1x128x384xbf16> to vector<128x384xbf16>
    %c1 = arith.constant 1 : index
    %c0_3 = arith.constant 0 : index
    %c0_4 = arith.constant 0 : index
    %5 = vector.load %arg3[%c1, %c0_3, %c0_4] : memref<2x128x384xbf16, #tpu.memory_space<vmem>>, vector<1x128x384xbf16>
    %6 = vector.shape_cast %5 : vector<1x128x384xbf16> to vector<128x384xbf16>
    %c0_5 = arith.constant 0 : index
    %c0_6 = arith.constant 0 : index
    %c0_7 = arith.constant 0 : index
    %7 = vector.load %arg4[%c0_5, %c0_6, %c0_7] : memref<2x1x128xf32, #tpu.memory_space<vmem>>, vector<1x1x128xf32>
    %8 = vector.shape_cast %7 : vector<1x1x128xf32> to vector<1x128xf32>
    %9 = vector.shape_cast %8 : vector<1x128xf32> to vector<1x128xf32>
    %10 = vector.broadcast %9 : vector<1x128xf32> to vector<8x128xf32>
    %c1_8 = arith.constant 1 : index
    %c0_9 = arith.constant 0 : index
    %c0_10 = arith.constant 0 : index
    %11 = vector.load %arg4[%c1_8, %c0_9, %c0_10] : memref<2x1x128xf32, #tpu.memory_space<vmem>>, vector<1x1x128xf32>
    %12 = vector.shape_cast %11 : vector<1x1x128xf32> to vector<1x128xf32>
    %13 = vector.shape_cast %12 : vector<1x128xf32> to vector<1x128xf32>
    %14 = vector.broadcast %13 : vector<1x128xf32> to vector<8x128xf32>
    %c0_11 = arith.constant 0 : index
    %c0_12 = arith.constant 0 : index
    %c0_13 = arith.constant 0 : index
    %15 = vector.load %arg7[%c0_11, %c0_12, %c0_13] : memref<2x8x128xf32, #tpu.memory_space<vmem>>, vector<1x8x128xf32>
    %16 = vector.shape_cast %15 : vector<1x8x128xf32> to vector<8x128xf32>
    %c1_14 = arith.constant 1 : index
    %c0_15 = arith.constant 0 : index
    %c0_16 = arith.constant 0 : index
    %17 = vector.load %arg7[%c1_14, %c0_15, %c0_16] : memref<2x8x128xf32, #tpu.memory_space<vmem>>, vector<1x8x128xf32>
    %18 = vector.shape_cast %17 : vector<1x8x128xf32> to vector<8x128xf32>
    %c0_17 = arith.constant 0 : index
    %c0_18 = arith.constant 0 : index
    %c0_19 = arith.constant 0 : index
    %c0_20 = arith.constant 0 : index
    %19 = vector.load %arg1[%c0_17, %c0_18, %c0_19, %c0_20] : memref<1x8x8x384xbf16, #tpu.memory_space<vmem>>, vector<1x1x8x384xbf16>
    %20 = vector.shape_cast %19 : vector<1x1x8x384xbf16> to vector<8x384xbf16>
    %21 = arith.extf %20 : vector<8x384xbf16> to vector<8x384xf32>
    %22 = arith.truncf %16 : vector<8x128xf32> to vector<8x128xbf16>
    %cst = arith.constant dense<0.000000e+00> : vector<8x384xf32>
    %23 = tpu.matmul %22, %4, %cst {dimension_numbers = #tpu.dot_dimension_numbers<[1], [0], [0], [1], [0, 0, 1, 1], [], []>} : vector<8x128xbf16>, vector<128x384xbf16>, vector<8x384xf32> -> vector<8x384xf32>
    %24 = vector.extract_strided_slice %21 {offsets = [0, 0], sizes = [8, 128], strides = [1, 1]} : vector<8x384xf32> to vector<8x128xf32>
    %25 = vector.extract_strided_slice %23 {offsets = [0, 0], sizes = [8, 128], strides = [1, 1]} : vector<8x384xf32> to vector<8x128xf32>
    %26 = arith.addf %24, %25 : vector<8x128xf32>
    %27 = arith.negf %26 : vector<8x128xf32>
    %28 = math.exp %27 : vector<8x128xf32>
    %cst_21 = arith.constant 1.000000e+00 : f32
    %29 = vector.broadcast %cst_21 : f32 to vector<8x128xf32>
    %30 = arith.addf %29, %28 : vector<8x128xf32>
    %31 = arith.divf %29, %30 : vector<8x128xf32>
    %32 = vector.extract_strided_slice %21 {offsets = [0, 128], sizes = [8, 128], strides = [1, 1]} : vector<8x384xf32> to vector<8x128xf32>
    %33 = vector.extract_strided_slice %23 {offsets = [0, 128], sizes = [8, 128], strides = [1, 1]} : vector<8x384xf32> to vector<8x128xf32>
    %34 = arith.addf %32, %33 : vector<8x128xf32>
    %35 = arith.negf %34 : vector<8x128xf32>
    %36 = math.exp %35 : vector<8x128xf32>
    %cst_22 = arith.constant 1.000000e+00 : f32
    %37 = vector.broadcast %cst_22 : f32 to vector<8x128xf32>
    %38 = arith.addf %37, %36 : vector<8x128xf32>
    %39 = arith.divf %37, %38 : vector<8x128xf32>
    %40 = vector.extract_strided_slice %21 {offsets = [0, 256], sizes = [8, 128], strides = [1, 1]} : vector<8x384xf32> to vector<8x128xf32>
    %41 = vector.extract_strided_slice %23 {offsets = [0, 256], sizes = [8, 128], strides = [1, 1]} : vector<8x384xf32> to vector<8x128xf32>
    %42 = arith.addf %41, %10 : vector<8x128xf32>
    %43 = arith.mulf %31, %42 : vector<8x128xf32>
    %44 = arith.addf %40, %43 : vector<8x128xf32>
    %45 = math.tanh %44 : vector<8x128xf32>
    %cst_23 = arith.constant 1.000000e+00 : f32
    %46 = vector.broadcast %cst_23 : f32 to vector<8x128xf32>
    %47 = arith.subf %46, %39 : vector<8x128xf32>
    %48 = arith.mulf %47, %45 : vector<8x128xf32>
    %49 = arith.mulf %39, %16 : vector<8x128xf32>
    %50 = arith.addf %48, %49 : vector<8x128xf32>
    %c0_24 = arith.constant 0 : index
    %c0_25 = arith.constant 0 : index
    %c0_26 = arith.constant 0 : index
    %51 = vector.load %arg5[%c0_24, %c0_25, %c0_26] : memref<8x8x128xf32, #tpu.memory_space<vmem>>, vector<1x8x128xf32>
    %52 = vector.shape_cast %51 : vector<1x8x128xf32> to vector<8x128xf32>
    %53 = vector.shape_cast %50 : vector<8x128xf32> to vector<1x8x128xf32>
    tpu.vector_store %arg5[%c0_24, %c0_25, %c0_26], %53 {strides = array<i32>} : memref<8x8x128xf32, #tpu.memory_space<vmem>>, vector<1x8x128xf32>,
    %c0_27 = arith.constant 0 : index
    %c7 = arith.constant 7 : index
    %c0_28 = arith.constant 0 : index
    %c0_29 = arith.constant 0 : index
    %54 = vector.load %arg2[%c0_27, %c7, %c0_28, %c0_29] : memref<1x8x8x384xbf16, #tpu.memory_space<vmem>>, vector<1x1x8x384xbf16>
    %55 = vector.shape_cast %54 : vector<1x1x8x384xbf16> to vector<8x384xbf16>
    %56 = arith.extf %55 : vector<8x384xbf16> to vector<8x384xf32>
    %57 = arith.truncf %18 : vector<8x128xf32> to vector<8x128xbf16>
    %cst_30 = arith.constant dense<0.000000e+00> : vector<8x384xf32>
    %58 = tpu.matmul %57, %6, %cst_30 {dimension_numbers = #tpu.dot_dimension_numbers<[1], [0], [0], [1], [0, 0, 1, 1], [], []>} : vector<8x128xbf16>, vector<128x384xbf16>, vector<8x384xf32> -> vector<8x384xf32>
    %59 = vector.extract_strided_slice %56 {offsets = [0, 0], sizes = [8, 128], strides = [1, 1]} : vector<8x384xf32> to vector<8x128xf32>
    %60 = vector.extract_strided_slice %58 {offsets = [0, 0], sizes = [8, 128], strides = [1, 1]} : vector<8x384xf32> to vector<8x128xf32>
    %61 = arith.addf %59, %60 : vector<8x128xf32>
    %62 = arith.negf %61 : vector<8x128xf32>
    %63 = math.exp %62 : vector<8x128xf32>
    %cst_31 = arith.constant 1.000000e+00 : f32
    %64 = vector.broadcast %cst_31 : f32 to vector<8x128xf32>
    %65 = arith.addf %64, %63 : vector<8x128xf32>
    %66 = arith.divf %64, %65 : vector<8x128xf32>
    %67 = vector.extract_strided_slice %56 {offsets = [0, 128], sizes = [8, 128], strides = [1, 1]} : vector<8x384xf32> to vector<8x128xf32>
    %68 = vector.extract_strided_slice %58 {offsets = [0, 128], sizes = [8, 128], strides = [1, 1]} : vector<8x384xf32> to vector<8x128xf32>
    %69 = arith.addf %67, %68 : vector<8x128xf32>
    %70 = arith.negf %69 : vector<8x128xf32>
    %71 = math.exp %70 : vector<8x128xf32>
    %cst_32 = arith.constant 1.000000e+00 : f32
    %72 = vector.broadcast %cst_32 : f32 to vector<8x128xf32>
    %73 = arith.addf %72, %71 : vector<8x128xf32>
    %74 = arith.divf %72, %73 : vector<8x128xf32>
    %75 = vector.extract_strided_slice %56 {offsets = [0, 256], sizes = [8, 128], strides = [1, 1]} : vector<8x384xf32> to vector<8x128xf32>
    %76 = vector.extract_strided_slice %58 {offsets = [0, 256], sizes = [8, 128], strides = [1, 1]} : vector<8x384xf32> to vector<8x128xf32>
    %77 = arith.addf %76, %14 : vector<8x128xf32>
    %78 = arith.mulf %66, %77 : vector<8x128xf32>
    %79 = arith.addf %75, %78 : vector<8x128xf32>
    %80 = math.tanh %79 : vector<8x128xf32>
    %cst_33 = arith.constant 1.000000e+00 : f32
    %81 = vector.broadcast %cst_33 : f32 to vector<8x128xf32>
    %82 = arith.subf %81, %74 : vector<8x128xf32>
    %83 = arith.mulf %82, %80 : vector<8x128xf32>
    %84 = arith.mulf %74, %18 : vector<8x128xf32>
    %85 = arith.addf %83, %84 : vector<8x128xf32>
    %c7_34 = arith.constant 7 : index
    %c0_35 = arith.constant 0 : index
    %c0_36 = arith.constant 0 : index
    %86 = vector.load %arg6[%c7_34, %c0_35, %c0_36] : memref<8x8x128xf32, #tpu.memory_space<vmem>>, vector<1x8x128xf32>
    %87 = vector.shape_cast %86 : vector<1x8x128xf32> to vector<8x128xf32>
    %88 = vector.shape_cast %85 : vector<8x128xf32> to vector<1x8x128xf32>
    tpu.vector_store %arg6[%c7_34, %c0_35, %c0_36], %88 {strides = array<i32>} : memref<8x8x128xf32, #tpu.memory_space<vmem>>, vector<1x8x128xf32>,
    %c0_37 = arith.constant 0 : index
    %c1_38 = arith.constant 1 : index
    %c0_39 = arith.constant 0 : index
    %c0_40 = arith.constant 0 : index
    %89 = vector.load %arg1[%c0_37, %c1_38, %c0_39, %c0_40] : memref<1x8x8x384xbf16, #tpu.memory_space<vmem>>, vector<1x1x8x384xbf16>
    %90 = vector.shape_cast %89 : vector<1x1x8x384xbf16> to vector<8x384xbf16>
    %91 = arith.extf %90 : vector<8x384xbf16> to vector<8x384xf32>
    %92 = arith.truncf %50 : vector<8x128xf32> to vector<8x128xbf16>
    %cst_41 = arith.constant dense<0.000000e+00> : vector<8x384xf32>
    %93 = tpu.matmul %92, %4, %cst_41 {dimension_numbers = #tpu.dot_dimension_numbers<[1], [0], [0], [1], [0, 0, 1, 1], [], []>} : vector<8x128xbf16>, vector<128x384xbf16>, vector<8x384xf32> -> vector<8x384xf32>
    %94 = vector.extract_strided_slice %91 {offsets = [0, 0], sizes = [8, 128], strides = [1, 1]} : vector<8x384xf32> to vector<8x128xf32>
    %95 = vector.extract_strided_slice %93 {offsets = [0, 0], sizes = [8, 128], strides = [1, 1]} : vector<8x384xf32> to vector<8x128xf32>
    %96 = arith.addf %94, %95 : vector<8x128xf32>
    %97 = arith.negf %96 : vector<8x128xf32>
    %98 = math.exp %97 : vector<8x128xf32>
    %cst_42 = arith.constant 1.000000e+00 : f32
    %99 = vector.broadcast %cst_42 : f32 to vector<8x128xf32>
    %100 = arith.addf %99, %98 : vector<8x128xf32>
    %101 = arith.divf %99, %100 : vector<8x128xf32>
    %102 = vector.extract_strided_slice %91 {offsets = [0, 128], sizes = [8, 128], strides = [1, 1]} : vector<8x384xf32> to vector<8x128xf32>
    %103 = vector.extract_strided_slice %93 {offsets = [0, 128], sizes = [8, 128], strides = [1, 1]} : vector<8x384xf32> to vector<8x128xf32>
    %104 = arith.addf %102, %103 : vector<8x128xf32>
    %105 = arith.negf %104 : vector<8x128xf32>
    %106 = math.exp %105 : vector<8x128xf32>
    %cst_43 = arith.constant 1.000000e+00 : f32
    %107 = vector.broadcast %cst_43 : f32 to vector<8x128xf32>
    %108 = arith.addf %107, %106 : vector<8x128xf32>
    %109 = arith.divf %107, %108 : vector<8x128xf32>
    %110 = vector.extract_strided_slice %91 {offsets = [0, 256], sizes = [8, 128], strides = [1, 1]} : vector<8x384xf32> to vector<8x128xf32>
    %111 = vector.extract_strided_slice %93 {offsets = [0, 256], sizes = [8, 128], strides = [1, 1]} : vector<8x384xf32> to vector<8x128xf32>
    %112 = arith.addf %111, %10 : vector<8x128xf32>
    %113 = arith.mulf %101, %112 : vector<8x128xf32>
    %114 = arith.addf %110, %113 : vector<8x128xf32>
    %115 = math.tanh %114 : vector<8x128xf32>
    %cst_44 = arith.constant 1.000000e+00 : f32
    %116 = vector.broadcast %cst_44 : f32 to vector<8x128xf32>
    %117 = arith.subf %116, %109 : vector<8x128xf32>
    %118 = arith.mulf %117, %115 : vector<8x128xf32>
    %119 = arith.mulf %109, %50 : vector<8x128xf32>
    %120 = arith.addf %118, %119 : vector<8x128xf32>
    %c1_45 = arith.constant 1 : index
    %c0_46 = arith.constant 0 : index
    %c0_47 = arith.constant 0 : index
    %121 = vector.load %arg5[%c1_45, %c0_46, %c0_47] : memref<8x8x128xf32, #tpu.memory_space<vmem>>, vector<1x8x128xf32>
    %122 = vector.shape_cast %121 : vector<1x8x128xf32> to vector<8x128xf32>
    %123 = vector.shape_cast %120 : vector<8x128xf32> to vector<1x8x128xf32>
    tpu.vector_store %arg5[%c1_45, %c0_46, %c0_47], %123 {strides = array<i32>} : memref<8x8x128xf32, #tpu.memory_space<vmem>>, vector<1x8x128xf32>,
    %c0_48 = arith.constant 0 : index
    %c6 = arith.constant 6 : index
    %c0_49 = arith.constant 0 : index
    %c0_50 = arith.constant 0 : index
    %124 = vector.load %arg2[%c0_48, %c6, %c0_49, %c0_50] : memref<1x8x8x384xbf16, #tpu.memory_space<vmem>>, vector<1x1x8x384xbf16>
    %125 = vector.shape_cast %124 : vector<1x1x8x384xbf16> to vector<8x384xbf16>
    %126 = arith.extf %125 : vector<8x384xbf16> to vector<8x384xf32>
    %127 = arith.truncf %85 : vector<8x128xf32> to vector<8x128xbf16>
    %cst_51 = arith.constant dense<0.000000e+00> : vector<8x384xf32>
    %128 = tpu.matmul %127, %6, %cst_51 {dimension_numbers = #tpu.dot_dimension_numbers<[1], [0], [0], [1], [0, 0, 1, 1], [], []>} : vector<8x128xbf16>, vector<128x384xbf16>, vector<8x384xf32> -> vector<8x384xf32>
    %129 = vector.extract_strided_slice %126 {offsets = [0, 0], sizes = [8, 128], strides = [1, 1]} : vector<8x384xf32> to vector<8x128xf32>
    %130 = vector.extract_strided_slice %128 {offsets = [0, 0], sizes = [8, 128], strides = [1, 1]} : vector<8x384xf32> to vector<8x128xf32>
    %131 = arith.addf %129, %130 : vector<8x128xf32>
    %132 = arith.negf %131 : vector<8x128xf32>
    %133 = math.exp %132 : vector<8x128xf32>
    %cst_52 = arith.constant 1.000000e+00 : f32
    %134 = vector.broadcast %cst_52 : f32 to vector<8x128xf32>
    %135 = arith.addf %134, %133 : vector<8x128xf32>
    %136 = arith.divf %134, %135 : vector<8x128xf32>
    %137 = vector.extract_strided_slice %126 {offsets = [0, 128], sizes = [8, 128], strides = [1, 1]} : vector<8x384xf32> to vector<8x128xf32>
    %138 = vector.extract_strided_slice %128 {offsets = [0, 128], sizes = [8, 128], strides = [1, 1]} : vector<8x384xf32> to vector<8x128xf32>
    %139 = arith.addf %137, %138 : vector<8x128xf32>
    %140 = arith.negf %139 : vector<8x128xf32>
    %141 = math.exp %140 : vector<8x128xf32>
    %cst_53 = arith.constant 1.000000e+00 : f32
    %142 = vector.broadcast %cst_53 : f32 to vector<8x128xf32>
    %143 = arith.addf %142, %141 : vector<8x128xf32>
    %144 = arith.divf %142, %143 : vector<8x128xf32>
    %145 = vector.extract_strided_slice %126 {offsets = [0, 256], sizes = [8, 128], strides = [1, 1]} : vector<8x384xf32> to vector<8x128xf32>
    %146 = vector.extract_strided_slice %128 {offsets = [0, 256], sizes = [8, 128], strides = [1, 1]} : vector<8x384xf32> to vector<8x128xf32>
    %147 = arith.addf %146, %14 : vector<8x128xf32>
    %148 = arith.mulf %136, %147 : vector<8x128xf32>
    %149 = arith.addf %145, %148 : vector<8x128xf32>
    %150 = math.tanh %149 : vector<8x128xf32>
    %cst_54 = arith.constant 1.000000e+00 : f32
    %151 = vector.broadcast %cst_54 : f32 to vector<8x128xf32>
    %152 = arith.subf %151, %144 : vector<8x128xf32>
    %153 = arith.mulf %152, %150 : vector<8x128xf32>
    %154 = arith.mulf %144, %85 : vector<8x128xf32>
    %155 = arith.addf %153, %154 : vector<8x128xf32>
    %c6_55 = arith.constant 6 : index
    %c0_56 = arith.constant 0 : index
    %c0_57 = arith.constant 0 : index
    %156 = vector.load %arg6[%c6_55, %c0_56, %c0_57] : memref<8x8x128xf32, #tpu.memory_space<vmem>>, vector<1x8x128xf32>
    %157 = vector.shape_cast %156 : vector<1x8x128xf32> to vector<8x128xf32>
    %158 = vector.shape_cast %155 : vector<8x128xf32> to vector<1x8x128xf32>
    tpu.vector_store %arg6[%c6_55, %c0_56, %c0_57], %158 {strides = array<i32>} : memref<8x8x128xf32, #tpu.memory_space<vmem>>, vector<1x8x128xf32>,
    %c0_58 = arith.constant 0 : index
    %c2 = arith.constant 2 : index
    %c0_59 = arith.constant 0 : index
    %c0_60 = arith.constant 0 : index
    %159 = vector.load %arg1[%c0_58, %c2, %c0_59, %c0_60] : memref<1x8x8x384xbf16, #tpu.memory_space<vmem>>, vector<1x1x8x384xbf16>
    %160 = vector.shape_cast %159 : vector<1x1x8x384xbf16> to vector<8x384xbf16>
    %161 = arith.extf %160 : vector<8x384xbf16> to vector<8x384xf32>
    %162 = arith.truncf %120 : vector<8x128xf32> to vector<8x128xbf16>
    %cst_61 = arith.constant dense<0.000000e+00> : vector<8x384xf32>
    %163 = tpu.matmul %162, %4, %cst_61 {dimension_numbers = #tpu.dot_dimension_numbers<[1], [0], [0], [1], [0, 0, 1, 1], [], []>} : vector<8x128xbf16>, vector<128x384xbf16>, vector<8x384xf32> -> vector<8x384xf32>
    %164 = vector.extract_strided_slice %161 {offsets = [0, 0], sizes = [8, 128], strides = [1, 1]} : vector<8x384xf32> to vector<8x128xf32>
    %165 = vector.extract_strided_slice %163 {offsets = [0, 0], sizes = [8, 128], strides = [1, 1]} : vector<8x384xf32> to vector<8x128xf32>
    %166 = arith.addf %164, %165 : vector<8x128xf32>
    %167 = arith.negf %166 : vector<8x128xf32>
    %168 = math.exp %167 : vector<8x128xf32>
    %cst_62 = arith.constant 1.000000e+00 : f32
    %169 = vector.broadcast %cst_62 : f32 to vector<8x128xf32>
    %170 = arith.addf %169, %168 : vector<8x128xf32>
    %171 = arith.divf %169, %170 : vector<8x128xf32>
    %172 = vector.extract_strided_slice %161 {offsets = [0, 128], sizes = [8, 128], strides = [1, 1]} : vector<8x384xf32> to vector<8x128xf32>
    %173 = vector.extract_strided_slice %163 {offsets = [0, 128], sizes = [8, 128], strides = [1, 1]} : vector<8x384xf32> to vector<8x128xf32>
    %174 = arith.addf %172, %173 : vector<8x128xf32>
    %175 = arith.negf %174 : vector<8x128xf32>
    %176 = math.exp %175 : vector<8x128xf32>
    %cst_63 = arith.constant 1.000000e+00 : f32
    %177 = vector.broadcast %cst_63 : f32 to vector<8x128xf32>
    %178 = arith.addf %177, %176 : vector<8x128xf32>
    %179 = arith.divf %177, %178 : vector<8x128xf32>
    %180 = vector.extract_strided_slice %161 {offsets = [0, 256], sizes = [8, 128], strides = [1, 1]} : vector<8x384xf32> to vector<8x128xf32>
    %181 = vector.extract_strided_slice %163 {offsets = [0, 256], sizes = [8, 128], strides = [1, 1]} : vector<8x384xf32> to vector<8x128xf32>
    %182 = arith.addf %181, %10 : vector<8x128xf32>
    %183 = arith.mulf %171, %182 : vector<8x128xf32>
    %184 = arith.addf %180, %183 : vector<8x128xf32>
    %185 = math.tanh %184 : vector<8x128xf32>
    %cst_64 = arith.constant 1.000000e+00 : f32
    %186 = vector.broadcast %cst_64 : f32 to vector<8x128xf32>
    %187 = arith.subf %186, %179 : vector<8x128xf32>
    %188 = arith.mulf %187, %185 : vector<8x128xf32>
    %189 = arith.mulf %179, %120 : vector<8x128xf32>
    %190 = arith.addf %188, %189 : vector<8x128xf32>
    %c2_65 = arith.constant 2 : index
    %c0_66 = arith.constant 0 : index
    %c0_67 = arith.constant 0 : index
    %191 = vector.load %arg5[%c2_65, %c0_66, %c0_67] : memref<8x8x128xf32, #tpu.memory_space<vmem>>, vector<1x8x128xf32>
    %192 = vector.shape_cast %191 : vector<1x8x128xf32> to vector<8x128xf32>
    %193 = vector.shape_cast %190 : vector<8x128xf32> to vector<1x8x128xf32>
    tpu.vector_store %arg5[%c2_65, %c0_66, %c0_67], %193 {strides = array<i32>} : memref<8x8x128xf32, #tpu.memory_space<vmem>>, vector<1x8x128xf32>,
    %c0_68 = arith.constant 0 : index
    %c5 = arith.constant 5 : index
    %c0_69 = arith.constant 0 : index
    %c0_70 = arith.constant 0 : index
    %194 = vector.load %arg2[%c0_68, %c5, %c0_69, %c0_70] : memref<1x8x8x384xbf16, #tpu.memory_space<vmem>>, vector<1x1x8x384xbf16>
    %195 = vector.shape_cast %194 : vector<1x1x8x384xbf16> to vector<8x384xbf16>
    %196 = arith.extf %195 : vector<8x384xbf16> to vector<8x384xf32>
    %197 = arith.truncf %155 : vector<8x128xf32> to vector<8x128xbf16>
    %cst_71 = arith.constant dense<0.000000e+00> : vector<8x384xf32>
    %198 = tpu.matmul %197, %6, %cst_71 {dimension_numbers = #tpu.dot_dimension_numbers<[1], [0], [0], [1], [0, 0, 1, 1], [], []>} : vector<8x128xbf16>, vector<128x384xbf16>, vector<8x384xf32> -> vector<8x384xf32>
    %199 = vector.extract_strided_slice %196 {offsets = [0, 0], sizes = [8, 128], strides = [1, 1]} : vector<8x384xf32> to vector<8x128xf32>
    %200 = vector.extract_strided_slice %198 {offsets = [0, 0], sizes = [8, 128], strides = [1, 1]} : vector<8x384xf32> to vector<8x128xf32>
    %201 = arith.addf %199, %200 : vector<8x128xf32>
    %202 = arith.negf %201 : vector<8x128xf32>
    %203 = math.exp %202 : vector<8x128xf32>
    %cst_72 = arith.constant 1.000000e+00 : f32
    %204 = vector.broadcast %cst_72 : f32 to vector<8x128xf32>
    %205 = arith.addf %204, %203 : vector<8x128xf32>
    %206 = arith.divf %204, %205 : vector<8x128xf32>
    %207 = vector.extract_strided_slice %196 {offsets = [0, 128], sizes = [8, 128], strides = [1, 1]} : vector<8x384xf32> to vector<8x128xf32>
    %208 = vector.extract_strided_slice %198 {offsets = [0, 128], sizes = [8, 128], strides = [1, 1]} : vector<8x384xf32> to vector<8x128xf32>
    %209 = arith.addf %207, %208 : vector<8x128xf32>
    %210 = arith.negf %209 : vector<8x128xf32>
    %211 = math.exp %210 : vector<8x128xf32>
    %cst_73 = arith.constant 1.000000e+00 : f32
    %212 = vector.broadcast %cst_73 : f32 to vector<8x128xf32>
    %213 = arith.addf %212, %211 : vector<8x128xf32>
    %214 = arith.divf %212, %213 : vector<8x128xf32>
    %215 = vector.extract_strided_slice %196 {offsets = [0, 256], sizes = [8, 128], strides = [1, 1]} : vector<8x384xf32> to vector<8x128xf32>
    %216 = vector.extract_strided_slice %198 {offsets = [0, 256], sizes = [8, 128], strides = [1, 1]} : vector<8x384xf32> to vector<8x128xf32>
    %217 = arith.addf %216, %14 : vector<8x128xf32>
    %218 = arith.mulf %206, %217 : vector<8x128xf32>
    %219 = arith.addf %215, %218 : vector<8x128xf32>
    %220 = math.tanh %219 : vector<8x128xf32>
    %cst_74 = arith.constant 1.000000e+00 : f32
    %221 = vector.broadcast %cst_74 : f32 to vector<8x128xf32>
    %222 = arith.subf %221, %214 : vector<8x128xf32>
    %223 = arith.mulf %222, %220 : vector<8x128xf32>
    %224 = arith.mulf %214, %155 : vector<8x128xf32>
    %225 = arith.addf %223, %224 : vector<8x128xf32>
    %c5_75 = arith.constant 5 : index
    %c0_76 = arith.constant 0 : index
    %c0_77 = arith.constant 0 : index
    %226 = vector.load %arg6[%c5_75, %c0_76, %c0_77] : memref<8x8x128xf32, #tpu.memory_space<vmem>>, vector<1x8x128xf32>
    %227 = vector.shape_cast %226 : vector<1x8x128xf32> to vector<8x128xf32>
    %228 = vector.shape_cast %225 : vector<8x128xf32> to vector<1x8x128xf32>
    tpu.vector_store %arg6[%c5_75, %c0_76, %c0_77], %228 {strides = array<i32>} : memref<8x8x128xf32, #tpu.memory_space<vmem>>, vector<1x8x128xf32>,
    %c0_78 = arith.constant 0 : index
    %c3 = arith.constant 3 : index
    %c0_79 = arith.constant 0 : index
    %c0_80 = arith.constant 0 : index
    %229 = vector.load %arg1[%c0_78, %c3, %c0_79, %c0_80] : memref<1x8x8x384xbf16, #tpu.memory_space<vmem>>, vector<1x1x8x384xbf16>
    %230 = vector.shape_cast %229 : vector<1x1x8x384xbf16> to vector<8x384xbf16>
    %231 = arith.extf %230 : vector<8x384xbf16> to vector<8x384xf32>
    %232 = arith.truncf %190 : vector<8x128xf32> to vector<8x128xbf16>
    %cst_81 = arith.constant dense<0.000000e+00> : vector<8x384xf32>
    %233 = tpu.matmul %232, %4, %cst_81 {dimension_numbers = #tpu.dot_dimension_numbers<[1], [0], [0], [1], [0, 0, 1, 1], [], []>} : vector<8x128xbf16>, vector<128x384xbf16>, vector<8x384xf32> -> vector<8x384xf32>
    %234 = vector.extract_strided_slice %231 {offsets = [0, 0], sizes = [8, 128], strides = [1, 1]} : vector<8x384xf32> to vector<8x128xf32>
    %235 = vector.extract_strided_slice %233 {offsets = [0, 0], sizes = [8, 128], strides = [1, 1]} : vector<8x384xf32> to vector<8x128xf32>
    %236 = arith.addf %234, %235 : vector<8x128xf32>
    %237 = arith.negf %236 : vector<8x128xf32>
    %238 = math.exp %237 : vector<8x128xf32>
    %cst_82 = arith.constant 1.000000e+00 : f32
    %239 = vector.broadcast %cst_82 : f32 to vector<8x128xf32>
    %240 = arith.addf %239, %238 : vector<8x128xf32>
    %241 = arith.divf %239, %240 : vector<8x128xf32>
    %242 = vector.extract_strided_slice %231 {offsets = [0, 128], sizes = [8, 128], strides = [1, 1]} : vector<8x384xf32> to vector<8x128xf32>
    %243 = vector.extract_strided_slice %233 {offsets = [0, 128], sizes = [8, 128], strides = [1, 1]} : vector<8x384xf32> to vector<8x128xf32>
    %244 = arith.addf %242, %243 : vector<8x128xf32>
    %245 = arith.negf %244 : vector<8x128xf32>
    %246 = math.exp %245 : vector<8x128xf32>
    %cst_83 = arith.constant 1.000000e+00 : f32
    %247 = vector.broadcast %cst_83 : f32 to vector<8x128xf32>
    %248 = arith.addf %247, %246 : vector<8x128xf32>
    %249 = arith.divf %247, %248 : vector<8x128xf32>
    %250 = vector.extract_strided_slice %231 {offsets = [0, 256], sizes = [8, 128], strides = [1, 1]} : vector<8x384xf32> to vector<8x128xf32>
    %251 = vector.extract_strided_slice %233 {offsets = [0, 256], sizes = [8, 128], strides = [1, 1]} : vector<8x384xf32> to vector<8x128xf32>
    %252 = arith.addf %251, %10 : vector<8x128xf32>
    %253 = arith.mulf %241, %252 : vector<8x128xf32>
    %254 = arith.addf %250, %253 : vector<8x128xf32>
    %255 = math.tanh %254 : vector<8x128xf32>
    %cst_84 = arith.constant 1.000000e+00 : f32
    %256 = vector.broadcast %cst_84 : f32 to vector<8x128xf32>
    %257 = arith.subf %256, %249 : vector<8x128xf32>
    %258 = arith.mulf %257, %255 : vector<8x128xf32>
    %259 = arith.mulf %249, %190 : vector<8x128xf32>
    %260 = arith.addf %258, %259 : vector<8x128xf32>
    %c3_85 = arith.constant 3 : index
    %c0_86 = arith.constant 0 : index
    %c0_87 = arith.constant 0 : index
    %261 = vector.load %arg5[%c3_85, %c0_86, %c0_87] : memref<8x8x128xf32, #tpu.memory_space<vmem>>, vector<1x8x128xf32>
    %262 = vector.shape_cast %261 : vector<1x8x128xf32> to vector<8x128xf32>
    %263 = vector.shape_cast %260 : vector<8x128xf32> to vector<1x8x128xf32>
    tpu.vector_store %arg5[%c3_85, %c0_86, %c0_87], %263 {strides = array<i32>} : memref<8x8x128xf32, #tpu.memory_space<vmem>>, vector<1x8x128xf32>,
    %c0_88 = arith.constant 0 : index
    %c4 = arith.constant 4 : index
    %c0_89 = arith.constant 0 : index
    %c0_90 = arith.constant 0 : index
    %264 = vector.load %arg2[%c0_88, %c4, %c0_89, %c0_90] : memref<1x8x8x384xbf16, #tpu.memory_space<vmem>>, vector<1x1x8x384xbf16>
    %265 = vector.shape_cast %264 : vector<1x1x8x384xbf16> to vector<8x384xbf16>
    %266 = arith.extf %265 : vector<8x384xbf16> to vector<8x384xf32>
    %267 = arith.truncf %225 : vector<8x128xf32> to vector<8x128xbf16>
    %cst_91 = arith.constant dense<0.000000e+00> : vector<8x384xf32>
    %268 = tpu.matmul %267, %6, %cst_91 {dimension_numbers = #tpu.dot_dimension_numbers<[1], [0], [0], [1], [0, 0, 1, 1], [], []>} : vector<8x128xbf16>, vector<128x384xbf16>, vector<8x384xf32> -> vector<8x384xf32>
    %269 = vector.extract_strided_slice %266 {offsets = [0, 0], sizes = [8, 128], strides = [1, 1]} : vector<8x384xf32> to vector<8x128xf32>
    %270 = vector.extract_strided_slice %268 {offsets = [0, 0], sizes = [8, 128], strides = [1, 1]} : vector<8x384xf32> to vector<8x128xf32>
    %271 = arith.addf %269, %270 : vector<8x128xf32>
    %272 = arith.negf %271 : vector<8x128xf32>
    %273 = math.exp %272 : vector<8x128xf32>
    %cst_92 = arith.constant 1.000000e+00 : f32
    %274 = vector.broadcast %cst_92 : f32 to vector<8x128xf32>
    %275 = arith.addf %274, %273 : vector<8x128xf32>
    %276 = arith.divf %274, %275 : vector<8x128xf32>
    %277 = vector.extract_strided_slice %266 {offsets = [0, 128], sizes = [8, 128], strides = [1, 1]} : vector<8x384xf32> to vector<8x128xf32>
    %278 = vector.extract_strided_slice %268 {offsets = [0, 128], sizes = [8, 128], strides = [1, 1]} : vector<8x384xf32> to vector<8x128xf32>
    %279 = arith.addf %277, %278 : vector<8x128xf32>
    %280 = arith.negf %279 : vector<8x128xf32>
    %281 = math.exp %280 : vector<8x128xf32>
    %cst_93 = arith.constant 1.000000e+00 : f32
    %282 = vector.broadcast %cst_93 : f32 to vector<8x128xf32>
    %283 = arith.addf %282, %281 : vector<8x128xf32>
    %284 = arith.divf %282, %283 : vector<8x128xf32>
    %285 = vector.extract_strided_slice %266 {offsets = [0, 256], sizes = [8, 128], strides = [1, 1]} : vector<8x384xf32> to vector<8x128xf32>
    %286 = vector.extract_strided_slice %268 {offsets = [0, 256], sizes = [8, 128], strides = [1, 1]} : vector<8x384xf32> to vector<8x128xf32>
    %287 = arith.addf %286, %14 : vector<8x128xf32>
    %288 = arith.mulf %276, %287 : vector<8x128xf32>
    %289 = arith.addf %285, %288 : vector<8x128xf32>
    %290 = math.tanh %289 : vector<8x128xf32>
    %cst_94 = arith.constant 1.000000e+00 : f32
    %291 = vector.broadcast %cst_94 : f32 to vector<8x128xf32>
    %292 = arith.subf %291, %284 : vector<8x128xf32>
    %293 = arith.mulf %292, %290 : vector<8x128xf32>
    %294 = arith.mulf %284, %225 : vector<8x128xf32>
    %295 = arith.addf %293, %294 : vector<8x128xf32>
    %c4_95 = arith.constant 4 : index
    %c0_96 = arith.constant 0 : index
    %c0_97 = arith.constant 0 : index
    %296 = vector.load %arg6[%c4_95, %c0_96, %c0_97] : memref<8x8x128xf32, #tpu.memory_space<vmem>>, vector<1x8x128xf32>
    %297 = vector.shape_cast %296 : vector<1x8x128xf32> to vector<8x128xf32>
    %298 = vector.shape_cast %295 : vector<8x128xf32> to vector<1x8x128xf32>
    tpu.vector_store %arg6[%c4_95, %c0_96, %c0_97], %298 {strides = array<i32>} : memref<8x8x128xf32, #tpu.memory_space<vmem>>, vector<1x8x128xf32>,
    %c0_98 = arith.constant 0 : index
    %c4_99 = arith.constant 4 : index
    %c0_100 = arith.constant 0 : index
    %c0_101 = arith.constant 0 : index
    %299 = vector.load %arg1[%c0_98, %c4_99, %c0_100, %c0_101] : memref<1x8x8x384xbf16, #tpu.memory_space<vmem>>, vector<1x1x8x384xbf16>
    %300 = vector.shape_cast %299 : vector<1x1x8x384xbf16> to vector<8x384xbf16>
    %301 = arith.extf %300 : vector<8x384xbf16> to vector<8x384xf32>
    %302 = arith.truncf %260 : vector<8x128xf32> to vector<8x128xbf16>
    %cst_102 = arith.constant dense<0.000000e+00> : vector<8x384xf32>
    %303 = tpu.matmul %302, %4, %cst_102 {dimension_numbers = #tpu.dot_dimension_numbers<[1], [0], [0], [1], [0, 0, 1, 1], [], []>} : vector<8x128xbf16>, vector<128x384xbf16>, vector<8x384xf32> -> vector<8x384xf32>
    %304 = vector.extract_strided_slice %301 {offsets = [0, 0], sizes = [8, 128], strides = [1, 1]} : vector<8x384xf32> to vector<8x128xf32>
    %305 = vector.extract_strided_slice %303 {offsets = [0, 0], sizes = [8, 128], strides = [1, 1]} : vector<8x384xf32> to vector<8x128xf32>
    %306 = arith.addf %304, %305 : vector<8x128xf32>
    %307 = arith.negf %306 : vector<8x128xf32>
    %308 = math.exp %307 : vector<8x128xf32>
    %cst_103 = arith.constant 1.000000e+00 : f32
    %309 = vector.broadcast %cst_103 : f32 to vector<8x128xf32>
    %310 = arith.addf %309, %308 : vector<8x128xf32>
    %311 = arith.divf %309, %310 : vector<8x128xf32>
    %312 = vector.extract_strided_slice %301 {offsets = [0, 128], sizes = [8, 128], strides = [1, 1]} : vector<8x384xf32> to vector<8x128xf32>
    %313 = vector.extract_strided_slice %303 {offsets = [0, 128], sizes = [8, 128], strides = [1, 1]} : vector<8x384xf32> to vector<8x128xf32>
    %314 = arith.addf %312, %313 : vector<8x128xf32>
    %315 = arith.negf %314 : vector<8x128xf32>
    %316 = math.exp %315 : vector<8x128xf32>
    %cst_104 = arith.constant 1.000000e+00 : f32
    %317 = vector.broadcast %cst_104 : f32 to vector<8x128xf32>
    %318 = arith.addf %317, %316 : vector<8x128xf32>
    %319 = arith.divf %317, %318 : vector<8x128xf32>
    %320 = vector.extract_strided_slice %301 {offsets = [0, 256], sizes = [8, 128], strides = [1, 1]} : vector<8x384xf32> to vector<8x128xf32>
    %321 = vector.extract_strided_slice %303 {offsets = [0, 256], sizes = [8, 128], strides = [1, 1]} : vector<8x384xf32> to vector<8x128xf32>
    %322 = arith.addf %321, %10 : vector<8x128xf32>
    %323 = arith.mulf %311, %322 : vector<8x128xf32>
    %324 = arith.addf %320, %323 : vector<8x128xf32>
    %325 = math.tanh %324 : vector<8x128xf32>
    %cst_105 = arith.constant 1.000000e+00 : f32
    %326 = vector.broadcast %cst_105 : f32 to vector<8x128xf32>
    %327 = arith.subf %326, %319 : vector<8x128xf32>
    %328 = arith.mulf %327, %325 : vector<8x128xf32>
    %329 = arith.mulf %319, %260 : vector<8x128xf32>
    %330 = arith.addf %328, %329 : vector<8x128xf32>
    %c4_106 = arith.constant 4 : index
    %c0_107 = arith.constant 0 : index
    %c0_108 = arith.constant 0 : index
    %331 = vector.load %arg5[%c4_106, %c0_107, %c0_108] : memref<8x8x128xf32, #tpu.memory_space<vmem>>, vector<1x8x128xf32>
    %332 = vector.shape_cast %331 : vector<1x8x128xf32> to vector<8x128xf32>
    %333 = vector.shape_cast %330 : vector<8x128xf32> to vector<1x8x128xf32>
    tpu.vector_store %arg5[%c4_106, %c0_107, %c0_108], %333 {strides = array<i32>} : memref<8x8x128xf32, #tpu.memory_space<vmem>>, vector<1x8x128xf32>,
    %c0_109 = arith.constant 0 : index
    %c3_110 = arith.constant 3 : index
    %c0_111 = arith.constant 0 : index
    %c0_112 = arith.constant 0 : index
    %334 = vector.load %arg2[%c0_109, %c3_110, %c0_111, %c0_112] : memref<1x8x8x384xbf16, #tpu.memory_space<vmem>>, vector<1x1x8x384xbf16>
    %335 = vector.shape_cast %334 : vector<1x1x8x384xbf16> to vector<8x384xbf16>
    %336 = arith.extf %335 : vector<8x384xbf16> to vector<8x384xf32>
    %337 = arith.truncf %295 : vector<8x128xf32> to vector<8x128xbf16>
    %cst_113 = arith.constant dense<0.000000e+00> : vector<8x384xf32>
    %338 = tpu.matmul %337, %6, %cst_113 {dimension_numbers = #tpu.dot_dimension_numbers<[1], [0], [0], [1], [0, 0, 1, 1], [], []>} : vector<8x128xbf16>, vector<128x384xbf16>, vector<8x384xf32> -> vector<8x384xf32>
    %339 = vector.extract_strided_slice %336 {offsets = [0, 0], sizes = [8, 128], strides = [1, 1]} : vector<8x384xf32> to vector<8x128xf32>
    %340 = vector.extract_strided_slice %338 {offsets = [0, 0], sizes = [8, 128], strides = [1, 1]} : vector<8x384xf32> to vector<8x128xf32>
    %341 = arith.addf %339, %340 : vector<8x128xf32>
    %342 = arith.negf %341 : vector<8x128xf32>
    %343 = math.exp %342 : vector<8x128xf32>
    %cst_114 = arith.constant 1.000000e+00 : f32
    %344 = vector.broadcast %cst_114 : f32 to vector<8x128xf32>
    %345 = arith.addf %344, %343 : vector<8x128xf32>
    %346 = arith.divf %344, %345 : vector<8x128xf32>
    %347 = vector.extract_strided_slice %336 {offsets = [0, 128], sizes = [8, 128], strides = [1, 1]} : vector<8x384xf32> to vector<8x128xf32>
    %348 = vector.extract_strided_slice %338 {offsets = [0, 128], sizes = [8, 128], strides = [1, 1]} : vector<8x384xf32> to vector<8x128xf32>
    %349 = arith.addf %347, %348 : vector<8x128xf32>
    %350 = arith.negf %349 : vector<8x128xf32>
    %351 = math.exp %350 : vector<8x128xf32>
    %cst_115 = arith.constant 1.000000e+00 : f32
    %352 = vector.broadcast %cst_115 : f32 to vector<8x128xf32>
    %353 = arith.addf %352, %351 : vector<8x128xf32>
    %354 = arith.divf %352, %353 : vector<8x128xf32>
    %355 = vector.extract_strided_slice %336 {offsets = [0, 256], sizes = [8, 128], strides = [1, 1]} : vector<8x384xf32> to vector<8x128xf32>
    %356 = vector.extract_strided_slice %338 {offsets = [0, 256], sizes = [8, 128], strides = [1, 1]} : vector<8x384xf32> to vector<8x128xf32>
    %357 = arith.addf %356, %14 : vector<8x128xf32>
    %358 = arith.mulf %346, %357 : vector<8x128xf32>
    %359 = arith.addf %355, %358 : vector<8x128xf32>
    %360 = math.tanh %359 : vector<8x128xf32>
    %cst_116 = arith.constant 1.000000e+00 : f32
    %361 = vector.broadcast %cst_116 : f32 to vector<8x128xf32>
    %362 = arith.subf %361, %354 : vector<8x128xf32>
    %363 = arith.mulf %362, %360 : vector<8x128xf32>
    %364 = arith.mulf %354, %295 : vector<8x128xf32>
    %365 = arith.addf %363, %364 : vector<8x128xf32>
    %c3_117 = arith.constant 3 : index
    %c0_118 = arith.constant 0 : index
    %c0_119 = arith.constant 0 : index
    %366 = vector.load %arg6[%c3_117, %c0_118, %c0_119] : memref<8x8x128xf32, #tpu.memory_space<vmem>>, vector<1x8x128xf32>
    %367 = vector.shape_cast %366 : vector<1x8x128xf32> to vector<8x128xf32>
    %368 = vector.shape_cast %365 : vector<8x128xf32> to vector<1x8x128xf32>
    tpu.vector_store %arg6[%c3_117, %c0_118, %c0_119], %368 {strides = array<i32>} : memref<8x8x128xf32, #tpu.memory_space<vmem>>, vector<1x8x128xf32>,
    %c0_120 = arith.constant 0 : index
    %c5_121 = arith.constant 5 : index
    %c0_122 = arith.constant 0 : index
    %c0_123 = arith.constant 0 : index
    %369 = vector.load %arg1[%c0_120, %c5_121, %c0_122, %c0_123] : memref<1x8x8x384xbf16, #tpu.memory_space<vmem>>, vector<1x1x8x384xbf16>
    %370 = vector.shape_cast %369 : vector<1x1x8x384xbf16> to vector<8x384xbf16>
    %371 = arith.extf %370 : vector<8x384xbf16> to vector<8x384xf32>
    %372 = arith.truncf %330 : vector<8x128xf32> to vector<8x128xbf16>
    %cst_124 = arith.constant dense<0.000000e+00> : vector<8x384xf32>
    %373 = tpu.matmul %372, %4, %cst_124 {dimension_numbers = #tpu.dot_dimension_numbers<[1], [0], [0], [1], [0, 0, 1, 1], [], []>} : vector<8x128xbf16>, vector<128x384xbf16>, vector<8x384xf32> -> vector<8x384xf32>
    %374 = vector.extract_strided_slice %371 {offsets = [0, 0], sizes = [8, 128], strides = [1, 1]} : vector<8x384xf32> to vector<8x128xf32>
    %375 = vector.extract_strided_slice %373 {offsets = [0, 0], sizes = [8, 128], strides = [1, 1]} : vector<8x384xf32> to vector<8x128xf32>
    %376 = arith.addf %374, %375 : vector<8x128xf32>
    %377 = arith.negf %376 : vector<8x128xf32>
    %378 = math.exp %377 : vector<8x128xf32>
    %cst_125 = arith.constant 1.000000e+00 : f32
    %379 = vector.broadcast %cst_125 : f32 to vector<8x128xf32>
    %380 = arith.addf %379, %378 : vector<8x128xf32>
    %381 = arith.divf %379, %380 : vector<8x128xf32>
    %382 = vector.extract_strided_slice %371 {offsets = [0, 128], sizes = [8, 128], strides = [1, 1]} : vector<8x384xf32> to vector<8x128xf32>
    %383 = vector.extract_strided_slice %373 {offsets = [0, 128], sizes = [8, 128], strides = [1, 1]} : vector<8x384xf32> to vector<8x128xf32>
    %384 = arith.addf %382, %383 : vector<8x128xf32>
    %385 = arith.negf %384 : vector<8x128xf32>
    %386 = math.exp %385 : vector<8x128xf32>
    %cst_126 = arith.constant 1.000000e+00 : f32
    %387 = vector.broadcast %cst_126 : f32 to vector<8x128xf32>
    %388 = arith.addf %387, %386 : vector<8x128xf32>
    %389 = arith.divf %387, %388 : vector<8x128xf32>
    %390 = vector.extract_strided_slice %371 {offsets = [0, 256], sizes = [8, 128], strides = [1, 1]} : vector<8x384xf32> to vector<8x128xf32>
    %391 = vector.extract_strided_slice %373 {offsets = [0, 256], sizes = [8, 128], strides = [1, 1]} : vector<8x384xf32> to vector<8x128xf32>
    %392 = arith.addf %391, %10 : vector<8x128xf32>
    %393 = arith.mulf %381, %392 : vector<8x128xf32>
    %394 = arith.addf %390, %393 : vector<8x128xf32>
    %395 = math.tanh %394 : vector<8x128xf32>
    %cst_127 = arith.constant 1.000000e+00 : f32
    %396 = vector.broadcast %cst_127 : f32 to vector<8x128xf32>
    %397 = arith.subf %396, %389 : vector<8x128xf32>
    %398 = arith.mulf %397, %395 : vector<8x128xf32>
    %399 = arith.mulf %389, %330 : vector<8x128xf32>
    %400 = arith.addf %398, %399 : vector<8x128xf32>
    %c5_128 = arith.constant 5 : index
    %c0_129 = arith.constant 0 : index
    %c0_130 = arith.constant 0 : index
    %401 = vector.load %arg5[%c5_128, %c0_129, %c0_130] : memref<8x8x128xf32, #tpu.memory_space<vmem>>, vector<1x8x128xf32>
    %402 = vector.shape_cast %401 : vector<1x8x128xf32> to vector<8x128xf32>
    %403 = vector.shape_cast %400 : vector<8x128xf32> to vector<1x8x128xf32>
    tpu.vector_store %arg5[%c5_128, %c0_129, %c0_130], %403 {strides = array<i32>} : memref<8x8x128xf32, #tpu.memory_space<vmem>>, vector<1x8x128xf32>,
    %c0_131 = arith.constant 0 : index
    %c2_132 = arith.constant 2 : index
    %c0_133 = arith.constant 0 : index
    %c0_134 = arith.constant 0 : index
    %404 = vector.load %arg2[%c0_131, %c2_132, %c0_133, %c0_134] : memref<1x8x8x384xbf16, #tpu.memory_space<vmem>>, vector<1x1x8x384xbf16>
    %405 = vector.shape_cast %404 : vector<1x1x8x384xbf16> to vector<8x384xbf16>
    %406 = arith.extf %405 : vector<8x384xbf16> to vector<8x384xf32>
    %407 = arith.truncf %365 : vector<8x128xf32> to vector<8x128xbf16>
    %cst_135 = arith.constant dense<0.000000e+00> : vector<8x384xf32>
    %408 = tpu.matmul %407, %6, %cst_135 {dimension_numbers = #tpu.dot_dimension_numbers<[1], [0], [0], [1], [0, 0, 1, 1], [], []>} : vector<8x128xbf16>, vector<128x384xbf16>, vector<8x384xf32> -> vector<8x384xf32>
    %409 = vector.extract_strided_slice %406 {offsets = [0, 0], sizes = [8, 128], strides = [1, 1]} : vector<8x384xf32> to vector<8x128xf32>
    %410 = vector.extract_strided_slice %408 {offsets = [0, 0], sizes = [8, 128], strides = [1, 1]} : vector<8x384xf32> to vector<8x128xf32>
    %411 = arith.addf %409, %410 : vector<8x128xf32>
    %412 = arith.negf %411 : vector<8x128xf32>
    %413 = math.exp %412 : vector<8x128xf32>
    %cst_136 = arith.constant 1.000000e+00 : f32
    %414 = vector.broadcast %cst_136 : f32 to vector<8x128xf32>
    %415 = arith.addf %414, %413 : vector<8x128xf32>
    %416 = arith.divf %414, %415 : vector<8x128xf32>
    %417 = vector.extract_strided_slice %406 {offsets = [0, 128], sizes = [8, 128], strides = [1, 1]} : vector<8x384xf32> to vector<8x128xf32>
    %418 = vector.extract_strided_slice %408 {offsets = [0, 128], sizes = [8, 128], strides = [1, 1]} : vector<8x384xf32> to vector<8x128xf32>
    %419 = arith.addf %417, %418 : vector<8x128xf32>
    %420 = arith.negf %419 : vector<8x128xf32>
    %421 = math.exp %420 : vector<8x128xf32>
    %cst_137 = arith.constant 1.000000e+00 : f32
    %422 = vector.broadcast %cst_137 : f32 to vector<8x128xf32>
    %423 = arith.addf %422, %421 : vector<8x128xf32>
    %424 = arith.divf %422, %423 : vector<8x128xf32>
    %425 = vector.extract_strided_slice %406 {offsets = [0, 256], sizes = [8, 128], strides = [1, 1]} : vector<8x384xf32> to vector<8x128xf32>
    %426 = vector.extract_strided_slice %408 {offsets = [0, 256], sizes = [8, 128], strides = [1, 1]} : vector<8x384xf32> to vector<8x128xf32>
    %427 = arith.addf %426, %14 : vector<8x128xf32>
    %428 = arith.mulf %416, %427 : vector<8x128xf32>
    %429 = arith.addf %425, %428 : vector<8x128xf32>
    %430 = math.tanh %429 : vector<8x128xf32>
    %cst_138 = arith.constant 1.000000e+00 : f32
    %431 = vector.broadcast %cst_138 : f32 to vector<8x128xf32>
    %432 = arith.subf %431, %424 : vector<8x128xf32>
    %433 = arith.mulf %432, %430 : vector<8x128xf32>
    %434 = arith.mulf %424, %365 : vector<8x128xf32>
    %435 = arith.addf %433, %434 : vector<8x128xf32>
    %c2_139 = arith.constant 2 : index
    %c0_140 = arith.constant 0 : index
    %c0_141 = arith.constant 0 : index
    %436 = vector.load %arg6[%c2_139, %c0_140, %c0_141] : memref<8x8x128xf32, #tpu.memory_space<vmem>>, vector<1x8x128xf32>
    %437 = vector.shape_cast %436 : vector<1x8x128xf32> to vector<8x128xf32>
    %438 = vector.shape_cast %435 : vector<8x128xf32> to vector<1x8x128xf32>
    tpu.vector_store %arg6[%c2_139, %c0_140, %c0_141], %438 {strides = array<i32>} : memref<8x8x128xf32, #tpu.memory_space<vmem>>, vector<1x8x128xf32>,
    %c0_142 = arith.constant 0 : index
    %c6_143 = arith.constant 6 : index
    %c0_144 = arith.constant 0 : index
    %c0_145 = arith.constant 0 : index
    %439 = vector.load %arg1[%c0_142, %c6_143, %c0_144, %c0_145] : memref<1x8x8x384xbf16, #tpu.memory_space<vmem>>, vector<1x1x8x384xbf16>
    %440 = vector.shape_cast %439 : vector<1x1x8x384xbf16> to vector<8x384xbf16>
    %441 = arith.extf %440 : vector<8x384xbf16> to vector<8x384xf32>
    %442 = arith.truncf %400 : vector<8x128xf32> to vector<8x128xbf16>
    %cst_146 = arith.constant dense<0.000000e+00> : vector<8x384xf32>
    %443 = tpu.matmul %442, %4, %cst_146 {dimension_numbers = #tpu.dot_dimension_numbers<[1], [0], [0], [1], [0, 0, 1, 1], [], []>} : vector<8x128xbf16>, vector<128x384xbf16>, vector<8x384xf32> -> vector<8x384xf32>
    %444 = vector.extract_strided_slice %441 {offsets = [0, 0], sizes = [8, 128], strides = [1, 1]} : vector<8x384xf32> to vector<8x128xf32>
    %445 = vector.extract_strided_slice %443 {offsets = [0, 0], sizes = [8, 128], strides = [1, 1]} : vector<8x384xf32> to vector<8x128xf32>
    %446 = arith.addf %444, %445 : vector<8x128xf32>
    %447 = arith.negf %446 : vector<8x128xf32>
    %448 = math.exp %447 : vector<8x128xf32>
    %cst_147 = arith.constant 1.000000e+00 : f32
    %449 = vector.broadcast %cst_147 : f32 to vector<8x128xf32>
    %450 = arith.addf %449, %448 : vector<8x128xf32>
    %451 = arith.divf %449, %450 : vector<8x128xf32>
    %452 = vector.extract_strided_slice %441 {offsets = [0, 128], sizes = [8, 128], strides = [1, 1]} : vector<8x384xf32> to vector<8x128xf32>
    %453 = vector.extract_strided_slice %443 {offsets = [0, 128], sizes = [8, 128], strides = [1, 1]} : vector<8x384xf32> to vector<8x128xf32>
    %454 = arith.addf %452, %453 : vector<8x128xf32>
    %455 = arith.negf %454 : vector<8x128xf32>
    %456 = math.exp %455 : vector<8x128xf32>
    %cst_148 = arith.constant 1.000000e+00 : f32
    %457 = vector.broadcast %cst_148 : f32 to vector<8x128xf32>
    %458 = arith.addf %457, %456 : vector<8x128xf32>
    %459 = arith.divf %457, %458 : vector<8x128xf32>
    %460 = vector.extract_strided_slice %441 {offsets = [0, 256], sizes = [8, 128], strides = [1, 1]} : vector<8x384xf32> to vector<8x128xf32>
    %461 = vector.extract_strided_slice %443 {offsets = [0, 256], sizes = [8, 128], strides = [1, 1]} : vector<8x384xf32> to vector<8x128xf32>
    %462 = arith.addf %461, %10 : vector<8x128xf32>
    %463 = arith.mulf %451, %462 : vector<8x128xf32>
    %464 = arith.addf %460, %463 : vector<8x128xf32>
    %465 = math.tanh %464 : vector<8x128xf32>
    %cst_149 = arith.constant 1.000000e+00 : f32
    %466 = vector.broadcast %cst_149 : f32 to vector<8x128xf32>
    %467 = arith.subf %466, %459 : vector<8x128xf32>
    %468 = arith.mulf %467, %465 : vector<8x128xf32>
    %469 = arith.mulf %459, %400 : vector<8x128xf32>
    %470 = arith.addf %468, %469 : vector<8x128xf32>
    %c6_150 = arith.constant 6 : index
    %c0_151 = arith.constant 0 : index
    %c0_152 = arith.constant 0 : index
    %471 = vector.load %arg5[%c6_150, %c0_151, %c0_152] : memref<8x8x128xf32, #tpu.memory_space<vmem>>, vector<1x8x128xf32>
    %472 = vector.shape_cast %471 : vector<1x8x128xf32> to vector<8x128xf32>
    %473 = vector.shape_cast %470 : vector<8x128xf32> to vector<1x8x128xf32>
    tpu.vector_store %arg5[%c6_150, %c0_151, %c0_152], %473 {strides = array<i32>} : memref<8x8x128xf32, #tpu.memory_space<vmem>>, vector<1x8x128xf32>,
    %c0_153 = arith.constant 0 : index
    %c1_154 = arith.constant 1 : index
    %c0_155 = arith.constant 0 : index
    %c0_156 = arith.constant 0 : index
    %474 = vector.load %arg2[%c0_153, %c1_154, %c0_155, %c0_156] : memref<1x8x8x384xbf16, #tpu.memory_space<vmem>>, vector<1x1x8x384xbf16>
    %475 = vector.shape_cast %474 : vector<1x1x8x384xbf16> to vector<8x384xbf16>
    %476 = arith.extf %475 : vector<8x384xbf16> to vector<8x384xf32>
    %477 = arith.truncf %435 : vector<8x128xf32> to vector<8x128xbf16>
    %cst_157 = arith.constant dense<0.000000e+00> : vector<8x384xf32>
    %478 = tpu.matmul %477, %6, %cst_157 {dimension_numbers = #tpu.dot_dimension_numbers<[1], [0], [0], [1], [0, 0, 1, 1], [], []>} : vector<8x128xbf16>, vector<128x384xbf16>, vector<8x384xf32> -> vector<8x384xf32>
    %479 = vector.extract_strided_slice %476 {offsets = [0, 0], sizes = [8, 128], strides = [1, 1]} : vector<8x384xf32> to vector<8x128xf32>
    %480 = vector.extract_strided_slice %478 {offsets = [0, 0], sizes = [8, 128], strides = [1, 1]} : vector<8x384xf32> to vector<8x128xf32>
    %481 = arith.addf %479, %480 : vector<8x128xf32>
    %482 = arith.negf %481 : vector<8x128xf32>
    %483 = math.exp %482 : vector<8x128xf32>
    %cst_158 = arith.constant 1.000000e+00 : f32
    %484 = vector.broadcast %cst_158 : f32 to vector<8x128xf32>
    %485 = arith.addf %484, %483 : vector<8x128xf32>
    %486 = arith.divf %484, %485 : vector<8x128xf32>
    %487 = vector.extract_strided_slice %476 {offsets = [0, 128], sizes = [8, 128], strides = [1, 1]} : vector<8x384xf32> to vector<8x128xf32>
    %488 = vector.extract_strided_slice %478 {offsets = [0, 128], sizes = [8, 128], strides = [1, 1]} : vector<8x384xf32> to vector<8x128xf32>
    %489 = arith.addf %487, %488 : vector<8x128xf32>
    %490 = arith.negf %489 : vector<8x128xf32>
    %491 = math.exp %490 : vector<8x128xf32>
    %cst_159 = arith.constant 1.000000e+00 : f32
    %492 = vector.broadcast %cst_159 : f32 to vector<8x128xf32>
    %493 = arith.addf %492, %491 : vector<8x128xf32>
    %494 = arith.divf %492, %493 : vector<8x128xf32>
    %495 = vector.extract_strided_slice %476 {offsets = [0, 256], sizes = [8, 128], strides = [1, 1]} : vector<8x384xf32> to vector<8x128xf32>
    %496 = vector.extract_strided_slice %478 {offsets = [0, 256], sizes = [8, 128], strides = [1, 1]} : vector<8x384xf32> to vector<8x128xf32>
    %497 = arith.addf %496, %14 : vector<8x128xf32>
    %498 = arith.mulf %486, %497 : vector<8x128xf32>
    %499 = arith.addf %495, %498 : vector<8x128xf32>
    %500 = math.tanh %499 : vector<8x128xf32>
    %cst_160 = arith.constant 1.000000e+00 : f32
    %501 = vector.broadcast %cst_160 : f32 to vector<8x128xf32>
    %502 = arith.subf %501, %494 : vector<8x128xf32>
    %503 = arith.mulf %502, %500 : vector<8x128xf32>
    %504 = arith.mulf %494, %435 : vector<8x128xf32>
    %505 = arith.addf %503, %504 : vector<8x128xf32>
    %c1_161 = arith.constant 1 : index
    %c0_162 = arith.constant 0 : index
    %c0_163 = arith.constant 0 : index
    %506 = vector.load %arg6[%c1_161, %c0_162, %c0_163] : memref<8x8x128xf32, #tpu.memory_space<vmem>>, vector<1x8x128xf32>
    %507 = vector.shape_cast %506 : vector<1x8x128xf32> to vector<8x128xf32>
    %508 = vector.shape_cast %505 : vector<8x128xf32> to vector<1x8x128xf32>
    tpu.vector_store %arg6[%c1_161, %c0_162, %c0_163], %508 {strides = array<i32>} : memref<8x8x128xf32, #tpu.memory_space<vmem>>, vector<1x8x128xf32>,
    %c0_164 = arith.constant 0 : index
    %c7_165 = arith.constant 7 : index
    %c0_166 = arith.constant 0 : index
    %c0_167 = arith.constant 0 : index
    %509 = vector.load %arg1[%c0_164, %c7_165, %c0_166, %c0_167] : memref<1x8x8x384xbf16, #tpu.memory_space<vmem>>, vector<1x1x8x384xbf16>
    %510 = vector.shape_cast %509 : vector<1x1x8x384xbf16> to vector<8x384xbf16>
    %511 = arith.extf %510 : vector<8x384xbf16> to vector<8x384xf32>
    %512 = arith.truncf %470 : vector<8x128xf32> to vector<8x128xbf16>
    %cst_168 = arith.constant dense<0.000000e+00> : vector<8x384xf32>
    %513 = tpu.matmul %512, %4, %cst_168 {dimension_numbers = #tpu.dot_dimension_numbers<[1], [0], [0], [1], [0, 0, 1, 1], [], []>} : vector<8x128xbf16>, vector<128x384xbf16>, vector<8x384xf32> -> vector<8x384xf32>
    %514 = vector.extract_strided_slice %511 {offsets = [0, 0], sizes = [8, 128], strides = [1, 1]} : vector<8x384xf32> to vector<8x128xf32>
    %515 = vector.extract_strided_slice %513 {offsets = [0, 0], sizes = [8, 128], strides = [1, 1]} : vector<8x384xf32> to vector<8x128xf32>
    %516 = arith.addf %514, %515 : vector<8x128xf32>
    %517 = arith.negf %516 : vector<8x128xf32>
    %518 = math.exp %517 : vector<8x128xf32>
    %cst_169 = arith.constant 1.000000e+00 : f32
    %519 = vector.broadcast %cst_169 : f32 to vector<8x128xf32>
    %520 = arith.addf %519, %518 : vector<8x128xf32>
    %521 = arith.divf %519, %520 : vector<8x128xf32>
    %522 = vector.extract_strided_slice %511 {offsets = [0, 128], sizes = [8, 128], strides = [1, 1]} : vector<8x384xf32> to vector<8x128xf32>
    %523 = vector.extract_strided_slice %513 {offsets = [0, 128], sizes = [8, 128], strides = [1, 1]} : vector<8x384xf32> to vector<8x128xf32>
    %524 = arith.addf %522, %523 : vector<8x128xf32>
    %525 = arith.negf %524 : vector<8x128xf32>
    %526 = math.exp %525 : vector<8x128xf32>
    %cst_170 = arith.constant 1.000000e+00 : f32
    %527 = vector.broadcast %cst_170 : f32 to vector<8x128xf32>
    %528 = arith.addf %527, %526 : vector<8x128xf32>
    %529 = arith.divf %527, %528 : vector<8x128xf32>
    %530 = vector.extract_strided_slice %511 {offsets = [0, 256], sizes = [8, 128], strides = [1, 1]} : vector<8x384xf32> to vector<8x128xf32>
    %531 = vector.extract_strided_slice %513 {offsets = [0, 256], sizes = [8, 128], strides = [1, 1]} : vector<8x384xf32> to vector<8x128xf32>
    %532 = arith.addf %531, %10 : vector<8x128xf32>
    %533 = arith.mulf %521, %532 : vector<8x128xf32>
    %534 = arith.addf %530, %533 : vector<8x128xf32>
    %535 = math.tanh %534 : vector<8x128xf32>
    %cst_171 = arith.constant 1.000000e+00 : f32
    %536 = vector.broadcast %cst_171 : f32 to vector<8x128xf32>
    %537 = arith.subf %536, %529 : vector<8x128xf32>
    %538 = arith.mulf %537, %535 : vector<8x128xf32>
    %539 = arith.mulf %529, %470 : vector<8x128xf32>
    %540 = arith.addf %538, %539 : vector<8x128xf32>
    %c7_172 = arith.constant 7 : index
    %c0_173 = arith.constant 0 : index
    %c0_174 = arith.constant 0 : index
    %541 = vector.load %arg5[%c7_172, %c0_173, %c0_174] : memref<8x8x128xf32, #tpu.memory_space<vmem>>, vector<1x8x128xf32>
    %542 = vector.shape_cast %541 : vector<1x8x128xf32> to vector<8x128xf32>
    %543 = vector.shape_cast %540 : vector<8x128xf32> to vector<1x8x128xf32>
    tpu.vector_store %arg5[%c7_172, %c0_173, %c0_174], %543 {strides = array<i32>} : memref<8x8x128xf32, #tpu.memory_space<vmem>>, vector<1x8x128xf32>,
    %c0_175 = arith.constant 0 : index
    %c0_176 = arith.constant 0 : index
    %c0_177 = arith.constant 0 : index
    %c0_178 = arith.constant 0 : index
    %544 = vector.load %arg2[%c0_175, %c0_176, %c0_177, %c0_178] : memref<1x8x8x384xbf16, #tpu.memory_space<vmem>>, vector<1x1x8x384xbf16>
    %545 = vector.shape_cast %544 : vector<1x1x8x384xbf16> to vector<8x384xbf16>
    %546 = arith.extf %545 : vector<8x384xbf16> to vector<8x384xf32>
    %547 = arith.truncf %505 : vector<8x128xf32> to vector<8x128xbf16>
    %cst_179 = arith.constant dense<0.000000e+00> : vector<8x384xf32>
    %548 = tpu.matmul %547, %6, %cst_179 {dimension_numbers = #tpu.dot_dimension_numbers<[1], [0], [0], [1], [0, 0, 1, 1], [], []>} : vector<8x128xbf16>, vector<128x384xbf16>, vector<8x384xf32> -> vector<8x384xf32>
    %549 = vector.extract_strided_slice %546 {offsets = [0, 0], sizes = [8, 128], strides = [1, 1]} : vector<8x384xf32> to vector<8x128xf32>
    %550 = vector.extract_strided_slice %548 {offsets = [0, 0], sizes = [8, 128], strides = [1, 1]} : vector<8x384xf32> to vector<8x128xf32>
    %551 = arith.addf %549, %550 : vector<8x128xf32>
    %552 = arith.negf %551 : vector<8x128xf32>
    %553 = math.exp %552 : vector<8x128xf32>
    %cst_180 = arith.constant 1.000000e+00 : f32
    %554 = vector.broadcast %cst_180 : f32 to vector<8x128xf32>
    %555 = arith.addf %554, %553 : vector<8x128xf32>
    %556 = arith.divf %554, %555 : vector<8x128xf32>
    %557 = vector.extract_strided_slice %546 {offsets = [0, 128], sizes = [8, 128], strides = [1, 1]} : vector<8x384xf32> to vector<8x128xf32>
    %558 = vector.extract_strided_slice %548 {offsets = [0, 128], sizes = [8, 128], strides = [1, 1]} : vector<8x384xf32> to vector<8x128xf32>
    %559 = arith.addf %557, %558 : vector<8x128xf32>
    %560 = arith.negf %559 : vector<8x128xf32>
    %561 = math.exp %560 : vector<8x128xf32>
    %cst_181 = arith.constant 1.000000e+00 : f32
    %562 = vector.broadcast %cst_181 : f32 to vector<8x128xf32>
    %563 = arith.addf %562, %561 : vector<8x128xf32>
    %564 = arith.divf %562, %563 : vector<8x128xf32>
    %565 = vector.extract_strided_slice %546 {offsets = [0, 256], sizes = [8, 128], strides = [1, 1]} : vector<8x384xf32> to vector<8x128xf32>
    %566 = vector.extract_strided_slice %548 {offsets = [0, 256], sizes = [8, 128], strides = [1, 1]} : vector<8x384xf32> to vector<8x128xf32>
    %567 = arith.addf %566, %14 : vector<8x128xf32>
    %568 = arith.mulf %556, %567 : vector<8x128xf32>
    %569 = arith.addf %565, %568 : vector<8x128xf32>
    %570 = math.tanh %569 : vector<8x128xf32>
    %cst_182 = arith.constant 1.000000e+00 : f32
    %571 = vector.broadcast %cst_182 : f32 to vector<8x128xf32>
    %572 = arith.subf %571, %564 : vector<8x128xf32>
    %573 = arith.mulf %572, %570 : vector<8x128xf32>
    %574 = arith.mulf %564, %505 : vector<8x128xf32>
    %575 = arith.addf %573, %574 : vector<8x128xf32>
    %c0_183 = arith.constant 0 : index
    %c0_184 = arith.constant 0 : index
    %c0_185 = arith.constant 0 : index
    %576 = vector.load %arg6[%c0_183, %c0_184, %c0_185] : memref<8x8x128xf32, #tpu.memory_space<vmem>>, vector<1x8x128xf32>
    %577 = vector.shape_cast %576 : vector<1x8x128xf32> to vector<8x128xf32>
    %578 = vector.shape_cast %575 : vector<8x128xf32> to vector<1x8x128xf32>
    tpu.vector_store %arg6[%c0_183, %c0_184, %c0_185], %578 {strides = array<i32>} : memref<8x8x128xf32, #tpu.memory_space<vmem>>, vector<1x8x128xf32>,
    %c0_186 = arith.constant 0 : index
    %c0_187 = arith.constant 0 : index
    %c0_188 = arith.constant 0 : index
    %579 = vector.load %arg7[%c0_186, %c0_187, %c0_188] : memref<2x8x128xf32, #tpu.memory_space<vmem>>, vector<1x8x128xf32>
    %580 = vector.shape_cast %579 : vector<1x8x128xf32> to vector<8x128xf32>
    %581 = vector.shape_cast %540 : vector<8x128xf32> to vector<1x8x128xf32>
    tpu.vector_store %arg7[%c0_186, %c0_187, %c0_188], %581 {strides = array<i32>} : memref<2x8x128xf32, #tpu.memory_space<vmem>>, vector<1x8x128xf32>,
    %c1_189 = arith.constant 1 : index
    %c0_190 = arith.constant 0 : index
    %c0_191 = arith.constant 0 : index
    %582 = vector.load %arg7[%c1_189, %c0_190, %c0_191] : memref<2x8x128xf32, #tpu.memory_space<vmem>>, vector<1x8x128xf32>
    %583 = vector.shape_cast %582 : vector<1x8x128xf32> to vector<8x128xf32>
    %584 = vector.shape_cast %575 : vector<8x128xf32> to vector<1x8x128xf32>
    tpu.vector_store %arg7[%c1_189, %c0_190, %c0_191], %584 {strides = array<i32>} : memref<2x8x128xf32, #tpu.memory_space<vmem>>, vector<1x8x128xf32>,
    return
  }
  func.func @transform_0(%arg0: i32) -> (i32, i32, i32, i32) {
    %c0_i32 = arith.constant 0 : i32
    %c0_i32_0 = arith.constant 0 : i32
    %c0_i32_1 = arith.constant 0 : i32
    %c0_i32_2 = arith.constant 0 : i32
    return %c0_i32, %arg0, %c0_i32_0, %c0_i32_1 : i32, i32, i32, i32
  }
  func.func @transform_1(%arg0: i32) -> (i32, i32, i32, i32) {
    %c0_i32 = arith.constant 0 : i32
    %0 = arith.subi %c0_i32, %arg0 : i32
    %c1_i32 = arith.constant 1 : i32
    %c0_i32_0 = arith.constant 0 : i32
    %c0_i32_1 = arith.constant 0 : i32
    %c0_i32_2 = arith.constant 0 : i32
    return %c1_i32, %0, %c0_i32_0, %c0_i32_1 : i32, i32, i32, i32
  }
  func.func @transform_2(%arg0: i32) -> (i32, i32, i32) {
    %c0_i32 = arith.constant 0 : i32
    %c0_i32_0 = arith.constant 0 : i32
    %c0_i32_1 = arith.constant 0 : i32
    %c0_i32_2 = arith.constant 0 : i32
    return %c0_i32, %c0_i32_0, %c0_i32_1 : i32, i32, i32
  }
  func.func @transform_3(%arg0: i32) -> (i32, i32, i32) {
    %c0_i32 = arith.constant 0 : i32
    %c0_i32_0 = arith.constant 0 : i32
    %c0_i32_1 = arith.constant 0 : i32
    %c0_i32_2 = arith.constant 0 : i32
    return %c0_i32, %c0_i32_0, %c0_i32_1 : i32, i32, i32
  }
  func.func @transform_4(%arg0: i32) -> (i32, i32, i32) {
    %c0_i32 = arith.constant 0 : i32
    %c0_i32_0 = arith.constant 0 : i32
    %c0_i32_1 = arith.constant 0 : i32
    return %arg0, %c0_i32, %c0_i32_0 : i32, i32, i32
  }
  func.func @transform_5(%arg0: i32) -> (i32, i32, i32) {
    %c0_i32 = arith.constant 0 : i32
    %0 = arith.subi %c0_i32, %arg0 : i32
    %c0_i32_0 = arith.constant 0 : i32
    %c0_i32_1 = arith.constant 0 : i32
    %c0_i32_2 = arith.constant 0 : i32
    return %0, %c0_i32_0, %c0_i32_1 : i32, i32, i32
  }
  func.func @transform_6(%arg0: i32) -> (i32, i32, i32) {
    %c0_i32 = arith.constant 0 : i32
    %c0_i32_0 = arith.constant 0 : i32
    %c0_i32_1 = arith.constant 0 : i32
    %c0_i32_2 = arith.constant 0 : i32
    return %c0_i32, %c0_i32_0, %c0_i32_1 : i32, i32, i32
  }
}

module attributes {stable_mosaic.version = 11 : i64} {
  func.func @_gru_bidir_kernel(%arg0: i32, %arg1: memref<1x8x8x384xbf16, #tpu.memory_space<vmem>>, %arg2: memref<1x8x8x384xbf16, #tpu.memory_space<vmem>>, %arg3: memref<2x128x384xbf16, #tpu.memory_space<vmem>>, %arg4: memref<2x1x128xf32, #tpu.memory_space<vmem>>, %arg5: memref<8x8x128xf32, #tpu.memory_space<vmem>>, %arg6: memref<8x8x128xf32, #tpu.memory_space<vmem>>, %arg7: memref<2x8x128xf32, #tpu.memory_space<vmem>>) attributes {dimension_semantics = [#tpu.dimension_semantics<arbitrary>], iteration_bounds = array<i64: 1>, scalar_prefetch = 0 : i64, scratch_operands = 0 : i64, tpu.core_type = #tpu.core_type<tc>, window_params = [{transform_indices = @transform_0, window_bounds = array<i64: 1, 8, 8, 384>}, {transform_indices = @transform_1, window_bounds = array<i64: 1, 8, 8, 384>}, {pipeline_mode = #tpu.pipeline_mode<synchronous>, transform_indices = @transform_2, window_bounds = array<i64: 2, 128, 384>}, {pipeline_mode = #tpu.pipeline_mode<synchronous>, transform_indices = @transform_3, window_bounds = array<i64: 2, 1, 128>}, {transform_indices = @transform_4, window_bounds = array<i64: 8, 8, 128>}, {transform_indices = @transform_5, window_bounds = array<i64: 8, 8, 128>}, {pipeline_mode = #tpu.pipeline_mode<synchronous>, transform_indices = @transform_6, window_bounds = array<i64: 2, 8, 128>}]} {
    %c0_i32 = arith.constant 0 : i32
    %0 = arith.cmpi eq, %arg0, %c0_i32 : i32
    %1 = arith.extui %0 : i1 to i32
    %c0_i32_0 = arith.constant 0 : i32
    %2 = arith.cmpi ne, %1, %c0_i32_0 : i32
    scf.if %2 {
      %cst_192 = arith.constant 0.000000e+00 : f32
      %585 = vector.broadcast %cst_192 : f32 to vector<2x8x128xf32>
      %c0_193 = arith.constant 0 : index
      %c0_194 = arith.constant 0 : index
      %c0_195 = arith.constant 0 : index
      %586 = vector.load %arg7[%c0_193, %c0_194, %c0_195] : memref<2x8x128xf32, #tpu.memory_space<vmem>>, vector<2x8x128xf32>
      tpu.vector_store %arg7[%c0_193, %c0_194, %c0_195], %585 {strides = array<i32>} : memref<2x8x128xf32, #tpu.memory_space<vmem>>, vector<2x8x128xf32>,
    } else {
    }
    %c0 = arith.constant 0 : index
    %c0_1 = arith.constant 0 : index
    %c0_2 = arith.constant 0 : index
    %3 = vector.load %arg3[%c0, %c0_1, %c0_2] : memref<2x128x384xbf16, #tpu.memory_space<vmem>>, vector<1x128x384xbf16>
    %4 = vector.shape_cast %3 : vector<1x128x384xbf16> to vector<128x384xbf16>
    %c1 = arith.constant 1 : index
    %c0_3 = arith.constant 0 : index
    %c0_4 = arith.constant 0 : index
    %5 = vector.load %arg3[%c1, %c0_3, %c0_4] : memref<2x128x384xbf16, #tpu.memory_space<vmem>>, vector<1x128x384xbf16>
    %6 = vector.shape_cast %5 : vector<1x128x384xbf16> to vector<128x384xbf16>
    %c0_5 = arith.constant 0 : index
    %c0_6 = arith.constant 0 : index
    %c0_7 = arith.constant 0 : index
    %7 = vector.load %arg4[%c0_5, %c0_6, %c0_7] : memref<2x1x128xf32, #tpu.memory_space<vmem>>, vector<1x1x128xf32>
    %8 = vector.shape_cast %7 : vector<1x1x128xf32> to vector<1x128xf32>
    %9 = vector.shape_cast %8 : vector<1x128xf32> to vector<1x128xf32>
    %10 = vector.broadcast %9 : vector<1x128xf32> to vector<8x128xf32>
    %c1_8 = arith.constant 1 : index
    %c0_9 = arith.constant 0 : index
    %c0_10 = arith.constant 0 : index
    %11 = vector.load %arg4[%c1_8, %c0_9, %c0_10] : memref<2x1x128xf32, #tpu.memory_space<vmem>>, vector<1x1x128xf32>
    %12 = vector.shape_cast %11 : vector<1x1x128xf32> to vector<1x128xf32>
    %13 = vector.shape_cast %12 : vector<1x128xf32> to vector<1x128xf32>
    %14 = vector.broadcast %13 : vector<1x128xf32> to vector<8x128xf32>
    %c0_11 = arith.constant 0 : index
    %c0_12 = arith.constant 0 : index
    %c0_13 = arith.constant 0 : index
    %15 = vector.load %arg7[%c0_11, %c0_12, %c0_13] : memref<2x8x128xf32, #tpu.memory_space<vmem>>, vector<1x8x128xf32>
    %16 = vector.shape_cast %15 : vector<1x8x128xf32> to vector<8x128xf32>
    %c1_14 = arith.constant 1 : index
    %c0_15 = arith.constant 0 : index
    %c0_16 = arith.constant 0 : index
    %17 = vector.load %arg7[%c1_14, %c0_15, %c0_16] : memref<2x8x128xf32, #tpu.memory_space<vmem>>, vector<1x8x128xf32>
    %18 = vector.shape_cast %17 : vector<1x8x128xf32> to vector<8x128xf32>
    %c0_17 = arith.constant 0 : index
    %c0_18 = arith.constant 0 : index
    %c0_19 = arith.constant 0 : index
    %c0_20 = arith.constant 0 : index
    %19 = vector.load %arg1[%c0_17, %c0_18, %c0_19, %c0_20] : memref<1x8x8x384xbf16, #tpu.memory_space<vmem>>, vector<1x1x8x384xbf16>
    %20 = vector.shape_cast %19 : vector<1x1x8x384xbf16> to vector<8x384xbf16>
    %21 = arith.extf %20 : vector<8x384xbf16> to vector<8x384xf32>
    %22 = arith.truncf %16 : vector<8x128xf32> to vector<8x128xbf16>
    %cst = arith.constant dense<0.000000e+00> : vector<8x384xf32>
    %23 = tpu.matmul %22, %4, %cst {dimension_numbers = #tpu.dot_dimension_numbers<[1], [0], [0], [1], [0, 0, 1, 1], [], []>} : vector<8x128xbf16>, vector<128x384xbf16>, vector<8x384xf32> -> vector<8x384xf32>
    %24 = vector.extract_strided_slice %21 {offsets = [0, 0], sizes = [8, 128], strides = [1, 1]} : vector<8x384xf32> to vector<8x128xf32>
    %25 = vector.extract_strided_slice %23 {offsets = [0, 0], sizes = [8, 128], strides = [1, 1]} : vector<8x384xf32> to vector<8x128xf32>
    %26 = arith.addf %24, %25 : vector<8x128xf32>
    %27 = arith.negf %26 : vector<8x128xf32>
    %28 = math.exp %27 : vector<8x128xf32>
    %cst_21 = arith.constant 1.000000e+00 : f32
    %29 = vector.broadcast %cst_21 : f32 to vector<8x128xf32>
    %30 = arith.addf %29, %28 : vector<8x128xf32>
    %31 = arith.divf %29, %30 : vector<8x128xf32>
    %32 = vector.extract_strided_slice %21 {offsets = [0, 128], sizes = [8, 128], strides = [1, 1]} : vector<8x384xf32> to vector<8x128xf32>
    %33 = vector.extract_strided_slice %23 {offsets = [0, 128], sizes = [8, 128], strides = [1, 1]} : vector<8x384xf32> to vector<8x128xf32>
    %34 = arith.addf %32, %33 : vector<8x128xf32>
    %35 = arith.negf %34 : vector<8x128xf32>
    %36 = math.exp %35 : vector<8x128xf32>
    %cst_22 = arith.constant 1.000000e+00 : f32
    %37 = vector.broadcast %cst_22 : f32 to vector<8x128xf32>
    %38 = arith.addf %37, %36 : vector<8x128xf32>
    %39 = arith.divf %37, %38 : vector<8x128xf32>
    %40 = vector.extract_strided_slice %21 {offsets = [0, 256], sizes = [8, 128], strides = [1, 1]} : vector<8x384xf32> to vector<8x128xf32>
    %41 = vector.extract_strided_slice %23 {offsets = [0, 256], sizes = [8, 128], strides = [1, 1]} : vector<8x384xf32> to vector<8x128xf32>
    %42 = arith.addf %41, %10 : vector<8x128xf32>
    %43 = arith.mulf %31, %42 : vector<8x128xf32>
    %44 = arith.addf %40, %43 : vector<8x128xf32>
    %45 = math.tanh %44 : vector<8x128xf32>
    %cst_23 = arith.constant 1.000000e+00 : f32
    %46 = vector.broadcast %cst_23 : f32 to vector<8x128xf32>
    %47 = arith.subf %46, %39 : vector<8x128xf32>
    %48 = arith.mulf %47, %45 : vector<8x128xf32>
    %49 = arith.mulf %39, %16 : vector<8x128xf32>
    %50 = arith.addf %48, %49 : vector<8x128xf32>
    %c0_24 = arith.constant 0 : index
    %c0_25 = arith.constant 0 : index
    %c0_26 = arith.constant 0 : index
    %51 = vector.load %arg5[%c0_24, %c0_25, %c0_26] : memref<8x8x128xf32, #tpu.memory_space<vmem>>, vector<1x8x128xf32>
    %52 = vector.shape_cast %51 : vector<1x8x128xf32> to vector<8x128xf32>
    %53 = vector.shape_cast %50 : vector<8x128xf32> to vector<1x8x128xf32>
    tpu.vector_store %arg5[%c0_24, %c0_25, %c0_26], %53 {strides = array<i32>} : memref<8x8x128xf32, #tpu.memory_space<vmem>>, vector<1x8x128xf32>,
    %c0_27 = arith.constant 0 : index
    %c7 = arith.constant 7 : index
    %c0_28 = arith.constant 0 : index
    %c0_29 = arith.constant 0 : index
    %54 = vector.load %arg2[%c0_27, %c7, %c0_28, %c0_29] : memref<1x8x8x384xbf16, #tpu.memory_space<vmem>>, vector<1x1x8x384xbf16>
    %55 = vector.shape_cast %54 : vector<1x1x8x384xbf16> to vector<8x384xbf16>
    %56 = arith.extf %55 : vector<8x384xbf16> to vector<8x384xf32>
    %57 = arith.truncf %18 : vector<8x128xf32> to vector<8x128xbf16>
    %cst_30 = arith.constant dense<0.000000e+00> : vector<8x384xf32>
    %58 = tpu.matmul %57, %6, %cst_30 {dimension_numbers = #tpu.dot_dimension_numbers<[1], [0], [0], [1], [0, 0, 1, 1], [], []>} : vector<8x128xbf16>, vector<128x384xbf16>, vector<8x384xf32> -> vector<8x384xf32>
    %59 = vector.extract_strided_slice %56 {offsets = [0, 0], sizes = [8, 128], strides = [1, 1]} : vector<8x384xf32> to vector<8x128xf32>
    %60 = vector.extract_strided_slice %58 {offsets = [0, 0], sizes = [8, 128], strides = [1, 1]} : vector<8x384xf32> to vector<8x128xf32>
    %61 = arith.addf %59, %60 : vector<8x128xf32>
    %62 = arith.negf %61 : vector<8x128xf32>
    %63 = math.exp %62 : vector<8x128xf32>
    %cst_31 = arith.constant 1.000000e+00 : f32
    %64 = vector.broadcast %cst_31 : f32 to vector<8x128xf32>
    %65 = arith.addf %64, %63 : vector<8x128xf32>
    %66 = arith.divf %64, %65 : vector<8x128xf32>
    %67 = vector.extract_strided_slice %56 {offsets = [0, 128], sizes = [8, 128], strides = [1, 1]} : vector<8x384xf32> to vector<8x128xf32>
    %68 = vector.extract_strided_slice %58 {offsets = [0, 128], sizes = [8, 128], strides = [1, 1]} : vector<8x384xf32> to vector<8x128xf32>
    %69 = arith.addf %67, %68 : vector<8x128xf32>
    %70 = arith.negf %69 : vector<8x128xf32>
    %71 = math.exp %70 : vector<8x128xf32>
    %cst_32 = arith.constant 1.000000e+00 : f32
    %72 = vector.broadcast %cst_32 : f32 to vector<8x128xf32>
    %73 = arith.addf %72, %71 : vector<8x128xf32>
    %74 = arith.divf %72, %73 : vector<8x128xf32>
    %75 = vector.extract_strided_slice %56 {offsets = [0, 256], sizes = [8, 128], strides = [1, 1]} : vector<8x384xf32> to vector<8x128xf32>
    %76 = vector.extract_strided_slice %58 {offsets = [0, 256], sizes = [8, 128], strides = [1, 1]} : vector<8x384xf32> to vector<8x128xf32>
    %77 = arith.addf %76, %14 : vector<8x128xf32>
    %78 = arith.mulf %66, %77 : vector<8x128xf32>
    %79 = arith.addf %75, %78 : vector<8x128xf32>
    %80 = math.tanh %79 : vector<8x128xf32>
    %cst_33 = arith.constant 1.000000e+00 : f32
    %81 = vector.broadcast %cst_33 : f32 to vector<8x128xf32>
    %82 = arith.subf %81, %74 : vector<8x128xf32>
    %83 = arith.mulf %82, %80 : vector<8x128xf32>
    %84 = arith.mulf %74, %18 : vector<8x128xf32>
    %85 = arith.addf %83, %84 : vector<8x128xf32>
    %c7_34 = arith.constant 7 : index
    %c0_35 = arith.constant 0 : index
    %c0_36 = arith.constant 0 : index
    %86 = vector.load %arg6[%c7_34, %c0_35, %c0_36] : memref<8x8x128xf32, #tpu.memory_space<vmem>>, vector<1x8x128xf32>
    %87 = vector.shape_cast %86 : vector<1x8x128xf32> to vector<8x128xf32>
    %88 = vector.shape_cast %85 : vector<8x128xf32> to vector<1x8x128xf32>
    tpu.vector_store %arg6[%c7_34, %c0_35, %c0_36], %88 {strides = array<i32>} : memref<8x8x128xf32, #tpu.memory_space<vmem>>, vector<1x8x128xf32>,
    %c0_37 = arith.constant 0 : index
    %c1_38 = arith.constant 1 : index
    %c0_39 = arith.constant 0 : index
    %c0_40 = arith.constant 0 : index
    %89 = vector.load %arg1[%c0_37, %c1_38, %c0_39, %c0_40] : memref<1x8x8x384xbf16, #tpu.memory_space<vmem>>, vector<1x1x8x384xbf16>
    %90 = vector.shape_cast %89 : vector<1x1x8x384xbf16> to vector<8x384xbf16>
    %91 = arith.extf %90 : vector<8x384xbf16> to vector<8x384xf32>
    %92 = arith.truncf %50 : vector<8x128xf32> to vector<8x128xbf16>
    %cst_41 = arith.constant dense<0.000000e+00> : vector<8x384xf32>
    %93 = tpu.matmul %92, %4, %cst_41 {dimension_numbers = #tpu.dot_dimension_numbers<[1], [0], [0], [1], [0, 0, 1, 1], [], []>} : vector<8x128xbf16>, vector<128x384xbf16>, vector<8x384xf32> -> vector<8x384xf32>
    %94 = vector.extract_strided_slice %91 {offsets = [0, 0], sizes = [8, 128], strides = [1, 1]} : vector<8x384xf32> to vector<8x128xf32>
    %95 = vector.extract_strided_slice %93 {offsets = [0, 0], sizes = [8, 128], strides = [1, 1]} : vector<8x384xf32> to vector<8x128xf32>
    %96 = arith.addf %94, %95 : vector<8x128xf32>
    %97 = arith.negf %96 : vector<8x128xf32>
    %98 = math.exp %97 : vector<8x128xf32>
    %cst_42 = arith.constant 1.000000e+00 : f32
    %99 = vector.broadcast %cst_42 : f32 to vector<8x128xf32>
    %100 = arith.addf %99, %98 : vector<8x128xf32>
    %101 = arith.divf %99, %100 : vector<8x128xf32>
    %102 = vector.extract_strided_slice %91 {offsets = [0, 128], sizes = [8, 128], strides = [1, 1]} : vector<8x384xf32> to vector<8x128xf32>
    %103 = vector.extract_strided_slice %93 {offsets = [0, 128], sizes = [8, 128], strides = [1, 1]} : vector<8x384xf32> to vector<8x128xf32>
    %104 = arith.addf %102, %103 : vector<8x128xf32>
    %105 = arith.negf %104 : vector<8x128xf32>
    %106 = math.exp %105 : vector<8x128xf32>
    %cst_43 = arith.constant 1.000000e+00 : f32
    %107 = vector.broadcast %cst_43 : f32 to vector<8x128xf32>
    %108 = arith.addf %107, %106 : vector<8x128xf32>
    %109 = arith.divf %107, %108 : vector<8x128xf32>
    %110 = vector.extract_strided_slice %91 {offsets = [0, 256], sizes = [8, 128], strides = [1, 1]} : vector<8x384xf32> to vector<8x128xf32>
    %111 = vector.extract_strided_slice %93 {offsets = [0, 256], sizes = [8, 128], strides = [1, 1]} : vector<8x384xf32> to vector<8x128xf32>
    %112 = arith.addf %111, %10 : vector<8x128xf32>
    %113 = arith.mulf %101, %112 : vector<8x128xf32>
    %114 = arith.addf %110, %113 : vector<8x128xf32>
    %115 = math.tanh %114 : vector<8x128xf32>
    %cst_44 = arith.constant 1.000000e+00 : f32
    %116 = vector.broadcast %cst_44 : f32 to vector<8x128xf32>
    %117 = arith.subf %116, %109 : vector<8x128xf32>
    %118 = arith.mulf %117, %115 : vector<8x128xf32>
    %119 = arith.mulf %109, %50 : vector<8x128xf32>
    %120 = arith.addf %118, %119 : vector<8x128xf32>
    %c1_45 = arith.constant 1 : index
    %c0_46 = arith.constant 0 : index
    %c0_47 = arith.constant 0 : index
    %121 = vector.load %arg5[%c1_45, %c0_46, %c0_47] : memref<8x8x128xf32, #tpu.memory_space<vmem>>, vector<1x8x128xf32>
    %122 = vector.shape_cast %121 : vector<1x8x128xf32> to vector<8x128xf32>
    %123 = vector.shape_cast %120 : vector<8x128xf32> to vector<1x8x128xf32>
    tpu.vector_store %arg5[%c1_45, %c0_46, %c0_47], %123 {strides = array<i32>} : memref<8x8x128xf32, #tpu.memory_space<vmem>>, vector<1x8x128xf32>,
    %c0_48 = arith.constant 0 : index
    %c6 = arith.constant 6 : index
    %c0_49 = arith.constant 0 : index
    %c0_50 = arith.constant 0 : index
    %124 = vector.load %arg2[%c0_48, %c6, %c0_49, %c0_50] : memref<1x8x8x384xbf16, #tpu.memory_space<vmem>>, vector<1x1x8x384xbf16>
    %125 = vector.shape_cast %124 : vector<1x1x8x384xbf16> to vector<8x384xbf16>
    %126 = arith.extf %125 : vector<8x384xbf16> to vector<8x384xf32>
    %127 = arith.truncf %85 : vector<8x128xf32> to vector<8x128xbf16>
    %cst_51 = arith.constant dense<0.000000e+00> : vector<8x384xf32>
    %128 = tpu.matmul %127, %6, %cst_51 {dimension_numbers = #tpu.dot_dimension_numbers<[1], [0], [0], [1], [0, 0, 1, 1], [], []>} : vector<8x128xbf16>, vector<128x384xbf16>, vector<8x384xf32> -> vector<8x384xf32>
    %129 = vector.extract_strided_slice %126 {offsets = [0, 0], sizes = [8, 128], strides = [1, 1]} : vector<8x384xf32> to vector<8x128xf32>
    %130 = vector.extract_strided_slice %128 {offsets = [0, 0], sizes = [8, 128], strides = [1, 1]} : vector<8x384xf32> to vector<8x128xf32>
    %131 = arith.addf %129, %130 : vector<8x128xf32>
    %132 = arith.negf %131 : vector<8x128xf32>
    %133 = math.exp %132 : vector<8x128xf32>
    %cst_52 = arith.constant 1.000000e+00 : f32
    %134 = vector.broadcast %cst_52 : f32 to vector<8x128xf32>
    %135 = arith.addf %134, %133 : vector<8x128xf32>
    %136 = arith.divf %134, %135 : vector<8x128xf32>
    %137 = vector.extract_strided_slice %126 {offsets = [0, 128], sizes = [8, 128], strides = [1, 1]} : vector<8x384xf32> to vector<8x128xf32>
    %138 = vector.extract_strided_slice %128 {offsets = [0, 128], sizes = [8, 128], strides = [1, 1]} : vector<8x384xf32> to vector<8x128xf32>
    %139 = arith.addf %137, %138 : vector<8x128xf32>
    %140 = arith.negf %139 : vector<8x128xf32>
    %141 = math.exp %140 : vector<8x128xf32>
    %cst_53 = arith.constant 1.000000e+00 : f32
    %142 = vector.broadcast %cst_53 : f32 to vector<8x128xf32>
    %143 = arith.addf %142, %141 : vector<8x128xf32>
    %144 = arith.divf %142, %143 : vector<8x128xf32>
    %145 = vector.extract_strided_slice %126 {offsets = [0, 256], sizes = [8, 128], strides = [1, 1]} : vector<8x384xf32> to vector<8x128xf32>
    %146 = vector.extract_strided_slice %128 {offsets = [0, 256], sizes = [8, 128], strides = [1, 1]} : vector<8x384xf32> to vector<8x128xf32>
    %147 = arith.addf %146, %14 : vector<8x128xf32>
    %148 = arith.mulf %136, %147 : vector<8x128xf32>
    %149 = arith.addf %145, %148 : vector<8x128xf32>
    %150 = math.tanh %149 : vector<8x128xf32>
    %cst_54 = arith.constant 1.000000e+00 : f32
    %151 = vector.broadcast %cst_54 : f32 to vector<8x128xf32>
    %152 = arith.subf %151, %144 : vector<8x128xf32>
    %153 = arith.mulf %152, %150 : vector<8x128xf32>
    %154 = arith.mulf %144, %85 : vector<8x128xf32>
    %155 = arith.addf %153, %154 : vector<8x128xf32>
    %c6_55 = arith.constant 6 : index
    %c0_56 = arith.constant 0 : index
    %c0_57 = arith.constant 0 : index
    %156 = vector.load %arg6[%c6_55, %c0_56, %c0_57] : memref<8x8x128xf32, #tpu.memory_space<vmem>>, vector<1x8x128xf32>
    %157 = vector.shape_cast %156 : vector<1x8x128xf32> to vector<8x128xf32>
    %158 = vector.shape_cast %155 : vector<8x128xf32> to vector<1x8x128xf32>
    tpu.vector_store %arg6[%c6_55, %c0_56, %c0_57], %158 {strides = array<i32>} : memref<8x8x128xf32, #tpu.memory_space<vmem>>, vector<1x8x128xf32>,
    %c0_58 = arith.constant 0 : index
    %c2 = arith.constant 2 : index
    %c0_59 = arith.constant 0 : index
    %c0_60 = arith.constant 0 : index
    %159 = vector.load %arg1[%c0_58, %c2, %c0_59, %c0_60] : memref<1x8x8x384xbf16, #tpu.memory_space<vmem>>, vector<1x1x8x384xbf16>
    %160 = vector.shape_cast %159 : vector<1x1x8x384xbf16> to vector<8x384xbf16>
    %161 = arith.extf %160 : vector<8x384xbf16> to vector<8x384xf32>
    %162 = arith.truncf %120 : vector<8x128xf32> to vector<8x128xbf16>
    %cst_61 = arith.constant dense<0.000000e+00> : vector<8x384xf32>
    %163 = tpu.matmul %162, %4, %cst_61 {dimension_numbers = #tpu.dot_dimension_numbers<[1], [0], [0], [1], [0, 0, 1, 1], [], []>} : vector<8x128xbf16>, vector<128x384xbf16>, vector<8x384xf32> -> vector<8x384xf32>
    %164 = vector.extract_strided_slice %161 {offsets = [0, 0], sizes = [8, 128], strides = [1, 1]} : vector<8x384xf32> to vector<8x128xf32>
    %165 = vector.extract_strided_slice %163 {offsets = [0, 0], sizes = [8, 128], strides = [1, 1]} : vector<8x384xf32> to vector<8x128xf32>
    %166 = arith.addf %164, %165 : vector<8x128xf32>
    %167 = arith.negf %166 : vector<8x128xf32>
    %168 = math.exp %167 : vector<8x128xf32>
    %cst_62 = arith.constant 1.000000e+00 : f32
    %169 = vector.broadcast %cst_62 : f32 to vector<8x128xf32>
    %170 = arith.addf %169, %168 : vector<8x128xf32>
    %171 = arith.divf %169, %170 : vector<8x128xf32>
    %172 = vector.extract_strided_slice %161 {offsets = [0, 128], sizes = [8, 128], strides = [1, 1]} : vector<8x384xf32> to vector<8x128xf32>
    %173 = vector.extract_strided_slice %163 {offsets = [0, 128], sizes = [8, 128], strides = [1, 1]} : vector<8x384xf32> to vector<8x128xf32>
    %174 = arith.addf %172, %173 : vector<8x128xf32>
    %175 = arith.negf %174 : vector<8x128xf32>
    %176 = math.exp %175 : vector<8x128xf32>
    %cst_63 = arith.constant 1.000000e+00 : f32
    %177 = vector.broadcast %cst_63 : f32 to vector<8x128xf32>
    %178 = arith.addf %177, %176 : vector<8x128xf32>
    %179 = arith.divf %177, %178 : vector<8x128xf32>
    %180 = vector.extract_strided_slice %161 {offsets = [0, 256], sizes = [8, 128], strides = [1, 1]} : vector<8x384xf32> to vector<8x128xf32>
    %181 = vector.extract_strided_slice %163 {offsets = [0, 256], sizes = [8, 128], strides = [1, 1]} : vector<8x384xf32> to vector<8x128xf32>
    %182 = arith.addf %181, %10 : vector<8x128xf32>
    %183 = arith.mulf %171, %182 : vector<8x128xf32>
    %184 = arith.addf %180, %183 : vector<8x128xf32>
    %185 = math.tanh %184 : vector<8x128xf32>
    %cst_64 = arith.constant 1.000000e+00 : f32
    %186 = vector.broadcast %cst_64 : f32 to vector<8x128xf32>
    %187 = arith.subf %186, %179 : vector<8x128xf32>
    %188 = arith.mulf %187, %185 : vector<8x128xf32>
    %189 = arith.mulf %179, %120 : vector<8x128xf32>
    %190 = arith.addf %188, %189 : vector<8x128xf32>
    %c2_65 = arith.constant 2 : index
    %c0_66 = arith.constant 0 : index
    %c0_67 = arith.constant 0 : index
    %191 = vector.load %arg5[%c2_65, %c0_66, %c0_67] : memref<8x8x128xf32, #tpu.memory_space<vmem>>, vector<1x8x128xf32>
    %192 = vector.shape_cast %191 : vector<1x8x128xf32> to vector<8x128xf32>
    %193 = vector.shape_cast %190 : vector<8x128xf32> to vector<1x8x128xf32>
    tpu.vector_store %arg5[%c2_65, %c0_66, %c0_67], %193 {strides = array<i32>} : memref<8x8x128xf32, #tpu.memory_space<vmem>>, vector<1x8x128xf32>,
    %c0_68 = arith.constant 0 : index
    %c5 = arith.constant 5 : index
    %c0_69 = arith.constant 0 : index
    %c0_70 = arith.constant 0 : index
    %194 = vector.load %arg2[%c0_68, %c5, %c0_69, %c0_70] : memref<1x8x8x384xbf16, #tpu.memory_space<vmem>>, vector<1x1x8x384xbf16>
    %195 = vector.shape_cast %194 : vector<1x1x8x384xbf16> to vector<8x384xbf16>
    %196 = arith.extf %195 : vector<8x384xbf16> to vector<8x384xf32>
    %197 = arith.truncf %155 : vector<8x128xf32> to vector<8x128xbf16>
    %cst_71 = arith.constant dense<0.000000e+00> : vector<8x384xf32>
    %198 = tpu.matmul %197, %6, %cst_71 {dimension_numbers = #tpu.dot_dimension_numbers<[1], [0], [0], [1], [0, 0, 1, 1], [], []>} : vector<8x128xbf16>, vector<128x384xbf16>, vector<8x384xf32> -> vector<8x384xf32>
    %199 = vector.extract_strided_slice %196 {offsets = [0, 0], sizes = [8, 128], strides = [1, 1]} : vector<8x384xf32> to vector<8x128xf32>
    %200 = vector.extract_strided_slice %198 {offsets = [0, 0], sizes = [8, 128], strides = [1, 1]} : vector<8x384xf32> to vector<8x128xf32>
    %201 = arith.addf %199, %200 : vector<8x128xf32>
    %202 = arith.negf %201 : vector<8x128xf32>
    %203 = math.exp %202 : vector<8x128xf32>
    %cst_72 = arith.constant 1.000000e+00 : f32
    %204 = vector.broadcast %cst_72 : f32 to vector<8x128xf32>
    %205 = arith.addf %204, %203 : vector<8x128xf32>
    %206 = arith.divf %204, %205 : vector<8x128xf32>
    %207 = vector.extract_strided_slice %196 {offsets = [0, 128], sizes = [8, 128], strides = [1, 1]} : vector<8x384xf32> to vector<8x128xf32>
    %208 = vector.extract_strided_slice %198 {offsets = [0, 128], sizes = [8, 128], strides = [1, 1]} : vector<8x384xf32> to vector<8x128xf32>
    %209 = arith.addf %207, %208 : vector<8x128xf32>
    %210 = arith.negf %209 : vector<8x128xf32>
    %211 = math.exp %210 : vector<8x128xf32>
    %cst_73 = arith.constant 1.000000e+00 : f32
    %212 = vector.broadcast %cst_73 : f32 to vector<8x128xf32>
    %213 = arith.addf %212, %211 : vector<8x128xf32>
    %214 = arith.divf %212, %213 : vector<8x128xf32>
    %215 = vector.extract_strided_slice %196 {offsets = [0, 256], sizes = [8, 128], strides = [1, 1]} : vector<8x384xf32> to vector<8x128xf32>
    %216 = vector.extract_strided_slice %198 {offsets = [0, 256], sizes = [8, 128], strides = [1, 1]} : vector<8x384xf32> to vector<8x128xf32>
    %217 = arith.addf %216, %14 : vector<8x128xf32>
    %218 = arith.mulf %206, %217 : vector<8x128xf32>
    %219 = arith.addf %215, %218 : vector<8x128xf32>
    %220 = math.tanh %219 : vector<8x128xf32>
    %cst_74 = arith.constant 1.000000e+00 : f32
    %221 = vector.broadcast %cst_74 : f32 to vector<8x128xf32>
    %222 = arith.subf %221, %214 : vector<8x128xf32>
    %223 = arith.mulf %222, %220 : vector<8x128xf32>
    %224 = arith.mulf %214, %155 : vector<8x128xf32>
    %225 = arith.addf %223, %224 : vector<8x128xf32>
    %c5_75 = arith.constant 5 : index
    %c0_76 = arith.constant 0 : index
    %c0_77 = arith.constant 0 : index
    %226 = vector.load %arg6[%c5_75, %c0_76, %c0_77] : memref<8x8x128xf32, #tpu.memory_space<vmem>>, vector<1x8x128xf32>
    %227 = vector.shape_cast %226 : vector<1x8x128xf32> to vector<8x128xf32>
    %228 = vector.shape_cast %225 : vector<8x128xf32> to vector<1x8x128xf32>
    tpu.vector_store %arg6[%c5_75, %c0_76, %c0_77], %228 {strides = array<i32>} : memref<8x8x128xf32, #tpu.memory_space<vmem>>, vector<1x8x128xf32>,
    %c0_78 = arith.constant 0 : index
    %c3 = arith.constant 3 : index
    %c0_79 = arith.constant 0 : index
    %c0_80 = arith.constant 0 : index
    %229 = vector.load %arg1[%c0_78, %c3, %c0_79, %c0_80] : memref<1x8x8x384xbf16, #tpu.memory_space<vmem>>, vector<1x1x8x384xbf16>
    %230 = vector.shape_cast %229 : vector<1x1x8x384xbf16> to vector<8x384xbf16>
    %231 = arith.extf %230 : vector<8x384xbf16> to vector<8x384xf32>
    %232 = arith.truncf %190 : vector<8x128xf32> to vector<8x128xbf16>
    %cst_81 = arith.constant dense<0.000000e+00> : vector<8x384xf32>
    %233 = tpu.matmul %232, %4, %cst_81 {dimension_numbers = #tpu.dot_dimension_numbers<[1], [0], [0], [1], [0, 0, 1, 1], [], []>} : vector<8x128xbf16>, vector<128x384xbf16>, vector<8x384xf32> -> vector<8x384xf32>
    %234 = vector.extract_strided_slice %231 {offsets = [0, 0], sizes = [8, 128], strides = [1, 1]} : vector<8x384xf32> to vector<8x128xf32>
    %235 = vector.extract_strided_slice %233 {offsets = [0, 0], sizes = [8, 128], strides = [1, 1]} : vector<8x384xf32> to vector<8x128xf32>
    %236 = arith.addf %234, %235 : vector<8x128xf32>
    %237 = arith.negf %236 : vector<8x128xf32>
    %238 = math.exp %237 : vector<8x128xf32>
    %cst_82 = arith.constant 1.000000e+00 : f32
    %239 = vector.broadcast %cst_82 : f32 to vector<8x128xf32>
    %240 = arith.addf %239, %238 : vector<8x128xf32>
    %241 = arith.divf %239, %240 : vector<8x128xf32>
    %242 = vector.extract_strided_slice %231 {offsets = [0, 128], sizes = [8, 128], strides = [1, 1]} : vector<8x384xf32> to vector<8x128xf32>
    %243 = vector.extract_strided_slice %233 {offsets = [0, 128], sizes = [8, 128], strides = [1, 1]} : vector<8x384xf32> to vector<8x128xf32>
    %244 = arith.addf %242, %243 : vector<8x128xf32>
    %245 = arith.negf %244 : vector<8x128xf32>
    %246 = math.exp %245 : vector<8x128xf32>
    %cst_83 = arith.constant 1.000000e+00 : f32
    %247 = vector.broadcast %cst_83 : f32 to vector<8x128xf32>
    %248 = arith.addf %247, %246 : vector<8x128xf32>
    %249 = arith.divf %247, %248 : vector<8x128xf32>
    %250 = vector.extract_strided_slice %231 {offsets = [0, 256], sizes = [8, 128], strides = [1, 1]} : vector<8x384xf32> to vector<8x128xf32>
    %251 = vector.extract_strided_slice %233 {offsets = [0, 256], sizes = [8, 128], strides = [1, 1]} : vector<8x384xf32> to vector<8x128xf32>
    %252 = arith.addf %251, %10 : vector<8x128xf32>
    %253 = arith.mulf %241, %252 : vector<8x128xf32>
    %254 = arith.addf %250, %253 : vector<8x128xf32>
    %255 = math.tanh %254 : vector<8x128xf32>
    %cst_84 = arith.constant 1.000000e+00 : f32
    %256 = vector.broadcast %cst_84 : f32 to vector<8x128xf32>
    %257 = arith.subf %256, %249 : vector<8x128xf32>
    %258 = arith.mulf %257, %255 : vector<8x128xf32>
    %259 = arith.mulf %249, %190 : vector<8x128xf32>
    %260 = arith.addf %258, %259 : vector<8x128xf32>
    %c3_85 = arith.constant 3 : index
    %c0_86 = arith.constant 0 : index
    %c0_87 = arith.constant 0 : index
    %261 = vector.load %arg5[%c3_85, %c0_86, %c0_87] : memref<8x8x128xf32, #tpu.memory_space<vmem>>, vector<1x8x128xf32>
    %262 = vector.shape_cast %261 : vector<1x8x128xf32> to vector<8x128xf32>
    %263 = vector.shape_cast %260 : vector<8x128xf32> to vector<1x8x128xf32>
    tpu.vector_store %arg5[%c3_85, %c0_86, %c0_87], %263 {strides = array<i32>} : memref<8x8x128xf32, #tpu.memory_space<vmem>>, vector<1x8x128xf32>,
    %c0_88 = arith.constant 0 : index
    %c4 = arith.constant 4 : index
    %c0_89 = arith.constant 0 : index
    %c0_90 = arith.constant 0 : index
    %264 = vector.load %arg2[%c0_88, %c4, %c0_89, %c0_90] : memref<1x8x8x384xbf16, #tpu.memory_space<vmem>>, vector<1x1x8x384xbf16>
    %265 = vector.shape_cast %264 : vector<1x1x8x384xbf16> to vector<8x384xbf16>
    %266 = arith.extf %265 : vector<8x384xbf16> to vector<8x384xf32>
    %267 = arith.truncf %225 : vector<8x128xf32> to vector<8x128xbf16>
    %cst_91 = arith.constant dense<0.000000e+00> : vector<8x384xf32>
    %268 = tpu.matmul %267, %6, %cst_91 {dimension_numbers = #tpu.dot_dimension_numbers<[1], [0], [0], [1], [0, 0, 1, 1], [], []>} : vector<8x128xbf16>, vector<128x384xbf16>, vector<8x384xf32> -> vector<8x384xf32>
    %269 = vector.extract_strided_slice %266 {offsets = [0, 0], sizes = [8, 128], strides = [1, 1]} : vector<8x384xf32> to vector<8x128xf32>
    %270 = vector.extract_strided_slice %268 {offsets = [0, 0], sizes = [8, 128], strides = [1, 1]} : vector<8x384xf32> to vector<8x128xf32>
    %271 = arith.addf %269, %270 : vector<8x128xf32>
    %272 = arith.negf %271 : vector<8x128xf32>
    %273 = math.exp %272 : vector<8x128xf32>
    %cst_92 = arith.constant 1.000000e+00 : f32
    %274 = vector.broadcast %cst_92 : f32 to vector<8x128xf32>
    %275 = arith.addf %274, %273 : vector<8x128xf32>
    %276 = arith.divf %274, %275 : vector<8x128xf32>
    %277 = vector.extract_strided_slice %266 {offsets = [0, 128], sizes = [8, 128], strides = [1, 1]} : vector<8x384xf32> to vector<8x128xf32>
    %278 = vector.extract_strided_slice %268 {offsets = [0, 128], sizes = [8, 128], strides = [1, 1]} : vector<8x384xf32> to vector<8x128xf32>
    %279 = arith.addf %277, %278 : vector<8x128xf32>
    %280 = arith.negf %279 : vector<8x128xf32>
    %281 = math.exp %280 : vector<8x128xf32>
    %cst_93 = arith.constant 1.000000e+00 : f32
    %282 = vector.broadcast %cst_93 : f32 to vector<8x128xf32>
    %283 = arith.addf %282, %281 : vector<8x128xf32>
    %284 = arith.divf %282, %283 : vector<8x128xf32>
    %285 = vector.extract_strided_slice %266 {offsets = [0, 256], sizes = [8, 128], strides = [1, 1]} : vector<8x384xf32> to vector<8x128xf32>
    %286 = vector.extract_strided_slice %268 {offsets = [0, 256], sizes = [8, 128], strides = [1, 1]} : vector<8x384xf32> to vector<8x128xf32>
    %287 = arith.addf %286, %14 : vector<8x128xf32>
    %288 = arith.mulf %276, %287 : vector<8x128xf32>
    %289 = arith.addf %285, %288 : vector<8x128xf32>
    %290 = math.tanh %289 : vector<8x128xf32>
    %cst_94 = arith.constant 1.000000e+00 : f32
    %291 = vector.broadcast %cst_94 : f32 to vector<8x128xf32>
    %292 = arith.subf %291, %284 : vector<8x128xf32>
    %293 = arith.mulf %292, %290 : vector<8x128xf32>
    %294 = arith.mulf %284, %225 : vector<8x128xf32>
    %295 = arith.addf %293, %294 : vector<8x128xf32>
    %c4_95 = arith.constant 4 : index
    %c0_96 = arith.constant 0 : index
    %c0_97 = arith.constant 0 : index
    %296 = vector.load %arg6[%c4_95, %c0_96, %c0_97] : memref<8x8x128xf32, #tpu.memory_space<vmem>>, vector<1x8x128xf32>
    %297 = vector.shape_cast %296 : vector<1x8x128xf32> to vector<8x128xf32>
    %298 = vector.shape_cast %295 : vector<8x128xf32> to vector<1x8x128xf32>
    tpu.vector_store %arg6[%c4_95, %c0_96, %c0_97], %298 {strides = array<i32>} : memref<8x8x128xf32, #tpu.memory_space<vmem>>, vector<1x8x128xf32>,
    %c0_98 = arith.constant 0 : index
    %c4_99 = arith.constant 4 : index
    %c0_100 = arith.constant 0 : index
    %c0_101 = arith.constant 0 : index
    %299 = vector.load %arg1[%c0_98, %c4_99, %c0_100, %c0_101] : memref<1x8x8x384xbf16, #tpu.memory_space<vmem>>, vector<1x1x8x384xbf16>
    %300 = vector.shape_cast %299 : vector<1x1x8x384xbf16> to vector<8x384xbf16>
    %301 = arith.extf %300 : vector<8x384xbf16> to vector<8x384xf32>
    %302 = arith.truncf %260 : vector<8x128xf32> to vector<8x128xbf16>
    %cst_102 = arith.constant dense<0.000000e+00> : vector<8x384xf32>
    %303 = tpu.matmul %302, %4, %cst_102 {dimension_numbers = #tpu.dot_dimension_numbers<[1], [0], [0], [1], [0, 0, 1, 1], [], []>} : vector<8x128xbf16>, vector<128x384xbf16>, vector<8x384xf32> -> vector<8x384xf32>
    %304 = vector.extract_strided_slice %301 {offsets = [0, 0], sizes = [8, 128], strides = [1, 1]} : vector<8x384xf32> to vector<8x128xf32>
    %305 = vector.extract_strided_slice %303 {offsets = [0, 0], sizes = [8, 128], strides = [1, 1]} : vector<8x384xf32> to vector<8x128xf32>
    %306 = arith.addf %304, %305 : vector<8x128xf32>
    %307 = arith.negf %306 : vector<8x128xf32>
    %308 = math.exp %307 : vector<8x128xf32>
    %cst_103 = arith.constant 1.000000e+00 : f32
    %309 = vector.broadcast %cst_103 : f32 to vector<8x128xf32>
    %310 = arith.addf %309, %308 : vector<8x128xf32>
    %311 = arith.divf %309, %310 : vector<8x128xf32>
    %312 = vector.extract_strided_slice %301 {offsets = [0, 128], sizes = [8, 128], strides = [1, 1]} : vector<8x384xf32> to vector<8x128xf32>
    %313 = vector.extract_strided_slice %303 {offsets = [0, 128], sizes = [8, 128], strides = [1, 1]} : vector<8x384xf32> to vector<8x128xf32>
    %314 = arith.addf %312, %313 : vector<8x128xf32>
    %315 = arith.negf %314 : vector<8x128xf32>
    %316 = math.exp %315 : vector<8x128xf32>
    %cst_104 = arith.constant 1.000000e+00 : f32
    %317 = vector.broadcast %cst_104 : f32 to vector<8x128xf32>
    %318 = arith.addf %317, %316 : vector<8x128xf32>
    %319 = arith.divf %317, %318 : vector<8x128xf32>
    %320 = vector.extract_strided_slice %301 {offsets = [0, 256], sizes = [8, 128], strides = [1, 1]} : vector<8x384xf32> to vector<8x128xf32>
    %321 = vector.extract_strided_slice %303 {offsets = [0, 256], sizes = [8, 128], strides = [1, 1]} : vector<8x384xf32> to vector<8x128xf32>
    %322 = arith.addf %321, %10 : vector<8x128xf32>
    %323 = arith.mulf %311, %322 : vector<8x128xf32>
    %324 = arith.addf %320, %323 : vector<8x128xf32>
    %325 = math.tanh %324 : vector<8x128xf32>
    %cst_105 = arith.constant 1.000000e+00 : f32
    %326 = vector.broadcast %cst_105 : f32 to vector<8x128xf32>
    %327 = arith.subf %326, %319 : vector<8x128xf32>
    %328 = arith.mulf %327, %325 : vector<8x128xf32>
    %329 = arith.mulf %319, %260 : vector<8x128xf32>
    %330 = arith.addf %328, %329 : vector<8x128xf32>
    %c4_106 = arith.constant 4 : index
    %c0_107 = arith.constant 0 : index
    %c0_108 = arith.constant 0 : index
    %331 = vector.load %arg5[%c4_106, %c0_107, %c0_108] : memref<8x8x128xf32, #tpu.memory_space<vmem>>, vector<1x8x128xf32>
    %332 = vector.shape_cast %331 : vector<1x8x128xf32> to vector<8x128xf32>
    %333 = vector.shape_cast %330 : vector<8x128xf32> to vector<1x8x128xf32>
    tpu.vector_store %arg5[%c4_106, %c0_107, %c0_108], %333 {strides = array<i32>} : memref<8x8x128xf32, #tpu.memory_space<vmem>>, vector<1x8x128xf32>,
    %c0_109 = arith.constant 0 : index
    %c3_110 = arith.constant 3 : index
    %c0_111 = arith.constant 0 : index
    %c0_112 = arith.constant 0 : index
    %334 = vector.load %arg2[%c0_109, %c3_110, %c0_111, %c0_112] : memref<1x8x8x384xbf16, #tpu.memory_space<vmem>>, vector<1x1x8x384xbf16>
    %335 = vector.shape_cast %334 : vector<1x1x8x384xbf16> to vector<8x384xbf16>
    %336 = arith.extf %335 : vector<8x384xbf16> to vector<8x384xf32>
    %337 = arith.truncf %295 : vector<8x128xf32> to vector<8x128xbf16>
    %cst_113 = arith.constant dense<0.000000e+00> : vector<8x384xf32>
    %338 = tpu.matmul %337, %6, %cst_113 {dimension_numbers = #tpu.dot_dimension_numbers<[1], [0], [0], [1], [0, 0, 1, 1], [], []>} : vector<8x128xbf16>, vector<128x384xbf16>, vector<8x384xf32> -> vector<8x384xf32>
    %339 = vector.extract_strided_slice %336 {offsets = [0, 0], sizes = [8, 128], strides = [1, 1]} : vector<8x384xf32> to vector<8x128xf32>
    %340 = vector.extract_strided_slice %338 {offsets = [0, 0], sizes = [8, 128], strides = [1, 1]} : vector<8x384xf32> to vector<8x128xf32>
    %341 = arith.addf %339, %340 : vector<8x128xf32>
    %342 = arith.negf %341 : vector<8x128xf32>
    %343 = math.exp %342 : vector<8x128xf32>
    %cst_114 = arith.constant 1.000000e+00 : f32
    %344 = vector.broadcast %cst_114 : f32 to vector<8x128xf32>
    %345 = arith.addf %344, %343 : vector<8x128xf32>
    %346 = arith.divf %344, %345 : vector<8x128xf32>
    %347 = vector.extract_strided_slice %336 {offsets = [0, 128], sizes = [8, 128], strides = [1, 1]} : vector<8x384xf32> to vector<8x128xf32>
    %348 = vector.extract_strided_slice %338 {offsets = [0, 128], sizes = [8, 128], strides = [1, 1]} : vector<8x384xf32> to vector<8x128xf32>
    %349 = arith.addf %347, %348 : vector<8x128xf32>
    %350 = arith.negf %349 : vector<8x128xf32>
    %351 = math.exp %350 : vector<8x128xf32>
    %cst_115 = arith.constant 1.000000e+00 : f32
    %352 = vector.broadcast %cst_115 : f32 to vector<8x128xf32>
    %353 = arith.addf %352, %351 : vector<8x128xf32>
    %354 = arith.divf %352, %353 : vector<8x128xf32>
    %355 = vector.extract_strided_slice %336 {offsets = [0, 256], sizes = [8, 128], strides = [1, 1]} : vector<8x384xf32> to vector<8x128xf32>
    %356 = vector.extract_strided_slice %338 {offsets = [0, 256], sizes = [8, 128], strides = [1, 1]} : vector<8x384xf32> to vector<8x128xf32>
    %357 = arith.addf %356, %14 : vector<8x128xf32>
    %358 = arith.mulf %346, %357 : vector<8x128xf32>
    %359 = arith.addf %355, %358 : vector<8x128xf32>
    %360 = math.tanh %359 : vector<8x128xf32>
    %cst_116 = arith.constant 1.000000e+00 : f32
    %361 = vector.broadcast %cst_116 : f32 to vector<8x128xf32>
    %362 = arith.subf %361, %354 : vector<8x128xf32>
    %363 = arith.mulf %362, %360 : vector<8x128xf32>
    %364 = arith.mulf %354, %295 : vector<8x128xf32>
    %365 = arith.addf %363, %364 : vector<8x128xf32>
    %c3_117 = arith.constant 3 : index
    %c0_118 = arith.constant 0 : index
    %c0_119 = arith.constant 0 : index
    %366 = vector.load %arg6[%c3_117, %c0_118, %c0_119] : memref<8x8x128xf32, #tpu.memory_space<vmem>>, vector<1x8x128xf32>
    %367 = vector.shape_cast %366 : vector<1x8x128xf32> to vector<8x128xf32>
    %368 = vector.shape_cast %365 : vector<8x128xf32> to vector<1x8x128xf32>
    tpu.vector_store %arg6[%c3_117, %c0_118, %c0_119], %368 {strides = array<i32>} : memref<8x8x128xf32, #tpu.memory_space<vmem>>, vector<1x8x128xf32>,
    %c0_120 = arith.constant 0 : index
    %c5_121 = arith.constant 5 : index
    %c0_122 = arith.constant 0 : index
    %c0_123 = arith.constant 0 : index
    %369 = vector.load %arg1[%c0_120, %c5_121, %c0_122, %c0_123] : memref<1x8x8x384xbf16, #tpu.memory_space<vmem>>, vector<1x1x8x384xbf16>
    %370 = vector.shape_cast %369 : vector<1x1x8x384xbf16> to vector<8x384xbf16>
    %371 = arith.extf %370 : vector<8x384xbf16> to vector<8x384xf32>
    %372 = arith.truncf %330 : vector<8x128xf32> to vector<8x128xbf16>
    %cst_124 = arith.constant dense<0.000000e+00> : vector<8x384xf32>
    %373 = tpu.matmul %372, %4, %cst_124 {dimension_numbers = #tpu.dot_dimension_numbers<[1], [0], [0], [1], [0, 0, 1, 1], [], []>} : vector<8x128xbf16>, vector<128x384xbf16>, vector<8x384xf32> -> vector<8x384xf32>
    %374 = vector.extract_strided_slice %371 {offsets = [0, 0], sizes = [8, 128], strides = [1, 1]} : vector<8x384xf32> to vector<8x128xf32>
    %375 = vector.extract_strided_slice %373 {offsets = [0, 0], sizes = [8, 128], strides = [1, 1]} : vector<8x384xf32> to vector<8x128xf32>
    %376 = arith.addf %374, %375 : vector<8x128xf32>
    %377 = arith.negf %376 : vector<8x128xf32>
    %378 = math.exp %377 : vector<8x128xf32>
    %cst_125 = arith.constant 1.000000e+00 : f32
    %379 = vector.broadcast %cst_125 : f32 to vector<8x128xf32>
    %380 = arith.addf %379, %378 : vector<8x128xf32>
    %381 = arith.divf %379, %380 : vector<8x128xf32>
    %382 = vector.extract_strided_slice %371 {offsets = [0, 128], sizes = [8, 128], strides = [1, 1]} : vector<8x384xf32> to vector<8x128xf32>
    %383 = vector.extract_strided_slice %373 {offsets = [0, 128], sizes = [8, 128], strides = [1, 1]} : vector<8x384xf32> to vector<8x128xf32>
    %384 = arith.addf %382, %383 : vector<8x128xf32>
    %385 = arith.negf %384 : vector<8x128xf32>
    %386 = math.exp %385 : vector<8x128xf32>
    %cst_126 = arith.constant 1.000000e+00 : f32
    %387 = vector.broadcast %cst_126 : f32 to vector<8x128xf32>
    %388 = arith.addf %387, %386 : vector<8x128xf32>
    %389 = arith.divf %387, %388 : vector<8x128xf32>
    %390 = vector.extract_strided_slice %371 {offsets = [0, 256], sizes = [8, 128], strides = [1, 1]} : vector<8x384xf32> to vector<8x128xf32>
    %391 = vector.extract_strided_slice %373 {offsets = [0, 256], sizes = [8, 128], strides = [1, 1]} : vector<8x384xf32> to vector<8x128xf32>
    %392 = arith.addf %391, %10 : vector<8x128xf32>
    %393 = arith.mulf %381, %392 : vector<8x128xf32>
    %394 = arith.addf %390, %393 : vector<8x128xf32>
    %395 = math.tanh %394 : vector<8x128xf32>
    %cst_127 = arith.constant 1.000000e+00 : f32
    %396 = vector.broadcast %cst_127 : f32 to vector<8x128xf32>
    %397 = arith.subf %396, %389 : vector<8x128xf32>
    %398 = arith.mulf %397, %395 : vector<8x128xf32>
    %399 = arith.mulf %389, %330 : vector<8x128xf32>
    %400 = arith.addf %398, %399 : vector<8x128xf32>
    %c5_128 = arith.constant 5 : index
    %c0_129 = arith.constant 0 : index
    %c0_130 = arith.constant 0 : index
    %401 = vector.load %arg5[%c5_128, %c0_129, %c0_130] : memref<8x8x128xf32, #tpu.memory_space<vmem>>, vector<1x8x128xf32>
    %402 = vector.shape_cast %401 : vector<1x8x128xf32> to vector<8x128xf32>
    %403 = vector.shape_cast %400 : vector<8x128xf32> to vector<1x8x128xf32>
    tpu.vector_store %arg5[%c5_128, %c0_129, %c0_130], %403 {strides = array<i32>} : memref<8x8x128xf32, #tpu.memory_space<vmem>>, vector<1x8x128xf32>,
    %c0_131 = arith.constant 0 : index
    %c2_132 = arith.constant 2 : index
    %c0_133 = arith.constant 0 : index
    %c0_134 = arith.constant 0 : index
    %404 = vector.load %arg2[%c0_131, %c2_132, %c0_133, %c0_134] : memref<1x8x8x384xbf16, #tpu.memory_space<vmem>>, vector<1x1x8x384xbf16>
    %405 = vector.shape_cast %404 : vector<1x1x8x384xbf16> to vector<8x384xbf16>
    %406 = arith.extf %405 : vector<8x384xbf16> to vector<8x384xf32>
    %407 = arith.truncf %365 : vector<8x128xf32> to vector<8x128xbf16>
    %cst_135 = arith.constant dense<0.000000e+00> : vector<8x384xf32>
    %408 = tpu.matmul %407, %6, %cst_135 {dimension_numbers = #tpu.dot_dimension_numbers<[1], [0], [0], [1], [0, 0, 1, 1], [], []>} : vector<8x128xbf16>, vector<128x384xbf16>, vector<8x384xf32> -> vector<8x384xf32>
    %409 = vector.extract_strided_slice %406 {offsets = [0, 0], sizes = [8, 128], strides = [1, 1]} : vector<8x384xf32> to vector<8x128xf32>
    %410 = vector.extract_strided_slice %408 {offsets = [0, 0], sizes = [8, 128], strides = [1, 1]} : vector<8x384xf32> to vector<8x128xf32>
    %411 = arith.addf %409, %410 : vector<8x128xf32>
    %412 = arith.negf %411 : vector<8x128xf32>
    %413 = math.exp %412 : vector<8x128xf32>
    %cst_136 = arith.constant 1.000000e+00 : f32
    %414 = vector.broadcast %cst_136 : f32 to vector<8x128xf32>
    %415 = arith.addf %414, %413 : vector<8x128xf32>
    %416 = arith.divf %414, %415 : vector<8x128xf32>
    %417 = vector.extract_strided_slice %406 {offsets = [0, 128], sizes = [8, 128], strides = [1, 1]} : vector<8x384xf32> to vector<8x128xf32>
    %418 = vector.extract_strided_slice %408 {offsets = [0, 128], sizes = [8, 128], strides = [1, 1]} : vector<8x384xf32> to vector<8x128xf32>
    %419 = arith.addf %417, %418 : vector<8x128xf32>
    %420 = arith.negf %419 : vector<8x128xf32>
    %421 = math.exp %420 : vector<8x128xf32>
    %cst_137 = arith.constant 1.000000e+00 : f32
    %422 = vector.broadcast %cst_137 : f32 to vector<8x128xf32>
    %423 = arith.addf %422, %421 : vector<8x128xf32>
    %424 = arith.divf %422, %423 : vector<8x128xf32>
    %425 = vector.extract_strided_slice %406 {offsets = [0, 256], sizes = [8, 128], strides = [1, 1]} : vector<8x384xf32> to vector<8x128xf32>
    %426 = vector.extract_strided_slice %408 {offsets = [0, 256], sizes = [8, 128], strides = [1, 1]} : vector<8x384xf32> to vector<8x128xf32>
    %427 = arith.addf %426, %14 : vector<8x128xf32>
    %428 = arith.mulf %416, %427 : vector<8x128xf32>
    %429 = arith.addf %425, %428 : vector<8x128xf32>
    %430 = math.tanh %429 : vector<8x128xf32>
    %cst_138 = arith.constant 1.000000e+00 : f32
    %431 = vector.broadcast %cst_138 : f32 to vector<8x128xf32>
    %432 = arith.subf %431, %424 : vector<8x128xf32>
    %433 = arith.mulf %432, %430 : vector<8x128xf32>
    %434 = arith.mulf %424, %365 : vector<8x128xf32>
    %435 = arith.addf %433, %434 : vector<8x128xf32>
    %c2_139 = arith.constant 2 : index
    %c0_140 = arith.constant 0 : index
    %c0_141 = arith.constant 0 : index
    %436 = vector.load %arg6[%c2_139, %c0_140, %c0_141] : memref<8x8x128xf32, #tpu.memory_space<vmem>>, vector<1x8x128xf32>
    %437 = vector.shape_cast %436 : vector<1x8x128xf32> to vector<8x128xf32>
    %438 = vector.shape_cast %435 : vector<8x128xf32> to vector<1x8x128xf32>
    tpu.vector_store %arg6[%c2_139, %c0_140, %c0_141], %438 {strides = array<i32>} : memref<8x8x128xf32, #tpu.memory_space<vmem>>, vector<1x8x128xf32>,
    %c0_142 = arith.constant 0 : index
    %c6_143 = arith.constant 6 : index
    %c0_144 = arith.constant 0 : index
    %c0_145 = arith.constant 0 : index
    %439 = vector.load %arg1[%c0_142, %c6_143, %c0_144, %c0_145] : memref<1x8x8x384xbf16, #tpu.memory_space<vmem>>, vector<1x1x8x384xbf16>
    %440 = vector.shape_cast %439 : vector<1x1x8x384xbf16> to vector<8x384xbf16>
    %441 = arith.extf %440 : vector<8x384xbf16> to vector<8x384xf32>
    %442 = arith.truncf %400 : vector<8x128xf32> to vector<8x128xbf16>
    %cst_146 = arith.constant dense<0.000000e+00> : vector<8x384xf32>
    %443 = tpu.matmul %442, %4, %cst_146 {dimension_numbers = #tpu.dot_dimension_numbers<[1], [0], [0], [1], [0, 0, 1, 1], [], []>} : vector<8x128xbf16>, vector<128x384xbf16>, vector<8x384xf32> -> vector<8x384xf32>
    %444 = vector.extract_strided_slice %441 {offsets = [0, 0], sizes = [8, 128], strides = [1, 1]} : vector<8x384xf32> to vector<8x128xf32>
    %445 = vector.extract_strided_slice %443 {offsets = [0, 0], sizes = [8, 128], strides = [1, 1]} : vector<8x384xf32> to vector<8x128xf32>
    %446 = arith.addf %444, %445 : vector<8x128xf32>
    %447 = arith.negf %446 : vector<8x128xf32>
    %448 = math.exp %447 : vector<8x128xf32>
    %cst_147 = arith.constant 1.000000e+00 : f32
    %449 = vector.broadcast %cst_147 : f32 to vector<8x128xf32>
    %450 = arith.addf %449, %448 : vector<8x128xf32>
    %451 = arith.divf %449, %450 : vector<8x128xf32>
    %452 = vector.extract_strided_slice %441 {offsets = [0, 128], sizes = [8, 128], strides = [1, 1]} : vector<8x384xf32> to vector<8x128xf32>
    %453 = vector.extract_strided_slice %443 {offsets = [0, 128], sizes = [8, 128], strides = [1, 1]} : vector<8x384xf32> to vector<8x128xf32>
    %454 = arith.addf %452, %453 : vector<8x128xf32>
    %455 = arith.negf %454 : vector<8x128xf32>
    %456 = math.exp %455 : vector<8x128xf32>
    %cst_148 = arith.constant 1.000000e+00 : f32
    %457 = vector.broadcast %cst_148 : f32 to vector<8x128xf32>
    %458 = arith.addf %457, %456 : vector<8x128xf32>
    %459 = arith.divf %457, %458 : vector<8x128xf32>
    %460 = vector.extract_strided_slice %441 {offsets = [0, 256], sizes = [8, 128], strides = [1, 1]} : vector<8x384xf32> to vector<8x128xf32>
    %461 = vector.extract_strided_slice %443 {offsets = [0, 256], sizes = [8, 128], strides = [1, 1]} : vector<8x384xf32> to vector<8x128xf32>
    %462 = arith.addf %461, %10 : vector<8x128xf32>
    %463 = arith.mulf %451, %462 : vector<8x128xf32>
    %464 = arith.addf %460, %463 : vector<8x128xf32>
    %465 = math.tanh %464 : vector<8x128xf32>
    %cst_149 = arith.constant 1.000000e+00 : f32
    %466 = vector.broadcast %cst_149 : f32 to vector<8x128xf32>
    %467 = arith.subf %466, %459 : vector<8x128xf32>
    %468 = arith.mulf %467, %465 : vector<8x128xf32>
    %469 = arith.mulf %459, %400 : vector<8x128xf32>
    %470 = arith.addf %468, %469 : vector<8x128xf32>
    %c6_150 = arith.constant 6 : index
    %c0_151 = arith.constant 0 : index
    %c0_152 = arith.constant 0 : index
    %471 = vector.load %arg5[%c6_150, %c0_151, %c0_152] : memref<8x8x128xf32, #tpu.memory_space<vmem>>, vector<1x8x128xf32>
    %472 = vector.shape_cast %471 : vector<1x8x128xf32> to vector<8x128xf32>
    %473 = vector.shape_cast %470 : vector<8x128xf32> to vector<1x8x128xf32>
    tpu.vector_store %arg5[%c6_150, %c0_151, %c0_152], %473 {strides = array<i32>} : memref<8x8x128xf32, #tpu.memory_space<vmem>>, vector<1x8x128xf32>,
    %c0_153 = arith.constant 0 : index
    %c1_154 = arith.constant 1 : index
    %c0_155 = arith.constant 0 : index
    %c0_156 = arith.constant 0 : index
    %474 = vector.load %arg2[%c0_153, %c1_154, %c0_155, %c0_156] : memref<1x8x8x384xbf16, #tpu.memory_space<vmem>>, vector<1x1x8x384xbf16>
    %475 = vector.shape_cast %474 : vector<1x1x8x384xbf16> to vector<8x384xbf16>
    %476 = arith.extf %475 : vector<8x384xbf16> to vector<8x384xf32>
    %477 = arith.truncf %435 : vector<8x128xf32> to vector<8x128xbf16>
    %cst_157 = arith.constant dense<0.000000e+00> : vector<8x384xf32>
    %478 = tpu.matmul %477, %6, %cst_157 {dimension_numbers = #tpu.dot_dimension_numbers<[1], [0], [0], [1], [0, 0, 1, 1], [], []>} : vector<8x128xbf16>, vector<128x384xbf16>, vector<8x384xf32> -> vector<8x384xf32>
    %479 = vector.extract_strided_slice %476 {offsets = [0, 0], sizes = [8, 128], strides = [1, 1]} : vector<8x384xf32> to vector<8x128xf32>
    %480 = vector.extract_strided_slice %478 {offsets = [0, 0], sizes = [8, 128], strides = [1, 1]} : vector<8x384xf32> to vector<8x128xf32>
    %481 = arith.addf %479, %480 : vector<8x128xf32>
    %482 = arith.negf %481 : vector<8x128xf32>
    %483 = math.exp %482 : vector<8x128xf32>
    %cst_158 = arith.constant 1.000000e+00 : f32
    %484 = vector.broadcast %cst_158 : f32 to vector<8x128xf32>
    %485 = arith.addf %484, %483 : vector<8x128xf32>
    %486 = arith.divf %484, %485 : vector<8x128xf32>
    %487 = vector.extract_strided_slice %476 {offsets = [0, 128], sizes = [8, 128], strides = [1, 1]} : vector<8x384xf32> to vector<8x128xf32>
    %488 = vector.extract_strided_slice %478 {offsets = [0, 128], sizes = [8, 128], strides = [1, 1]} : vector<8x384xf32> to vector<8x128xf32>
    %489 = arith.addf %487, %488 : vector<8x128xf32>
    %490 = arith.negf %489 : vector<8x128xf32>
    %491 = math.exp %490 : vector<8x128xf32>
    %cst_159 = arith.constant 1.000000e+00 : f32
    %492 = vector.broadcast %cst_159 : f32 to vector<8x128xf32>
    %493 = arith.addf %492, %491 : vector<8x128xf32>
    %494 = arith.divf %492, %493 : vector<8x128xf32>
    %495 = vector.extract_strided_slice %476 {offsets = [0, 256], sizes = [8, 128], strides = [1, 1]} : vector<8x384xf32> to vector<8x128xf32>
    %496 = vector.extract_strided_slice %478 {offsets = [0, 256], sizes = [8, 128], strides = [1, 1]} : vector<8x384xf32> to vector<8x128xf32>
    %497 = arith.addf %496, %14 : vector<8x128xf32>
    %498 = arith.mulf %486, %497 : vector<8x128xf32>
    %499 = arith.addf %495, %498 : vector<8x128xf32>
    %500 = math.tanh %499 : vector<8x128xf32>
    %cst_160 = arith.constant 1.000000e+00 : f32
    %501 = vector.broadcast %cst_160 : f32 to vector<8x128xf32>
    %502 = arith.subf %501, %494 : vector<8x128xf32>
    %503 = arith.mulf %502, %500 : vector<8x128xf32>
    %504 = arith.mulf %494, %435 : vector<8x128xf32>
    %505 = arith.addf %503, %504 : vector<8x128xf32>
    %c1_161 = arith.constant 1 : index
    %c0_162 = arith.constant 0 : index
    %c0_163 = arith.constant 0 : index
    %506 = vector.load %arg6[%c1_161, %c0_162, %c0_163] : memref<8x8x128xf32, #tpu.memory_space<vmem>>, vector<1x8x128xf32>
    %507 = vector.shape_cast %506 : vector<1x8x128xf32> to vector<8x128xf32>
    %508 = vector.shape_cast %505 : vector<8x128xf32> to vector<1x8x128xf32>
    tpu.vector_store %arg6[%c1_161, %c0_162, %c0_163], %508 {strides = array<i32>} : memref<8x8x128xf32, #tpu.memory_space<vmem>>, vector<1x8x128xf32>,
    %c0_164 = arith.constant 0 : index
    %c7_165 = arith.constant 7 : index
    %c0_166 = arith.constant 0 : index
    %c0_167 = arith.constant 0 : index
    %509 = vector.load %arg1[%c0_164, %c7_165, %c0_166, %c0_167] : memref<1x8x8x384xbf16, #tpu.memory_space<vmem>>, vector<1x1x8x384xbf16>
    %510 = vector.shape_cast %509 : vector<1x1x8x384xbf16> to vector<8x384xbf16>
    %511 = arith.extf %510 : vector<8x384xbf16> to vector<8x384xf32>
    %512 = arith.truncf %470 : vector<8x128xf32> to vector<8x128xbf16>
    %cst_168 = arith.constant dense<0.000000e+00> : vector<8x384xf32>
    %513 = tpu.matmul %512, %4, %cst_168 {dimension_numbers = #tpu.dot_dimension_numbers<[1], [0], [0], [1], [0, 0, 1, 1], [], []>} : vector<8x128xbf16>, vector<128x384xbf16>, vector<8x384xf32> -> vector<8x384xf32>
    %514 = vector.extract_strided_slice %511 {offsets = [0, 0], sizes = [8, 128], strides = [1, 1]} : vector<8x384xf32> to vector<8x128xf32>
    %515 = vector.extract_strided_slice %513 {offsets = [0, 0], sizes = [8, 128], strides = [1, 1]} : vector<8x384xf32> to vector<8x128xf32>
    %516 = arith.addf %514, %515 : vector<8x128xf32>
    %517 = arith.negf %516 : vector<8x128xf32>
    %518 = math.exp %517 : vector<8x128xf32>
    %cst_169 = arith.constant 1.000000e+00 : f32
    %519 = vector.broadcast %cst_169 : f32 to vector<8x128xf32>
    %520 = arith.addf %519, %518 : vector<8x128xf32>
    %521 = arith.divf %519, %520 : vector<8x128xf32>
    %522 = vector.extract_strided_slice %511 {offsets = [0, 128], sizes = [8, 128], strides = [1, 1]} : vector<8x384xf32> to vector<8x128xf32>
    %523 = vector.extract_strided_slice %513 {offsets = [0, 128], sizes = [8, 128], strides = [1, 1]} : vector<8x384xf32> to vector<8x128xf32>
    %524 = arith.addf %522, %523 : vector<8x128xf32>
    %525 = arith.negf %524 : vector<8x128xf32>
    %526 = math.exp %525 : vector<8x128xf32>
    %cst_170 = arith.constant 1.000000e+00 : f32
    %527 = vector.broadcast %cst_170 : f32 to vector<8x128xf32>
    %528 = arith.addf %527, %526 : vector<8x128xf32>
    %529 = arith.divf %527, %528 : vector<8x128xf32>
    %530 = vector.extract_strided_slice %511 {offsets = [0, 256], sizes = [8, 128], strides = [1, 1]} : vector<8x384xf32> to vector<8x128xf32>
    %531 = vector.extract_strided_slice %513 {offsets = [0, 256], sizes = [8, 128], strides = [1, 1]} : vector<8x384xf32> to vector<8x128xf32>
    %532 = arith.addf %531, %10 : vector<8x128xf32>
    %533 = arith.mulf %521, %532 : vector<8x128xf32>
    %534 = arith.addf %530, %533 : vector<8x128xf32>
    %535 = math.tanh %534 : vector<8x128xf32>
    %cst_171 = arith.constant 1.000000e+00 : f32
    %536 = vector.broadcast %cst_171 : f32 to vector<8x128xf32>
    %537 = arith.subf %536, %529 : vector<8x128xf32>
    %538 = arith.mulf %537, %535 : vector<8x128xf32>
    %539 = arith.mulf %529, %470 : vector<8x128xf32>
    %540 = arith.addf %538, %539 : vector<8x128xf32>
    %c7_172 = arith.constant 7 : index
    %c0_173 = arith.constant 0 : index
    %c0_174 = arith.constant 0 : index
    %541 = vector.load %arg5[%c7_172, %c0_173, %c0_174] : memref<8x8x128xf32, #tpu.memory_space<vmem>>, vector<1x8x128xf32>
    %542 = vector.shape_cast %541 : vector<1x8x128xf32> to vector<8x128xf32>
    %543 = vector.shape_cast %540 : vector<8x128xf32> to vector<1x8x128xf32>
    tpu.vector_store %arg5[%c7_172, %c0_173, %c0_174], %543 {strides = array<i32>} : memref<8x8x128xf32, #tpu.memory_space<vmem>>, vector<1x8x128xf32>,
    %c0_175 = arith.constant 0 : index
    %c0_176 = arith.constant 0 : index
    %c0_177 = arith.constant 0 : index
    %c0_178 = arith.constant 0 : index
    %544 = vector.load %arg2[%c0_175, %c0_176, %c0_177, %c0_178] : memref<1x8x8x384xbf16, #tpu.memory_space<vmem>>, vector<1x1x8x384xbf16>
    %545 = vector.shape_cast %544 : vector<1x1x8x384xbf16> to vector<8x384xbf16>
    %546 = arith.extf %545 : vector<8x384xbf16> to vector<8x384xf32>
    %547 = arith.truncf %505 : vector<8x128xf32> to vector<8x128xbf16>
    %cst_179 = arith.constant dense<0.000000e+00> : vector<8x384xf32>
    %548 = tpu.matmul %547, %6, %cst_179 {dimension_numbers = #tpu.dot_dimension_numbers<[1], [0], [0], [1], [0, 0, 1, 1], [], []>} : vector<8x128xbf16>, vector<128x384xbf16>, vector<8x384xf32> -> vector<8x384xf32>
    %549 = vector.extract_strided_slice %546 {offsets = [0, 0], sizes = [8, 128], strides = [1, 1]} : vector<8x384xf32> to vector<8x128xf32>
    %550 = vector.extract_strided_slice %548 {offsets = [0, 0], sizes = [8, 128], strides = [1, 1]} : vector<8x384xf32> to vector<8x128xf32>
    %551 = arith.addf %549, %550 : vector<8x128xf32>
    %552 = arith.negf %551 : vector<8x128xf32>
    %553 = math.exp %552 : vector<8x128xf32>
    %cst_180 = arith.constant 1.000000e+00 : f32
    %554 = vector.broadcast %cst_180 : f32 to vector<8x128xf32>
    %555 = arith.addf %554, %553 : vector<8x128xf32>
    %556 = arith.divf %554, %555 : vector<8x128xf32>
    %557 = vector.extract_strided_slice %546 {offsets = [0, 128], sizes = [8, 128], strides = [1, 1]} : vector<8x384xf32> to vector<8x128xf32>
    %558 = vector.extract_strided_slice %548 {offsets = [0, 128], sizes = [8, 128], strides = [1, 1]} : vector<8x384xf32> to vector<8x128xf32>
    %559 = arith.addf %557, %558 : vector<8x128xf32>
    %560 = arith.negf %559 : vector<8x128xf32>
    %561 = math.exp %560 : vector<8x128xf32>
    %cst_181 = arith.constant 1.000000e+00 : f32
    %562 = vector.broadcast %cst_181 : f32 to vector<8x128xf32>
    %563 = arith.addf %562, %561 : vector<8x128xf32>
    %564 = arith.divf %562, %563 : vector<8x128xf32>
    %565 = vector.extract_strided_slice %546 {offsets = [0, 256], sizes = [8, 128], strides = [1, 1]} : vector<8x384xf32> to vector<8x128xf32>
    %566 = vector.extract_strided_slice %548 {offsets = [0, 256], sizes = [8, 128], strides = [1, 1]} : vector<8x384xf32> to vector<8x128xf32>
    %567 = arith.addf %566, %14 : vector<8x128xf32>
    %568 = arith.mulf %556, %567 : vector<8x128xf32>
    %569 = arith.addf %565, %568 : vector<8x128xf32>
    %570 = math.tanh %569 : vector<8x128xf32>
    %cst_182 = arith.constant 1.000000e+00 : f32
    %571 = vector.broadcast %cst_182 : f32 to vector<8x128xf32>
    %572 = arith.subf %571, %564 : vector<8x128xf32>
    %573 = arith.mulf %572, %570 : vector<8x128xf32>
    %574 = arith.mulf %564, %505 : vector<8x128xf32>
    %575 = arith.addf %573, %574 : vector<8x128xf32>
    %c0_183 = arith.constant 0 : index
    %c0_184 = arith.constant 0 : index
    %c0_185 = arith.constant 0 : index
    %576 = vector.load %arg6[%c0_183, %c0_184, %c0_185] : memref<8x8x128xf32, #tpu.memory_space<vmem>>, vector<1x8x128xf32>
    %577 = vector.shape_cast %576 : vector<1x8x128xf32> to vector<8x128xf32>
    %578 = vector.shape_cast %575 : vector<8x128xf32> to vector<1x8x128xf32>
    tpu.vector_store %arg6[%c0_183, %c0_184, %c0_185], %578 {strides = array<i32>} : memref<8x8x128xf32, #tpu.memory_space<vmem>>, vector<1x8x128xf32>,
    %c0_186 = arith.constant 0 : index
    %c0_187 = arith.constant 0 : index
    %c0_188 = arith.constant 0 : index
    %579 = vector.load %arg7[%c0_186, %c0_187, %c0_188] : memref<2x8x128xf32, #tpu.memory_space<vmem>>, vector<1x8x128xf32>
    %580 = vector.shape_cast %579 : vector<1x8x128xf32> to vector<8x128xf32>
    %581 = vector.shape_cast %540 : vector<8x128xf32> to vector<1x8x128xf32>
    tpu.vector_store %arg7[%c0_186, %c0_187, %c0_188], %581 {strides = array<i32>} : memref<2x8x128xf32, #tpu.memory_space<vmem>>, vector<1x8x128xf32>,
    %c1_189 = arith.constant 1 : index
    %c0_190 = arith.constant 0 : index
    %c0_191 = arith.constant 0 : index
    %582 = vector.load %arg7[%c1_189, %c0_190, %c0_191] : memref<2x8x128xf32, #tpu.memory_space<vmem>>, vector<1x8x128xf32>
    %583 = vector.shape_cast %582 : vector<1x8x128xf32> to vector<8x128xf32>
    %584 = vector.shape_cast %575 : vector<8x128xf32> to vector<1x8x128xf32>
    tpu.vector_store %arg7[%c1_189, %c0_190, %c0_191], %584 {strides = array<i32>} : memref<2x8x128xf32, #tpu.memory_space<vmem>>, vector<1x8x128xf32>,
    return
  }
  func.func @transform_0(%arg0: i32) -> (i32, i32, i32, i32) {
    %c0_i32 = arith.constant 0 : i32
    %c0_i32_0 = arith.constant 0 : i32
    %c0_i32_1 = arith.constant 0 : i32
    %c0_i32_2 = arith.constant 0 : i32
    return %c0_i32, %arg0, %c0_i32_0, %c0_i32_1 : i32, i32, i32, i32
  }
  func.func @transform_1(%arg0: i32) -> (i32, i32, i32, i32) {
    %c0_i32 = arith.constant 0 : i32
    %0 = arith.subi %c0_i32, %arg0 : i32
    %c1_i32 = arith.constant 1 : i32
    %c0_i32_0 = arith.constant 0 : i32
    %c0_i32_1 = arith.constant 0 : i32
    %c0_i32_2 = arith.constant 0 : i32
    return %c1_i32, %0, %c0_i32_0, %c0_i32_1 : i32, i32, i32, i32
  }
  func.func @transform_2(%arg0: i32) -> (i32, i32, i32) {
    %c0_i32 = arith.constant 0 : i32
    %c0_i32_0 = arith.constant 0 : i32
    %c0_i32_1 = arith.constant 0 : i32
    %c0_i32_2 = arith.constant 0 : i32
    return %c0_i32, %c0_i32_0, %c0_i32_1 : i32, i32, i32
  }
  func.func @transform_3(%arg0: i32) -> (i32, i32, i32) {
    %c0_i32 = arith.constant 0 : i32
    %c0_i32_0 = arith.constant 0 : i32
    %c0_i32_1 = arith.constant 0 : i32
    %c0_i32_2 = arith.constant 0 : i32
    return %c0_i32, %c0_i32_0, %c0_i32_1 : i32, i32, i32
  }
  func.func @transform_4(%arg0: i32) -> (i32, i32, i32) {
    %c0_i32 = arith.constant 0 : i32
    %c0_i32_0 = arith.constant 0 : i32
    %c0_i32_1 = arith.constant 0 : i32
    return %arg0, %c0_i32, %c0_i32_0 : i32, i32, i32
  }
  func.func @transform_5(%arg0: i32) -> (i32, i32, i32) {
    %c0_i32 = arith.constant 0 : i32
    %0 = arith.subi %c0_i32, %arg0 : i32
    %c0_i32_0 = arith.constant 0 : i32
    %c0_i32_1 = arith.constant 0 : i32
    %c0_i32_2 = arith.constant 0 : i32
    return %0, %c0_i32_0, %c0_i32_1 : i32, i32, i32
  }
  func.func @transform_6(%arg0: i32) -> (i32, i32, i32) {
    %c0_i32 = arith.constant 0 : i32
    %c0_i32_0 = arith.constant 0 : i32
    %c0_i32_1 = arith.constant 0 : i32
    %c0_i32_2 = arith.constant 0 : i32
    return %c0_i32, %c0_i32_0, %c0_i32_1 : i32, i32, i32
  }
}

</mosaic_0001>

<bundles_post_ra>
// kernel: gru_layer_forward.2
= control target key start
LH: loop header
LB: loop body
LE: loop exit
PB: predicated region body
PF: predicated region fallthrough
CT: control target
= control target key end

     0   :  { %12 = vsyncpa [#allocation3], 0  ;;  %s2520_s24 = smov [#allocation2]   ;;  %s2521_s26 = smov 192   ;;  %s3390_s0 = inlined_call_operand.vmem [shape: bf16[2,8,8,384], index: 0, kind: input, shape index: {}, may-alias: {0,1}]   ;;  %s3391_s1 = inlined_call_operand.vmem [shape: bf16[2,8,8,384], index: 1, kind: input, shape index: {}, may-alias: {0,1}]   ;;  %s3392_s2 = inlined_call_operand.hbm [shape: bf16[2,128,384], index: 2, kind: input, shape index: {}]   ;;  %s3393_s3 = inlined_call_operand.vmem [shape: f32[2,1,128], index: 3, kind: input, shape index: {}]   ;;  %s3394_s4 = inlined_call_operand.vmem [shape: f32[8,8,128], index: 4, kind: output, shape index: {0}]   ;;  %s3395_s5 = inlined_call_operand.vmem [shape: f32[8,8,128], index: 5, kind: output, shape index: {1}]   ;;  %s3396_s6 = inlined_call_operand.vmem [shape: f32[2,8,128], index: 6, kind: output, shape index: {2}]  }
   0x1   :  { %s31_s23 = sshll.u32 %s3392_s2, 4  ;;  %s33_s25 = sshll.u32 %s2520_s24, 4  ;;  %s32_s23 = int_to_ptr.hbm [resolvable:$true] %s31_s23  ;;  %s34_s25 = int_to_ptr.vmem [resolvable:$true] %s33_s25 }
   0x2   :  { %s2522_s27 = smov 12  }
   0x3   :  { %39 = dma.hbm_to_vmem [thread:$0]  %s32_s23, 6144, %s34_s25, [#allocation3], %s2521_s26, %s2521_s26, %s2522_s27  }
   0x4   :  { %2518 = dma.done.wait [#allocation3], 6144  }
   0x5   :  { %2519 = vsyncadd [#allocation3], 4294961152  ;;  %v2093_v0 = vld [vmem:[#allocation2 + $0xa8] sm:$0xf]  ;;  %v2298_v1 = vld [vmem:[#allocation2 + $0xb0] sm:$0xf0] }
   0x6   :  { %v2193_v2 = vld [vmem:[#allocation2 + $0x168] sm:$0xf]  ;;  %v2562_v3 = vor.u32 %v2298_v1, %v2093_v0  ;;  %v2322_v4 = vld [vmem:[#allocation2 + $0x170] sm:$0xf0]  ;;  %v2297_v5 = vld [vmem:[#allocation2 + $0xac] sm:$0xf] }
   0x7   :  { %v2095_v6 = vld [vmem:[#allocation2 + $0xb4] sm:$0xf0]  ;;  %v2564_v7 = vor.u32 %v2322_v4, %v2193_v2  ;;  %v2081_v9 = vld [vmem:[#allocation2 + $0x90] sm:$0xf]  ;;  %v2295_v10 = vld [vmem:[#allocation2 + $0x98] sm:$0xf0] }
   0x8   :  { %v2566_v8 = vor.u32 %v2297_v5, %v2095_v6  ;;  %v2181_v11 = vld [vmem:[#allocation2 + $0x150] sm:$0xf]  ;;  %295 = vmatpush.bf16.msra.mxu0 %v2562_v3  ;;  %v2569_v12 = vor.u32 %v2295_v10, %v2081_v9  ;;  %v2319_v13 = vld [vmem:[#allocation2 + $0x158] sm:$0xf0]  ;;  %v2294_v14 = vld [vmem:[#allocation2 + $0x94] sm:$0xf] }
   0x9   :  { %v2083_v15 = vld [vmem:[#allocation2 + $0x9c] sm:$0xf0]  ;;  %518 = vmatpush.bf16.msra.mxu3 %v2564_v7  ;;  %v2573_v16 = vor.u32 %v2319_v13, %v2181_v11  ;;  %v2069_v18 = vld [vmem:[#allocation2 + $0x78] sm:$0xf]  ;;  %v2292_v19 = vld [vmem:[#allocation2 + $0x80] sm:$0xf0] }
   0xa   :  { %308 = vmatpush.bf16.msra.mxu1 %v2566_v8  ;;  %v2575_v17 = vor.u32 %v2294_v14, %v2083_v15  ;;  %v2169_v20 = vld [vmem:[#allocation2 + $0x138] sm:$0xf]  ;;  %v2316_v21 = vld [vmem:[#allocation2 + $0x140] sm:$0xf0]  ;;  %v2291_v22 = vld [vmem:[#allocation2 + $0x7c] sm:$0xf]  ;;  %v2578_v24 = vor.u32 %v2292_v19, %v2069_v18 }
   0xb   :  { %v2071_v23 = vld [vmem:[#allocation2 + $0x84] sm:$0xf0]  ;;  %v2582_v25 = vor.u32 %v2316_v21, %v2169_v20  ;;  %v2057_v27 = vld [vmem:[#allocation2 + $0x60] sm:$0xf]  ;;  %v2289_v28 = vld [vmem:[#allocation2 + $0x68] sm:$0xf0] }
   0xc   :  { %296 = vmatpush.bf16.msra.mxu0 %v2569_v12  ;;  %v2584_v26 = vor.u32 %v2291_v22, %v2071_v23  ;;  %v2157_v29 = vld [vmem:[#allocation2 + $0x120] sm:$0xf]  ;;  %v2313_v30 = vld [vmem:[#allocation2 + $0x128] sm:$0xf0]  ;;  %v2288_v31 = vld [vmem:[#allocation2 + $0x64] sm:$0xf]  ;;  %v2587_v34 = vor.u32 %v2289_v28, %v2057_v27 }
   0xd   :  { %519 = vmatpush.bf16.msra.mxu3 %v2573_v16  ;;  %v2059_v32 = vld [vmem:[#allocation2 + $0x6c] sm:$0xf0]  ;;  %v2045_v35 = vld [vmem:[#allocation2 + $0x48] sm:$0xf]  ;;  %v2286_v36 = vld [vmem:[#allocation2 + $0x50] sm:$0xf0]  ;;  %v2591_v38 = vor.u32 %v2313_v30, %v2157_v29 }
   0xe   :  { %309 = vmatpush.bf16.msra.mxu1 %v2575_v17  ;;  %3429 = vst [vmem:[#allocation5_spill] sm:$0xff] %v2584_v26  ;;  %v2101_v33 = vld [vmem:[#allocation2 + $0xb0] sm:$0xf]  ;;  %v2299_v37 = vld [vmem:[#allocation2 + $0xb8] sm:$0xf0]  ;;  %v2593_v39 = vor.u32 %v2288_v31, %v2059_v32  ;;  %v2601_v48 = vor.u32 %v2286_v36, %v2045_v35 }
   0xf   :  { %3430 = vst [vmem:[#allocation6_spill] sm:$0xff] %v2587_v34  ;;  %v2145_v40 = vld [vmem:[#allocation2 + $0x108] sm:$0xf]  ;;  %v2310_v41 = vld [vmem:[#allocation2 + $0x110] sm:$0xf0]  ;;  %v2595_v43 = vor.u32 %v2299_v37, %v2101_v33 }
  0x10   :  { %297 = vmatpush.bf16.msra.mxu0 %v2578_v24  ;;  %3431 = vst [vmem:[#allocation7_spill] sm:$0xff] %v2593_v39  ;;  %v2285_v42 = vld [vmem:[#allocation2 + $0x4c] sm:$0xf]  ;;  %v2047_v44 = vld [vmem:[#allocation2 + $0x54] sm:$0xf0]  ;;  %v2605_v51 = vor.u32 %v2310_v41, %v2145_v40 }
  0x11   :  { %520 = vmatpush.bf16.msra.mxu3 %v2582_v25  ;;  %v2089_v45 = vld [vmem:[#allocation2 + $0x98] sm:$0xf]  ;;  %v2296_v46 = vld [vmem:[#allocation2 + $0xa0] sm:$0xf0]  ;;  %321 = vmatpush.bf16.msra.mxu2 %v2595_v43  ;;  %3432 = vst [vmem:[#allocation8_spill] sm:$0xff] %v2601_v48  ;;  %v2607_v52 = vor.u32 %v2285_v42, %v2047_v44 }
  0x12   :  { %310 = vmatpush.bf16.msra.mxu1 %v2584_v26  ;;  %v2598_v47 = vor.u32 %v2296_v46, %v2089_v45  ;;  %v2033_v49 = vld [vmem:[#allocation2 + $0x30] sm:$0xf]  ;;  %v2283_v50 = vld [vmem:[#allocation2 + $0x38] sm:$0xf0]  ;;  %v2077_v54 = vld [vmem:[#allocation2 + $0x80] sm:$0xf] }
  0x13   :  { %3433 = vst [vmem:[#allocation9_spill] sm:$0xff] %v2607_v52  ;;  %v2133_v53 = vld [vmem:[#allocation2 + $0xf0] sm:$0xf]  ;;  %v2293_v55 = vld [vmem:[#allocation2 + $0x88] sm:$0xf0]  ;;  %v2613_v60 = vor.u32 %v2283_v50, %v2033_v49 }
  0x14   :  { %298 = vmatpush.bf16.msra.mxu0 %v2587_v34  ;;  %v2307_v56 = vld [vmem:[#allocation2 + $0xf8] sm:$0xf0]  ;;  %v2282_v57 = vld [vmem:[#allocation2 + $0x34] sm:$0xf]  ;;  %v2035_v58 = vld [vmem:[#allocation2 + $0x3c] sm:$0xf0]  ;;  %v2610_v59 = vor.u32 %v2293_v55, %v2077_v54 }
  0x15   :  { %521 = vmatpush.bf16.msra.mxu3 %v2591_v38  ;;  %322 = vmatpush.bf16.msra.mxu2 %v2598_v47  ;;  %3434 = vst [vmem:[#allocation10_spill] sm:$0xff] %v2613_v60  ;;  %v2065_v61 = vld [vmem:[#allocation2 + $0x68] sm:$0xf]  ;;  %v2290_v62 = vld [vmem:[#allocation2 + $0x70] sm:$0xf0]  ;;  %v2617_v63 = vor.u32 %v2307_v56, %v2133_v53  ;;  %v2619_v0 = vor.u32 %v2282_v57, %v2035_v58  ;;  %v2523_v58 = vmov 0.0|0.0  }
  0x16   :  { %311 = vmatpush.bf16.msra.mxu1 %v2593_v39  ;;  %v2021_v1 = vld [vmem:[#allocation2 + $0x18] sm:$0xf]  ;;  %v2280_v2 = vld [vmem:[#allocation2 + $0x20] sm:$0xf0]  ;;  %v2279_v6 = vld [vmem:[#allocation2 + $0x1c] sm:$0xf]  ;;  %v2622_v10 = vor.u32 %v2290_v62, %v2065_v61 }
  0x17   :  { %3435 = vst [vmem:[#allocation11_spill] sm:$0xff] %v2619_v0  ;;  %v2121_v4 = vld [vmem:[#allocation2 + $0xd8] sm:$0xf]  ;;  %v2304_v5 = vld [vmem:[#allocation2 + $0xe0] sm:$0xf0]  ;;  %v2625_v11 = vor.u32 %v2280_v2, %v2021_v1 }
  0x18   :  { %299 = vmatpush.bf16.msra.mxu0 %v2601_v48  ;;  %v2023_v9 = vld [vmem:[#allocation2 + $0x24] sm:$0xf0]  ;;  %v2053_v13 = vld [vmem:[#allocation2 + $0x50] sm:$0xf]  ;;  %v2287_v14 = vld [vmem:[#allocation2 + $0x58] sm:$0xf0]  ;;  %v2629_v15 = vor.u32 %v2304_v5, %v2121_v4 }
  0x19   :  { %522 = vmatpush.bf16.msra.mxu3 %v2605_v51  ;;  %323 = vmatpush.bf16.msra.mxu2 %v2610_v59  ;;  %3436 = vst [vmem:[#allocation12_spill] sm:$0xff] %v2625_v11  ;;  %v2631_v18 = vor.u32 %v2279_v6, %v2023_v9  ;;  %v2009_v19 = vld [vmem:[#allocation2] sm:$0xf]  ;;  %v2277_v20 = vld [vmem:[#allocation2 + $0x8] sm:$0xf0]  ;;  %v2634_v30 = vor.u32 %v2287_v14, %v2053_v13 }
  0x1a   :  { %312 = vmatpush.bf16.msra.mxu1 %v2607_v52  ;;  %v2109_v21 = vld [vmem:[#allocation2 + $0xc0] sm:$0xf]  ;;  %v2301_v22 = vld [vmem:[#allocation2 + $0xc8] sm:$0xf0]  ;;  %v2195_v27 = vld [vmem:[#allocation2 + $0x174] sm:$0xf0]  ;;  %v2637_v31 = vor.u32 %v2277_v20, %v2009_v19 }
  0x1b   :  { %3437 = vst [vmem:[#allocation13_spill] sm:$0xff] %v2631_v18  ;;  %v2321_v23 = vld [vmem:[#allocation2 + $0x16c] sm:$0xf]  ;;  %v2276_v28 = vld [vmem:[#allocation2 + $0x4] sm:$0xf]  ;;  %v2641_v35 = vor.u32 %v2301_v22, %v2109_v21 }
  0x1c   :  { %300 = vmatpush.bf16.msra.mxu0 %v2613_v60  ;;  %v2011_v29 = vld [vmem:[#allocation2 + $0xc] sm:$0xf0]  ;;  %3438 = vst [vmem:[#allocation14_spill] sm:$0xff] %v2637_v31  ;;  %v2323_v33 = vld [vmem:[#allocation2 + $0x178] sm:$0xf0]  ;;  %v2643_v36 = vor.u32 %v2321_v23, %v2195_v27 }
  0x1d   :  { %523 = vmatpush.bf16.msra.mxu3 %v2617_v63  ;;  %324 = vmatpush.bf16.msra.mxu2 %v2622_v10  ;;  %v2201_v32 = vld [vmem:[#allocation2 + $0x170] sm:$0xf]  ;;  %v2041_v37 = vld [vmem:[#allocation2 + $0x38] sm:$0xf]  ;;  %v2284_v40 = vld [vmem:[#allocation2 + $0x40] sm:$0xf0]  ;;  %v2645_v41 = vor.u32 %v2276_v28, %v2011_v29 }
  0x1e   :  { %313 = vmatpush.bf16.msra.mxu1 %v2619_v0  ;;  %v2318_v42 = vld [vmem:[#allocation2 + $0x154] sm:$0xf]  ;;  %v2183_v44 = vld [vmem:[#allocation2 + $0x15c] sm:$0xf0]  ;;  %v2647_v45 = vor.u32 %v2323_v33, %v2201_v32  ;;  %v2189_v46 = vld [vmem:[#allocation2 + $0x158] sm:$0xf]  ;;  %v2651_v50 = vor.u32 %v2284_v40, %v2041_v37 }
  0x1f   :  { %3439 = vst [vmem:[#allocation15_spill] sm:$0xff] %v2645_v41  ;;  %v2320_v49 = vld [vmem:[#allocation2 + $0x160] sm:$0xf0]  ;;  %v2029_v53 = vld [vmem:[#allocation2 + $0x20] sm:$0xf]  ;;  %v2655_v54 = vor.u32 %v2318_v42, %v2183_v44 }
  0x20   :  { %301 = vmatpush.bf16.msra.mxu0 %v2625_v11  ;;  %v2281_v55 = vld [vmem:[#allocation2 + $0x28] sm:$0xf0]  ;;  %v2315_v56 = vld [vmem:[#allocation2 + $0x13c] sm:$0xf]  ;;  %v2171_v57 = vld [vmem:[#allocation2 + $0x144] sm:$0xf0]  ;;  %v2661_v61 = vor.u32 %v2320_v49, %v2189_v46 }
  0x21   :  { %524 = vmatpush.bf16.msra.mxu3 %v2629_v15  ;;  %325 = vmatpush.bf16.msra.mxu2 %v2634_v30  ;;  %v2177_v62 = vld [vmem:[#allocation2 + $0x140] sm:$0xf]  ;;  %v2317_v1 = vld [vmem:[#allocation2 + $0x148] sm:$0xf0]  ;;  %v2665_v2 = vor.u32 %v2281_v55, %v2029_v53  ;;  %v2669_v4 = vor.u32 %v2315_v56, %v2171_v57  ;;  %v2017_v5 = vld [vmem:[#allocation2 + $0x8] sm:$0xf] }
  0x22   :  { %314 = vmatpush.bf16.msra.mxu1 %v2631_v18  ;;  %v2278_v6 = vld [vmem:[#allocation2 + $0x10] sm:$0xf0]  ;;  %v2312_v9 = vld [vmem:[#allocation2 + $0x124] sm:$0xf]  ;;  %v2159_v13 = vld [vmem:[#allocation2 + $0x12c] sm:$0xf0]  ;;  %v2673_v14 = vor.u32 %v2317_v1, %v2177_v62 }
  0x23   :  { %v2165_v19 = vld [vmem:[#allocation2 + $0x128] sm:$0xf]  ;;  %v2314_v20 = vld [vmem:[#allocation2 + $0x130] sm:$0xf0]  ;;  %v2676_v21 = vor.u32 %v2278_v6, %v2017_v5  ;;  %v2679_v22 = vor.u32 %v2312_v9, %v2159_v13  ;;  %v2309_v23 = vld [vmem:[#allocation2 + $0x10c] sm:$0xf] }
  0x24   :  { %302 = vmatpush.bf16.msra.mxu0 %v2637_v31  ;;  %v2147_v27 = vld [vmem:[#allocation2 + $0x114] sm:$0xf0]  ;;  %v2683_v28 = vor.u32 %v2314_v20, %v2165_v19  ;;  %v2153_v29 = vld [vmem:[#allocation2 + $0x110] sm:$0xf]  ;;  %v2311_v32 = vld [vmem:[#allocation2 + $0x118] sm:$0xf0] }
  0x25   :  { %525 = vmatpush.bf16.msra.mxu3 %v2641_v35  ;;  %326 = vmatpush.bf16.msra.mxu2 %v2651_v50  ;;  %v2687_v33 = vor.u32 %v2309_v23, %v2147_v27  ;;  %v2306_v37 = vld [vmem:[#allocation2 + $0xf4] sm:$0xf]  ;;  %v2135_v40 = vld [vmem:[#allocation2 + $0xfc] sm:$0xf0]  ;;  %v2692_v42 = vor.u32 %v2311_v32, %v2153_v29  ;;  %v2141_v44 = vld [vmem:[#allocation2 + $0xf8] sm:$0xf] }
  0x26   :  { %315 = vmatpush.bf16.msra.mxu1 %v2645_v41  ;;  %v2308_v46 = vld [vmem:[#allocation2 + $0x100] sm:$0xf0]  ;;  %v2696_v49 = vor.u32 %v2306_v37, %v2135_v40  ;;  %v2303_v53 = vld [vmem:[#allocation2 + $0xdc] sm:$0xf]  ;;  %v2123_v55 = vld [vmem:[#allocation2 + $0xe4] sm:$0xf0] }
  0x27   :  { %303 = vmatmul.bf16.vlgmr.msra.gmra.mxu0 %v2523_v58  ;;  %v2701_v56 = vor.u32 %v2308_v46, %v2141_v44  ;;  %v2129_v57 = vld [vmem:[#allocation2 + $0xe0] sm:$0xf]  ;;  %v2305_v62 = vld [vmem:[#allocation2 + $0xe8] sm:$0xf0]  ;;  %v2704_v1 = vor.u32 %v2303_v53, %v2123_v55  ;;  %v2300_v5 = vld [vmem:[#allocation2 + $0xc4] sm:$0xf] }
  0x28   :  { %531 = vmatpush.bf16.msrb.mxu0 %v2643_v36  ;;  %526 = vmatmul.bf16.vlgmr.msra.gmra.mxu3 %v2523_v58  ;;  %v2111_v6 = vld [vmem:[#allocation2 + $0xcc] sm:$0xf0]  ;;  %v2709_v9 = vor.u32 %v2305_v62, %v2129_v57  ;;  %v2117_v13 = vld [vmem:[#allocation2 + $0xc8] sm:$0xf]  ;;  %v2302_v19 = vld [vmem:[#allocation2 + $0xd0] sm:$0xf0] }
  0x29   :  { %627 = vmatpush.bf16.msrb.mxu3 %v2566_v8  ;;  %316 = vmatmul.bf16.vlgmr.msra.gmra.mxu1 %v2523_v58  ;;  %3440 = vst [vmem:[#allocation16_spill] sm:$0xff] %v2701_v56  ;;  %v2712_v20 = vor.u32 %v2300_v5, %v2111_v6  ;;  %v2717_v23 = vor.u32 %v2302_v19, %v2117_v13  ;;  %v2105_v40 = vld [vmem:[%s3391_s1 + $0xb4] sm:$0xff] }
  0x2a   :  { %544 = vmatpush.bf16.msrb.mxu1 %v2647_v45  ;;  %327 = vmatpush.bf16.msra.mxu2 %v2665_v2  ;;  %3441 = vst [vmem:[#allocation17_spill] sm:$0xff] %v2709_v9  ;;  %v386_v55 = vunpack.c.l.bf16 %v2105_v40 }
  0x2b   :  { %3442 = vst [vmem:[#allocation18_spill] sm:$0xff] %v2717_v23 }
  0x2c   :  { %532 = vmatpush.bf16.msrb.mxu0 %v2655_v54 }
  0x2d   :  { %628 = vmatpush.bf16.msrb.mxu3 %v2575_v17 }
  0x2e   :  { %545 = vmatpush.bf16.msrb.mxu1 %v2661_v61  ;;  %328 = vmatpush.bf16.msra.mxu2 %v2676_v21 }
  0x30   :  { %533 = vmatpush.bf16.msrb.mxu0 %v2669_v4 }
  0x31   :  { %629 = vmatpush.bf16.msrb.mxu3 %v2584_v26  ;;  %329 = vmatmul.bf16.vlgmr.msra.gmra.mxu2 %v2523_v58 }
  0x32   :  { %546 = vmatpush.bf16.msrb.mxu1 %v2673_v14  ;;  %614 = vmatpush.bf16.msrb.mxu2 %v2562_v3 }
  0x34   :  { %534 = vmatpush.bf16.msrb.mxu0 %v2679_v22 }
  0x35   :  { %630 = vmatpush.bf16.msrb.mxu3 %v2593_v39 }
  0x36   :  { %547 = vmatpush.bf16.msrb.mxu1 %v2683_v28  ;;  %615 = vmatpush.bf16.msrb.mxu2 %v2569_v12 }
  0x38   :  { %535 = vmatpush.bf16.msrb.mxu0 %v2687_v33 }
  0x39   :  { %631 = vmatpush.bf16.msrb.mxu3 %v2607_v52 }
  0x3a   :  { %548 = vmatpush.bf16.msrb.mxu1 %v2692_v42  ;;  %616 = vmatpush.bf16.msrb.mxu2 %v2578_v24 }
  0x3c   :  { %536 = vmatpush.bf16.msrb.mxu0 %v2696_v49 }
  0x3d   :  { %632 = vmatpush.bf16.msrb.mxu3 %v2619_v0 }
  0x3e   :  { %549 = vmatpush.bf16.msrb.mxu1 %v2701_v56  ;;  %617 = vmatpush.bf16.msrb.mxu2 %v2587_v34 }
  0x40   :  { %537 = vmatpush.bf16.msrb.mxu0 %v2704_v1 }
  0x41   :  { %633 = vmatpush.bf16.msrb.mxu3 %v2631_v18 }
  0x42   :  { %550 = vmatpush.bf16.msrb.mxu1 %v2709_v9  ;;  %618 = vmatpush.bf16.msrb.mxu2 %v2601_v48 }
  0x44   :  { %538 = vmatpush.bf16.msrb.mxu0 %v2712_v20 }
  0x45   :  { %634 = vmatpush.bf16.msrb.mxu3 %v2645_v41 }
  0x46   :  { %551 = vmatpush.bf16.msrb.mxu1 %v2717_v23  ;;  %619 = vmatpush.bf16.msrb.mxu2 %v2613_v60 }
  0x47   :  { %539 = vmatmul.bf16.vlgmr.msrb.gmra.mxu0 %v2523_v58 }
  0x48   :  { %640 = vmatpush.bf16.msra.mxu0 %v2595_v43 }
  0x49   :  { %736 = vmatpush.bf16.msra.mxu3 %v2647_v45  ;;  %552 = vmatmul.bf16.vlgmr.msrb.gmra.mxu1 %v2523_v58  ;;  %v161_v58 = vld [vmem:[%s3390_s0] sm:$0xff] }
  0x4a   :  { %710 = vmatpush.bf16.msra.mxu1 %v2564_v7  ;;  %620 = vmatpush.bf16.msrb.mxu2 %v2625_v11  ;;  %v163_v27 = vunpack.c.l.bf16 %v161_v58  ;;  %v164_v29 = vunpack.c.h.bf16 %v161_v58 }
  0x4c   :  { %641 = vmatpush.bf16.msra.mxu0 %v2598_v47 }
  0x4d   :  { %737 = vmatpush.bf16.msra.mxu3 %v2661_v61 }
  0x4e   :  { %711 = vmatpush.bf16.msra.mxu1 %v2573_v16  ;;  %621 = vmatpush.bf16.msrb.mxu2 %v2637_v31 }
  0x50   :  { %642 = vmatpush.bf16.msra.mxu0 %v2610_v59 }
  0x51   :  { %738 = vmatpush.bf16.msra.mxu3 %v2673_v14 }
  0x52   :  { %712 = vmatpush.bf16.msra.mxu1 %v2582_v25  ;;  %723 = vmatpush.bf16.msra.mxu2 %v2643_v36 }
  0x54   :  { %643 = vmatpush.bf16.msra.mxu0 %v2622_v10 }
  0x55   :  { %739 = vmatpush.bf16.msra.mxu3 %v2683_v28 }
  0x56   :  { %713 = vmatpush.bf16.msra.mxu1 %v2591_v38  ;;  %724 = vmatpush.bf16.msra.mxu2 %v2655_v54 }
  0x58   :  { %644 = vmatpush.bf16.msra.mxu0 %v2634_v30 }
  0x59   :  { %740 = vmatpush.bf16.msra.mxu3 %v2692_v42 }
  0x5a   :  { %714 = vmatpush.bf16.msra.mxu1 %v2605_v51  ;;  %725 = vmatpush.bf16.msra.mxu2 %v2669_v4 }
  0x5c   :  { %645 = vmatpush.bf16.msra.mxu0 %v2651_v50 }
  0x5d   :  { %741 = vmatpush.bf16.msra.mxu3 %v2701_v56 }
  0x5e   :  { %715 = vmatpush.bf16.msra.mxu1 %v2617_v63  ;;  %726 = vmatpush.bf16.msra.mxu2 %v2679_v22 }
  0x60   :  { %646 = vmatpush.bf16.msra.mxu0 %v2665_v2 }
  0x61   :  { %742 = vmatpush.bf16.msra.mxu3 %v2709_v9 }
  0x62   :  { %716 = vmatpush.bf16.msra.mxu1 %v2629_v15  ;;  %727 = vmatpush.bf16.msra.mxu2 %v2687_v33 }
  0x64   :  { %647 = vmatpush.bf16.msra.mxu0 %v2676_v21 }
  0x65   :  { %743 = vmatpush.bf16.msra.mxu3 %v2717_v23 }
  0x66   :  { %717 = vmatpush.bf16.msra.mxu1 %v2641_v35  ;;  %728 = vmatpush.bf16.msra.mxu2 %v2696_v49 }
  0x68   :  { %806 = vmatpush.bf16.msrb.mxu0 %v2562_v3 }
  0x6a   :  { %819 = vmatpush.bf16.msrb.mxu1 %v2566_v8  ;;  %729 = vmatpush.bf16.msra.mxu2 %v2704_v1 }
  0x6c   :  { %807 = vmatpush.bf16.msrb.mxu0 %v2569_v12 }
  0x6e   :  { %820 = vmatpush.bf16.msrb.mxu1 %v2575_v17  ;;  %730 = vmatpush.bf16.msra.mxu2 %v2712_v20 }
  0x70   :  { %808 = vmatpush.bf16.msrb.mxu0 %v2578_v24 }
  0x72   :  { %821 = vmatpush.bf16.msrb.mxu1 %v2584_v26 }
  0x74   :  { %809 = vmatpush.bf16.msrb.mxu0 %v2587_v34 }
  0x76   :  { %822 = vmatpush.bf16.msrb.mxu1 %v2593_v39 }
  0x78   :  { %810 = vmatpush.bf16.msrb.mxu0 %v2601_v48 }
  0x7a   :  { %823 = vmatpush.bf16.msrb.mxu1 %v2607_v52 }
  0x7c   :  { %811 = vmatpush.bf16.msrb.mxu0 %v2613_v60 }
  0x7e   :  { %824 = vmatpush.bf16.msrb.mxu1 %v2619_v0 }
  0x80   :  { %812 = vmatpush.bf16.msrb.mxu0 %v2625_v11 }
  0x82   :  { %825 = vmatpush.bf16.msrb.mxu1 %v2631_v18 }
  0x84   :  { %813 = vmatpush.bf16.msrb.mxu0 %v2637_v31 }
  0x86   :  { %826 = vmatpush.bf16.msrb.mxu1 %v2645_v41 }
  0xa4   :  { %v304_v32 = vpop.f32.mrf.mxu0 }
  0xa5   :  { %v334_v37 = vadd.f32 %v304_v32, %v163_v27 }
  0xa6   :  { %v317_v44 = vpop.f32.mrf.mxu1 }
  0xa7   :  { %v2103_v46 = vmul.f32 -1.442695, %v334_v37  ;;  %v354_v53 = vadd.f32 %v317_v44, %v164_v29 }
  0xa9   :  { %2330 = vpow2.f32 %v2103_v46  ;;  %v2104_v57 = vmul.f32 -1.442695, %v354_v53 }
  0xab   :  { %2332 = vpow2.f32 %v2104_v57  ;;  %v527_v62 = vpop.f32.mrf.mxu3 }
  0xac   :  { %v557_v5 = vadd.f32 %v527_v62, %v386_v55  ;;  %v306_v6 = vpop.f32.mrf.mxu0 }
  0xae   :  { %v2203_v13 = vmul.f32 -1.442695, %v557_v5  ;;  %v319_v19 = vpop.f32.mrf.mxu1 }
  0xaf   :  { %v2331_v41 = vpop.eup %2330 }
  0xb0   :  { %v338_v58 = vadd.f32 1.0, %v2331_v41  ;;  %2334 = vpow2.f32 %v2203_v13  ;;  %v2788_v41 = vld [vmem:[%s3393_s3] ss:$0 sm:$0xff]  ;;  %v387_v13 = vunpack.c.h.bf16 %v2105_v40 }
  0xb1   :  { %v2333_v27 = vpop.eup %2332  ;;  %3443 = vst [vmem:[#allocation19_spill] sm:$0xff] %v2788_v41 }
  0xb2   :  { %2336 = vrcp.f32 %v338_v58  ;;  %v358_v32 = vadd.f32 1.0, %v2333_v27  ;;  %vm344_vm0 = vweird.f32 %v338_v58  ;;  %v350_v62 = vand.u32 2147483648, %v338_v58 }
  0xb3   :  { %v529_v31 = vpop.f32.mrf.mxu3  ;;  %v348_v6 = vand.u32 2147483647, %v338_v58 }
  0xb4   :  { %2338 = vrcp.f32 %v358_v32  ;;  %v330_v37 = vpop.f32.mrf.mxu2  ;;  %v162_v31 = vld [vmem:[%s3390_s0 + $0x8] sm:$0xf]  ;;  %vm364_vm2 = vweird.f32 %v358_v32  ;;  %v370_v48 = vand.u32 2147483648, %v358_v32 }
  0xb5   :  { %v165_v0 = vunpack.c.l.bf16 %v162_v31  ;;  %v374_v23 = vadd.f32 %v2788_v41, %v330_v37  ;;  %vm349_vm5 = vcmp.eq.f32.partialorder %v348_v6, 8.507059e+37 }
  0xb6   :  { %v2335_v18 = vpop.eup %2334  ;;  %v371_v34 = vor.u32 1.1754944e-38, %v370_v48 }
  0xb7   :  { %v2782_v29 = vadd.f32 1.0, %v2335_v18 }
  0xb8   :  { %v2337_v44 = vpop.eup %2336 }
  0xb9   :  { %2340 = vrcp.f32 %v2782_v29  ;;  %v340_v46 = vmul.f32 %v2337_v44, %v338_v58  ;;  %vm345_vm1 = vweird.f32 %v2337_v44  ;;  %vm567_vm8 = vweird.f32 %v2782_v29 }
  0xba   :  { %v2339_v53 = vpop.eup %2338  ;;  %vm346_vm3 = vmor %vm344_vm0, %vm345_vm1 }
  0xbb   :  { %v360_v55 = vmul.f32 %v2339_v53, %v358_v32  ;;  %v341_v57 = vsub.f32 1.0, %v340_v46  ;;  %v351_v46 = vor.u32 1.1754944e-38, %v350_v62  ;;  %vm365_vm4 = vweird.f32 %v2339_v53 }
  0xbc   :  { %v332_v19 = vpop.f32.mrf.mxu2  ;;  %vm2796_vm6 = vmor %vm364_vm2, %vm365_vm4 }
  0xbd   :  { %v361_v18 = vsub.f32 1.0, %v360_v55  ;;  %v342_v5 = vmul.f32 %v2337_v44, %v341_v57  ;;  %v368_v57 = vand.u32 2147483647, %v358_v32 }
  0xbf   :  { %v2341_v27 = vpop.eup %2340  ;;  %v362_v11 = vmul.f32 %v2339_v53, %v361_v18  ;;  %v343_v60 = vadd.f32 %v2337_v44, %v342_v5  ;;  %vm369_vm7 = vcmp.eq.f32.partialorder %v368_v57, 8.507059e+37  ;;  %v2106_v57 = vld [vmem:[%s3391_s1 + $0xbc] sm:$0xf] }
  0xc0   :  { %v563_v52 = vmul.f32 %v2341_v27, %v2782_v29  ;;  %vm568_vm9 = vweird.f32 %v2341_v27 }
  0xc1   :  { %v347_v9 = vsel %vm346_vm3, %v2337_v44, %v343_v60  ;;  %v363_v39 = vadd.f32 %v2339_v53, %v362_v11  ;;  %vm2805_vm10 = vmor %vm567_vm8, %vm568_vm9 }
  0xc2   :  { %v352_v58 = vsel %vm349_vm5, %v351_v46, %v347_v9  ;;  %v564_v19 = vsub.f32 1.0, %v563_v52  ;;  %v573_v52 = vand.u32 2147483648, %v2782_v29  ;;  %v571_v9 = vand.u32 2147483647, %v2782_v29 }
  0xc3   :  { %v375_v18 = vmul.f32 %v374_v23, %v352_v58  ;;  %v367_v60 = vsel %vm2796_vm6, %v2339_v53, %v363_v39  ;;  %v2812_v39 = vld [vmem:[%s3393_s3 + $0x1] ss:$0 sm:$0xff] }
  0xc4   :  { %v540_v55 = vpop.f32.mrf.mxu0  ;;  %v565_v41 = vmul.f32 %v2341_v27, %v564_v19  ;;  %v372_v32 = vsel %vm369_vm7, %v371_v34, %v367_v60  ;;  %v574_v53 = vor.u32 1.1754944e-38, %v573_v52  ;;  %vm572_vm11 = vcmp.eq.f32.partialorder %v571_v9, 8.507059e+37 }
  0xc5   :  { %v577_v40 = vadd.f32 %v540_v55, %v387_v13  ;;  %v376_v5 = vadd.f32 %v375_v18, %v165_v0  ;;  %v378_v6 = vsub.f32 1.0, %v372_v32  ;;  %v388_v19 = vunpack.c.l.bf16 %v2106_v57  ;;  %v3452_v57 = vld [vmem:[#allocation9_spill] sm:$0xff] }
  0xc6   :  { %v553_v31 = vpop.f32.mrf.mxu1  ;;  %v566_v11 = vadd.f32 %v2341_v27, %v565_v41  ;;  %v380_v41 = vmul.f32 0.0, %v372_v32 }
  0xc7   :  { %v2204_v62 = vmul.f32 -1.442695, %v577_v40  ;;  %v597_v55 = vadd.f32 %v2812_v39, %v553_v31 }
  0xc8   :  { %v570_v29 = vsel %vm2805_vm10, %v2341_v27, %v566_v11 }
  0xc9   :  { %2342 = vpow2.f32 %v2204_v62  ;;  %v575_v58 = vsel %vm572_vm11, %v574_v53, %v570_v29  ;;  %v3448_v29 = vld [vmem:[#allocation6_spill] sm:$0xff] }
  0xca   :  { %2344 = vtanh.f32 %v376_v5  ;;  %v598_v18 = vmul.f32 %v597_v55, %v575_v58  ;;  %v3451_v55 = vld [vmem:[#allocation8_spill] sm:$0xff]  ;;  %v3453_v58 = vld [vmem:[#allocation18_spill] sm:$0xff] }
  0xcc   :  { %v542_v23 = vpop.f32.mrf.mxu0  ;;  %v599_v62 = vadd.f32 %v598_v18, %v388_v19  ;;  %v3455_v19 = vld [vmem:[#allocation11_spill] sm:$0xff]  ;;  %v3456_v18 = vld [vmem:[#allocation12_spill] sm:$0xff] }
  0xce   :  { %v555_v48 = vpop.f32.mrf.mxu1 }
  0xcf   :  { %v2343_v44 = vpop.eup %2342 }
  0xd0   :  { %v2345_v13 = vpop.eup %2344  ;;  %v581_v46 = vadd.f32 1.0, %v2343_v44 }
  0xd1   :  { %v379_v34 = vmul.f32 %v2345_v13, %v378_v6 }
  0xd2   :  { %2346 = vrcp.f32 %v581_v46  ;;  %v593_v60 = vand.u32 2147483648, %v581_v46  ;;  %v591_v11 = vand.u32 2147483647, %v581_v46  ;;  %vm587_vm13 = vweird.f32 %v581_v46 }
  0xd3   :  { %v2820_v40 = vadd.f32 %v380_v41, %v379_v34  ;;  %2348 = vtanh.f32 %v599_v62  ;;  %v3449_v34 = vld [vmem:[#allocation7_spill] sm:$0xff]  ;;  %v3450_v41 = vld [vmem:[#allocation17_spill] sm:$0xff] }
  0xd4   :  { %v594_v23 = vor.u32 1.1754944e-38, %v593_v60  ;;  %vm592_vm15 = vcmp.eq.f32.partialorder %v591_v11, 8.507059e+37  ;;  %v3459_v62 = vld [vmem:[#allocation15_spill] sm:$0xff] }
  0xd5   :  { %382 = vst [vmem:[%s3394_s4] sm:$0xff] %v2820_v40  ;;  %v613_v27 = vpack.c.bf16 %v2820_v40, %v2820_v40 }
  0xd7   :  { %622 = vmatmul.bf16.vlgmr.msrb.gmra.mxu2 %v613_v27  ;;  %635 = vmatmul.bf16.vlgmr.msrb.gmra.mxu3 %v613_v27 }
  0xd8   :  { %v2347_v31 = vpop.eup %2346  ;;  %648 = vmatmul.bf16.vlgmr.msra.gmra.mxu0 %v613_v27  ;;  %832 = vmatpush.bf16.msrb.mxu2 %v2595_v43  ;;  %v3454_v27 = vld [vmem:[#allocation10_spill] sm:$0xff] }
  0xd9   :  { %v583_v37 = vmul.f32 %v2347_v31, %v581_v46  ;;  %902 = vmatpush.bf16.msrb.mxu3 %v2564_v7  ;;  %915 = vmatpush.bf16.msra.mxu0 %v2643_v36  ;;  %vm588_vm12 = vweird.f32 %v2347_v31  ;;  %v2349_v44 = vpop.eup %2348 }
  0xda   :  { %vm589_vm14 = vmor %vm587_vm13, %vm588_vm12 }
  0xdb   :  { %v584_v5 = vsub.f32 1.0, %v583_v37  ;;  %v3458_v37 = vld [vmem:[#allocation14_spill] sm:$0xff] }
  0xdc   :  { %833 = vmatpush.bf16.msrb.mxu2 %v2598_v47 }
  0xdd   :  { %v585_v52 = vmul.f32 %v2347_v31, %v584_v5  ;;  %903 = vmatpush.bf16.msrb.mxu3 %v2573_v16  ;;  %916 = vmatpush.bf16.msra.mxu0 %v2655_v54  ;;  %v2206_v5 = vld [vmem:[%s3390_s0 + $0xc] sm:$0xff] }
  0xde   :  { %v611_v11 = vunpack.c.h.bf16 %v2206_v5 }
  0xdf   :  { %v586_v9 = vadd.f32 %v2347_v31, %v585_v52  ;;  %v610_v52 = vunpack.c.l.bf16 %v2206_v5 }
  0xe0   :  { %834 = vmatpush.bf16.msrb.mxu2 %v2610_v59 }
  0xe1   :  { %v590_v32 = vsel %vm589_vm14, %v2347_v31, %v586_v9  ;;  %904 = vmatpush.bf16.msrb.mxu3 %v2582_v25  ;;  %917 = vmatpush.bf16.msra.mxu0 %v2669_v4  ;;  %v3457_v31 = vld [vmem:[#allocation13_spill] sm:$0xff] }
  0xe2   :  { %v595_v0 = vsel %vm592_vm15, %v594_v23, %v590_v32 }
  0xe3   :  { %v601_v48 = vsub.f32 1.0, %v595_v0  ;;  %v603_v6 = vmul.f32 0.0, %v595_v0 }
  0xe4   :  { %835 = vmatpush.bf16.msrb.mxu2 %v2622_v10 }
  0xe5   :  { %v602_v53 = vmul.f32 %v2349_v44, %v601_v48  ;;  %905 = vmatpush.bf16.msrb.mxu3 %v2591_v38  ;;  %918 = vmatpush.bf16.msra.mxu0 %v2679_v22 }
  0xe7   :  { %v2840_v13 = vadd.f32 %v603_v6, %v602_v53 }
  0xe8   :  { %836 = vmatpush.bf16.msrb.mxu2 %v2634_v30 }
  0xe9   :  { %2205 = vst [vmem:[%s3395_s5 + $0x38] sm:$0xff] %v2840_v13  ;;  %v709_v46 = vpack.c.bf16 %v2840_v13, %v2840_v13  ;;  %906 = vmatpush.bf16.msrb.mxu3 %v2605_v51  ;;  %919 = vmatpush.bf16.msra.mxu0 %v2687_v33 }
  0xeb   :  { %718 = vmatmul.bf16.vlgmr.msra.gmra.mxu1 %v709_v46  ;;  %731 = vmatmul.bf16.vlgmr.msra.gmra.mxu2 %v709_v46 }
  0xec   :  { %744 = vmatmul.bf16.vlgmr.msra.gmra.mxu3 %v709_v46  ;;  %928 = vmatpush.bf16.msra.mxu1 %v2647_v45 }
  0xed   :  { %837 = vmatpush.bf16.msrb.mxu2 %v2651_v50  ;;  %907 = vmatpush.bf16.msrb.mxu3 %v2617_v63 }
  0xee   :  { %920 = vmatpush.bf16.msra.mxu0 %v2696_v49 }
  0xf0   :  { %929 = vmatpush.bf16.msra.mxu1 %v2661_v61 }
  0xf1   :  { %838 = vmatpush.bf16.msrb.mxu2 %v2665_v2  ;;  %908 = vmatpush.bf16.msrb.mxu3 %v2629_v15 }
  0xf2   :  { %921 = vmatpush.bf16.msra.mxu0 %v2704_v1 }
  0xf4   :  { %930 = vmatpush.bf16.msra.mxu1 %v2673_v14 }
  0xf5   :  { %839 = vmatpush.bf16.msrb.mxu2 %v2676_v21  ;;  %909 = vmatpush.bf16.msrb.mxu3 %v2641_v35 }
  0xf6   :  { %922 = vmatpush.bf16.msra.mxu0 %v2712_v20 }
  0xf8   :  { %931 = vmatpush.bf16.msra.mxu1 %v2683_v28 }
  0xf9   :  { %998 = vmatpush.bf16.msra.mxu2 %v2562_v3  ;;  %1011 = vmatpush.bf16.msra.mxu3 %v2566_v8 }
  0xfc   :  { %932 = vmatpush.bf16.msra.mxu1 %v2692_v42 }
  0xfd   :  { %999 = vmatpush.bf16.msra.mxu2 %v2569_v12  ;;  %1012 = vmatpush.bf16.msra.mxu3 %v2575_v17 }
 0x100   :  { %933 = vmatpush.bf16.msra.mxu1 %v2701_v56 }
 0x101   :  { %1000 = vmatpush.bf16.msra.mxu2 %v2578_v24  ;;  %1013 = vmatpush.bf16.msra.mxu3 %v2584_v26 }
 0x104   :  { %934 = vmatpush.bf16.msra.mxu1 %v3450_v41 }
 0x105   :  { %1001 = vmatpush.bf16.msra.mxu2 %v3448_v29  ;;  %1014 = vmatpush.bf16.msra.mxu3 %v3449_v34 }
 0x108   :  { %935 = vmatpush.bf16.msra.mxu1 %v3453_v58 }
 0x109   :  { %1002 = vmatpush.bf16.msra.mxu2 %v3451_v55  ;;  %1015 = vmatpush.bf16.msra.mxu3 %v3452_v57 }
 0x10d   :  { %1003 = vmatpush.bf16.msra.mxu2 %v3454_v27  ;;  %1016 = vmatpush.bf16.msra.mxu3 %v3455_v19 }
 0x111   :  { %1004 = vmatpush.bf16.msra.mxu2 %v3456_v18  ;;  %1017 = vmatpush.bf16.msra.mxu3 %v3457_v31 }
 0x115   :  { %1005 = vmatpush.bf16.msra.mxu2 %v3458_v37  ;;  %1018 = vmatpush.bf16.msra.mxu3 %v3459_v62  ;;  %v2211_v62 = vld [vmem:[%s3391_s1 + $0xa8] sm:$0xff] }
 0x116   :  { %v706_v19 = vunpack.c.l.bf16 %v2211_v62 }
 0x155   :  { %v649_v60 = vpop.f32.mrf.mxu0 }
 0x15a   :  { %v623_v9 = vpop.f32.mrf.mxu2  ;;  %v636_v23 = vpop.f32.mrf.mxu3 }
 0x15b   :  { %v653_v32 = vadd.f32 %v623_v9, %v610_v52  ;;  %v673_v0 = vadd.f32 %v636_v23, %v611_v11  ;;  %v707_v11 = vunpack.c.h.bf16 %v2211_v62  ;;  %v2207_v62 = vld [vmem:[%s3390_s0 + $0x14] sm:$0xf] }
 0x15d   :  { %v2208_v48 = vmul.f32 -1.442695, %v653_v32  ;;  %v2209_v44 = vmul.f32 -1.442695, %v673_v0  ;;  %v651_v53 = vpop.f32.mrf.mxu0 }
 0x15f   :  { %2350 = vpow2.f32 %v2208_v48 }
 0x160   :  { %2352 = vpow2.f32 %v2209_v44 }
 0x162   :  { %v625_v6 = vpop.f32.mrf.mxu2  ;;  %v638_v46 = vpop.f32.mrf.mxu3 }
 0x165   :  { %v2351_v37 = vpop.eup %2350 }
 0x166   :  { %v2353_v31 = vpop.eup %2352  ;;  %v657_v18 = vadd.f32 1.0, %v2351_v37 }
 0x167   :  { %v677_v5 = vadd.f32 1.0, %v2353_v31 }
 0x168   :  { %2354 = vrcp.f32 %v657_v18  ;;  %v719_v27 = vpop.f32.mrf.mxu1  ;;  %v669_v55 = vand.u32 2147483648, %v657_v18  ;;  %v667_v34 = vand.u32 2147483647, %v657_v18  ;;  %vm663_vm1 = vweird.f32 %v657_v18 }
 0x169   :  { %2356 = vrcp.f32 %v677_v5  ;;  %v749_v52 = vadd.f32 %v719_v27, %v706_v19  ;;  %v689_v26 = vand.u32 2147483648, %v677_v5  ;;  %vm683_vm5 = vweird.f32 %v677_v5 }
 0x16a   :  { %vm668_vm3 = vcmp.eq.f32.partialorder %v667_v34, 8.507059e+37 }
 0x16b   :  { %v2213_v9 = vmul.f32 -1.442695, %v749_v52 }
 0x16d   :  { %2358 = vpow2.f32 %v2213_v9  ;;  %v3460_v9 = vld [vmem:[#allocation19_spill] sm:$0xff] }
 0x16e   :  { %v2355_v23 = vpop.eup %2354  ;;  %v732_v32 = vpop.f32.mrf.mxu2 }
 0x16f   :  { %v2357_v0 = vpop.eup %2356  ;;  %v659_v48 = vmul.f32 %v2355_v23, %v657_v18  ;;  %v769_v44 = vadd.f32 %v732_v32, %v707_v11  ;;  %v2890_v53 = vpop.f32.mrf.mxu3  ;;  %vm664_vm0 = vweird.f32 %v2355_v23  ;;  %v693_v32 = vadd.f32 %v3460_v9, %v649_v60 }
 0x170   :  { %v679_v6 = vmul.f32 %v2357_v0, %v677_v5  ;;  %v721_v46 = vpop.f32.mrf.mxu1  ;;  %vm665_vm2 = vmor %vm663_vm1, %vm664_vm0  ;;  %vm684_vm4 = vweird.f32 %v2357_v0 }
 0x171   :  { %v660_v57 = vsub.f32 1.0, %v659_v48  ;;  %v2214_v37 = vmul.f32 -1.442695, %v769_v44  ;;  %v670_v48 = vor.u32 1.1754944e-38, %v669_v55  ;;  %vm685_vm6 = vmor %vm683_vm5, %vm684_vm4 }
 0x172   :  { %v680_v31 = vsub.f32 1.0, %v679_v6  ;;  %v612_v6 = vunpack.c.l.bf16 %v2207_v62 }
 0x173   :  { %v661_v58 = vmul.f32 %v2355_v23, %v660_v57  ;;  %2360 = vpow2.f32 %v2214_v37  ;;  %v2359_v27 = vpop.eup %2358 }
 0x174   :  { %v681_v19 = vmul.f32 %v2357_v0, %v680_v31  ;;  %v753_v11 = vadd.f32 1.0, %v2359_v27 }
 0x175   :  { %v662_v52 = vadd.f32 %v2355_v23, %v661_v58  ;;  %v687_v58 = vand.u32 2147483647, %v677_v5 }
 0x176   :  { %v734_v44 = vpop.f32.mrf.mxu2  ;;  %2362 = vrcp.f32 %v753_v11  ;;  %v682_v29 = vadd.f32 %v2357_v0, %v681_v19  ;;  %v763_v5 = vand.u32 2147483647, %v753_v11  ;;  %vm759_vm9 = vweird.f32 %v753_v11 }
 0x177   :  { %v666_v46 = vsel %vm665_vm2, %v2355_v23, %v662_v52  ;;  %v747_v57 = vpop.f32.mrf.mxu3  ;;  %v690_v44 = vor.u32 1.1754944e-38, %v689_v26  ;;  %vm688_vm7 = vcmp.eq.f32.partialorder %v687_v58, 8.507059e+37  ;;  %v765_v52 = vand.u32 2147483648, %v753_v11 }
 0x178   :  { %v671_v37 = vsel %vm668_vm3, %v670_v48, %v666_v46  ;;  %v686_v60 = vsel %vm685_vm6, %v2357_v0, %v682_v29  ;;  %vm764_vm11 = vcmp.eq.f32.partialorder %v763_v5, 8.507059e+37 }
 0x179   :  { %v2361_v31 = vpop.eup %2360  ;;  %v694_v41 = vmul.f32 %v693_v32, %v671_v37  ;;  %v691_v23 = vsel %vm688_vm7, %v690_v44, %v686_v60  ;;  %v2212_v32 = vld [vmem:[%s3391_s1 + $0xb0] sm:$0xf] }
 0x17a   :  { %v773_v18 = vadd.f32 1.0, %v2361_v31  ;;  %v697_v46 = vsub.f32 1.0, %v691_v23  ;;  %v699_v0 = vmul.f32 %v691_v23, %v2820_v40  ;;  %v708_v37 = vunpack.c.l.bf16 %v2212_v32 }
 0x17b   :  { %v695_v27 = vadd.f32 %v694_v41, %v612_v6  ;;  %v766_v31 = vor.u32 1.1754944e-38, %v765_v52 }
 0x17c   :  { %2364 = vrcp.f32 %v773_v18  ;;  %v2363_v55 = vpop.eup %2362  ;;  %vm779_vm13 = vweird.f32 %v773_v18 }
 0x17d   :  { %2366 = vtanh.f32 %v695_v27  ;;  %v755_v34 = vmul.f32 %v2363_v55, %v753_v11  ;;  %vm760_vm8 = vweird.f32 %v2363_v55  ;;  %v789_v27 = vadd.f32 %v2812_v39, %v2890_v53 }
 0x17e   :  { %vm761_vm10 = vmor %vm759_vm9, %vm760_vm8 }
 0x17f   :  { %v756_v62 = vsub.f32 1.0, %v755_v34 }
 0x181   :  { %v757_v48 = vmul.f32 %v2363_v55, %v756_v62  ;;  %v785_v62 = vand.u32 2147483648, %v773_v18 }
 0x182   :  { %v2365_v19 = vpop.eup %2364 }
 0x183   :  { %v2367_v41 = vpop.eup %2366  ;;  %v775_v57 = vmul.f32 %v2365_v19, %v773_v18  ;;  %v758_v29 = vadd.f32 %v2363_v55, %v757_v48  ;;  %vm780_vm12 = vweird.f32 %v2365_v19  ;;  %v786_v52 = vor.u32 1.1754944e-38, %v785_v62  ;;  %v3472_v62 = vld [vmem:[#allocation14_spill] sm:$0xff] }
 0x184   :  { %v698_v26 = vmul.f32 %v2367_v41, %v697_v46  ;;  %vm781_vm14 = vmor %vm779_vm13, %vm780_vm12 }
 0x185   :  { %v776_v6 = vsub.f32 1.0, %v775_v57  ;;  %v762_v58 = vsel %vm761_vm10, %v2363_v55, %v758_v29  ;;  %v783_v55 = vand.u32 2147483647, %v773_v18  ;;  %v3462_v29 = vld [vmem:[#allocation17_spill] sm:$0xff] }
 0x186   :  { %v2902_v60 = vadd.f32 %v699_v0, %v698_v26  ;;  %v767_v34 = vsel %vm764_vm11, %v766_v31, %v762_v58  ;;  %v3463_v26 = vld [vmem:[#allocation6_spill] sm:$0xff]  ;;  %v3464_v0 = vld [vmem:[#allocation7_spill] sm:$0xff]  ;;  %v3467_v31 = vld [vmem:[#allocation9_spill] sm:$0xff] }
 0x187   :  { %v777_v44 = vmul.f32 %v2365_v19, %v776_v6  ;;  %v790_v48 = vmul.f32 %v789_v27, %v767_v34  ;;  %vm784_vm15 = vcmp.eq.f32.partialorder %v783_v55, 8.507059e+37  ;;  %v3465_v6 = vld [vmem:[#allocation18_spill] sm:$0xff]  ;;  %v3469_v27 = vld [vmem:[#allocation11_spill] sm:$0xff]  ;;  %v3471_v34 = vld [vmem:[#allocation13_spill] sm:$0xff] }
 0x188   :  { %2210 = vst [vmem:[%s3394_s4 + $0x8] sm:$0xff] %v2902_v60  ;;  %v805_v40 = vpack.c.bf16 %v2902_v60, %v2902_v60  ;;  %v3468_v58 = vld [vmem:[#allocation10_spill] sm:$0xff] }
 0x189   :  { %v778_v11 = vadd.f32 %v2365_v19, %v777_v44  ;;  %v791_v53 = vadd.f32 %v790_v48, %v708_v37  ;;  %v3466_v37 = vld [vmem:[#allocation8_spill] sm:$0xff]  ;;  %v3473_v48 = vld [vmem:[#allocation15_spill] sm:$0xff] }
 0x18a   :  { %814 = vmatmul.bf16.vlgmr.msrb.gmra.mxu0 %v805_v40  ;;  %827 = vmatmul.bf16.vlgmr.msrb.gmra.mxu1 %v805_v40  ;;  %v3470_v44 = vld [vmem:[#allocation12_spill] sm:$0xff] }
 0x18b   :  { %v782_v23 = vsel %vm781_vm14, %v2365_v19, %v778_v11  ;;  %840 = vmatmul.bf16.vlgmr.msrb.gmra.mxu2 %v805_v40  ;;  %1024 = vmatpush.bf16.msrb.mxu0 %v2595_v43  ;;  %2368 = vtanh.f32 %v791_v53  ;;  %v2216_v40 = vld [vmem:[%s3390_s0 + $0x18] sm:$0xff] }
 0x18c   :  { %1094 = vmatpush.bf16.msrb.mxu1 %v2564_v7  ;;  %1107 = vmatpush.bf16.msrb.mxu2 %v2643_v36  ;;  %v787_v32 = vsel %vm784_vm15, %v786_v52, %v782_v23  ;;  %v802_v11 = vunpack.c.l.bf16 %v2216_v40  ;;  %v803_v55 = vunpack.c.h.bf16 %v2216_v40 }
 0x18d   :  { %v793_v18 = vsub.f32 1.0, %v787_v32  ;;  %v795_v46 = vmul.f32 %v787_v32, %v2840_v13  ;;  %v3461_v13 = vld [vmem:[#allocation5_spill] sm:$0xff] }
 0x18f   :  { %1025 = vmatpush.bf16.msrb.mxu0 %v2598_v47 }
 0x190   :  { %1095 = vmatpush.bf16.msrb.mxu1 %v2573_v16  ;;  %1108 = vmatpush.bf16.msrb.mxu2 %v2655_v54 }
 0x191   :  { %v2369_v5 = vpop.eup %2368 }
 0x192   :  { %v794_v19 = vmul.f32 %v2369_v5, %v793_v18 }
 0x193   :  { %1026 = vmatpush.bf16.msrb.mxu0 %v2610_v59 }
 0x194   :  { %1096 = vmatpush.bf16.msrb.mxu1 %v2582_v25  ;;  %1109 = vmatpush.bf16.msrb.mxu2 %v2669_v4  ;;  %v2920_v41 = vadd.f32 %v795_v46, %v794_v19 }
 0x196   :  { %2215 = vst [vmem:[%s3395_s5 + $0x30] sm:$0xff] %v2920_v41  ;;  %v901_v57 = vpack.c.bf16 %v2920_v41, %v2920_v41 }
 0x197   :  { %1027 = vmatpush.bf16.msrb.mxu0 %v2622_v10 }
 0x198   :  { %1097 = vmatpush.bf16.msrb.mxu1 %v2591_v38  ;;  %1110 = vmatpush.bf16.msrb.mxu2 %v2679_v22 }
 0x199   :  { %910 = vmatmul.bf16.vlgmr.msrb.gmra.mxu3 %v901_v57 }
 0x19a   :  { %923 = vmatmul.bf16.vlgmr.msra.gmra.mxu0 %v901_v57  ;;  %936 = vmatmul.bf16.vlgmr.msra.gmra.mxu1 %v901_v57 }
 0x19b   :  { %1028 = vmatpush.bf16.msrb.mxu0 %v2634_v30  ;;  %1120 = vmatpush.bf16.msrb.mxu3 %v2647_v45 }
 0x19c   :  { %1098 = vmatpush.bf16.msrb.mxu1 %v2605_v51  ;;  %1111 = vmatpush.bf16.msrb.mxu2 %v2687_v33 }
 0x19f   :  { %1029 = vmatpush.bf16.msrb.mxu0 %v2651_v50  ;;  %1121 = vmatpush.bf16.msrb.mxu3 %v2661_v61 }
 0x1a0   :  { %1099 = vmatpush.bf16.msrb.mxu1 %v2617_v63  ;;  %1112 = vmatpush.bf16.msrb.mxu2 %v2696_v49 }
 0x1a3   :  { %1030 = vmatpush.bf16.msrb.mxu0 %v2665_v2  ;;  %1122 = vmatpush.bf16.msrb.mxu3 %v2673_v14 }
 0x1a4   :  { %1100 = vmatpush.bf16.msrb.mxu1 %v2629_v15  ;;  %1113 = vmatpush.bf16.msrb.mxu2 %v2704_v1 }
 0x1a7   :  { %1031 = vmatpush.bf16.msrb.mxu0 %v2676_v21  ;;  %1123 = vmatpush.bf16.msrb.mxu3 %v2683_v28 }
 0x1a8   :  { %1101 = vmatpush.bf16.msrb.mxu1 %v2641_v35  ;;  %1114 = vmatpush.bf16.msrb.mxu2 %v2712_v20 }
 0x1ab   :  { %1190 = vmatpush.bf16.msra.mxu0 %v2562_v3  ;;  %1124 = vmatpush.bf16.msrb.mxu3 %v2692_v42 }
 0x1ac   :  { %1203 = vmatpush.bf16.msra.mxu1 %v2566_v8 }
 0x1af   :  { %1191 = vmatpush.bf16.msra.mxu0 %v2569_v12  ;;  %1125 = vmatpush.bf16.msrb.mxu3 %v2701_v56 }
 0x1b0   :  { %1204 = vmatpush.bf16.msra.mxu1 %v2575_v17 }
 0x1b3   :  { %1192 = vmatpush.bf16.msra.mxu0 %v2578_v24  ;;  %1126 = vmatpush.bf16.msrb.mxu3 %v3462_v29 }
 0x1b4   :  { %1205 = vmatpush.bf16.msra.mxu1 %v3461_v13 }
 0x1b7   :  { %1193 = vmatpush.bf16.msra.mxu0 %v3463_v26  ;;  %1127 = vmatpush.bf16.msrb.mxu3 %v3465_v6 }
 0x1b8   :  { %1206 = vmatpush.bf16.msra.mxu1 %v3464_v0 }
 0x1bb   :  { %1194 = vmatpush.bf16.msra.mxu0 %v3466_v37 }
 0x1bc   :  { %1207 = vmatpush.bf16.msra.mxu1 %v3467_v31 }
 0x1bf   :  { %1195 = vmatpush.bf16.msra.mxu0 %v3468_v58 }
 0x1c0   :  { %1208 = vmatpush.bf16.msra.mxu1 %v3469_v27 }
 0x1c3   :  { %1196 = vmatpush.bf16.msra.mxu0 %v3470_v44 }
 0x1c4   :  { %1209 = vmatpush.bf16.msra.mxu1 %v3471_v34 }
 0x1c7   :  { %1197 = vmatpush.bf16.msra.mxu0 %v3472_v62 }
 0x1c8   :  { %1210 = vmatpush.bf16.msra.mxu1 %v3473_v48  ;;  %v2221_v48 = vld [vmem:[%s3391_s1 + $0x9c] sm:$0xff] }
 0x1c9   :  { %v899_v40 = vunpack.c.h.bf16 %v2221_v48 }
 0x207   :  { %v815_v53 = vpop.f32.mrf.mxu0  ;;  %v828_v23 = vpop.f32.mrf.mxu1 }
 0x208   :  { %v845_v52 = vadd.f32 %v815_v53, %v802_v11  ;;  %v865_v32 = vadd.f32 %v828_v23, %v803_v55 }
 0x20a   :  { %v2218_v18 = vmul.f32 -1.442695, %v845_v52  ;;  %v2219_v5 = vmul.f32 -1.442695, %v865_v32  ;;  %v898_v52 = vunpack.c.l.bf16 %v2221_v48  ;;  %v2217_v48 = vld [vmem:[%s3390_s0 + $0x20] sm:$0xf] }
 0x20c   :  { %2370 = vpow2.f32 %v2218_v18 }
 0x20d   :  { %2372 = vpow2.f32 %v2219_v5 }
 0x20e   :  { %v841_v19 = vpop.f32.mrf.mxu2 }
 0x20f   :  { %v817_v46 = vpop.f32.mrf.mxu0  ;;  %v830_v57 = vpop.f32.mrf.mxu1 }
 0x212   :  { %v2371_v62 = vpop.eup %2370 }
 0x213   :  { %v2373_v34 = vpop.eup %2372  ;;  %v849_v44 = vadd.f32 1.0, %v2371_v62 }
 0x214   :  { %v869_v27 = vadd.f32 1.0, %v2373_v34 }
 0x215   :  { %2374 = vrcp.f32 %v849_v44  ;;  %v861_v34 = vand.u32 2147483648, %v849_v44  ;;  %v859_v56 = vand.u32 2147483647, %v849_v44  ;;  %vm855_vm1 = vweird.f32 %v849_v44 }
 0x216   :  { %2376 = vrcp.f32 %v869_v27  ;;  %v843_v11 = vpop.f32.mrf.mxu2  ;;  %vm875_vm5 = vweird.f32 %v869_v27 }
 0x217   :  { %v924_v55 = vpop.f32.mrf.mxu0  ;;  %v2973_v53 = vpop.f32.mrf.mxu1  ;;  %vm860_vm3 = vcmp.eq.f32.partialorder %v859_v56, 8.507059e+37 }
 0x218   :  { %v961_v23 = vadd.f32 %v924_v55, %v899_v40 }
 0x21a   :  { %v2224_v32 = vmul.f32 -1.442695, %v961_v23  ;;  %v862_v23 = vor.u32 1.1754944e-38, %v861_v34 }
 0x21b   :  { %v2375_v18 = vpop.eup %2374 }
 0x21c   :  { %v2377_v5 = vpop.eup %2376  ;;  %v851_v46 = vmul.f32 %v2375_v18, %v849_v44  ;;  %2378 = vpow2.f32 %v2224_v32  ;;  %v911_v57 = vpop.f32.mrf.mxu3  ;;  %vm856_vm0 = vweird.f32 %v2375_v18  ;;  %v879_v44 = vand.u32 2147483647, %v869_v27 }
 0x21d   :  { %v871_v6 = vmul.f32 %v2377_v5, %v869_v27  ;;  %v941_v58 = vadd.f32 %v911_v57, %v898_v52  ;;  %vm857_vm2 = vmor %vm855_vm1, %vm856_vm0  ;;  %vm876_vm4 = vweird.f32 %v2377_v5 }
 0x21e   :  { %v852_v31 = vsub.f32 1.0, %v851_v46  ;;  %v881_v46 = vand.u32 2147483648, %v869_v27  ;;  %vm877_vm6 = vmor %vm875_vm5, %vm876_vm4  ;;  %vm880_vm7 = vcmp.eq.f32.partialorder %v879_v44, 8.507059e+37  ;;  %v981_v44 = vadd.f32 %v2812_v39, %v2973_v53 }
 0x21f   :  { %v872_v62 = vsub.f32 1.0, %v871_v6  ;;  %v2223_v29 = vmul.f32 -1.442695, %v941_v58  ;;  %v926_v37 = vpop.f32.mrf.mxu0  ;;  %v939_v0 = vpop.f32.mrf.mxu1  ;;  %v804_v6 = vunpack.c.l.bf16 %v2217_v48 }
 0x220   :  { %v853_v11 = vmul.f32 %v2375_v18, %v852_v31  ;;  %v885_v0 = vadd.f32 %v3460_v9, %v841_v19  ;;  %v882_v48 = vor.u32 1.1754944e-38, %v881_v46 }
 0x221   :  { %v873_v26 = vmul.f32 %v2377_v5, %v872_v62  ;;  %2380 = vpow2.f32 %v2223_v29 }
 0x222   :  { %v2379_v40 = vpop.eup %2378  ;;  %v854_v55 = vadd.f32 %v2375_v18, %v853_v11 }
 0x223   :  { %v2978_v52 = vadd.f32 1.0, %v2379_v40  ;;  %v874_v31 = vadd.f32 %v2377_v5, %v873_v26 }
 0x224   :  { %v858_v58 = vsel %vm857_vm2, %v2375_v18, %v854_v55  ;;  %v913_v37 = vpop.f32.mrf.mxu3 }
 0x225   :  { %v863_v32 = vsel %vm860_vm3, %v862_v23, %v858_v58  ;;  %2382 = vrcp.f32 %v2978_v52  ;;  %v878_v11 = vsel %vm877_vm6, %v2377_v5, %v874_v31  ;;  %vm971_vm13 = vweird.f32 %v2978_v52 }
 0x226   :  { %v886_v57 = vmul.f32 %v885_v0, %v863_v32  ;;  %v883_v9 = vsel %vm880_vm7, %v882_v48, %v878_v11 }
 0x227   :  { %v2381_v29 = vpop.eup %2380  ;;  %v889_v26 = vsub.f32 1.0, %v883_v9  ;;  %v891_v23 = vmul.f32 %v883_v9, %v2902_v60  ;;  %v2222_v60 = vld [vmem:[%s3391_s1 + $0xa4] sm:$0xf] }
 0x228   :  { %v887_v62 = vadd.f32 %v886_v57, %v804_v6  ;;  %v945_v34 = vadd.f32 1.0, %v2381_v29  ;;  %v900_v11 = vunpack.c.l.bf16 %v2222_v60  ;;  %v3481_v60 = vld [vmem:[#allocation18_spill] sm:$0xff] }
 0x22a   :  { %2384 = vtanh.f32 %v887_v62  ;;  %v957_v5 = vand.u32 2147483648, %v945_v34  ;;  %v955_v32 = vand.u32 2147483647, %v945_v34  ;;  %vm951_vm9 = vweird.f32 %v945_v34 }
 0x22b   :  { %2386 = vrcp.f32 %v945_v34  ;;  %v2383_v56 = vpop.eup %2382 }
 0x22c   :  { %v967_v19 = vmul.f32 %v2383_v56, %v2978_v52  ;;  %v958_v29 = vor.u32 1.1754944e-38, %v957_v5  ;;  %vm956_vm11 = vcmp.eq.f32.partialorder %v955_v32, 8.507059e+37  ;;  %vm972_vm12 = vweird.f32 %v2383_v56  ;;  %v3476_v5 = vld [vmem:[#allocation7_spill] sm:$0xff]  ;;  %v3479_v32 = vld [vmem:[#allocation9_spill] sm:$0xff] }
 0x22d   :  { %vm973_vm14 = vmor %vm971_vm13, %vm972_vm12 }
 0x22e   :  { %v968_v27 = vsub.f32 1.0, %v967_v19  ;;  %v975_v19 = vand.u32 2147483647, %v2978_v52 }
 0x230   :  { %v2385_v18 = vpop.eup %2384  ;;  %v969_v46 = vmul.f32 %v2383_v56, %v968_v27  ;;  %vm976_vm15 = vcmp.eq.f32.partialorder %v975_v19, 8.507059e+37 }
 0x231   :  { %v2387_v40 = vpop.eup %2386  ;;  %v890_v55 = vmul.f32 %v2385_v18, %v889_v26 }
 0x232   :  { %v947_v58 = vmul.f32 %v2387_v40, %v945_v34  ;;  %vm952_vm8 = vweird.f32 %v2387_v40  ;;  %v970_v48 = vadd.f32 %v2383_v56, %v969_v46  ;;  %v977_v34 = vand.u32 2147483648, %v2978_v52  ;;  %v3480_v46 = vld [vmem:[#allocation10_spill] sm:$0xff] }
 0x233   :  { %v2984_v0 = vadd.f32 %v891_v23, %v890_v55  ;;  %vm953_vm10 = vmor %vm951_vm9, %vm952_vm8 }
 0x234   :  { %v948_v6 = vsub.f32 1.0, %v947_v58  ;;  %v974_v53 = vsel %vm973_vm14, %v2383_v56, %v970_v48  ;;  %v978_v18 = vor.u32 1.1754944e-38, %v977_v34  ;;  %v2226_v48 = vld [vmem:[%s3390_s0 + $0x24] sm:$0xff] }
 0x235   :  { %2220 = vst [vmem:[%s3394_s4 + $0x10] sm:$0xff] %v2984_v0  ;;  %v997_v37 = vpack.c.bf16 %v2984_v0, %v2984_v0  ;;  %v994_v34 = vunpack.c.l.bf16 %v2226_v48 }
 0x236   :  { %v949_v31 = vmul.f32 %v2387_v40, %v948_v6  ;;  %v3475_v6 = vld [vmem:[#allocation16_spill] sm:$0xff] }
 0x237   :  { %1006 = vmatmul.bf16.vlgmr.msra.gmra.mxu2 %v997_v37  ;;  %1019 = vmatmul.bf16.vlgmr.msra.gmra.mxu3 %v997_v37 }
 0x238   :  { %v950_v57 = vadd.f32 %v2387_v40, %v949_v31  ;;  %1032 = vmatmul.bf16.vlgmr.msrb.gmra.mxu0 %v997_v37  ;;  %1216 = vmatpush.bf16.msra.mxu2 %v2595_v43  ;;  %v3477_v37 = vld [vmem:[#allocation8_spill] sm:$0xff]  ;;  %v3478_v31 = vld [vmem:[#allocation17_spill] sm:$0xff] }
 0x239   :  { %1286 = vmatpush.bf16.msra.mxu3 %v2564_v7  ;;  %1299 = vmatpush.bf16.msrb.mxu0 %v2643_v36 }
 0x23a   :  { %v954_v62 = vsel %vm953_vm10, %v2387_v40, %v950_v57  ;;  %v979_v40 = vsel %vm976_vm15, %v978_v18, %v974_v53  ;;  %v3482_v57 = vld [vmem:[#allocation11_spill] sm:$0xff] }
 0x23b   :  { %v959_v9 = vsel %vm956_vm11, %v958_v29, %v954_v62  ;;  %v985_v52 = vsub.f32 1.0, %v979_v40  ;;  %v987_v56 = vmul.f32 %v979_v40, %v2920_v41  ;;  %v3474_v41 = vld [vmem:[#allocation6_spill] sm:$0xff]  ;;  %v3483_v29 = vld [vmem:[#allocation12_spill] sm:$0xff] }
 0x23c   :  { %v982_v26 = vmul.f32 %v981_v44, %v959_v9  ;;  %1217 = vmatpush.bf16.msra.mxu2 %v2598_v47  ;;  %v3484_v44 = vld [vmem:[#allocation13_spill] sm:$0xff]  ;;  %v3485_v62 = vld [vmem:[#allocation14_spill] sm:$0xff] }
 0x23d   :  { %1287 = vmatpush.bf16.msra.mxu3 %v2573_v16  ;;  %1300 = vmatpush.bf16.msrb.mxu0 %v2655_v54 }
 0x23e   :  { %v983_v39 = vadd.f32 %v982_v26, %v900_v11  ;;  %v3486_v11 = vld [vmem:[#allocation15_spill] sm:$0xff]  ;;  %v995_v26 = vunpack.c.h.bf16 %v2226_v48 }
 0x240   :  { %2388 = vtanh.f32 %v983_v39  ;;  %1218 = vmatpush.bf16.msra.mxu2 %v2610_v59 }
 0x241   :  { %1288 = vmatpush.bf16.msra.mxu3 %v2582_v25  ;;  %1301 = vmatpush.bf16.msrb.mxu0 %v2669_v4 }
 0x244   :  { %1219 = vmatpush.bf16.msra.mxu2 %v2622_v10 }
 0x245   :  { %1289 = vmatpush.bf16.msra.mxu3 %v2591_v38  ;;  %1302 = vmatpush.bf16.msrb.mxu0 %v2679_v22 }
 0x246   :  { %v2389_v55 = vpop.eup %2388 }
 0x247   :  { %v986_v23 = vmul.f32 %v2389_v55, %v985_v52 }
 0x248   :  { %1220 = vmatpush.bf16.msra.mxu2 %v2634_v30 }
 0x249   :  { %v3014_v58 = vadd.f32 %v987_v56, %v986_v23  ;;  %1290 = vmatpush.bf16.msra.mxu3 %v2605_v51  ;;  %1303 = vmatpush.bf16.msrb.mxu0 %v2687_v33 }
 0x24b   :  { %2225 = vst [vmem:[%s3395_s5 + $0x28] sm:$0xff] %v3014_v58  ;;  %v1093_v27 = vpack.c.bf16 %v3014_v58, %v3014_v58 }
 0x24c   :  { %1221 = vmatpush.bf16.msra.mxu2 %v2651_v50 }
 0x24d   :  { %1102 = vmatmul.bf16.vlgmr.msrb.gmra.mxu1 %v1093_v27  ;;  %1115 = vmatmul.bf16.vlgmr.msrb.gmra.mxu2 %v1093_v27 }
 0x24e   :  { %1128 = vmatmul.bf16.vlgmr.msrb.gmra.mxu3 %v1093_v27  ;;  %1312 = vmatpush.bf16.msrb.mxu1 %v2647_v45  ;;  %v2231_v27 = vld [vmem:[%s3391_s1 + $0x90] sm:$0xff] }
 0x24f   :  { %1291 = vmatpush.bf16.msra.mxu3 %v2617_v63  ;;  %1304 = vmatpush.bf16.msrb.mxu0 %v2696_v49  ;;  %v1090_v48 = vunpack.c.l.bf16 %v2231_v27 }
 0x250   :  { %1222 = vmatpush.bf16.msra.mxu2 %v2665_v2 }
 0x252   :  { %1313 = vmatpush.bf16.msrb.mxu1 %v2661_v61 }
 0x253   :  { %1292 = vmatpush.bf16.msra.mxu3 %v2629_v15  ;;  %1305 = vmatpush.bf16.msrb.mxu0 %v2704_v1 }
 0x254   :  { %1223 = vmatpush.bf16.msra.mxu2 %v2676_v21 }
 0x256   :  { %1314 = vmatpush.bf16.msrb.mxu1 %v2673_v14 }
 0x257   :  { %1293 = vmatpush.bf16.msra.mxu3 %v2641_v35  ;;  %1306 = vmatpush.bf16.msrb.mxu0 %v2712_v20 }
 0x258   :  { %1382 = vmatpush.bf16.msrb.mxu2 %v2562_v3 }
 0x25a   :  { %1315 = vmatpush.bf16.msrb.mxu1 %v2683_v28 }
 0x25b   :  { %1395 = vmatpush.bf16.msrb.mxu3 %v2566_v8 }
 0x25c   :  { %1383 = vmatpush.bf16.msrb.mxu2 %v2569_v12 }
 0x25e   :  { %1316 = vmatpush.bf16.msrb.mxu1 %v2692_v42 }
 0x25f   :  { %1396 = vmatpush.bf16.msrb.mxu3 %v2575_v17 }
 0x260   :  { %1384 = vmatpush.bf16.msrb.mxu2 %v2578_v24 }
 0x262   :  { %1317 = vmatpush.bf16.msrb.mxu1 %v3475_v6 }
 0x263   :  { %1397 = vmatpush.bf16.msrb.mxu3 %v3461_v13 }
 0x264   :  { %1385 = vmatpush.bf16.msrb.mxu2 %v3474_v41 }
 0x266   :  { %1318 = vmatpush.bf16.msrb.mxu1 %v3478_v31 }
 0x267   :  { %1398 = vmatpush.bf16.msrb.mxu3 %v3476_v5 }
 0x268   :  { %1386 = vmatpush.bf16.msrb.mxu2 %v3477_v37 }
 0x26a   :  { %1319 = vmatpush.bf16.msrb.mxu1 %v3481_v60 }
 0x26b   :  { %1399 = vmatpush.bf16.msrb.mxu3 %v3479_v32 }
 0x26c   :  { %1387 = vmatpush.bf16.msrb.mxu2 %v3480_v46 }
 0x26f   :  { %1400 = vmatpush.bf16.msrb.mxu3 %v3482_v57 }
 0x270   :  { %1388 = vmatpush.bf16.msrb.mxu2 %v3483_v29 }
 0x273   :  { %1401 = vmatpush.bf16.msrb.mxu3 %v3484_v44 }
 0x274   :  { %1389 = vmatpush.bf16.msrb.mxu2 %v3485_v62 }
 0x277   :  { %1402 = vmatpush.bf16.msrb.mxu3 %v3486_v11 }
 0x2b5   :  { %v1033_v9 = vpop.f32.mrf.mxu0 }
 0x2ba   :  { %v1007_v19 = vpop.f32.mrf.mxu2  ;;  %v1020_v39 = vpop.f32.mrf.mxu3 }
 0x2bb   :  { %v1037_v53 = vadd.f32 %v1007_v19, %v994_v34  ;;  %v1057_v18 = vadd.f32 %v1020_v39, %v995_v26  ;;  %v1091_v39 = vunpack.c.h.bf16 %v2231_v27  ;;  %v2227_v27 = vld [vmem:[%s3390_s0 + $0x2c] sm:$0xf] }
 0x2bd   :  { %v2228_v40 = vmul.f32 -1.442695, %v1037_v53  ;;  %v2229_v52 = vmul.f32 -1.442695, %v1057_v18  ;;  %v1035_v55 = vpop.f32.mrf.mxu0 }
 0x2bf   :  { %2390 = vpow2.f32 %v2228_v40 }
 0x2c0   :  { %2392 = vpow2.f32 %v2229_v52 }
 0x2c2   :  { %v1009_v23 = vpop.f32.mrf.mxu2  ;;  %v1022_v56 = vpop.f32.mrf.mxu3 }
 0x2c5   :  { %v2391_v11 = vpop.eup %2390 }
 0x2c6   :  { %v2393_v62 = vpop.eup %2392  ;;  %v1041_v44 = vadd.f32 1.0, %v2391_v11 }
 0x2c7   :  { %v1061_v29 = vadd.f32 1.0, %v2393_v62 }
 0x2c8   :  { %2394 = vrcp.f32 %v1041_v44  ;;  %v1053_v46 = vand.u32 2147483648, %v1041_v44  ;;  %v1051_v37 = vand.u32 2147483647, %v1041_v44  ;;  %vm1047_vm1 = vweird.f32 %v1041_v44 }
 0x2c9   :  { %2396 = vrcp.f32 %v1061_v29  ;;  %vm1067_vm5 = vweird.f32 %v1061_v29 }
 0x2ca   :  { %v1103_v34 = vpop.f32.mrf.mxu1  ;;  %vm1052_vm3 = vcmp.eq.f32.partialorder %v1051_v37, 8.507059e+37 }
 0x2cb   :  { %v1133_v26 = vadd.f32 %v1103_v34, %v1090_v48 }
 0x2cd   :  { %v2233_v19 = vmul.f32 -1.442695, %v1133_v26 }
 0x2ce   :  { %v2395_v53 = vpop.eup %2394 }
 0x2cf   :  { %v2397_v18 = vpop.eup %2396  ;;  %v1043_v40 = vmul.f32 %v2395_v53, %v1041_v44  ;;  %2398 = vpow2.f32 %v2233_v19  ;;  %vm1048_vm0 = vweird.f32 %v2395_v53  ;;  %v1054_v19 = vor.u32 1.1754944e-38, %v1053_v46 }
 0x2d0   :  { %v1063_v52 = vmul.f32 %v2397_v18, %v1061_v29  ;;  %v1116_v55 = vpop.f32.mrf.mxu2  ;;  %vm1049_vm2 = vmor %vm1047_vm1, %vm1048_vm0  ;;  %vm1068_vm4 = vweird.f32 %v2397_v18  ;;  %v1071_v46 = vand.u32 2147483647, %v1061_v29 }
 0x2d1   :  { %v1044_v23 = vsub.f32 1.0, %v1043_v40  ;;  %v1153_v56 = vadd.f32 %v1116_v55, %v1091_v39  ;;  %v3063_v57 = vpop.f32.mrf.mxu3  ;;  %v3071_v40 = vld [vmem:[%s3393_s3] ss:$0 sm:$0xff]  ;;  %vm1069_vm6 = vmor %vm1067_vm5, %vm1068_vm4 }
 0x2d2   :  { %v1064_v11 = vsub.f32 1.0, %v1063_v52  ;;  %v1105_v62 = vpop.f32.mrf.mxu1  ;;  %v1077_v52 = vadd.f32 %v3071_v40, %v1033_v9  ;;  %vm1072_vm7 = vcmp.eq.f32.partialorder %v1071_v46, 8.507059e+37 }
 0x2d3   :  { %v1045_v32 = vmul.f32 %v2395_v53, %v1044_v23  ;;  %v2234_v60 = vmul.f32 -1.442695, %v1153_v56  ;;  %v996_v23 = vunpack.c.l.bf16 %v2227_v27 }
 0x2d4   :  { %v1065_v48 = vmul.f32 %v2397_v18, %v1064_v11 }
 0x2d5   :  { %v2399_v34 = vpop.eup %2398  ;;  %v1046_v26 = vadd.f32 %v2395_v53, %v1045_v32  ;;  %2400 = vpow2.f32 %v2234_v60  ;;  %v1073_v60 = vand.u32 2147483648, %v1061_v29  ;;  %v2232_v29 = vld [vmem:[%s3391_s1 + $0x98] sm:$0xf] }
 0x2d6   :  { %v1137_v39 = vadd.f32 1.0, %v2399_v34  ;;  %v1066_v11 = vadd.f32 %v2397_v18, %v1065_v48 }
 0x2d7   :  { %v1050_v55 = vsel %vm1049_vm2, %v2395_v53, %v1046_v26  ;;  %v1074_v13 = vor.u32 1.1754944e-38, %v1073_v60 }
 0x2d8   :  { %v1055_v56 = vsel %vm1052_vm3, %v1054_v19, %v1050_v55  ;;  %2402 = vrcp.f32 %v1137_v39  ;;  %v1118_v32 = vpop.f32.mrf.mxu2  ;;  %v1070_v31 = vsel %vm1069_vm6, %v2397_v18, %v1066_v11  ;;  %v1149_v27 = vand.u32 2147483648, %v1137_v39 }
 0x2d9   :  { %v1078_v44 = vmul.f32 %v1077_v52, %v1055_v56  ;;  %v1131_v62 = vpop.f32.mrf.mxu3  ;;  %v1075_v53 = vsel %vm1072_vm7, %v1074_v13, %v1070_v31  ;;  %v1147_v55 = vand.u32 2147483647, %v1137_v39  ;;  %vm1143_vm9 = vweird.f32 %v1137_v39 }
 0x2da   :  { %v1081_v26 = vsub.f32 1.0, %v1075_v53  ;;  %v1092_v32 = vunpack.c.l.bf16 %v2232_v29  ;;  %v1150_v13 = vor.u32 1.1754944e-38, %v1149_v27  ;;  %v3083_v62 = vld [vmem:[%s3393_s3 + $0x1] ss:$0 sm:$0xff] }
 0x2db   :  { %v2401_v34 = vpop.eup %2400  ;;  %v1079_v5 = vadd.f32 %v1078_v44, %v996_v23  ;;  %vm1148_vm11 = vcmp.eq.f32.partialorder %v1147_v55, 8.507059e+37  ;;  %v1173_v46 = vadd.f32 %v3083_v62, %v3063_v57 }
 0x2dc   :  { %v1157_v41 = vadd.f32 1.0, %v2401_v34 }
 0x2dd   :  { %2404 = vtanh.f32 %v1079_v5  ;;  %v1083_v5 = vmul.f32 %v1075_v53, %v2984_v0 }
 0x2de   :  { %v2403_v9 = vpop.eup %2402  ;;  %2406 = vrcp.f32 %v1157_v41  ;;  %v1167_v53 = vand.u32 2147483647, %v1157_v41  ;;  %vm1163_vm13 = vweird.f32 %v1157_v41 }
 0x2df   :  { %v1139_v37 = vmul.f32 %v2403_v9, %v1137_v39  ;;  %vm1144_vm8 = vweird.f32 %v2403_v9 }
 0x2e0   :  { %vm1145_vm10 = vmor %vm1143_vm9, %vm1144_vm8  ;;  %vm1168_vm15 = vcmp.eq.f32.partialorder %v1167_v53, 8.507059e+37 }
 0x2e1   :  { %v1140_v48 = vsub.f32 1.0, %v1139_v37 }
 0x2e3   :  { %v2405_v19 = vpop.eup %2404  ;;  %v1141_v52 = vmul.f32 %v2403_v9, %v1140_v48 }
 0x2e4   :  { %v2407_v23 = vpop.eup %2406  ;;  %v1082_v18 = vmul.f32 %v2405_v19, %v1081_v26 }
 0x2e5   :  { %v1159_v56 = vmul.f32 %v2407_v23, %v1157_v41  ;;  %v1142_v11 = vadd.f32 %v2403_v9, %v1141_v52  ;;  %vm1164_vm12 = vweird.f32 %v2407_v23 }
 0x2e6   :  { %v3078_v31 = vadd.f32 %v1083_v5, %v1082_v18  ;;  %vm1165_vm14 = vmor %vm1163_vm13, %vm1164_vm12  ;;  %v3488_v5 = vld [vmem:[#allocation17_spill] sm:$0xff] }
 0x2e7   :  { %v1160_v44 = vsub.f32 1.0, %v1159_v56  ;;  %v1146_v60 = vsel %vm1145_vm10, %v2403_v9, %v1142_v11  ;;  %v1169_v9 = vand.u32 2147483648, %v1157_v41  ;;  %v3489_v56 = vld [vmem:[#allocation6_spill] sm:$0xff]  ;;  %v3490_v11 = vld [vmem:[#allocation7_spill] sm:$0xff] }
 0x2e8   :  { %v1151_v0 = vsel %vm1148_vm11, %v1150_v13, %v1146_v60  ;;  %2230 = vst [vmem:[%s3394_s4 + $0x18] sm:$0xff] %v3078_v31  ;;  %v1189_v39 = vpack.c.bf16 %v3078_v31, %v3078_v31  ;;  %v3492_v13 = vld [vmem:[#allocation8_spill] sm:$0xff]  ;;  %v3494_v60 = vld [vmem:[#allocation10_spill] sm:$0xff] }
 0x2e9   :  { %v1161_v34 = vmul.f32 %v2407_v23, %v1160_v44  ;;  %v1174_v37 = vmul.f32 %v1173_v46, %v1151_v0  ;;  %v1170_v57 = vor.u32 1.1754944e-38, %v1169_v9  ;;  %v3493_v44 = vld [vmem:[#allocation9_spill] sm:$0xff]  ;;  %v3495_v46 = vld [vmem:[#allocation11_spill] sm:$0xff]  ;;  %v3496_v0 = vld [vmem:[#allocation12_spill] sm:$0xff] }
 0x2ea   :  { %1198 = vmatmul.bf16.vlgmr.msra.gmra.mxu0 %v1189_v39  ;;  %1211 = vmatmul.bf16.vlgmr.msra.gmra.mxu1 %v1189_v39  ;;  %v3499_v9 = vld [vmem:[#allocation15_spill] sm:$0xff] }
 0x2eb   :  { %v1162_v48 = vadd.f32 %v2407_v23, %v1161_v34  ;;  %v1175_v27 = vadd.f32 %v1174_v37, %v1092_v32  ;;  %1224 = vmatmul.bf16.vlgmr.msra.gmra.mxu2 %v1189_v39  ;;  %1408 = vmatpush.bf16.msra.mxu0 %v2595_v43  ;;  %v3491_v32 = vld [vmem:[#allocation18_spill] sm:$0xff]  ;;  %v3497_v39 = vld [vmem:[#allocation13_spill] sm:$0xff] }
 0x2ec   :  { %1478 = vmatpush.bf16.msra.mxu1 %v2564_v7  ;;  %1491 = vmatpush.bf16.msra.mxu2 %v2643_v36  ;;  %v3498_v34 = vld [vmem:[#allocation14_spill] sm:$0xff]  ;;  %v2236_v37 = vld [vmem:[%s3390_s0 + $0x30] sm:$0xff] }
 0x2ed   :  { %v1166_v26 = vsel %vm1165_vm14, %v2407_v23, %v1162_v48  ;;  %2408 = vtanh.f32 %v1175_v27  ;;  %v1186_v53 = vunpack.c.l.bf16 %v2236_v37  ;;  %v1187_v48 = vunpack.c.h.bf16 %v2236_v37 }
 0x2ee   :  { %v1171_v19 = vsel %vm1168_vm15, %v1170_v57, %v1166_v26 }
 0x2ef   :  { %1409 = vmatpush.bf16.msra.mxu0 %v2598_v47  ;;  %v1177_v41 = vsub.f32 1.0, %v1171_v19  ;;  %v1179_v55 = vmul.f32 %v1171_v19, %v3014_v58  ;;  %v3487_v58 = vld [vmem:[#allocation5_spill] sm:$0xff] }
 0x2f0   :  { %1479 = vmatpush.bf16.msra.mxu1 %v2573_v16  ;;  %1492 = vmatpush.bf16.msra.mxu2 %v2655_v54 }
 0x2f3   :  { %v2409_v29 = vpop.eup %2408  ;;  %1410 = vmatpush.bf16.msra.mxu0 %v2610_v59 }
 0x2f4   :  { %v1178_v52 = vmul.f32 %v2409_v29, %v1177_v41  ;;  %1480 = vmatpush.bf16.msra.mxu1 %v2582_v25  ;;  %1493 = vmatpush.bf16.msra.mxu2 %v2669_v4 }
 0x2f6   :  { %v3103_v23 = vadd.f32 %v1179_v55, %v1178_v52 }
 0x2f7   :  { %1411 = vmatpush.bf16.msra.mxu0 %v2622_v10 }
 0x2f8   :  { %2235 = vst [vmem:[%s3395_s5 + $0x20] sm:$0xff] %v3103_v23  ;;  %v1285_v18 = vpack.c.bf16 %v3103_v23, %v3103_v23  ;;  %1481 = vmatpush.bf16.msra.mxu1 %v2591_v38  ;;  %1494 = vmatpush.bf16.msra.mxu2 %v2679_v22 }
 0x2fa   :  { %1294 = vmatmul.bf16.vlgmr.msra.gmra.mxu3 %v1285_v18  ;;  %1307 = vmatmul.bf16.vlgmr.msrb.gmra.mxu0 %v1285_v18 }
 0x2fb   :  { %1320 = vmatmul.bf16.vlgmr.msrb.gmra.mxu1 %v1285_v18  ;;  %1412 = vmatpush.bf16.msra.mxu0 %v2634_v30 }
 0x2fc   :  { %1504 = vmatpush.bf16.msra.mxu3 %v2647_v45  ;;  %1482 = vmatpush.bf16.msra.mxu1 %v2605_v51 }
 0x2fd   :  { %1495 = vmatpush.bf16.msra.mxu2 %v2687_v33 }
 0x2ff   :  { %1413 = vmatpush.bf16.msra.mxu0 %v2651_v50 }
 0x300   :  { %1505 = vmatpush.bf16.msra.mxu3 %v2661_v61  ;;  %1483 = vmatpush.bf16.msra.mxu1 %v2617_v63 }
 0x301   :  { %1496 = vmatpush.bf16.msra.mxu2 %v2696_v49 }
 0x303   :  { %1414 = vmatpush.bf16.msra.mxu0 %v2665_v2 }
 0x304   :  { %1506 = vmatpush.bf16.msra.mxu3 %v2673_v14  ;;  %1484 = vmatpush.bf16.msra.mxu1 %v2629_v15 }
 0x305   :  { %1497 = vmatpush.bf16.msra.mxu2 %v2704_v1 }
 0x307   :  { %1415 = vmatpush.bf16.msra.mxu0 %v2676_v21 }
 0x308   :  { %1507 = vmatpush.bf16.msra.mxu3 %v2683_v28  ;;  %1485 = vmatpush.bf16.msra.mxu1 %v2641_v35 }
 0x309   :  { %1498 = vmatpush.bf16.msra.mxu2 %v2712_v20 }
 0x30b   :  { %1574 = vmatpush.bf16.msrb.mxu0 %v2562_v3 }
 0x30c   :  { %1587 = vmatpush.bf16.msrb.mxu1 %v2566_v8  ;;  %1508 = vmatpush.bf16.msra.mxu3 %v2692_v42 }
 0x30f   :  { %1575 = vmatpush.bf16.msrb.mxu0 %v2569_v12 }
 0x310   :  { %1588 = vmatpush.bf16.msrb.mxu1 %v2575_v17  ;;  %1509 = vmatpush.bf16.msra.mxu3 %v3475_v6 }
 0x313   :  { %1576 = vmatpush.bf16.msrb.mxu0 %v2578_v24 }
 0x314   :  { %1589 = vmatpush.bf16.msrb.mxu1 %v3487_v58  ;;  %1510 = vmatpush.bf16.msra.mxu3 %v3488_v5 }
 0x317   :  { %1577 = vmatpush.bf16.msrb.mxu0 %v3489_v56 }
 0x318   :  { %1590 = vmatpush.bf16.msrb.mxu1 %v3490_v11  ;;  %1511 = vmatpush.bf16.msra.mxu3 %v3491_v32 }
 0x31b   :  { %1578 = vmatpush.bf16.msrb.mxu0 %v3492_v13 }
 0x31c   :  { %1591 = vmatpush.bf16.msrb.mxu1 %v3493_v44 }
 0x31f   :  { %1579 = vmatpush.bf16.msrb.mxu0 %v3494_v60 }
 0x320   :  { %1592 = vmatpush.bf16.msrb.mxu1 %v3495_v46 }
 0x323   :  { %1580 = vmatpush.bf16.msrb.mxu0 %v3496_v0 }
 0x324   :  { %1593 = vmatpush.bf16.msrb.mxu1 %v3497_v39 }
 0x327   :  { %1581 = vmatpush.bf16.msrb.mxu0 %v3498_v34 }
 0x328   :  { %1594 = vmatpush.bf16.msrb.mxu1 %v3499_v9  ;;  %v2241_v9 = vld [vmem:[%s3391_s1 + $0x84] sm:$0xff] }
 0x329   :  { %v1283_v37 = vunpack.c.h.bf16 %v2241_v9 }
 0x367   :  { %v1199_v27 = vpop.f32.mrf.mxu0  ;;  %v1212_v57 = vpop.f32.mrf.mxu1 }
 0x368   :  { %v1229_v26 = vadd.f32 %v1199_v27, %v1186_v53  ;;  %v1249_v19 = vadd.f32 %v1212_v57, %v1187_v48 }
 0x36a   :  { %v2238_v41 = vmul.f32 -1.442695, %v1229_v26  ;;  %v2239_v29 = vmul.f32 -1.442695, %v1249_v19  ;;  %v1282_v19 = vunpack.c.l.bf16 %v2241_v9  ;;  %v2237_v9 = vld [vmem:[%s3390_s0 + $0x38] sm:$0xf] }
 0x36c   :  { %2410 = vpow2.f32 %v2238_v41 }
 0x36d   :  { %2412 = vpow2.f32 %v2239_v29 }
 0x36e   :  { %v1225_v52 = vpop.f32.mrf.mxu2 }
 0x36f   :  { %v1201_v55 = vpop.f32.mrf.mxu0  ;;  %v1214_v18 = vpop.f32.mrf.mxu1 }
 0x372   :  { %v2411_v34 = vpop.eup %2410 }
 0x373   :  { %v2413_v39 = vpop.eup %2412  ;;  %v1233_v0 = vadd.f32 1.0, %v2411_v34 }
 0x374   :  { %v1253_v46 = vadd.f32 1.0, %v2413_v39 }
 0x375   :  { %2414 = vrcp.f32 %v1233_v0  ;;  %v1245_v39 = vand.u32 2147483648, %v1233_v0  ;;  %vm1239_vm1 = vweird.f32 %v1233_v0 }
 0x376   :  { %2416 = vrcp.f32 %v1253_v46  ;;  %v1227_v53 = vpop.f32.mrf.mxu2  ;;  %vm1259_vm5 = vweird.f32 %v1253_v46 }
 0x377   :  { %v1308_v48 = vpop.f32.mrf.mxu0  ;;  %v1243_v53 = vand.u32 2147483647, %v1233_v0 }
 0x378   :  { %v1345_v27 = vadd.f32 %v1308_v48, %v1283_v37  ;;  %v3156_v57 = vpop.f32.mrf.mxu1 }
 0x379   :  { %vm1244_vm3 = vcmp.eq.f32.partialorder %v1243_v53, 8.507059e+37 }
 0x37a   :  { %v2244_v26 = vmul.f32 -1.442695, %v1345_v27 }
 0x37b   :  { %v2415_v41 = vpop.eup %2414 }
 0x37c   :  { %v2417_v29 = vpop.eup %2416  ;;  %v1235_v55 = vmul.f32 %v2415_v41, %v1233_v0  ;;  %2418 = vpow2.f32 %v2244_v26  ;;  %vm1240_vm0 = vweird.f32 %v2415_v41  ;;  %v1246_v26 = vor.u32 1.1754944e-38, %v1245_v39 }
 0x37d   :  { %v1255_v18 = vmul.f32 %v2417_v29, %v1253_v46  ;;  %v1295_v32 = vpop.f32.mrf.mxu3  ;;  %vm1241_vm2 = vmor %vm1239_vm1, %vm1240_vm0  ;;  %vm1260_vm4 = vweird.f32 %v2417_v29 }
 0x37e   :  { %v1236_v60 = vsub.f32 1.0, %v1235_v55  ;;  %v1325_v44 = vadd.f32 %v1295_v32, %v1282_v19  ;;  %v1188_v19 = vunpack.c.l.bf16 %v2237_v9  ;;  %vm1261_vm6 = vmor %vm1259_vm5, %vm1260_vm4 }
 0x37f   :  { %v1256_v34 = vsub.f32 1.0, %v1255_v18  ;;  %v1310_v5 = vpop.f32.mrf.mxu0 }
 0x380   :  { %v1237_v13 = vmul.f32 %v2415_v41, %v1236_v60  ;;  %v2243_v11 = vmul.f32 -1.442695, %v1325_v44  ;;  %v1323_v37 = vpop.f32.mrf.mxu1  ;;  %v1269_v60 = vadd.f32 %v3071_v40, %v1225_v52 }
 0x381   :  { %v1257_v48 = vmul.f32 %v2417_v29, %v1256_v34  ;;  %v1265_v34 = vand.u32 2147483648, %v1253_v46 }
 0x382   :  { %v2419_v27 = vpop.eup %2418  ;;  %v1238_v6 = vadd.f32 %v2415_v41, %v1237_v13  ;;  %2420 = vpow2.f32 %v2243_v11  ;;  %v1263_v13 = vand.u32 2147483647, %v1253_v46 }
 0x383   :  { %v3161_v32 = vadd.f32 1.0, %v2419_v27  ;;  %v1258_v44 = vadd.f32 %v2417_v29, %v1257_v48  ;;  %v1266_v9 = vor.u32 1.1754944e-38, %v1265_v34 }
 0x384   :  { %v1242_v5 = vsel %vm1241_vm2, %v2415_v41, %v1238_v6  ;;  %vm1264_vm7 = vcmp.eq.f32.partialorder %v1263_v13, 8.507059e+37 }
 0x385   :  { %v1247_v55 = vsel %vm1244_vm3, %v1246_v26, %v1242_v5  ;;  %v1297_v18 = vpop.f32.mrf.mxu3  ;;  %2422 = vrcp.f32 %v3161_v32  ;;  %v1262_v39 = vsel %vm1261_vm6, %v2417_v29, %v1258_v44  ;;  %vm1355_vm13 = vweird.f32 %v3161_v32 }
 0x386   :  { %v1270_v37 = vmul.f32 %v1269_v60, %v1247_v55  ;;  %v1267_v52 = vsel %vm1264_vm7, %v1266_v9, %v1262_v39  ;;  %v1365_v39 = vadd.f32 %v3083_v62, %v3156_v57 }
 0x387   :  { %v1273_v41 = vsub.f32 1.0, %v1267_v52  ;;  %v1275_v60 = vmul.f32 %v1267_v52, %v3078_v31  ;;  %v2242_v31 = vld [vmem:[%s3391_s1 + $0x8c] sm:$0xf] }
 0x388   :  { %v2421_v11 = vpop.eup %2420  ;;  %v1271_v0 = vadd.f32 %v1270_v37, %v1188_v19  ;;  %v1284_v52 = vunpack.c.l.bf16 %v2242_v31  ;;  %v3511_v31 = vld [vmem:[#allocation15_spill] sm:$0xff] }
 0x389   :  { %v1329_v27 = vadd.f32 1.0, %v2421_v11 }
 0x38a   :  { %2424 = vtanh.f32 %v1271_v0 }
 0x38b   :  { %2426 = vrcp.f32 %v1329_v27  ;;  %v2423_v6 = vpop.eup %2422  ;;  %v1341_v19 = vand.u32 2147483648, %v1329_v27  ;;  %v1339_v37 = vand.u32 2147483647, %v1329_v27  ;;  %vm1335_vm9 = vweird.f32 %v1329_v27 }
 0x38c   :  { %v1351_v53 = vmul.f32 %v2423_v6, %v3161_v32  ;;  %vm1356_vm12 = vweird.f32 %v2423_v6 }
 0x38d   :  { %v1342_v0 = vor.u32 1.1754944e-38, %v1341_v19  ;;  %vm1340_vm11 = vcmp.eq.f32.partialorder %v1339_v37, 8.507059e+37  ;;  %vm1357_vm14 = vmor %vm1355_vm13, %vm1356_vm12  ;;  %v3505_v37 = vld [vmem:[#allocation10_spill] sm:$0xff] }
 0x38e   :  { %v1352_v55 = vsub.f32 1.0, %v1351_v53 }
 0x390   :  { %v2425_v48 = vpop.eup %2424  ;;  %v1353_v13 = vmul.f32 %v2423_v6, %v1352_v55 }
 0x391   :  { %v2427_v26 = vpop.eup %2426  ;;  %v1274_v5 = vmul.f32 %v2425_v48, %v1273_v41 }
 0x392   :  { %v1331_v46 = vmul.f32 %v2427_v26, %v1329_v27  ;;  %vm1336_vm8 = vweird.f32 %v2427_v26  ;;  %v1354_v41 = vadd.f32 %v2423_v6, %v1353_v13  ;;  %v1361_v27 = vand.u32 2147483648, %v3161_v32  ;;  %v3508_v13 = vld [vmem:[#allocation12_spill] sm:$0xff] }
 0x393   :  { %v3167_v18 = vadd.f32 %v1275_v60, %v1274_v5  ;;  %vm1337_vm10 = vmor %vm1335_vm9, %vm1336_vm8  ;;  %v1359_v5 = vand.u32 2147483647, %v3161_v32 }
 0x394   :  { %v1332_v29 = vsub.f32 1.0, %v1331_v46  ;;  %v1362_v60 = vor.u32 1.1754944e-38, %v1361_v27 }
 0x395   :  { %2240 = vst [vmem:[%s3394_s4 + $0x20] sm:$0xff] %v3167_v18  ;;  %v1381_v44 = vpack.c.bf16 %v3167_v18, %v3167_v18  ;;  %vm1360_vm15 = vcmp.eq.f32.partialorder %v1359_v5, 8.507059e+37 }
 0x396   :  { %v1333_v34 = vmul.f32 %v2427_v26, %v1332_v29 }
 0x397   :  { %1390 = vmatmul.bf16.vlgmr.msrb.gmra.mxu2 %v1381_v44  ;;  %1403 = vmatmul.bf16.vlgmr.msrb.gmra.mxu3 %v1381_v44 }
 0x398   :  { %v1334_v11 = vadd.f32 %v2427_v26, %v1333_v34  ;;  %1416 = vmatmul.bf16.vlgmr.msra.gmra.mxu0 %v1381_v44  ;;  %1600 = vmatpush.bf16.msrb.mxu2 %v2595_v43  ;;  %v3502_v34 = vld [vmem:[#allocation8_spill] sm:$0xff] }
 0x399   :  { %1670 = vmatpush.bf16.msrb.mxu3 %v2564_v7  ;;  %1683 = vmatpush.bf16.msra.mxu0 %v2643_v36 }
 0x39a   :  { %v1338_v9 = vsel %vm1337_vm10, %v2427_v26, %v1334_v11  ;;  %v1358_v26 = vsel %vm1357_vm14, %v2423_v6, %v1354_v41  ;;  %v2246_v11 = vld [vmem:[%s3390_s0 + $0x3c] sm:$0xff] }
 0x39b   :  { %v1343_v53 = vsel %vm1340_vm11, %v1342_v0, %v1338_v9  ;;  %v1363_v46 = vsel %vm1360_vm15, %v1362_v60, %v1358_v26  ;;  %v1379_v9 = vunpack.c.h.bf16 %v2246_v11 }
 0x39c   :  { %v1366_v48 = vmul.f32 %v1365_v39, %v1343_v53  ;;  %1601 = vmatpush.bf16.msrb.mxu2 %v2598_v47  ;;  %v1369_v32 = vsub.f32 1.0, %v1363_v46  ;;  %v1371_v6 = vmul.f32 %v1363_v46, %v3103_v23  ;;  %v3501_v23 = vld [vmem:[#allocation7_spill] sm:$0xff]  ;;  %v1378_v39 = vunpack.c.l.bf16 %v2246_v11  ;;  %v2251_v46 = vld [vmem:[%s3391_s1 + $0x78] sm:$0xff] }
 0x39d   :  { %1671 = vmatpush.bf16.msrb.mxu3 %v2573_v16  ;;  %1684 = vmatpush.bf16.msra.mxu0 %v2655_v54 }
 0x39e   :  { %v1367_v57 = vadd.f32 %v1366_v48, %v1284_v52 }
 0x3a0   :  { %2428 = vtanh.f32 %v1367_v57  ;;  %1602 = vmatpush.bf16.msrb.mxu2 %v2610_v59 }
 0x3a1   :  { %1672 = vmatpush.bf16.msrb.mxu3 %v2582_v25  ;;  %1685 = vmatpush.bf16.msra.mxu0 %v2669_v4 }
 0x3a4   :  { %1603 = vmatpush.bf16.msrb.mxu2 %v2622_v10 }
 0x3a5   :  { %1673 = vmatpush.bf16.msrb.mxu3 %v2591_v38  ;;  %1686 = vmatpush.bf16.msra.mxu0 %v2679_v22 }
 0x3a6   :  { %v2429_v55 = vpop.eup %2428 }
 0x3a7   :  { %v1370_v29 = vmul.f32 %v2429_v55, %v1369_v32 }
 0x3a8   :  { %1604 = vmatpush.bf16.msrb.mxu2 %v2634_v30 }
 0x3a9   :  { %v3197_v19 = vadd.f32 %v1371_v6, %v1370_v29  ;;  %1674 = vmatpush.bf16.msrb.mxu3 %v2605_v51  ;;  %1687 = vmatpush.bf16.msra.mxu0 %v2687_v33 }
 0x3ab   :  { %2245 = vst [vmem:[%s3395_s5 + $0x18] sm:$0xff] %v3197_v19  ;;  %v1477_v44 = vpack.c.bf16 %v3197_v19, %v3197_v19 }
 0x3ac   :  { %1605 = vmatpush.bf16.msrb.mxu2 %v2651_v50 }
 0x3ad   :  { %1486 = vmatmul.bf16.vlgmr.msra.gmra.mxu1 %v1477_v44  ;;  %1499 = vmatmul.bf16.vlgmr.msra.gmra.mxu2 %v1477_v44 }
 0x3ae   :  { %1512 = vmatmul.bf16.vlgmr.msra.gmra.mxu3 %v1477_v44  ;;  %1696 = vmatpush.bf16.msra.mxu1 %v2647_v45  ;;  %v1474_v44 = vunpack.c.l.bf16 %v2251_v46 }
 0x3af   :  { %1675 = vmatpush.bf16.msrb.mxu3 %v2617_v63  ;;  %1688 = vmatpush.bf16.msra.mxu0 %v2696_v49 }
 0x3b0   :  { %1606 = vmatpush.bf16.msrb.mxu2 %v2665_v2 }
 0x3b2   :  { %1697 = vmatpush.bf16.msra.mxu1 %v2661_v61 }
 0x3b3   :  { %1676 = vmatpush.bf16.msrb.mxu3 %v2629_v15  ;;  %1689 = vmatpush.bf16.msra.mxu0 %v2704_v1 }
 0x3b4   :  { %1607 = vmatpush.bf16.msrb.mxu2 %v2676_v21 }
 0x3b6   :  { %1698 = vmatpush.bf16.msra.mxu1 %v2673_v14 }
 0x3b7   :  { %1677 = vmatpush.bf16.msrb.mxu3 %v2641_v35  ;;  %1690 = vmatpush.bf16.msra.mxu0 %v2712_v20 }
 0x3b8   :  { %1766 = vmatpush.bf16.msra.mxu2 %v2562_v3  ;;  %v3500_v3 = vld [vmem:[#allocation16_spill] sm:$0xff] }
 0x3ba   :  { %1699 = vmatpush.bf16.msra.mxu1 %v2683_v28 }
 0x3bb   :  { %1779 = vmatpush.bf16.msra.mxu3 %v2566_v8  ;;  %v3503_v8 = vld [vmem:[#allocation17_spill] sm:$0xff] }
 0x3bc   :  { %1767 = vmatpush.bf16.msra.mxu2 %v2569_v12  ;;  %v3504_v12 = vld [vmem:[#allocation9_spill] sm:$0xff] }
 0x3be   :  { %1700 = vmatpush.bf16.msra.mxu1 %v2692_v42 }
 0x3bf   :  { %1780 = vmatpush.bf16.msra.mxu3 %v2575_v17  ;;  %v3506_v17 = vld [vmem:[#allocation18_spill] sm:$0xff] }
 0x3c0   :  { %1768 = vmatpush.bf16.msra.mxu2 %v2578_v24  ;;  %v3507_v24 = vld [vmem:[#allocation11_spill] sm:$0xff] }
 0x3c2   :  { %1701 = vmatpush.bf16.msra.mxu1 %v3500_v3 }
 0x3c3   :  { %1781 = vmatpush.bf16.msra.mxu3 %v3487_v58  ;;  %v3509_v58 = vld [vmem:[#allocation13_spill] sm:$0xff] }
 0x3c4   :  { %1769 = vmatpush.bf16.msra.mxu2 %v3489_v56  ;;  %v3510_v56 = vld [vmem:[#allocation14_spill] sm:$0xff] }
 0x3c6   :  { %1702 = vmatpush.bf16.msra.mxu1 %v3503_v8 }
 0x3c7   :  { %1782 = vmatpush.bf16.msra.mxu3 %v3501_v23 }
 0x3c8   :  { %1770 = vmatpush.bf16.msra.mxu2 %v3502_v34 }
 0x3ca   :  { %1703 = vmatpush.bf16.msra.mxu1 %v3506_v17 }
 0x3cb   :  { %1783 = vmatpush.bf16.msra.mxu3 %v3504_v12 }
 0x3cc   :  { %1771 = vmatpush.bf16.msra.mxu2 %v3505_v37  ;;  %v1475_v37 = vunpack.c.h.bf16 %v2251_v46 }
 0x3cf   :  { %1784 = vmatpush.bf16.msra.mxu3 %v3507_v24 }
 0x3d0   :  { %1772 = vmatpush.bf16.msra.mxu2 %v3508_v13 }
 0x3d3   :  { %1785 = vmatpush.bf16.msra.mxu3 %v3509_v58 }
 0x3d4   :  { %1773 = vmatpush.bf16.msra.mxu2 %v3510_v56 }
 0x3d7   :  { %1786 = vmatpush.bf16.msra.mxu3 %v3511_v31 }
 0x415   :  { %v1417_v0 = vpop.f32.mrf.mxu0 }
 0x41a   :  { %v1391_v52 = vpop.f32.mrf.mxu2  ;;  %v1404_v41 = vpop.f32.mrf.mxu3 }
 0x41b   :  { %v1421_v53 = vadd.f32 %v1391_v52, %v1378_v39  ;;  %v1441_v27 = vadd.f32 %v1404_v41, %v1379_v9 }
 0x41d   :  { %v2248_v48 = vmul.f32 -1.442695, %v1421_v53  ;;  %v2249_v5 = vmul.f32 -1.442695, %v1441_v27  ;;  %v1419_v57 = vpop.f32.mrf.mxu0 }
 0x41f   :  { %2430 = vpow2.f32 %v2248_v48 }
 0x420   :  { %2432 = vpow2.f32 %v2249_v5 }
 0x422   :  { %v1393_v26 = vpop.f32.mrf.mxu2  ;;  %v1406_v60 = vpop.f32.mrf.mxu3 }
 0x423   :  { %v2247_v26 = vld [vmem:[%s3390_s0 + $0x44] sm:$0xf] }
 0x425   :  { %v2431_v32 = vpop.eup %2430 }
 0x426   :  { %v2433_v55 = vpop.eup %2432  ;;  %v1425_v29 = vadd.f32 1.0, %v2431_v32 }
 0x427   :  { %v1445_v6 = vadd.f32 1.0, %v2433_v55 }
 0x428   :  { %2434 = vrcp.f32 %v1425_v29  ;;  %v1437_v52 = vand.u32 2147483648, %v1425_v29  ;;  %v1435_v48 = vand.u32 2147483647, %v1425_v29  ;;  %vm1431_vm1 = vweird.f32 %v1425_v29 }
 0x429   :  { %2436 = vrcp.f32 %v1445_v6  ;;  %vm1451_vm5 = vweird.f32 %v1445_v6 }
 0x42a   :  { %v1487_v23 = vpop.f32.mrf.mxu1  ;;  %v1438_v32 = vor.u32 1.1754944e-38, %v1437_v52  ;;  %vm1436_vm3 = vcmp.eq.f32.partialorder %v1435_v48, 8.507059e+37 }
 0x42b   :  { %v1517_v34 = vadd.f32 %v1487_v23, %v1474_v44  ;;  %v1461_v44 = vadd.f32 %v3071_v40, %v1417_v0 }
 0x42d   :  { %v2253_v12 = vmul.f32 -1.442695, %v1517_v34  ;;  %v1380_v34 = vunpack.c.l.bf16 %v2247_v26 }
 0x42e   :  { %v2435_v24 = vpop.eup %2434 }
 0x42f   :  { %v2437_v13 = vpop.eup %2436  ;;  %v1427_v58 = vmul.f32 %v2435_v24, %v1425_v29  ;;  %2438 = vpow2.f32 %v2253_v12  ;;  %vm1432_vm0 = vweird.f32 %v2435_v24 }
 0x430   :  { %v1447_v56 = vmul.f32 %v2437_v13, %v1445_v6  ;;  %v1500_v31 = vpop.f32.mrf.mxu2  ;;  %vm1433_vm2 = vmor %vm1431_vm1, %vm1432_vm0  ;;  %vm1452_vm4 = vweird.f32 %v2437_v13 }
 0x431   :  { %v1428_v11 = vsub.f32 1.0, %v1427_v58  ;;  %v1537_v39 = vadd.f32 %v1500_v31, %v1475_v37  ;;  %v3246_v9 = vpop.f32.mrf.mxu3  ;;  %v1457_v31 = vand.u32 2147483648, %v1445_v6  ;;  %vm1453_vm6 = vmor %vm1451_vm5, %vm1452_vm4 }
 0x432   :  { %v1448_v41 = vsub.f32 1.0, %v1447_v56  ;;  %v1489_v53 = vpop.f32.mrf.mxu1 }
 0x433   :  { %v1429_v27 = vmul.f32 %v2435_v24, %v1428_v11  ;;  %v2254_v5 = vmul.f32 -1.442695, %v1537_v39  ;;  %v1455_v39 = vand.u32 2147483647, %v1445_v6  ;;  %v2252_v6 = vld [vmem:[%s3391_s1 + $0x80] sm:$0xf] }
 0x434   :  { %v1449_v57 = vmul.f32 %v2437_v13, %v1448_v41 }
 0x435   :  { %v2439_v60 = vpop.eup %2438  ;;  %v1430_v46 = vadd.f32 %v2435_v24, %v1429_v27  ;;  %2440 = vpow2.f32 %v2254_v5  ;;  %v1458_v27 = vor.u32 1.1754944e-38, %v1457_v31  ;;  %vm1456_vm7 = vcmp.eq.f32.partialorder %v1455_v39, 8.507059e+37 }
 0x436   :  { %v1521_v55 = vadd.f32 1.0, %v2439_v60  ;;  %v1450_v37 = vadd.f32 %v2437_v13, %v1449_v57 }
 0x437   :  { %v1434_v23 = vsel %vm1433_vm2, %v2435_v24, %v1430_v46 }
 0x438   :  { %v1439_v12 = vsel %vm1436_vm3, %v1438_v32, %v1434_v23  ;;  %2442 = vrcp.f32 %v1521_v55  ;;  %v1502_v58 = vpop.f32.mrf.mxu2  ;;  %v1454_v53 = vsel %vm1453_vm6, %v2437_v13, %v1450_v37  ;;  %v1533_v5 = vand.u32 2147483648, %v1521_v55 }
 0x439   :  { %v1462_v56 = vmul.f32 %v1461_v44, %v1439_v12  ;;  %v1515_v11 = vpop.f32.mrf.mxu3  ;;  %v1459_v24 = vsel %vm1456_vm7, %v1458_v27, %v1454_v53  ;;  %v1531_v46 = vand.u32 2147483647, %v1521_v55  ;;  %vm1527_vm9 = vweird.f32 %v1521_v55 }
 0x43a   :  { %v1465_v57 = vsub.f32 1.0, %v1459_v24  ;;  %v1467_v44 = vmul.f32 %v1459_v24, %v3167_v18  ;;  %v1476_v12 = vunpack.c.l.bf16 %v2252_v6  ;;  %v1534_v37 = vor.u32 1.1754944e-38, %v1533_v5 }
 0x43b   :  { %v2441_v29 = vpop.eup %2440  ;;  %v1463_v41 = vadd.f32 %v1462_v56, %v1380_v34  ;;  %vm1532_vm11 = vcmp.eq.f32.partialorder %v1531_v46, 8.507059e+37  ;;  %v1557_v11 = vadd.f32 %v3083_v62, %v3246_v9 }
 0x43c   :  { %v1541_v52 = vadd.f32 1.0, %v2441_v29 }
 0x43d   :  { %2444 = vtanh.f32 %v1463_v41 }
 0x43e   :  { %v2443_v40 = vpop.eup %2442  ;;  %2446 = vrcp.f32 %v1541_v52  ;;  %v1553_v29 = vand.u32 2147483648, %v1541_v52  ;;  %v1551_v53 = vand.u32 2147483647, %v1541_v52  ;;  %vm1547_vm13 = vweird.f32 %v1541_v52 }
 0x43f   :  { %v1523_v0 = vmul.f32 %v2443_v40, %v1521_v55  ;;  %vm1528_vm8 = vweird.f32 %v2443_v40 }
 0x440   :  { %vm1529_vm10 = vmor %vm1527_vm9, %vm1528_vm8  ;;  %v1554_v62 = vor.u32 1.1754944e-38, %v1553_v29  ;;  %vm1552_vm15 = vcmp.eq.f32.partialorder %v1551_v53, 8.507059e+37 }
 0x441   :  { %v1524_v48 = vsub.f32 1.0, %v1523_v0 }
 0x443   :  { %v2445_v26 = vpop.eup %2444  ;;  %v1525_v60 = vmul.f32 %v2443_v40, %v1524_v48 }
 0x444   :  { %v2447_v32 = vpop.eup %2446  ;;  %v1466_v13 = vmul.f32 %v2445_v26, %v1465_v57 }
 0x445   :  { %v1543_v23 = vmul.f32 %v2447_v32, %v1541_v52  ;;  %v1526_v34 = vadd.f32 %v2443_v40, %v1525_v60  ;;  %vm1548_vm12 = vweird.f32 %v2447_v32 }
 0x446   :  { %v3256_v58 = vadd.f32 %v1467_v44, %v1466_v13  ;;  %vm1549_vm14 = vmor %vm1547_vm13, %vm1548_vm12 }
 0x447   :  { %v1544_v56 = vsub.f32 1.0, %v1543_v23  ;;  %v1530_v31 = vsel %vm1529_vm10, %v2443_v40, %v1526_v34  ;;  %v2257_v23 = vld [vmem:[%s3390_s0 + $0x50] sm:$0xf] }
 0x448   :  { %v1535_v39 = vsel %vm1532_vm11, %v1534_v37, %v1530_v31  ;;  %2250 = vst [vmem:[%s3394_s4 + $0x28] sm:$0xff] %v3256_v58  ;;  %v1573_v18 = vpack.c.bf16 %v3256_v58, %v3256_v58  ;;  %v1572_v31 = vunpack.c.l.bf16 %v2257_v23 }
 0x449   :  { %v1545_v55 = vmul.f32 %v2447_v32, %v1544_v56  ;;  %v1558_v41 = vmul.f32 %v1557_v11, %v1535_v39  ;;  %v3323_v39 = vld [vmem:[%s3393_s3] ss:$0 sm:$0xff] }
 0x44a   :  { %1582 = vmatmul.bf16.vlgmr.msrb.gmra.mxu0 %v1573_v18  ;;  %1595 = vmatmul.bf16.vlgmr.msrb.gmra.mxu1 %v1573_v18 }
 0x44b   :  { %v1546_v27 = vadd.f32 %v2447_v32, %v1545_v55  ;;  %v1559_v40 = vadd.f32 %v1558_v41, %v1476_v12  ;;  %1608 = vmatmul.bf16.vlgmr.msrb.gmra.mxu2 %v1573_v18  ;;  %1792 = vmatpush.bf16.msrb.mxu0 %v2595_v43 }
 0x44c   :  { %1861 = vmatpush.bf16.msrb.mxu1 %v2564_v7  ;;  %1874 = vmatpush.bf16.msrb.mxu2 %v2643_v36 }
 0x44d   :  { %v1550_v9 = vsel %vm1549_vm14, %v2447_v32, %v1546_v27  ;;  %2448 = vtanh.f32 %v1559_v40 }
 0x44e   :  { %v1555_v0 = vsel %vm1552_vm15, %v1554_v62, %v1550_v9 }
 0x44f   :  { %1793 = vmatpush.bf16.msrb.mxu0 %v2598_v47  ;;  %v1561_v52 = vsub.f32 1.0, %v1555_v0  ;;  %v1563_v7 = vmul.f32 %v1555_v0, %v3197_v19 }
 0x450   :  { %1862 = vmatpush.bf16.msrb.mxu1 %v2573_v16  ;;  %1875 = vmatpush.bf16.msrb.mxu2 %v2655_v54  ;;  %v2261_v54 = vld [vmem:[%s3391_s1 + $0x6c] sm:$0xff] }
 0x453   :  { %v2449_v24 = vpop.eup %2448  ;;  %1794 = vmatpush.bf16.msrb.mxu0 %v2610_v59 }
 0x454   :  { %v1562_v43 = vmul.f32 %v2449_v24, %v1561_v52  ;;  %1863 = vmatpush.bf16.msrb.mxu1 %v2582_v25  ;;  %1876 = vmatpush.bf16.msrb.mxu2 %v2669_v4  ;;  %v2256_v25 = vld [vmem:[%s3390_s0 + $0x48] sm:$0xff] }
 0x455   :  { %v1571_v47 = vunpack.c.h.bf16 %v2256_v25 }
 0x456   :  { %v3276_v36 = vadd.f32 %v1563_v7, %v1562_v43 }
 0x457   :  { %1795 = vmatpush.bf16.msrb.mxu0 %v2622_v10 }
 0x458   :  { %2255 = vst [vmem:[%s3395_s5 + $0x10] sm:$0xff] %v3276_v36  ;;  %v1669_v16 = vpack.c.bf16 %v3276_v36, %v3276_v36  ;;  %1864 = vmatpush.bf16.msrb.mxu1 %v2591_v38  ;;  %1877 = vmatpush.bf16.msrb.mxu2 %v2679_v22  ;;  %v1570_v38 = vunpack.c.l.bf16 %v2256_v25 }
 0x45a   :  { %1678 = vmatmul.bf16.vlgmr.msrb.gmra.mxu3 %v1669_v16  ;;  %1691 = vmatmul.bf16.vlgmr.msra.gmra.mxu0 %v1669_v16 }
 0x45b   :  { %1704 = vmatmul.bf16.vlgmr.msra.gmra.mxu1 %v1669_v16  ;;  %1796 = vmatpush.bf16.msrb.mxu0 %v2634_v30 }
 0x45c   :  { %1887 = vmatpush.bf16.msrb.mxu3 %v2647_v45  ;;  %1865 = vmatpush.bf16.msrb.mxu1 %v2605_v51 }
 0x45d   :  { %1878 = vmatpush.bf16.msrb.mxu2 %v2687_v33 }
 0x45f   :  { %1797 = vmatpush.bf16.msrb.mxu0 %v2651_v50 }
 0x460   :  { %1888 = vmatpush.bf16.msrb.mxu3 %v2661_v61  ;;  %1866 = vmatpush.bf16.msrb.mxu1 %v2617_v63 }
 0x461   :  { %1879 = vmatpush.bf16.msrb.mxu2 %v2696_v49 }
 0x463   :  { %1798 = vmatpush.bf16.msrb.mxu0 %v2665_v2 }
 0x464   :  { %1889 = vmatpush.bf16.msrb.mxu3 %v2673_v14  ;;  %1867 = vmatpush.bf16.msrb.mxu1 %v2629_v15 }
 0x465   :  { %1880 = vmatpush.bf16.msrb.mxu2 %v2704_v1  ;;  %v1666_v1 = vunpack.c.l.bf16 %v2261_v54 }
 0x467   :  { %1799 = vmatpush.bf16.msrb.mxu0 %v2676_v21  ;;  %v1667_v21 = vunpack.c.h.bf16 %v2261_v54 }
 0x468   :  { %1890 = vmatpush.bf16.msrb.mxu3 %v2683_v28  ;;  %1868 = vmatpush.bf16.msrb.mxu1 %v2641_v35 }
 0x469   :  { %1881 = vmatpush.bf16.msrb.mxu2 %v2712_v20 }
 0x46c   :  { %1891 = vmatpush.bf16.msrb.mxu3 %v2692_v42 }
 0x470   :  { %1892 = vmatpush.bf16.msrb.mxu3 %v3500_v3 }
 0x474   :  { %1893 = vmatpush.bf16.msrb.mxu3 %v3503_v8 }
 0x478   :  { %1894 = vmatpush.bf16.msrb.mxu3 %v3506_v17 }
 0x4c7   :  { %v1583_v51 = vpop.f32.mrf.mxu0  ;;  %v1596_v59 = vpop.f32.mrf.mxu1 }
 0x4c8   :  { %v1613_v63 = vadd.f32 %v1583_v51, %v1570_v38  ;;  %v1633_v10 = vadd.f32 %v1596_v59, %v1571_v47 }
 0x4ca   :  { %v2258_v15 = vmul.f32 -1.442695, %v1613_v63  ;;  %v2259_v30 = vmul.f32 -1.442695, %v1633_v10 }
 0x4cc   :  { %2450 = vpow2.f32 %v2258_v15 }
 0x4cd   :  { %2452 = vpow2.f32 %v2259_v30 }
 0x4ce   :  { %v1609_v35 = vpop.f32.mrf.mxu2 }
 0x4cf   :  { %v1585_v45 = vpop.f32.mrf.mxu0  ;;  %v1598_v50 = vpop.f32.mrf.mxu1  ;;  %v1653_v18 = vadd.f32 %v3323_v39, %v1609_v35 }
 0x4d2   :  { %v2451_v61 = vpop.eup %2450 }
 0x4d3   :  { %v2453_v2 = vpop.eup %2452  ;;  %v1617_v4 = vadd.f32 1.0, %v2451_v61 }
 0x4d4   :  { %v1637_v14 = vadd.f32 1.0, %v2453_v2 }
 0x4d5   :  { %2454 = vrcp.f32 %v1617_v4  ;;  %v1629_v26 = vand.u32 2147483648, %v1617_v4  ;;  %v1627_v46 = vand.u32 2147483647, %v1617_v4  ;;  %vm1623_vm1 = vweird.f32 %v1617_v4 }
 0x4d6   :  { %2456 = vrcp.f32 %v1637_v14  ;;  %v1611_v22 = vpop.f32.mrf.mxu2  ;;  %v1649_v53 = vand.u32 2147483648, %v1637_v14  ;;  %vm1643_vm5 = vweird.f32 %v1637_v14  ;;  %v1647_v40 = vand.u32 2147483647, %v1637_v14 }
 0x4d7   :  { %v1692_v28 = vpop.f32.mrf.mxu0  ;;  %v1630_v37 = vor.u32 1.1754944e-38, %v1629_v26  ;;  %vm1628_vm3 = vcmp.eq.f32.partialorder %v1627_v46, 8.507059e+37  ;;  %v2266_v46 = vld [vmem:[%s3390_s0 + $0x54] sm:$0xff] }
 0x4d8   :  { %v1729_v33 = vadd.f32 %v1692_v28, %v1667_v21  ;;  %v3313_v42 = vpop.f32.mrf.mxu1  ;;  %v1650_v24 = vor.u32 1.1754944e-38, %v1649_v53  ;;  %vm1648_vm7 = vcmp.eq.f32.partialorder %v1647_v40, 8.507059e+37 }
 0x4da   :  { %v2264_v49 = vmul.f32 -1.442695, %v1729_v33 }
 0x4db   :  { %v2455_v20 = vpop.eup %2454 }
 0x4dc   :  { %v2457_v19 = vpop.eup %2456  ;;  %v1619_v3 = vmul.f32 %v2455_v20, %v1617_v4  ;;  %2458 = vpow2.f32 %v2264_v49  ;;  %vm1624_vm0 = vweird.f32 %v2455_v20 }
 0x4dd   :  { %v1639_v8 = vmul.f32 %v2457_v19, %v1637_v14  ;;  %v1679_v17 = vpop.f32.mrf.mxu3  ;;  %vm1625_vm2 = vmor %vm1623_vm1, %vm1624_vm0  ;;  %vm1644_vm4 = vweird.f32 %v2457_v19  ;;  %v3343_v14 = vld [vmem:[%s3393_s3 + $0x1] ss:$0 sm:$0xff] }
 0x4de   :  { %v1620_v48 = vsub.f32 1.0, %v1619_v3  ;;  %v1709_v5 = vadd.f32 %v1679_v17, %v1666_v1  ;;  %vm1645_vm6 = vmor %vm1643_vm5, %vm1644_vm4  ;;  %v1749_v21 = vadd.f32 %v3343_v14, %v3313_v42 }
 0x4df   :  { %v1640_v57 = vsub.f32 1.0, %v1639_v8  ;;  %v1694_v6 = vpop.f32.mrf.mxu0 }
 0x4e0   :  { %v1621_v60 = vmul.f32 %v2455_v20, %v1620_v48  ;;  %v2263_v32 = vmul.f32 -1.442695, %v1709_v5  ;;  %v1707_v13 = vpop.f32.mrf.mxu1 }
 0x4e1   :  { %v1641_v44 = vmul.f32 %v2457_v19, %v1640_v57  ;;  %v1762_v13 = vunpack.c.l.bf16 %v2266_v46 }
 0x4e2   :  { %v2459_v34 = vpop.eup %2458  ;;  %v1622_v12 = vadd.f32 %v2455_v20, %v1621_v60  ;;  %2460 = vpow2.f32 %v2263_v32 }
 0x4e3   :  { %v3318_v56 = vadd.f32 1.0, %v2459_v34  ;;  %v1642_v55 = vadd.f32 %v2457_v19, %v1641_v44 }
 0x4e4   :  { %v1626_v11 = vsel %vm1625_vm2, %v2455_v20, %v1622_v12 }
 0x4e5   :  { %v1631_v29 = vsel %vm1628_vm3, %v1630_v37, %v1626_v11  ;;  %v1681_v41 = vpop.f32.mrf.mxu3  ;;  %2462 = vrcp.f32 %v3318_v56  ;;  %v1646_v0 = vsel %vm1645_vm6, %v2457_v19, %v1642_v55  ;;  %v1745_v1 = vand.u32 2147483648, %v3318_v56  ;;  %v2271_v55 = vld [vmem:[%s3391_s1 + $0x60] sm:$0xff] }
 0x4e6   :  { %v1654_v27 = vmul.f32 %v1653_v18, %v1631_v29  ;;  %v1651_v7 = vsel %vm1648_vm7, %v1650_v24, %v1646_v0  ;;  %vm1739_vm13 = vweird.f32 %v3318_v56  ;;  %v1743_v19 = vand.u32 2147483647, %v3318_v56 }
 0x4e7   :  { %v1657_v16 = vsub.f32 1.0, %v1651_v7  ;;  %v1659_v59 = vmul.f32 %v1651_v7, %v3256_v58  ;;  %v2262_v58 = vld [vmem:[%s3391_s1 + $0x74] sm:$0xf]  ;;  %v1746_v17 = vor.u32 1.1754944e-38, %v1745_v1  ;;  %v1857_v40 = vunpack.c.l.bf16 %v2271_v55 }
 0x4e8   :  { %v2461_v62 = vpop.eup %2460  ;;  %v1655_v9 = vadd.f32 %v1654_v27, %v1572_v31  ;;  %v1668_v28 = vunpack.c.l.bf16 %v2262_v58  ;;  %vm1744_vm15 = vcmp.eq.f32.partialorder %v1743_v19, 8.507059e+37 }
 0x4e9   :  { %v1713_v52 = vadd.f32 1.0, %v2461_v62 }
 0x4ea   :  { %2464 = vtanh.f32 %v1655_v9 }
 0x4eb   :  { %2466 = vrcp.f32 %v1713_v52  ;;  %v2463_v43 = vpop.eup %2462  ;;  %v1725_v35 = vand.u32 2147483648, %v1713_v52  ;;  %v1723_v54 = vand.u32 2147483647, %v1713_v52  ;;  %vm1719_vm9 = vweird.f32 %v1713_v52 }
 0x4ec   :  { %v1735_v25 = vmul.f32 %v2463_v43, %v3318_v56  ;;  %vm1740_vm12 = vweird.f32 %v2463_v43 }
 0x4ed   :  { %v1726_v4 = vor.u32 1.1754944e-38, %v1725_v35  ;;  %vm1724_vm11 = vcmp.eq.f32.partialorder %v1723_v54, 8.507059e+37  ;;  %vm1741_vm14 = vmor %vm1739_vm13, %vm1740_vm12 }
 0x4ee   :  { %v1736_v10 = vsub.f32 1.0, %v1735_v25 }
 0x4f0   :  { %v2465_v38 = vpop.eup %2464  ;;  %v1737_v61 = vmul.f32 %v2463_v43, %v1736_v10 }
 0x4f1   :  { %v2467_v47 = vpop.eup %2466  ;;  %v1658_v51 = vmul.f32 %v2465_v38, %v1657_v16 }
 0x4f2   :  { %v1715_v63 = vmul.f32 %v2467_v47, %v1713_v52  ;;  %vm1720_vm8 = vweird.f32 %v2467_v47  ;;  %v1738_v33 = vadd.f32 %v2463_v43, %v1737_v61  ;;  %v1858_v52 = vunpack.c.h.bf16 %v2271_v55 }
 0x4f3   :  { %v3329_v15 = vadd.f32 %v1659_v59, %v1658_v51  ;;  %vm1721_vm10 = vmor %vm1719_vm9, %vm1720_vm8 }
 0x4f4   :  { %v1716_v30 = vsub.f32 1.0, %v1715_v63  ;;  %v1742_v8 = vsel %vm1741_vm14, %v2463_v43, %v1738_v33 }
 0x4f5   :  { %2260 = vst [vmem:[%s3394_s4 + $0x30] sm:$0xff] %v3329_v15  ;;  %v1765_v45 = vpack.c.bf16 %v3329_v15, %v3329_v15  ;;  %v1747_v42 = vsel %vm1744_vm15, %v1746_v17, %v1742_v8 }
 0x4f6   :  { %v1717_v50 = vmul.f32 %v2467_v47, %v1716_v30  ;;  %v1753_v48 = vsub.f32 1.0, %v1747_v42  ;;  %v1755_v26 = vmul.f32 %v1747_v42, %v3276_v36  ;;  %v1763_v36 = vunpack.c.h.bf16 %v2266_v46 }
 0x4f7   :  { %1774 = vmatmul.bf16.vlgmr.msra.gmra.mxu2 %v1765_v45  ;;  %1787 = vmatmul.bf16.vlgmr.msra.gmra.mxu3 %v1765_v45 }
 0x4f8   :  { %v1718_v2 = vadd.f32 %v2467_v47, %v1717_v50  ;;  %1800 = vmatmul.bf16.vlgmr.msrb.gmra.mxu0 %v1765_v45  ;;  %v2267_v50 = vld [vmem:[%s3390_s0 + $0x5c] sm:$0xf] }
 0x4fa   :  { %v1722_v22 = vsel %vm1721_vm10, %v2467_v47, %v1718_v2 }
 0x4fb   :  { %v1727_v49 = vsel %vm1724_vm11, %v1726_v4, %v1722_v22  ;;  %v1764_v22 = vunpack.c.l.bf16 %v2267_v50 }
 0x4fc   :  { %v1750_v20 = vmul.f32 %v1749_v21, %v1727_v49 }
 0x4fe   :  { %v1751_v3 = vadd.f32 %v1750_v20, %v1668_v28 }
 0x500   :  { %2468 = vtanh.f32 %v1751_v3 }
 0x506   :  { %v2469_v5 = vpop.eup %2468 }
 0x507   :  { %v1754_v57 = vmul.f32 %v2469_v5, %v1753_v48 }
 0x509   :  { %v3351_v6 = vadd.f32 %v1755_v26, %v1754_v57 }
 0x50b   :  { %2265 = vst [vmem:[%s3395_s5 + $0x8] sm:$0xff] %v3351_v6  ;;  %v1860_v60 = vpack.c.bf16 %v3351_v6, %v3351_v6 }
 0x50d   :  { %1869 = vmatmul.bf16.vlgmr.msrb.gmra.mxu1 %v1860_v60  ;;  %1882 = vmatmul.bf16.vlgmr.msrb.gmra.mxu2 %v1860_v60 }
 0x50e   :  { %1895 = vmatmul.bf16.vlgmr.msrb.gmra.mxu3 %v1860_v60 }
 0x575   :  { %v1801_v32 = vpop.f32.mrf.mxu0 }
 0x576   :  { %v1845_v21 = vadd.f32 %v3323_v39, %v1801_v32 }
 0x57a   :  { %v1775_v44 = vpop.f32.mrf.mxu2  ;;  %v1788_v23 = vpop.f32.mrf.mxu3 }
 0x57b   :  { %v1805_v34 = vadd.f32 %v1775_v44, %v1762_v13  ;;  %v1825_v12 = vadd.f32 %v1788_v23, %v1763_v36  ;;  %v2272_v44 = vld [vmem:[%s3391_s1 + $0x68] sm:$0xf] }
 0x57c   :  { %v1859_v55 = vunpack.c.l.bf16 %v2272_v44 }
 0x57d   :  { %v2268_v37 = vmul.f32 -1.442695, %v1805_v34  ;;  %v2269_v56 = vmul.f32 -1.442695, %v1825_v12  ;;  %v1803_v31 = vpop.f32.mrf.mxu0 }
 0x57f   :  { %2470 = vpow2.f32 %v2268_v37 }
 0x580   :  { %2472 = vpow2.f32 %v2269_v56 }
 0x582   :  { %v1777_v11 = vpop.f32.mrf.mxu2  ;;  %v1790_v18 = vpop.f32.mrf.mxu3 }
 0x585   :  { %v2471_v29 = vpop.eup %2470 }
 0x586   :  { %v2473_v41 = vpop.eup %2472  ;;  %v1809_v53 = vadd.f32 1.0, %v2471_v29 }
 0x587   :  { %v1829_v27 = vadd.f32 1.0, %v2473_v41 }
 0x588   :  { %2474 = vrcp.f32 %v1809_v53  ;;  %v1821_v59 = vand.u32 2147483648, %v1809_v53  ;;  %v1819_v35 = vand.u32 2147483647, %v1809_v53  ;;  %vm1815_vm1 = vweird.f32 %v1809_v53 }
 0x589   :  { %2476 = vrcp.f32 %v1829_v27  ;;  %v1841_v19 = vand.u32 2147483648, %v1829_v27  ;;  %vm1835_vm5 = vweird.f32 %v1829_v27  ;;  %v1839_v8 = vand.u32 2147483647, %v1829_v27 }
 0x58a   :  { %v1870_v62 = vpop.f32.mrf.mxu1  ;;  %v1822_v2 = vor.u32 1.1754944e-38, %v1821_v59  ;;  %vm1820_vm3 = vcmp.eq.f32.partialorder %v1819_v35, 8.507059e+37 }
 0x58b   :  { %v1900_v9 = vadd.f32 %v1870_v62, %v1857_v40  ;;  %v1842_v39 = vor.u32 1.1754944e-38, %v1841_v19  ;;  %vm1840_vm7 = vcmp.eq.f32.partialorder %v1839_v8, 8.507059e+37 }
 0x58d   :  { %v2273_v0 = vmul.f32 -1.442695, %v1900_v9 }
 0x58e   :  { %v2475_v24 = vpop.eup %2474 }
 0x58f   :  { %v2477_v43 = vpop.eup %2476  ;;  %v1811_v7 = vmul.f32 %v2475_v24, %v1809_v53  ;;  %2478 = vpow2.f32 %v2273_v0  ;;  %vm1816_vm0 = vweird.f32 %v2475_v24 }
 0x590   :  { %v1831_v16 = vmul.f32 %v2477_v43, %v1829_v27  ;;  %v1883_v25 = vpop.f32.mrf.mxu2  ;;  %vm1817_vm2 = vmor %vm1815_vm1, %vm1816_vm0  ;;  %vm1836_vm4 = vweird.f32 %v2477_v43 }
 0x591   :  { %v1812_v38 = vsub.f32 1.0, %v1811_v7  ;;  %v1920_v47 = vadd.f32 %v1883_v25, %v1858_v52  ;;  %v3365_v51 = vpop.f32.mrf.mxu3  ;;  %vm1837_vm6 = vmor %vm1835_vm5, %vm1836_vm4 }
 0x592   :  { %v1832_v63 = vsub.f32 1.0, %v1831_v16  ;;  %v1872_v10 = vpop.f32.mrf.mxu1  ;;  %v1940_v27 = vadd.f32 %v3343_v14, %v3365_v51 }
 0x593   :  { %v1813_v30 = vmul.f32 %v2475_v24, %v1812_v38  ;;  %v2274_v45 = vmul.f32 -1.442695, %v1920_v47 }
 0x594   :  { %v1833_v54 = vmul.f32 %v2477_v43, %v1832_v63 }
 0x595   :  { %v2479_v61 = vpop.eup %2478  ;;  %v1814_v58 = vadd.f32 %v2475_v24, %v1813_v30  ;;  %2480 = vpow2.f32 %v2274_v45 }
 0x596   :  { %v1904_v4 = vadd.f32 1.0, %v2479_v61  ;;  %v1834_v49 = vadd.f32 %v2477_v43, %v1833_v54 }
 0x597   :  { %v1818_v28 = vsel %vm1817_vm2, %v2475_v24, %v1814_v58 }
 0x598   :  { %v1823_v33 = vsel %vm1820_vm3, %v1822_v2, %v1818_v28  ;;  %2482 = vrcp.f32 %v1904_v4  ;;  %v1885_v1 = vpop.f32.mrf.mxu2  ;;  %v1838_v48 = vsel %vm1837_vm6, %v2477_v43, %v1834_v49  ;;  %v1916_v13 = vand.u32 2147483648, %v1904_v4 }
 0x599   :  { %v1846_v20 = vmul.f32 %v1845_v21, %v1823_v33  ;;  %v1898_v3 = vpop.f32.mrf.mxu3  ;;  %v1843_v26 = vsel %vm1840_vm7, %v1842_v39, %v1838_v48  ;;  %v1914_v34 = vand.u32 2147483647, %v1904_v4  ;;  %vm1910_vm9 = vweird.f32 %v1904_v4 }
 0x59a   :  { %v1849_v32 = vsub.f32 1.0, %v1843_v26  ;;  %v1851_v56 = vmul.f32 %v1843_v26, %v3329_v15  ;;  %v1917_v29 = vor.u32 1.1754944e-38, %v1916_v13 }
 0x59b   :  { %v2481_v17 = vpop.eup %2480  ;;  %v1847_v42 = vadd.f32 %v1846_v20, %v1764_v22  ;;  %vm1915_vm11 = vcmp.eq.f32.partialorder %v1914_v34, 8.507059e+37 }
 0x59c   :  { %v1924_v5 = vadd.f32 1.0, %v2481_v17 }
 0x59d   :  { %2484 = vtanh.f32 %v1847_v42 }
 0x59e   :  { %v2483_v57 = vpop.eup %2482  ;;  %2486 = vrcp.f32 %v1924_v5  ;;  %v1936_v62 = vand.u32 2147483648, %v1924_v5  ;;  %v1934_v0 = vand.u32 2147483647, %v1924_v5  ;;  %vm1930_vm13 = vweird.f32 %v1924_v5 }
 0x59f   :  { %v1906_v60 = vmul.f32 %v2483_v57, %v1904_v4  ;;  %vm1911_vm8 = vweird.f32 %v2483_v57 }
 0x5a0   :  { %vm1912_vm10 = vmor %vm1910_vm9, %vm1911_vm8  ;;  %v1937_v43 = vor.u32 1.1754944e-38, %v1936_v62  ;;  %vm1935_vm15 = vcmp.eq.f32.partialorder %v1934_v0, 8.507059e+37 }
 0x5a1   :  { %v1907_v46 = vsub.f32 1.0, %v1906_v60 }
 0x5a3   :  { %v2485_v36 = vpop.eup %2484  ;;  %v1908_v23 = vmul.f32 %v2483_v57, %v1907_v46 }
 0x5a4   :  { %v2487_v12 = vpop.eup %2486  ;;  %v1850_v37 = vmul.f32 %v2485_v36, %v1849_v32 }
 0x5a5   :  { %v1926_v31 = vmul.f32 %v2487_v12, %v1924_v5  ;;  %v1909_v11 = vadd.f32 %v2483_v57, %v1908_v23  ;;  %vm1931_vm12 = vweird.f32 %v2487_v12 }
 0x5a6   :  { %v1852_v18 = vadd.f32 %v1851_v56, %v1850_v37  ;;  %vm1932_vm14 = vmor %vm1930_vm13, %vm1931_vm12 }
 0x5a7   :  { %v1927_v41 = vsub.f32 1.0, %v1926_v31  ;;  %v1913_v53 = vsel %vm1912_vm10, %v2483_v57, %v1909_v11 }
 0x5a8   :  { %2270 = vst [vmem:[%s3394_s4 + $0x38] sm:$0xff] %v1852_v18  ;;  %v1918_v40 = vsel %vm1915_vm11, %v1917_v29, %v1913_v53 }
 0x5a9   :  { %1949 = vst [vmem:[%s3396_s6] sm:$0xff] %v1852_v18  ;;  %v1928_v15 = vmul.f32 %v2487_v12, %v1927_v41  ;;  %v1941_v9 = vmul.f32 %v1940_v27, %v1918_v40 }
 0x5ab   :  { %v1929_v52 = vadd.f32 %v2487_v12, %v1928_v15  ;;  %v1942_v24 = vadd.f32 %v1941_v9, %v1859_v55 }
 0x5ad   :  { %v1933_v14 = vsel %vm1932_vm14, %v2487_v12, %v1929_v52  ;;  %2488 = vtanh.f32 %v1942_v24 }
 0x5ae   :  { %v1938_v7 = vsel %vm1935_vm15, %v1937_v43, %v1933_v14 }
 0x5af   :  { %v1944_v16 = vsub.f32 1.0, %v1938_v7  ;;  %v1946_v47 = vmul.f32 %v1938_v7, %v3351_v6 }
 0x5b3   :  { %v2489_v25 = vpop.eup %2488 }
 0x5b4   :  { %v1945_v38 = vmul.f32 %v2489_v25, %v1944_v16 }
 0x5b6   :  { %v1947_v51 = vadd.f32 %v1946_v47, %v1945_v38 }
 0x5b8   :  { %1948 = vst [vmem:[%s3395_s5] sm:$0xff] %v1947_v51 }
 0x5b9   :  { %2275 = vst [vmem:[%s3396_s6 + $0x8] sm:$0xff] %v1947_v51 }
 0x5ba   :  { %1977 = vsyncpa [#allocation3], 1 }

// kernel: gru_layer_forward.3
= control target key start
LH: loop header
LB: loop body
LE: loop exit
PB: predicated region body
PF: predicated region fallthrough
CT: control target
= control target key end

     0   :  { %s3658_s2 = inlined_call_operand.vmem [shape: bf16[2,128,384], index: 2, kind: input, shape index: {}]   ;;  %s3659_s3 = inlined_call_operand.vmem [shape: f32[2,1,128], index: 3, kind: input, shape index: {}]   ;;  %s3660_s0 = inlined_call_operand.vmem [shape: bf16[2,8,8,384], index: 0, kind: input, shape index: {}, may-alias: {0,1}]   ;;  %s3661_s1 = inlined_call_operand.vmem [shape: bf16[2,8,8,384], index: 1, kind: input, shape index: {}, may-alias: {0,1}]   ;;  %s3662_s4 = inlined_call_operand.vmem [shape: f32[8,8,128], index: 4, kind: output, shape index: {0}]   ;;  %s3663_s5 = inlined_call_operand.vmem [shape: f32[8,8,128], index: 5, kind: output, shape index: {1}]   ;;  %s3664_s6 = inlined_call_operand.vmem [shape: f32[2,8,128], index: 6, kind: output, shape index: {2}]  }
   0x1   :  { %v2108_v0 = vld [vmem:[%s3658_s2 + $0xa8] sm:$0xf]  ;;  %v2313_v1 = vld [vmem:[%s3658_s2 + $0xb0] sm:$0xf0]  ;;  %v2312_v5 = vld [vmem:[%s3658_s2 + $0xac] sm:$0xf] }
   0x2   :  { %v2208_v2 = vld [vmem:[%s3658_s2 + $0x168] sm:$0xf]  ;;  %v2551_v3 = vor.u32 %v2313_v1, %v2108_v0  ;;  %v2337_v4 = vld [vmem:[%s3658_s2 + $0x170] sm:$0xf0]  ;;  %v2110_v6 = vld [vmem:[%s3658_s2 + $0xb4] sm:$0xf0] }
   0x3   :  { %v2562_v7 = vor.u32 %v2337_v4, %v2208_v2  ;;  %v2564_v8 = vor.u32 %v2312_v5, %v2110_v6  ;;  %v2096_v9 = vld [vmem:[%s3658_s2 + $0x90] sm:$0xf]  ;;  %v2310_v10 = vld [vmem:[%s3658_s2 + $0x98] sm:$0xf0]  ;;  %v2309_v14 = vld [vmem:[%s3658_s2 + $0x94] sm:$0xf] }
   0x4   :  { %v2196_v11 = vld [vmem:[%s3658_s2 + $0x150] sm:$0xf]  ;;  %279 = vmatpush.bf16.msra.mxu0 %v2551_v3  ;;  %v2576_v12 = vor.u32 %v2310_v10, %v2096_v9  ;;  %v2334_v13 = vld [vmem:[%s3658_s2 + $0x158] sm:$0xf0]  ;;  %v2098_v15 = vld [vmem:[%s3658_s2 + $0x9c] sm:$0xf0] }
   0x5   :  { %502 = vmatpush.bf16.msra.mxu3 %v2562_v7  ;;  %292 = vmatpush.bf16.msra.mxu1 %v2564_v8  ;;  %v2589_v16 = vor.u32 %v2334_v13, %v2196_v11  ;;  %v2591_v17 = vor.u32 %v2309_v14, %v2098_v15  ;;  %v2084_v18 = vld [vmem:[%s3658_s2 + $0x78] sm:$0xf]  ;;  %v2307_v19 = vld [vmem:[%s3658_s2 + $0x80] sm:$0xf0]  ;;  %v2306_v22 = vld [vmem:[%s3658_s2 + $0x7c] sm:$0xf] }
   0x6   :  { %v2184_v20 = vld [vmem:[%s3658_s2 + $0x138] sm:$0xf]  ;;  %v2331_v21 = vld [vmem:[%s3658_s2 + $0x140] sm:$0xf0]  ;;  %v2086_v23 = vld [vmem:[%s3658_s2 + $0x84] sm:$0xf0]  ;;  %v2612_v24 = vor.u32 %v2307_v19, %v2084_v18 }
   0x7   :  { %v2616_v25 = vor.u32 %v2331_v21, %v2184_v20  ;;  %v2618_v26 = vor.u32 %v2306_v22, %v2086_v23  ;;  %v2072_v27 = vld [vmem:[%s3658_s2 + $0x60] sm:$0xf]  ;;  %v2304_v28 = vld [vmem:[%s3658_s2 + $0x68] sm:$0xf0]  ;;  %v2303_v31 = vld [vmem:[%s3658_s2 + $0x64] sm:$0xf] }
   0x8   :  { %280 = vmatpush.bf16.msra.mxu0 %v2576_v12  ;;  %v2172_v29 = vld [vmem:[%s3658_s2 + $0x120] sm:$0xf]  ;;  %v2328_v30 = vld [vmem:[%s3658_s2 + $0x128] sm:$0xf0]  ;;  %v2074_v32 = vld [vmem:[%s3658_s2 + $0x6c] sm:$0xf0]  ;;  %v2642_v34 = vor.u32 %v2304_v28, %v2072_v27 }
   0x9   :  { %503 = vmatpush.bf16.msra.mxu3 %v2589_v16  ;;  %293 = vmatpush.bf16.msra.mxu1 %v2591_v17  ;;  %3697 = vst [vmem:[#allocation2_spill] sm:$0xff] %v2618_v26  ;;  %v2116_v33 = vld [vmem:[%s3658_s2 + $0xb0] sm:$0xf]  ;;  %v2060_v35 = vld [vmem:[%s3658_s2 + $0x48] sm:$0xf]  ;;  %v2655_v38 = vor.u32 %v2328_v30, %v2172_v29  ;;  %v2657_v39 = vor.u32 %v2303_v31, %v2074_v32 }
   0xa   :  { %3698 = vst [vmem:[#allocation3_spill] sm:$0xff] %v2642_v34  ;;  %v2301_v36 = vld [vmem:[%s3658_s2 + $0x50] sm:$0xf0]  ;;  %v2314_v37 = vld [vmem:[%s3658_s2 + $0xb8] sm:$0xf0] }
   0xb   :  { %3699 = vst [vmem:[#allocation4_spill] sm:$0xff] %v2657_v39  ;;  %v2160_v40 = vld [vmem:[%s3658_s2 + $0x108] sm:$0xf]  ;;  %v2325_v41 = vld [vmem:[%s3658_s2 + $0x110] sm:$0xf0]  ;;  %v2668_v43 = vor.u32 %v2314_v37, %v2116_v33  ;;  %v2683_v48 = vor.u32 %v2301_v36, %v2060_v35 }
   0xc   :  { %281 = vmatpush.bf16.msra.mxu0 %v2612_v24  ;;  %v2300_v42 = vld [vmem:[%s3658_s2 + $0x4c] sm:$0xf]  ;;  %v2062_v44 = vld [vmem:[%s3658_s2 + $0x54] sm:$0xf0]  ;;  %v2311_v46 = vld [vmem:[%s3658_s2 + $0xa0] sm:$0xf0]  ;;  %v2693_v51 = vor.u32 %v2325_v41, %v2160_v40 }
   0xd   :  { %504 = vmatpush.bf16.msra.mxu3 %v2616_v25  ;;  %294 = vmatpush.bf16.msra.mxu1 %v2618_v26  ;;  %v2104_v45 = vld [vmem:[%s3658_s2 + $0x98] sm:$0xf]  ;;  %3700 = vst [vmem:[#allocation5_spill] sm:$0xff] %v2683_v48  ;;  %v2048_v49 = vld [vmem:[%s3658_s2 + $0x30] sm:$0xf]  ;;  %v2695_v52 = vor.u32 %v2300_v42, %v2062_v44 }
   0xe   :  { %305 = vmatpush.bf16.msra.mxu2 %v2668_v43  ;;  %v2680_v47 = vor.u32 %v2311_v46, %v2104_v45  ;;  %v2298_v50 = vld [vmem:[%s3658_s2 + $0x38] sm:$0xf0]  ;;  %v2148_v53 = vld [vmem:[%s3658_s2 + $0xf0] sm:$0xf]  ;;  %v2092_v54 = vld [vmem:[%s3658_s2 + $0x80] sm:$0xf] }
   0xf   :  { %3701 = vst [vmem:[#allocation6_spill] sm:$0xff] %v2695_v52  ;;  %v2308_v55 = vld [vmem:[%s3658_s2 + $0x88] sm:$0xf0]  ;;  %v2322_v56 = vld [vmem:[%s3658_s2 + $0xf8] sm:$0xf0]  ;;  %v2719_v60 = vor.u32 %v2298_v50, %v2048_v49 }
  0x10   :  { %282 = vmatpush.bf16.msra.mxu0 %v2642_v34  ;;  %v2297_v57 = vld [vmem:[%s3658_s2 + $0x34] sm:$0xf]  ;;  %v2050_v58 = vld [vmem:[%s3658_s2 + $0x3c] sm:$0xf0]  ;;  %v2716_v59 = vor.u32 %v2308_v55, %v2092_v54  ;;  %v2080_v61 = vld [vmem:[%s3658_s2 + $0x68] sm:$0xf]  ;;  %v2729_v63 = vor.u32 %v2322_v56, %v2148_v53 }
  0x11   :  { %505 = vmatpush.bf16.msra.mxu3 %v2655_v38  ;;  %295 = vmatpush.bf16.msra.mxu1 %v2657_v39  ;;  %3702 = vst [vmem:[#allocation7_spill] sm:$0xff] %v2719_v60  ;;  %v2305_v62 = vld [vmem:[%s3658_s2 + $0x70] sm:$0xf0]  ;;  %v2731_v0 = vor.u32 %v2297_v57, %v2050_v58  ;;  %v2036_v1 = vld [vmem:[%s3658_s2 + $0x18] sm:$0xf]  ;;  %v2506_v58 = vmov 0.0|0.0  }
  0x12   :  { %306 = vmatpush.bf16.msra.mxu2 %v2680_v47  ;;  %v2295_v2 = vld [vmem:[%s3658_s2 + $0x20] sm:$0xf0]  ;;  %v2136_v4 = vld [vmem:[%s3658_s2 + $0xd8] sm:$0xf]  ;;  %v2294_v6 = vld [vmem:[%s3658_s2 + $0x1c] sm:$0xf]  ;;  %v2752_v10 = vor.u32 %v2305_v62, %v2080_v61 }
  0x13   :  { %3703 = vst [vmem:[#allocation8_spill] sm:$0xff] %v2731_v0  ;;  %v2319_v5 = vld [vmem:[%s3658_s2 + $0xe0] sm:$0xf0]  ;;  %v2038_v9 = vld [vmem:[%s3658_s2 + $0x24] sm:$0xf0]  ;;  %v2755_v11 = vor.u32 %v2295_v2, %v2036_v1 }
  0x14   :  { %283 = vmatpush.bf16.msra.mxu0 %v2683_v48  ;;  %v2068_v13 = vld [vmem:[%s3658_s2 + $0x50] sm:$0xf]  ;;  %v2302_v14 = vld [vmem:[%s3658_s2 + $0x58] sm:$0xf0]  ;;  %v2765_v15 = vor.u32 %v2319_v5, %v2136_v4  ;;  %v2767_v18 = vor.u32 %v2294_v6, %v2038_v9  ;;  %v2024_v19 = vld [vmem:[%s3658_s2] sm:$0xf] }
  0x15   :  { %506 = vmatpush.bf16.msra.mxu3 %v2693_v51  ;;  %296 = vmatpush.bf16.msra.mxu1 %v2695_v52  ;;  %3704 = vst [vmem:[#allocation9_spill] sm:$0xff] %v2755_v11  ;;  %v2292_v20 = vld [vmem:[%s3658_s2 + $0x8] sm:$0xf0]  ;;  %v2124_v21 = vld [vmem:[%s3658_s2 + $0xc0] sm:$0xf]  ;;  %v2794_v30 = vor.u32 %v2302_v14, %v2068_v13 }
  0x16   :  { %307 = vmatpush.bf16.msra.mxu2 %v2716_v59  ;;  %3705 = vst [vmem:[#allocation10_spill] sm:$0xff] %v2767_v18  ;;  %v2316_v22 = vld [vmem:[%s3658_s2 + $0xc8] sm:$0xf0]  ;;  %v2210_v27 = vld [vmem:[%s3658_s2 + $0x174] sm:$0xf0]  ;;  %v2797_v31 = vor.u32 %v2292_v20, %v2024_v19 }
  0x17   :  { %v2336_v23 = vld [vmem:[%s3658_s2 + $0x16c] sm:$0xf]  ;;  %v2291_v28 = vld [vmem:[%s3658_s2 + $0x4] sm:$0xf]  ;;  %v2026_v29 = vld [vmem:[%s3658_s2 + $0xc] sm:$0xf0]  ;;  %v2807_v35 = vor.u32 %v2316_v22, %v2124_v21 }
  0x18   :  { %284 = vmatpush.bf16.msra.mxu0 %v2719_v60  ;;  %3706 = vst [vmem:[#allocation11_spill] sm:$0xff] %v2797_v31  ;;  %v2216_v32 = vld [vmem:[%s3658_s2 + $0x170] sm:$0xf]  ;;  %v2338_v33 = vld [vmem:[%s3658_s2 + $0x178] sm:$0xf0]  ;;  %v2809_v36 = vor.u32 %v2336_v23, %v2210_v27  ;;  %v2817_v41 = vor.u32 %v2291_v28, %v2026_v29 }
  0x19   :  { %507 = vmatpush.bf16.msra.mxu3 %v2729_v63  ;;  %297 = vmatpush.bf16.msra.mxu1 %v2731_v0  ;;  %v2056_v37 = vld [vmem:[%s3658_s2 + $0x38] sm:$0xf]  ;;  %v2299_v40 = vld [vmem:[%s3658_s2 + $0x40] sm:$0xf0]  ;;  %v2333_v42 = vld [vmem:[%s3658_s2 + $0x154] sm:$0xf]  ;;  %v2825_v45 = vor.u32 %v2338_v33, %v2216_v32 }
  0x1a   :  { %308 = vmatpush.bf16.msra.mxu2 %v2752_v10  ;;  %3707 = vst [vmem:[#allocation12_spill] sm:$0xff] %v2817_v41  ;;  %v2198_v44 = vld [vmem:[%s3658_s2 + $0x15c] sm:$0xf0]  ;;  %v2204_v46 = vld [vmem:[%s3658_s2 + $0x158] sm:$0xf]  ;;  %v2835_v50 = vor.u32 %v2299_v40, %v2056_v37 }
  0x1b   :  { %v2335_v49 = vld [vmem:[%s3658_s2 + $0x160] sm:$0xf0]  ;;  %v2839_v53 = vor.u32 %v2333_v42, %v2198_v44  ;;  %v2044_v54 = vld [vmem:[%s3658_s2 + $0x20] sm:$0xf]  ;;  %v2296_v55 = vld [vmem:[%s3658_s2 + $0x28] sm:$0xf0] }
  0x1c   :  { %285 = vmatpush.bf16.msra.mxu0 %v2755_v11  ;;  %v2330_v56 = vld [vmem:[%s3658_s2 + $0x13c] sm:$0xf]  ;;  %v2186_v57 = vld [vmem:[%s3658_s2 + $0x144] sm:$0xf0]  ;;  %v2857_v61 = vor.u32 %v2335_v49, %v2204_v46  ;;  %v2192_v62 = vld [vmem:[%s3658_s2 + $0x140] sm:$0xf]  ;;  %v2867_v2 = vor.u32 %v2296_v55, %v2044_v54 }
  0x1d   :  { %508 = vmatpush.bf16.msra.mxu3 %v2765_v15  ;;  %298 = vmatpush.bf16.msra.mxu1 %v2767_v18  ;;  %v2332_v1 = vld [vmem:[%s3658_s2 + $0x148] sm:$0xf0]  ;;  %v2871_v4 = vor.u32 %v2330_v56, %v2186_v57  ;;  %v2032_v5 = vld [vmem:[%s3658_s2 + $0x8] sm:$0xf]  ;;  %v2293_v6 = vld [vmem:[%s3658_s2 + $0x10] sm:$0xf0] }
  0x1e   :  { %309 = vmatpush.bf16.msra.mxu2 %v2794_v30  ;;  %v2327_v9 = vld [vmem:[%s3658_s2 + $0x124] sm:$0xf]  ;;  %v2174_v13 = vld [vmem:[%s3658_s2 + $0x12c] sm:$0xf0]  ;;  %v2887_v14 = vor.u32 %v2332_v1, %v2192_v62  ;;  %v2180_v19 = vld [vmem:[%s3658_s2 + $0x128] sm:$0xf]  ;;  %v2896_v21 = vor.u32 %v2293_v6, %v2032_v5 }
  0x1f   :  { %v2329_v20 = vld [vmem:[%s3658_s2 + $0x130] sm:$0xf0]  ;;  %v2899_v22 = vor.u32 %v2327_v9, %v2174_v13  ;;  %v2324_v23 = vld [vmem:[%s3658_s2 + $0x10c] sm:$0xf]  ;;  %v2162_v27 = vld [vmem:[%s3658_s2 + $0x114] sm:$0xf0] }
  0x20   :  { %286 = vmatpush.bf16.msra.mxu0 %v2797_v31  ;;  %v2909_v28 = vor.u32 %v2329_v20, %v2180_v19  ;;  %v2168_v29 = vld [vmem:[%s3658_s2 + $0x110] sm:$0xf]  ;;  %v2326_v32 = vld [vmem:[%s3658_s2 + $0x118] sm:$0xf0]  ;;  %v2919_v33 = vor.u32 %v2324_v23, %v2162_v27  ;;  %v2321_v37 = vld [vmem:[%s3658_s2 + $0xf4] sm:$0xf] }
  0x21   :  { %509 = vmatpush.bf16.msra.mxu3 %v2807_v35  ;;  %299 = vmatpush.bf16.msra.mxu1 %v2817_v41  ;;  %v2150_v40 = vld [vmem:[%s3658_s2 + $0xfc] sm:$0xf0]  ;;  %v2930_v42 = vor.u32 %v2326_v32, %v2168_v29  ;;  %v2156_v44 = vld [vmem:[%s3658_s2 + $0xf8] sm:$0xf]  ;;  %v2323_v46 = vld [vmem:[%s3658_s2 + $0x100] sm:$0xf0] }
  0x22   :  { %310 = vmatpush.bf16.msra.mxu2 %v2835_v50  ;;  %v2940_v49 = vor.u32 %v2321_v37, %v2150_v40  ;;  %v2318_v54 = vld [vmem:[%s3658_s2 + $0xdc] sm:$0xf]  ;;  %v2138_v55 = vld [vmem:[%s3658_s2 + $0xe4] sm:$0xf0]  ;;  %v2951_v56 = vor.u32 %v2323_v46, %v2156_v44  ;;  %v2144_v57 = vld [vmem:[%s3658_s2 + $0xe0] sm:$0xf] }
  0x23   :  { %287 = vmatmul.bf16.vlgmr.msra.gmra.mxu0 %v2506_v58  ;;  %v2320_v62 = vld [vmem:[%s3658_s2 + $0xe8] sm:$0xf0]  ;;  %v2960_v1 = vor.u32 %v2318_v54, %v2138_v55  ;;  %v2315_v5 = vld [vmem:[%s3658_s2 + $0xc4] sm:$0xf]  ;;  %v2126_v6 = vld [vmem:[%s3658_s2 + $0xcc] sm:$0xf0] }
  0x24   :  { %515 = vmatpush.bf16.msrb.mxu0 %v2809_v36  ;;  %510 = vmatmul.bf16.vlgmr.msra.gmra.mxu3 %v2506_v58  ;;  %3708 = vst [vmem:[#allocation13_spill] sm:$0xff] %v2951_v56  ;;  %v2971_v9 = vor.u32 %v2320_v62, %v2144_v57  ;;  %v2132_v13 = vld [vmem:[%s3658_s2 + $0xc8] sm:$0xf]  ;;  %v2317_v19 = vld [vmem:[%s3658_s2 + $0xd0] sm:$0xf0]  ;;  %v2980_v20 = vor.u32 %v2315_v5, %v2126_v6 }
  0x25   :  { %611 = vmatpush.bf16.msrb.mxu3 %v2564_v8  ;;  %528 = vmatpush.bf16.msrb.mxu1 %v2825_v45  ;;  %v2985_v23 = vor.u32 %v2317_v19, %v2132_v13  ;;  %v2120_v40 = vld [vmem:[%s3661_s1 + $0xb4] sm:$0xff] }
  0x26   :  { %300 = vmatmul.bf16.vlgmr.msra.gmra.mxu1 %v2506_v58  ;;  %311 = vmatpush.bf16.msra.mxu2 %v2867_v2  ;;  %3709 = vst [vmem:[#allocation14_spill] sm:$0xff] %v2971_v9  ;;  %v370_v55 = vunpack.c.l.bf16 %v2120_v40 }
  0x27   :  { %3710 = vst [vmem:[#allocation15_spill] sm:$0xff] %v2985_v23 }
  0x28   :  { %516 = vmatpush.bf16.msrb.mxu0 %v2839_v53 }
  0x29   :  { %612 = vmatpush.bf16.msrb.mxu3 %v2591_v17  ;;  %529 = vmatpush.bf16.msrb.mxu1 %v2857_v61 }
  0x2a   :  { %312 = vmatpush.bf16.msra.mxu2 %v2896_v21 }
  0x2c   :  { %517 = vmatpush.bf16.msrb.mxu0 %v2871_v4 }
  0x2d   :  { %613 = vmatpush.bf16.msrb.mxu3 %v2618_v26  ;;  %530 = vmatpush.bf16.msrb.mxu1 %v2887_v14 }
  0x2e   :  { %598 = vmatpush.bf16.msrb.mxu2 %v2551_v3 }
  0x2f   :  { %313 = vmatmul.bf16.vlgmr.msra.gmra.mxu2 %v2506_v58 }
  0x30   :  { %518 = vmatpush.bf16.msrb.mxu0 %v2899_v22 }
  0x31   :  { %614 = vmatpush.bf16.msrb.mxu3 %v2657_v39  ;;  %531 = vmatpush.bf16.msrb.mxu1 %v2909_v28 }
  0x32   :  { %599 = vmatpush.bf16.msrb.mxu2 %v2576_v12 }
  0x34   :  { %519 = vmatpush.bf16.msrb.mxu0 %v2919_v33 }
  0x35   :  { %615 = vmatpush.bf16.msrb.mxu3 %v2695_v52  ;;  %532 = vmatpush.bf16.msrb.mxu1 %v2930_v42 }
  0x36   :  { %600 = vmatpush.bf16.msrb.mxu2 %v2612_v24 }
  0x38   :  { %520 = vmatpush.bf16.msrb.mxu0 %v2940_v49 }
  0x39   :  { %616 = vmatpush.bf16.msrb.mxu3 %v2731_v0  ;;  %533 = vmatpush.bf16.msrb.mxu1 %v2951_v56 }
  0x3a   :  { %601 = vmatpush.bf16.msrb.mxu2 %v2642_v34 }
  0x3c   :  { %521 = vmatpush.bf16.msrb.mxu0 %v2960_v1 }
  0x3d   :  { %617 = vmatpush.bf16.msrb.mxu3 %v2767_v18  ;;  %534 = vmatpush.bf16.msrb.mxu1 %v2971_v9 }
  0x3e   :  { %602 = vmatpush.bf16.msrb.mxu2 %v2683_v48 }
  0x40   :  { %522 = vmatpush.bf16.msrb.mxu0 %v2980_v20 }
  0x41   :  { %618 = vmatpush.bf16.msrb.mxu3 %v2817_v41  ;;  %535 = vmatpush.bf16.msrb.mxu1 %v2985_v23 }
  0x42   :  { %603 = vmatpush.bf16.msrb.mxu2 %v2719_v60 }
  0x43   :  { %523 = vmatmul.bf16.vlgmr.msrb.gmra.mxu0 %v2506_v58 }
  0x44   :  { %624 = vmatpush.bf16.msra.mxu0 %v2668_v43  ;;  %536 = vmatmul.bf16.vlgmr.msrb.gmra.mxu1 %v2506_v58  ;;  %v145_v58 = vld [vmem:[%s3660_s0] sm:$0xff] }
  0x45   :  { %720 = vmatpush.bf16.msra.mxu3 %v2825_v45  ;;  %694 = vmatpush.bf16.msra.mxu1 %v2562_v7  ;;  %v147_v27 = vunpack.c.l.bf16 %v145_v58  ;;  %v148_v29 = vunpack.c.h.bf16 %v145_v58 }
  0x46   :  { %604 = vmatpush.bf16.msrb.mxu2 %v2755_v11 }
  0x48   :  { %625 = vmatpush.bf16.msra.mxu0 %v2680_v47 }
  0x49   :  { %721 = vmatpush.bf16.msra.mxu3 %v2857_v61  ;;  %695 = vmatpush.bf16.msra.mxu1 %v2589_v16 }
  0x4a   :  { %605 = vmatpush.bf16.msrb.mxu2 %v2797_v31 }
  0x4c   :  { %626 = vmatpush.bf16.msra.mxu0 %v2716_v59 }
  0x4d   :  { %722 = vmatpush.bf16.msra.mxu3 %v2887_v14  ;;  %696 = vmatpush.bf16.msra.mxu1 %v2616_v25 }
  0x4e   :  { %707 = vmatpush.bf16.msra.mxu2 %v2809_v36 }
  0x50   :  { %627 = vmatpush.bf16.msra.mxu0 %v2752_v10 }
  0x51   :  { %723 = vmatpush.bf16.msra.mxu3 %v2909_v28  ;;  %697 = vmatpush.bf16.msra.mxu1 %v2655_v38 }
  0x52   :  { %708 = vmatpush.bf16.msra.mxu2 %v2839_v53 }
  0x54   :  { %628 = vmatpush.bf16.msra.mxu0 %v2794_v30 }
  0x55   :  { %724 = vmatpush.bf16.msra.mxu3 %v2930_v42  ;;  %698 = vmatpush.bf16.msra.mxu1 %v2693_v51 }
  0x56   :  { %709 = vmatpush.bf16.msra.mxu2 %v2871_v4 }
  0x58   :  { %629 = vmatpush.bf16.msra.mxu0 %v2835_v50 }
  0x59   :  { %725 = vmatpush.bf16.msra.mxu3 %v2951_v56  ;;  %699 = vmatpush.bf16.msra.mxu1 %v2729_v63 }
  0x5a   :  { %710 = vmatpush.bf16.msra.mxu2 %v2899_v22 }
  0x5c   :  { %630 = vmatpush.bf16.msra.mxu0 %v2867_v2 }
  0x5d   :  { %726 = vmatpush.bf16.msra.mxu3 %v2971_v9  ;;  %700 = vmatpush.bf16.msra.mxu1 %v2765_v15 }
  0x5e   :  { %711 = vmatpush.bf16.msra.mxu2 %v2919_v33 }
  0x60   :  { %631 = vmatpush.bf16.msra.mxu0 %v2896_v21 }
  0x61   :  { %727 = vmatpush.bf16.msra.mxu3 %v2985_v23  ;;  %701 = vmatpush.bf16.msra.mxu1 %v2807_v35 }
  0x62   :  { %712 = vmatpush.bf16.msra.mxu2 %v2940_v49 }
  0x64   :  { %790 = vmatpush.bf16.msrb.mxu0 %v2551_v3 }
  0x65   :  { %803 = vmatpush.bf16.msrb.mxu1 %v2564_v8 }
  0x66   :  { %713 = vmatpush.bf16.msra.mxu2 %v2960_v1 }
  0x68   :  { %791 = vmatpush.bf16.msrb.mxu0 %v2576_v12 }
  0x69   :  { %804 = vmatpush.bf16.msrb.mxu1 %v2591_v17 }
  0x6a   :  { %714 = vmatpush.bf16.msra.mxu2 %v2980_v20 }
  0x6c   :  { %792 = vmatpush.bf16.msrb.mxu0 %v2612_v24 }
  0x6d   :  { %805 = vmatpush.bf16.msrb.mxu1 %v2618_v26 }
  0x70   :  { %793 = vmatpush.bf16.msrb.mxu0 %v2642_v34 }
  0x71   :  { %806 = vmatpush.bf16.msrb.mxu1 %v2657_v39 }
  0x74   :  { %794 = vmatpush.bf16.msrb.mxu0 %v2683_v48 }
  0x75   :  { %807 = vmatpush.bf16.msrb.mxu1 %v2695_v52 }
  0x78   :  { %795 = vmatpush.bf16.msrb.mxu0 %v2719_v60 }
  0x79   :  { %808 = vmatpush.bf16.msrb.mxu1 %v2731_v0 }
  0x7c   :  { %796 = vmatpush.bf16.msrb.mxu0 %v2755_v11 }
  0x7d   :  { %809 = vmatpush.bf16.msrb.mxu1 %v2767_v18 }
  0x80   :  { %797 = vmatpush.bf16.msrb.mxu0 %v2797_v31 }
  0x81   :  { %810 = vmatpush.bf16.msrb.mxu1 %v2817_v41 }
  0xa0   :  { %v288_v32 = vpop.f32.mrf.mxu0 }
  0xa1   :  { %v318_v37 = vadd.f32 %v288_v32, %v147_v27 }
  0xa3   :  { %v301_v44 = vpop.f32.mrf.mxu1  ;;  %v2118_v46 = vmul.f32 -1.442695, %v318_v37 }
  0xa4   :  { %v338_v54 = vadd.f32 %v301_v44, %v148_v29 }
  0xa5   :  { %2342 = vpow2.f32 %v2118_v46 }
  0xa6   :  { %v2119_v57 = vmul.f32 -1.442695, %v338_v54 }
  0xa7   :  { %v511_v62 = vpop.f32.mrf.mxu3 }
  0xa8   :  { %2344 = vpow2.f32 %v2119_v57  ;;  %v541_v5 = vadd.f32 %v511_v62, %v370_v55  ;;  %v290_v6 = vpop.f32.mrf.mxu0 }
  0xaa   :  { %v2218_v13 = vmul.f32 -1.442695, %v541_v5 }
  0xab   :  { %v303_v19 = vpop.f32.mrf.mxu1  ;;  %v2343_v41 = vpop.eup %2342 }
  0xac   :  { %v322_v58 = vadd.f32 1.0, %v2343_v41  ;;  %2346 = vpow2.f32 %v2218_v13  ;;  %v3056_v41 = vld [vmem:[%s3659_s3] ss:$0 sm:$0xff]  ;;  %v371_v13 = vunpack.c.h.bf16 %v2120_v40 }
  0xad   :  { %3711 = vst [vmem:[#allocation16_spill] sm:$0xff] %v3056_v41 }
  0xae   :  { %v2345_v27 = vpop.eup %2344  ;;  %2348 = vrcp.f32 %v322_v58  ;;  %vm328_vm0 = vweird.f32 %v322_v58  ;;  %v334_v62 = vand.u32 2147483648, %v322_v58  ;;  %v332_v6 = vand.u32 2147483647, %v322_v58 }
  0xaf   :  { %v342_v32 = vadd.f32 1.0, %v2345_v27  ;;  %v513_v31 = vpop.f32.mrf.mxu3 }
  0xb0   :  { %v146_v31 = vld [vmem:[%s3660_s0 + $0x8] sm:$0xf]  ;;  %vm333_vm5 = vcmp.eq.f32.partialorder %v332_v6, 8.507059e+37 }
  0xb1   :  { %2350 = vrcp.f32 %v342_v32  ;;  %v149_v0 = vunpack.c.l.bf16 %v146_v31  ;;  %vm348_vm2 = vweird.f32 %v342_v32  ;;  %v354_v48 = vand.u32 2147483648, %v342_v32 }
  0xb2   :  { %v2347_v18 = vpop.eup %2346  ;;  %v314_v37 = vpop.f32.mrf.mxu2 }
  0xb3   :  { %v3050_v29 = vadd.f32 1.0, %v2347_v18  ;;  %v358_v23 = vadd.f32 %v3056_v41, %v314_v37  ;;  %v355_v34 = vor.u32 1.1754944e-38, %v354_v48 }
  0xb4   :  { %v2349_v44 = vpop.eup %2348 }
  0xb5   :  { %2352 = vrcp.f32 %v3050_v29  ;;  %v324_v46 = vmul.f32 %v2349_v44, %v322_v58  ;;  %vm329_vm1 = vweird.f32 %v2349_v44  ;;  %vm551_vm8 = vweird.f32 %v3050_v29 }
  0xb6   :  { %vm330_vm3 = vmor %vm328_vm0, %vm329_vm1 }
  0xb7   :  { %v2351_v54 = vpop.eup %2350  ;;  %v325_v57 = vsub.f32 1.0, %v324_v46  ;;  %v335_v46 = vor.u32 1.1754944e-38, %v334_v62 }
  0xb8   :  { %v344_v55 = vmul.f32 %v2351_v54, %v342_v32  ;;  %vm349_vm4 = vweird.f32 %v2351_v54 }
  0xb9   :  { %v326_v5 = vmul.f32 %v2349_v44, %v325_v57  ;;  %v352_v57 = vand.u32 2147483647, %v342_v32  ;;  %vm3064_vm6 = vmor %vm348_vm2, %vm349_vm4 }
  0xba   :  { %v345_v18 = vsub.f32 1.0, %v344_v55  ;;  %v316_v19 = vpop.f32.mrf.mxu2 }
  0xbb   :  { %v2353_v27 = vpop.eup %2352  ;;  %v327_v60 = vadd.f32 %v2349_v44, %v326_v5  ;;  %vm353_vm7 = vcmp.eq.f32.partialorder %v352_v57, 8.507059e+37  ;;  %v2121_v57 = vld [vmem:[%s3661_s1 + $0xbc] sm:$0xf] }
  0xbc   :  { %v346_v11 = vmul.f32 %v2351_v54, %v345_v18  ;;  %v547_v52 = vmul.f32 %v2353_v27, %v3050_v29  ;;  %vm552_vm9 = vweird.f32 %v2353_v27 }
  0xbd   :  { %v331_v9 = vsel %vm330_vm3, %v2349_v44, %v327_v60  ;;  %vm3073_vm10 = vmor %vm551_vm8, %vm552_vm9 }
  0xbe   :  { %v336_v58 = vsel %vm333_vm5, %v335_v46, %v331_v9  ;;  %v548_v19 = vsub.f32 1.0, %v547_v52  ;;  %v347_v39 = vadd.f32 %v2351_v54, %v346_v11  ;;  %v557_v52 = vand.u32 2147483648, %v3050_v29 }
  0xbf   :  { %v359_v18 = vmul.f32 %v358_v23, %v336_v58  ;;  %v555_v9 = vand.u32 2147483647, %v3050_v29 }
  0xc0   :  { %v524_v55 = vpop.f32.mrf.mxu0  ;;  %v549_v41 = vmul.f32 %v2353_v27, %v548_v19  ;;  %v351_v60 = vsel %vm3064_vm6, %v2351_v54, %v347_v39  ;;  %v3080_v39 = vld [vmem:[%s3659_s3 + $0x1] ss:$0 sm:$0xff]  ;;  %v558_v54 = vor.u32 1.1754944e-38, %v557_v52  ;;  %v372_v19 = vunpack.c.l.bf16 %v2121_v57  ;;  %v3720_v57 = vld [vmem:[#allocation6_spill] sm:$0xff] }
  0xc1   :  { %v561_v40 = vadd.f32 %v524_v55, %v371_v13  ;;  %v537_v31 = vpop.f32.mrf.mxu1  ;;  %v360_v5 = vadd.f32 %v359_v18, %v149_v0  ;;  %v356_v32 = vsel %vm353_vm7, %v355_v34, %v351_v60  ;;  %vm556_vm11 = vcmp.eq.f32.partialorder %v555_v9, 8.507059e+37 }
  0xc2   :  { %v550_v11 = vadd.f32 %v2353_v27, %v549_v41  ;;  %v362_v6 = vsub.f32 1.0, %v356_v32  ;;  %v364_v41 = vmul.f32 0.0, %v356_v32  ;;  %v581_v55 = vadd.f32 %v3080_v39, %v537_v31 }
  0xc3   :  { %v2219_v62 = vmul.f32 -1.442695, %v561_v40 }
  0xc4   :  { %v554_v29 = vsel %vm3073_vm10, %v2353_v27, %v550_v11 }
  0xc5   :  { %2354 = vpow2.f32 %v2219_v62  ;;  %v559_v58 = vsel %vm556_vm11, %v558_v54, %v554_v29  ;;  %v3716_v29 = vld [vmem:[#allocation3_spill] sm:$0xff] }
  0xc6   :  { %2356 = vtanh.f32 %v360_v5  ;;  %v582_v18 = vmul.f32 %v581_v55, %v559_v58  ;;  %v3719_v55 = vld [vmem:[#allocation5_spill] sm:$0xff]  ;;  %v3721_v58 = vld [vmem:[#allocation15_spill] sm:$0xff] }
  0xc8   :  { %v526_v23 = vpop.f32.mrf.mxu0  ;;  %v583_v62 = vadd.f32 %v582_v18, %v372_v19  ;;  %v3723_v19 = vld [vmem:[#allocation8_spill] sm:$0xff]  ;;  %v3724_v18 = vld [vmem:[#allocation9_spill] sm:$0xff] }
  0xc9   :  { %v539_v48 = vpop.f32.mrf.mxu1 }
  0xcb   :  { %v2355_v44 = vpop.eup %2354 }
  0xcc   :  { %v2357_v13 = vpop.eup %2356  ;;  %v565_v46 = vadd.f32 1.0, %v2355_v44 }
  0xcd   :  { %v363_v34 = vmul.f32 %v2357_v13, %v362_v6 }
  0xce   :  { %2358 = vrcp.f32 %v565_v46  ;;  %v577_v60 = vand.u32 2147483648, %v565_v46  ;;  %v575_v11 = vand.u32 2147483647, %v565_v46  ;;  %vm571_vm13 = vweird.f32 %v565_v46 }
  0xcf   :  { %v3088_v40 = vadd.f32 %v364_v41, %v363_v34  ;;  %2360 = vtanh.f32 %v583_v62  ;;  %v3717_v34 = vld [vmem:[#allocation4_spill] sm:$0xff]  ;;  %v3718_v41 = vld [vmem:[#allocation14_spill] sm:$0xff] }
  0xd0   :  { %v578_v23 = vor.u32 1.1754944e-38, %v577_v60  ;;  %vm576_vm15 = vcmp.eq.f32.partialorder %v575_v11, 8.507059e+37  ;;  %v3727_v62 = vld [vmem:[#allocation12_spill] sm:$0xff] }
  0xd1   :  { %366 = vst [vmem:[%s3662_s4] sm:$0xff] %v3088_v40  ;;  %v597_v27 = vpack.c.bf16 %v3088_v40, %v3088_v40 }
  0xd3   :  { %606 = vmatmul.bf16.vlgmr.msrb.gmra.mxu2 %v597_v27  ;;  %619 = vmatmul.bf16.vlgmr.msrb.gmra.mxu3 %v597_v27 }
  0xd4   :  { %v2359_v31 = vpop.eup %2358  ;;  %632 = vmatmul.bf16.vlgmr.msra.gmra.mxu0 %v597_v27  ;;  %816 = vmatpush.bf16.msrb.mxu2 %v2668_v43  ;;  %v3722_v27 = vld [vmem:[#allocation7_spill] sm:$0xff] }
  0xd5   :  { %v567_v37 = vmul.f32 %v2359_v31, %v565_v46  ;;  %886 = vmatpush.bf16.msrb.mxu3 %v2562_v7  ;;  %899 = vmatpush.bf16.msra.mxu0 %v2809_v36  ;;  %vm572_vm12 = vweird.f32 %v2359_v31  ;;  %v2361_v44 = vpop.eup %2360 }
  0xd6   :  { %vm573_vm14 = vmor %vm571_vm13, %vm572_vm12 }
  0xd7   :  { %v568_v5 = vsub.f32 1.0, %v567_v37  ;;  %v3726_v37 = vld [vmem:[#allocation11_spill] sm:$0xff] }
  0xd8   :  { %817 = vmatpush.bf16.msrb.mxu2 %v2680_v47 }
  0xd9   :  { %v569_v52 = vmul.f32 %v2359_v31, %v568_v5  ;;  %887 = vmatpush.bf16.msrb.mxu3 %v2589_v16  ;;  %900 = vmatpush.bf16.msra.mxu0 %v2839_v53  ;;  %v2221_v5 = vld [vmem:[%s3660_s0 + $0xc] sm:$0xff] }
  0xda   :  { %v595_v11 = vunpack.c.h.bf16 %v2221_v5 }
  0xdb   :  { %v570_v9 = vadd.f32 %v2359_v31, %v569_v52  ;;  %v594_v52 = vunpack.c.l.bf16 %v2221_v5 }
  0xdc   :  { %818 = vmatpush.bf16.msrb.mxu2 %v2716_v59 }
  0xdd   :  { %v574_v32 = vsel %vm573_vm14, %v2359_v31, %v570_v9  ;;  %888 = vmatpush.bf16.msrb.mxu3 %v2616_v25  ;;  %901 = vmatpush.bf16.msra.mxu0 %v2871_v4  ;;  %v3725_v31 = vld [vmem:[#allocation10_spill] sm:$0xff] }
  0xde   :  { %v579_v0 = vsel %vm576_vm15, %v578_v23, %v574_v32 }
  0xdf   :  { %v585_v48 = vsub.f32 1.0, %v579_v0  ;;  %v587_v6 = vmul.f32 0.0, %v579_v0 }
  0xe0   :  { %819 = vmatpush.bf16.msrb.mxu2 %v2752_v10 }
  0xe1   :  { %v586_v54 = vmul.f32 %v2361_v44, %v585_v48  ;;  %889 = vmatpush.bf16.msrb.mxu3 %v2655_v38  ;;  %902 = vmatpush.bf16.msra.mxu0 %v2899_v22 }
  0xe3   :  { %v3108_v13 = vadd.f32 %v587_v6, %v586_v54 }
  0xe4   :  { %820 = vmatpush.bf16.msrb.mxu2 %v2794_v30 }
  0xe5   :  { %2220 = vst [vmem:[%s3663_s5 + $0x38] sm:$0xff] %v3108_v13  ;;  %v693_v46 = vpack.c.bf16 %v3108_v13, %v3108_v13  ;;  %890 = vmatpush.bf16.msrb.mxu3 %v2693_v51  ;;  %903 = vmatpush.bf16.msra.mxu0 %v2919_v33 }
  0xe7   :  { %702 = vmatmul.bf16.vlgmr.msra.gmra.mxu1 %v693_v46  ;;  %715 = vmatmul.bf16.vlgmr.msra.gmra.mxu2 %v693_v46 }
  0xe8   :  { %728 = vmatmul.bf16.vlgmr.msra.gmra.mxu3 %v693_v46  ;;  %912 = vmatpush.bf16.msra.mxu1 %v2825_v45 }
  0xe9   :  { %821 = vmatpush.bf16.msrb.mxu2 %v2835_v50  ;;  %891 = vmatpush.bf16.msrb.mxu3 %v2729_v63 }
  0xea   :  { %904 = vmatpush.bf16.msra.mxu0 %v2940_v49 }
  0xec   :  { %913 = vmatpush.bf16.msra.mxu1 %v2857_v61 }
  0xed   :  { %822 = vmatpush.bf16.msrb.mxu2 %v2867_v2  ;;  %892 = vmatpush.bf16.msrb.mxu3 %v2765_v15 }
  0xee   :  { %905 = vmatpush.bf16.msra.mxu0 %v2960_v1 }
  0xf0   :  { %914 = vmatpush.bf16.msra.mxu1 %v2887_v14 }
  0xf1   :  { %823 = vmatpush.bf16.msrb.mxu2 %v2896_v21  ;;  %893 = vmatpush.bf16.msrb.mxu3 %v2807_v35 }
  0xf2   :  { %906 = vmatpush.bf16.msra.mxu0 %v2980_v20 }
  0xf4   :  { %915 = vmatpush.bf16.msra.mxu1 %v2909_v28 }
  0xf5   :  { %982 = vmatpush.bf16.msra.mxu2 %v2551_v3  ;;  %995 = vmatpush.bf16.msra.mxu3 %v2564_v8 }
  0xf8   :  { %916 = vmatpush.bf16.msra.mxu1 %v2930_v42 }
  0xf9   :  { %983 = vmatpush.bf16.msra.mxu2 %v2576_v12  ;;  %996 = vmatpush.bf16.msra.mxu3 %v2591_v17 }
  0xfc   :  { %917 = vmatpush.bf16.msra.mxu1 %v2951_v56 }
  0xfd   :  { %984 = vmatpush.bf16.msra.mxu2 %v2612_v24  ;;  %997 = vmatpush.bf16.msra.mxu3 %v2618_v26 }
 0x100   :  { %918 = vmatpush.bf16.msra.mxu1 %v3718_v41 }
 0x101   :  { %985 = vmatpush.bf16.msra.mxu2 %v3716_v29  ;;  %998 = vmatpush.bf16.msra.mxu3 %v3717_v34 }
 0x104   :  { %919 = vmatpush.bf16.msra.mxu1 %v3721_v58 }
 0x105   :  { %986 = vmatpush.bf16.msra.mxu2 %v3719_v55  ;;  %999 = vmatpush.bf16.msra.mxu3 %v3720_v57 }
 0x109   :  { %987 = vmatpush.bf16.msra.mxu2 %v3722_v27  ;;  %1000 = vmatpush.bf16.msra.mxu3 %v3723_v19 }
 0x10d   :  { %988 = vmatpush.bf16.msra.mxu2 %v3724_v18  ;;  %1001 = vmatpush.bf16.msra.mxu3 %v3725_v31 }
 0x111   :  { %989 = vmatpush.bf16.msra.mxu2 %v3726_v37  ;;  %1002 = vmatpush.bf16.msra.mxu3 %v3727_v62  ;;  %v2226_v62 = vld [vmem:[%s3661_s1 + $0xa8] sm:$0xff] }
 0x112   :  { %v690_v19 = vunpack.c.l.bf16 %v2226_v62 }
 0x151   :  { %v633_v60 = vpop.f32.mrf.mxu0 }
 0x156   :  { %v607_v9 = vpop.f32.mrf.mxu2  ;;  %v620_v23 = vpop.f32.mrf.mxu3 }
 0x157   :  { %v637_v32 = vadd.f32 %v607_v9, %v594_v52  ;;  %v657_v0 = vadd.f32 %v620_v23, %v595_v11  ;;  %v691_v11 = vunpack.c.h.bf16 %v2226_v62  ;;  %v2222_v62 = vld [vmem:[%s3660_s0 + $0x14] sm:$0xf] }
 0x159   :  { %v2223_v48 = vmul.f32 -1.442695, %v637_v32  ;;  %v2224_v44 = vmul.f32 -1.442695, %v657_v0  ;;  %v635_v54 = vpop.f32.mrf.mxu0 }
 0x15b   :  { %2362 = vpow2.f32 %v2223_v48 }
 0x15c   :  { %2364 = vpow2.f32 %v2224_v44 }
 0x15e   :  { %v609_v6 = vpop.f32.mrf.mxu2  ;;  %v622_v46 = vpop.f32.mrf.mxu3 }
 0x161   :  { %v2363_v37 = vpop.eup %2362 }
 0x162   :  { %v2365_v31 = vpop.eup %2364  ;;  %v641_v18 = vadd.f32 1.0, %v2363_v37 }
 0x163   :  { %v661_v5 = vadd.f32 1.0, %v2365_v31 }
 0x164   :  { %2366 = vrcp.f32 %v641_v18  ;;  %v703_v27 = vpop.f32.mrf.mxu1  ;;  %v653_v55 = vand.u32 2147483648, %v641_v18  ;;  %v651_v34 = vand.u32 2147483647, %v641_v18  ;;  %vm647_vm1 = vweird.f32 %v641_v18 }
 0x165   :  { %2368 = vrcp.f32 %v661_v5  ;;  %v733_v52 = vadd.f32 %v703_v27, %v690_v19  ;;  %v673_v26 = vand.u32 2147483648, %v661_v5  ;;  %vm667_vm5 = vweird.f32 %v661_v5 }
 0x166   :  { %vm652_vm3 = vcmp.eq.f32.partialorder %v651_v34, 8.507059e+37 }
 0x167   :  { %v2228_v9 = vmul.f32 -1.442695, %v733_v52 }
 0x169   :  { %2370 = vpow2.f32 %v2228_v9  ;;  %v3728_v9 = vld [vmem:[#allocation16_spill] sm:$0xff] }
 0x16a   :  { %v2367_v23 = vpop.eup %2366  ;;  %v716_v32 = vpop.f32.mrf.mxu2 }
 0x16b   :  { %v2369_v0 = vpop.eup %2368  ;;  %v643_v48 = vmul.f32 %v2367_v23, %v641_v18  ;;  %v753_v44 = vadd.f32 %v716_v32, %v691_v11  ;;  %v3158_v54 = vpop.f32.mrf.mxu3  ;;  %vm648_vm0 = vweird.f32 %v2367_v23  ;;  %v677_v32 = vadd.f32 %v3728_v9, %v633_v60 }
 0x16c   :  { %v663_v6 = vmul.f32 %v2369_v0, %v661_v5  ;;  %v705_v46 = vpop.f32.mrf.mxu1  ;;  %vm649_vm2 = vmor %vm647_vm1, %vm648_vm0  ;;  %vm668_vm4 = vweird.f32 %v2369_v0 }
 0x16d   :  { %v644_v57 = vsub.f32 1.0, %v643_v48  ;;  %v2229_v37 = vmul.f32 -1.442695, %v753_v44  ;;  %v654_v48 = vor.u32 1.1754944e-38, %v653_v55  ;;  %vm669_vm6 = vmor %vm667_vm5, %vm668_vm4 }
 0x16e   :  { %v664_v31 = vsub.f32 1.0, %v663_v6  ;;  %v596_v6 = vunpack.c.l.bf16 %v2222_v62 }
 0x16f   :  { %v645_v58 = vmul.f32 %v2367_v23, %v644_v57  ;;  %2372 = vpow2.f32 %v2229_v37  ;;  %v2371_v27 = vpop.eup %2370 }
 0x170   :  { %v665_v19 = vmul.f32 %v2369_v0, %v664_v31  ;;  %v737_v11 = vadd.f32 1.0, %v2371_v27 }
 0x171   :  { %v646_v52 = vadd.f32 %v2367_v23, %v645_v58  ;;  %v671_v58 = vand.u32 2147483647, %v661_v5 }
 0x172   :  { %v718_v44 = vpop.f32.mrf.mxu2  ;;  %2374 = vrcp.f32 %v737_v11  ;;  %v666_v29 = vadd.f32 %v2369_v0, %v665_v19  ;;  %v747_v5 = vand.u32 2147483647, %v737_v11  ;;  %vm743_vm9 = vweird.f32 %v737_v11 }
 0x173   :  { %v650_v46 = vsel %vm649_vm2, %v2367_v23, %v646_v52  ;;  %v731_v57 = vpop.f32.mrf.mxu3  ;;  %v674_v44 = vor.u32 1.1754944e-38, %v673_v26  ;;  %vm672_vm7 = vcmp.eq.f32.partialorder %v671_v58, 8.507059e+37  ;;  %v749_v52 = vand.u32 2147483648, %v737_v11 }
 0x174   :  { %v655_v37 = vsel %vm652_vm3, %v654_v48, %v650_v46  ;;  %v670_v60 = vsel %vm669_vm6, %v2369_v0, %v666_v29  ;;  %vm748_vm11 = vcmp.eq.f32.partialorder %v747_v5, 8.507059e+37 }
 0x175   :  { %v2373_v31 = vpop.eup %2372  ;;  %v678_v41 = vmul.f32 %v677_v32, %v655_v37  ;;  %v675_v23 = vsel %vm672_vm7, %v674_v44, %v670_v60  ;;  %v2227_v32 = vld [vmem:[%s3661_s1 + $0xb0] sm:$0xf] }
 0x176   :  { %v757_v18 = vadd.f32 1.0, %v2373_v31  ;;  %v681_v46 = vsub.f32 1.0, %v675_v23  ;;  %v683_v0 = vmul.f32 %v675_v23, %v3088_v40  ;;  %v692_v37 = vunpack.c.l.bf16 %v2227_v32 }
 0x177   :  { %v679_v27 = vadd.f32 %v678_v41, %v596_v6  ;;  %v750_v31 = vor.u32 1.1754944e-38, %v749_v52 }
 0x178   :  { %2376 = vrcp.f32 %v757_v18  ;;  %v2375_v55 = vpop.eup %2374  ;;  %vm763_vm13 = vweird.f32 %v757_v18 }
 0x179   :  { %2378 = vtanh.f32 %v679_v27  ;;  %v739_v34 = vmul.f32 %v2375_v55, %v737_v11  ;;  %vm744_vm8 = vweird.f32 %v2375_v55  ;;  %v773_v27 = vadd.f32 %v3080_v39, %v3158_v54 }
 0x17a   :  { %vm745_vm10 = vmor %vm743_vm9, %vm744_vm8 }
 0x17b   :  { %v740_v62 = vsub.f32 1.0, %v739_v34 }
 0x17d   :  { %v741_v48 = vmul.f32 %v2375_v55, %v740_v62  ;;  %v769_v62 = vand.u32 2147483648, %v757_v18 }
 0x17e   :  { %v2377_v19 = vpop.eup %2376 }
 0x17f   :  { %v2379_v41 = vpop.eup %2378  ;;  %v759_v57 = vmul.f32 %v2377_v19, %v757_v18  ;;  %v742_v29 = vadd.f32 %v2375_v55, %v741_v48  ;;  %vm764_vm12 = vweird.f32 %v2377_v19  ;;  %v770_v52 = vor.u32 1.1754944e-38, %v769_v62  ;;  %v3740_v62 = vld [vmem:[#allocation11_spill] sm:$0xff] }
 0x180   :  { %v682_v26 = vmul.f32 %v2379_v41, %v681_v46  ;;  %vm765_vm14 = vmor %vm763_vm13, %vm764_vm12 }
 0x181   :  { %v760_v6 = vsub.f32 1.0, %v759_v57  ;;  %v746_v58 = vsel %vm745_vm10, %v2375_v55, %v742_v29  ;;  %v767_v55 = vand.u32 2147483647, %v757_v18  ;;  %v3730_v29 = vld [vmem:[#allocation14_spill] sm:$0xff] }
 0x182   :  { %v3170_v60 = vadd.f32 %v683_v0, %v682_v26  ;;  %v751_v34 = vsel %vm748_vm11, %v750_v31, %v746_v58  ;;  %v3731_v26 = vld [vmem:[#allocation3_spill] sm:$0xff]  ;;  %v3732_v0 = vld [vmem:[#allocation4_spill] sm:$0xff]  ;;  %v3735_v31 = vld [vmem:[#allocation6_spill] sm:$0xff] }
 0x183   :  { %v761_v44 = vmul.f32 %v2377_v19, %v760_v6  ;;  %v774_v48 = vmul.f32 %v773_v27, %v751_v34  ;;  %vm768_vm15 = vcmp.eq.f32.partialorder %v767_v55, 8.507059e+37  ;;  %v3733_v6 = vld [vmem:[#allocation15_spill] sm:$0xff]  ;;  %v3737_v27 = vld [vmem:[#allocation8_spill] sm:$0xff]  ;;  %v3739_v34 = vld [vmem:[#allocation10_spill] sm:$0xff] }
 0x184   :  { %2225 = vst [vmem:[%s3662_s4 + $0x8] sm:$0xff] %v3170_v60  ;;  %v789_v40 = vpack.c.bf16 %v3170_v60, %v3170_v60  ;;  %v3736_v58 = vld [vmem:[#allocation7_spill] sm:$0xff] }
 0x185   :  { %v762_v11 = vadd.f32 %v2377_v19, %v761_v44  ;;  %v775_v54 = vadd.f32 %v774_v48, %v692_v37  ;;  %v3734_v37 = vld [vmem:[#allocation5_spill] sm:$0xff]  ;;  %v3741_v48 = vld [vmem:[#allocation12_spill] sm:$0xff] }
 0x186   :  { %798 = vmatmul.bf16.vlgmr.msrb.gmra.mxu0 %v789_v40  ;;  %811 = vmatmul.bf16.vlgmr.msrb.gmra.mxu1 %v789_v40  ;;  %v3738_v44 = vld [vmem:[#allocation9_spill] sm:$0xff] }
 0x187   :  { %v766_v23 = vsel %vm765_vm14, %v2377_v19, %v762_v11  ;;  %824 = vmatmul.bf16.vlgmr.msrb.gmra.mxu2 %v789_v40  ;;  %1008 = vmatpush.bf16.msrb.mxu0 %v2668_v43  ;;  %2380 = vtanh.f32 %v775_v54  ;;  %v2231_v40 = vld [vmem:[%s3660_s0 + $0x18] sm:$0xff] }
 0x188   :  { %1078 = vmatpush.bf16.msrb.mxu1 %v2562_v7  ;;  %1091 = vmatpush.bf16.msrb.mxu2 %v2809_v36  ;;  %v771_v32 = vsel %vm768_vm15, %v770_v52, %v766_v23  ;;  %v786_v11 = vunpack.c.l.bf16 %v2231_v40  ;;  %v787_v55 = vunpack.c.h.bf16 %v2231_v40 }
 0x189   :  { %v777_v18 = vsub.f32 1.0, %v771_v32  ;;  %v779_v46 = vmul.f32 %v771_v32, %v3108_v13  ;;  %v3729_v13 = vld [vmem:[#allocation2_spill] sm:$0xff] }
 0x18b   :  { %1009 = vmatpush.bf16.msrb.mxu0 %v2680_v47 }
 0x18c   :  { %1079 = vmatpush.bf16.msrb.mxu1 %v2589_v16  ;;  %1092 = vmatpush.bf16.msrb.mxu2 %v2839_v53 }
 0x18d   :  { %v2381_v5 = vpop.eup %2380 }
 0x18e   :  { %v778_v19 = vmul.f32 %v2381_v5, %v777_v18 }
 0x18f   :  { %1010 = vmatpush.bf16.msrb.mxu0 %v2716_v59 }
 0x190   :  { %1080 = vmatpush.bf16.msrb.mxu1 %v2616_v25  ;;  %1093 = vmatpush.bf16.msrb.mxu2 %v2871_v4  ;;  %v3188_v41 = vadd.f32 %v779_v46, %v778_v19 }
 0x192   :  { %2230 = vst [vmem:[%s3663_s5 + $0x30] sm:$0xff] %v3188_v41  ;;  %v885_v57 = vpack.c.bf16 %v3188_v41, %v3188_v41 }
 0x193   :  { %1011 = vmatpush.bf16.msrb.mxu0 %v2752_v10 }
 0x194   :  { %1081 = vmatpush.bf16.msrb.mxu1 %v2655_v38  ;;  %1094 = vmatpush.bf16.msrb.mxu2 %v2899_v22 }
 0x195   :  { %894 = vmatmul.bf16.vlgmr.msrb.gmra.mxu3 %v885_v57 }
 0x196   :  { %907 = vmatmul.bf16.vlgmr.msra.gmra.mxu0 %v885_v57  ;;  %920 = vmatmul.bf16.vlgmr.msra.gmra.mxu1 %v885_v57 }
 0x197   :  { %1012 = vmatpush.bf16.msrb.mxu0 %v2794_v30  ;;  %1104 = vmatpush.bf16.msrb.mxu3 %v2825_v45 }
 0x198   :  { %1082 = vmatpush.bf16.msrb.mxu1 %v2693_v51  ;;  %1095 = vmatpush.bf16.msrb.mxu2 %v2919_v33 }
 0x19b   :  { %1013 = vmatpush.bf16.msrb.mxu0 %v2835_v50  ;;  %1105 = vmatpush.bf16.msrb.mxu3 %v2857_v61 }
 0x19c   :  { %1083 = vmatpush.bf16.msrb.mxu1 %v2729_v63  ;;  %1096 = vmatpush.bf16.msrb.mxu2 %v2940_v49 }
 0x19f   :  { %1014 = vmatpush.bf16.msrb.mxu0 %v2867_v2  ;;  %1106 = vmatpush.bf16.msrb.mxu3 %v2887_v14 }
 0x1a0   :  { %1084 = vmatpush.bf16.msrb.mxu1 %v2765_v15  ;;  %1097 = vmatpush.bf16.msrb.mxu2 %v2960_v1 }
 0x1a3   :  { %1015 = vmatpush.bf16.msrb.mxu0 %v2896_v21  ;;  %1107 = vmatpush.bf16.msrb.mxu3 %v2909_v28 }
 0x1a4   :  { %1085 = vmatpush.bf16.msrb.mxu1 %v2807_v35  ;;  %1098 = vmatpush.bf16.msrb.mxu2 %v2980_v20 }
 0x1a7   :  { %1174 = vmatpush.bf16.msra.mxu0 %v2551_v3  ;;  %1108 = vmatpush.bf16.msrb.mxu3 %v2930_v42 }
 0x1a8   :  { %1187 = vmatpush.bf16.msra.mxu1 %v2564_v8 }
 0x1ab   :  { %1175 = vmatpush.bf16.msra.mxu0 %v2576_v12  ;;  %1109 = vmatpush.bf16.msrb.mxu3 %v2951_v56 }
 0x1ac   :  { %1188 = vmatpush.bf16.msra.mxu1 %v2591_v17 }
 0x1af   :  { %1176 = vmatpush.bf16.msra.mxu0 %v2612_v24  ;;  %1110 = vmatpush.bf16.msrb.mxu3 %v3730_v29 }
 0x1b0   :  { %1189 = vmatpush.bf16.msra.mxu1 %v3729_v13 }
 0x1b3   :  { %1177 = vmatpush.bf16.msra.mxu0 %v3731_v26  ;;  %1111 = vmatpush.bf16.msrb.mxu3 %v3733_v6 }
 0x1b4   :  { %1190 = vmatpush.bf16.msra.mxu1 %v3732_v0 }
 0x1b7   :  { %1178 = vmatpush.bf16.msra.mxu0 %v3734_v37 }
 0x1b8   :  { %1191 = vmatpush.bf16.msra.mxu1 %v3735_v31 }
 0x1bb   :  { %1179 = vmatpush.bf16.msra.mxu0 %v3736_v58 }
 0x1bc   :  { %1192 = vmatpush.bf16.msra.mxu1 %v3737_v27 }
 0x1bf   :  { %1180 = vmatpush.bf16.msra.mxu0 %v3738_v44 }
 0x1c0   :  { %1193 = vmatpush.bf16.msra.mxu1 %v3739_v34 }
 0x1c3   :  { %1181 = vmatpush.bf16.msra.mxu0 %v3740_v62 }
 0x1c4   :  { %1194 = vmatpush.bf16.msra.mxu1 %v3741_v48  ;;  %v2236_v48 = vld [vmem:[%s3661_s1 + $0x9c] sm:$0xff] }
 0x1c5   :  { %v883_v40 = vunpack.c.h.bf16 %v2236_v48 }
 0x203   :  { %v799_v54 = vpop.f32.mrf.mxu0  ;;  %v812_v23 = vpop.f32.mrf.mxu1 }
 0x204   :  { %v829_v52 = vadd.f32 %v799_v54, %v786_v11  ;;  %v849_v32 = vadd.f32 %v812_v23, %v787_v55 }
 0x206   :  { %v2233_v18 = vmul.f32 -1.442695, %v829_v52  ;;  %v2234_v5 = vmul.f32 -1.442695, %v849_v32  ;;  %v882_v52 = vunpack.c.l.bf16 %v2236_v48  ;;  %v2232_v48 = vld [vmem:[%s3660_s0 + $0x20] sm:$0xf] }
 0x208   :  { %2382 = vpow2.f32 %v2233_v18 }
 0x209   :  { %2384 = vpow2.f32 %v2234_v5 }
 0x20a   :  { %v825_v19 = vpop.f32.mrf.mxu2 }
 0x20b   :  { %v801_v46 = vpop.f32.mrf.mxu0  ;;  %v814_v57 = vpop.f32.mrf.mxu1 }
 0x20e   :  { %v2383_v62 = vpop.eup %2382 }
 0x20f   :  { %v2385_v34 = vpop.eup %2384  ;;  %v833_v44 = vadd.f32 1.0, %v2383_v62 }
 0x210   :  { %v853_v27 = vadd.f32 1.0, %v2385_v34 }
 0x211   :  { %2386 = vrcp.f32 %v833_v44  ;;  %v845_v34 = vand.u32 2147483648, %v833_v44  ;;  %v843_v56 = vand.u32 2147483647, %v833_v44  ;;  %vm839_vm1 = vweird.f32 %v833_v44 }
 0x212   :  { %2388 = vrcp.f32 %v853_v27  ;;  %v827_v11 = vpop.f32.mrf.mxu2  ;;  %vm859_vm5 = vweird.f32 %v853_v27 }
 0x213   :  { %v908_v55 = vpop.f32.mrf.mxu0  ;;  %v3241_v54 = vpop.f32.mrf.mxu1  ;;  %vm844_vm3 = vcmp.eq.f32.partialorder %v843_v56, 8.507059e+37 }
 0x214   :  { %v945_v23 = vadd.f32 %v908_v55, %v883_v40 }
 0x216   :  { %v2239_v32 = vmul.f32 -1.442695, %v945_v23  ;;  %v846_v23 = vor.u32 1.1754944e-38, %v845_v34 }
 0x217   :  { %v2387_v18 = vpop.eup %2386 }
 0x218   :  { %v2389_v5 = vpop.eup %2388  ;;  %v835_v46 = vmul.f32 %v2387_v18, %v833_v44  ;;  %2390 = vpow2.f32 %v2239_v32  ;;  %v895_v57 = vpop.f32.mrf.mxu3  ;;  %vm840_vm0 = vweird.f32 %v2387_v18  ;;  %v863_v44 = vand.u32 2147483647, %v853_v27 }
 0x219   :  { %v855_v6 = vmul.f32 %v2389_v5, %v853_v27  ;;  %v925_v58 = vadd.f32 %v895_v57, %v882_v52  ;;  %vm841_vm2 = vmor %vm839_vm1, %vm840_vm0  ;;  %vm860_vm4 = vweird.f32 %v2389_v5 }
 0x21a   :  { %v836_v31 = vsub.f32 1.0, %v835_v46  ;;  %v865_v46 = vand.u32 2147483648, %v853_v27  ;;  %vm861_vm6 = vmor %vm859_vm5, %vm860_vm4  ;;  %vm864_vm7 = vcmp.eq.f32.partialorder %v863_v44, 8.507059e+37  ;;  %v965_v44 = vadd.f32 %v3080_v39, %v3241_v54 }
 0x21b   :  { %v856_v62 = vsub.f32 1.0, %v855_v6  ;;  %v2238_v29 = vmul.f32 -1.442695, %v925_v58  ;;  %v910_v37 = vpop.f32.mrf.mxu0  ;;  %v923_v0 = vpop.f32.mrf.mxu1  ;;  %v788_v6 = vunpack.c.l.bf16 %v2232_v48 }
 0x21c   :  { %v837_v11 = vmul.f32 %v2387_v18, %v836_v31  ;;  %v869_v0 = vadd.f32 %v3728_v9, %v825_v19  ;;  %v866_v48 = vor.u32 1.1754944e-38, %v865_v46 }
 0x21d   :  { %v857_v26 = vmul.f32 %v2389_v5, %v856_v62  ;;  %2392 = vpow2.f32 %v2238_v29 }
 0x21e   :  { %v2391_v40 = vpop.eup %2390  ;;  %v838_v55 = vadd.f32 %v2387_v18, %v837_v11 }
 0x21f   :  { %v3246_v52 = vadd.f32 1.0, %v2391_v40  ;;  %v858_v31 = vadd.f32 %v2389_v5, %v857_v26 }
 0x220   :  { %v842_v58 = vsel %vm841_vm2, %v2387_v18, %v838_v55  ;;  %v897_v37 = vpop.f32.mrf.mxu3 }
 0x221   :  { %v847_v32 = vsel %vm844_vm3, %v846_v23, %v842_v58  ;;  %2394 = vrcp.f32 %v3246_v52  ;;  %v862_v11 = vsel %vm861_vm6, %v2389_v5, %v858_v31  ;;  %vm955_vm13 = vweird.f32 %v3246_v52 }
 0x222   :  { %v870_v57 = vmul.f32 %v869_v0, %v847_v32  ;;  %v867_v9 = vsel %vm864_vm7, %v866_v48, %v862_v11 }
 0x223   :  { %v2393_v29 = vpop.eup %2392  ;;  %v873_v26 = vsub.f32 1.0, %v867_v9  ;;  %v875_v23 = vmul.f32 %v867_v9, %v3170_v60  ;;  %v2237_v60 = vld [vmem:[%s3661_s1 + $0xa4] sm:$0xf] }
 0x224   :  { %v871_v62 = vadd.f32 %v870_v57, %v788_v6  ;;  %v929_v34 = vadd.f32 1.0, %v2393_v29  ;;  %v884_v11 = vunpack.c.l.bf16 %v2237_v60  ;;  %v3749_v60 = vld [vmem:[#allocation15_spill] sm:$0xff] }
 0x226   :  { %2396 = vtanh.f32 %v871_v62  ;;  %v941_v5 = vand.u32 2147483648, %v929_v34  ;;  %v939_v32 = vand.u32 2147483647, %v929_v34  ;;  %vm935_vm9 = vweird.f32 %v929_v34 }
 0x227   :  { %2398 = vrcp.f32 %v929_v34  ;;  %v2395_v56 = vpop.eup %2394 }
 0x228   :  { %v951_v19 = vmul.f32 %v2395_v56, %v3246_v52  ;;  %v942_v29 = vor.u32 1.1754944e-38, %v941_v5  ;;  %vm940_vm11 = vcmp.eq.f32.partialorder %v939_v32, 8.507059e+37  ;;  %vm956_vm12 = vweird.f32 %v2395_v56  ;;  %v3744_v5 = vld [vmem:[#allocation4_spill] sm:$0xff]  ;;  %v3747_v32 = vld [vmem:[#allocation6_spill] sm:$0xff] }
 0x229   :  { %vm957_vm14 = vmor %vm955_vm13, %vm956_vm12 }
 0x22a   :  { %v952_v27 = vsub.f32 1.0, %v951_v19  ;;  %v959_v19 = vand.u32 2147483647, %v3246_v52 }
 0x22c   :  { %v2397_v18 = vpop.eup %2396  ;;  %v953_v46 = vmul.f32 %v2395_v56, %v952_v27  ;;  %vm960_vm15 = vcmp.eq.f32.partialorder %v959_v19, 8.507059e+37 }
 0x22d   :  { %v2399_v40 = vpop.eup %2398  ;;  %v874_v55 = vmul.f32 %v2397_v18, %v873_v26 }
 0x22e   :  { %v931_v58 = vmul.f32 %v2399_v40, %v929_v34  ;;  %vm936_vm8 = vweird.f32 %v2399_v40  ;;  %v954_v48 = vadd.f32 %v2395_v56, %v953_v46  ;;  %v961_v34 = vand.u32 2147483648, %v3246_v52  ;;  %v3748_v46 = vld [vmem:[#allocation7_spill] sm:$0xff] }
 0x22f   :  { %v3252_v0 = vadd.f32 %v875_v23, %v874_v55  ;;  %vm937_vm10 = vmor %vm935_vm9, %vm936_vm8 }
 0x230   :  { %v932_v6 = vsub.f32 1.0, %v931_v58  ;;  %v958_v54 = vsel %vm957_vm14, %v2395_v56, %v954_v48  ;;  %v962_v18 = vor.u32 1.1754944e-38, %v961_v34  ;;  %v2241_v48 = vld [vmem:[%s3660_s0 + $0x24] sm:$0xff] }
 0x231   :  { %2235 = vst [vmem:[%s3662_s4 + $0x10] sm:$0xff] %v3252_v0  ;;  %v981_v37 = vpack.c.bf16 %v3252_v0, %v3252_v0  ;;  %v978_v34 = vunpack.c.l.bf16 %v2241_v48 }
 0x232   :  { %v933_v31 = vmul.f32 %v2399_v40, %v932_v6  ;;  %v3743_v6 = vld [vmem:[#allocation13_spill] sm:$0xff] }
 0x233   :  { %990 = vmatmul.bf16.vlgmr.msra.gmra.mxu2 %v981_v37  ;;  %1003 = vmatmul.bf16.vlgmr.msra.gmra.mxu3 %v981_v37 }
 0x234   :  { %v934_v57 = vadd.f32 %v2399_v40, %v933_v31  ;;  %1016 = vmatmul.bf16.vlgmr.msrb.gmra.mxu0 %v981_v37  ;;  %1200 = vmatpush.bf16.msra.mxu2 %v2668_v43  ;;  %v3745_v37 = vld [vmem:[#allocation5_spill] sm:$0xff]  ;;  %v3746_v31 = vld [vmem:[#allocation14_spill] sm:$0xff] }
 0x235   :  { %1270 = vmatpush.bf16.msra.mxu3 %v2562_v7  ;;  %1283 = vmatpush.bf16.msrb.mxu0 %v2809_v36 }
 0x236   :  { %v938_v62 = vsel %vm937_vm10, %v2399_v40, %v934_v57  ;;  %v963_v40 = vsel %vm960_vm15, %v962_v18, %v958_v54  ;;  %v3750_v57 = vld [vmem:[#allocation8_spill] sm:$0xff] }
 0x237   :  { %v943_v9 = vsel %vm940_vm11, %v942_v29, %v938_v62  ;;  %v969_v52 = vsub.f32 1.0, %v963_v40  ;;  %v971_v56 = vmul.f32 %v963_v40, %v3188_v41  ;;  %v3742_v41 = vld [vmem:[#allocation3_spill] sm:$0xff]  ;;  %v3751_v29 = vld [vmem:[#allocation9_spill] sm:$0xff] }
 0x238   :  { %v966_v26 = vmul.f32 %v965_v44, %v943_v9  ;;  %1201 = vmatpush.bf16.msra.mxu2 %v2680_v47  ;;  %v3752_v44 = vld [vmem:[#allocation10_spill] sm:$0xff]  ;;  %v3753_v62 = vld [vmem:[#allocation11_spill] sm:$0xff] }
 0x239   :  { %1271 = vmatpush.bf16.msra.mxu3 %v2589_v16  ;;  %1284 = vmatpush.bf16.msrb.mxu0 %v2839_v53 }
 0x23a   :  { %v967_v39 = vadd.f32 %v966_v26, %v884_v11  ;;  %v3754_v11 = vld [vmem:[#allocation12_spill] sm:$0xff]  ;;  %v979_v26 = vunpack.c.h.bf16 %v2241_v48 }
 0x23c   :  { %2400 = vtanh.f32 %v967_v39  ;;  %1202 = vmatpush.bf16.msra.mxu2 %v2716_v59 }
 0x23d   :  { %1272 = vmatpush.bf16.msra.mxu3 %v2616_v25  ;;  %1285 = vmatpush.bf16.msrb.mxu0 %v2871_v4 }
 0x240   :  { %1203 = vmatpush.bf16.msra.mxu2 %v2752_v10 }
 0x241   :  { %1273 = vmatpush.bf16.msra.mxu3 %v2655_v38  ;;  %1286 = vmatpush.bf16.msrb.mxu0 %v2899_v22 }
 0x242   :  { %v2401_v55 = vpop.eup %2400 }
 0x243   :  { %v970_v23 = vmul.f32 %v2401_v55, %v969_v52 }
 0x244   :  { %1204 = vmatpush.bf16.msra.mxu2 %v2794_v30 }
 0x245   :  { %v3282_v58 = vadd.f32 %v971_v56, %v970_v23  ;;  %1274 = vmatpush.bf16.msra.mxu3 %v2693_v51  ;;  %1287 = vmatpush.bf16.msrb.mxu0 %v2919_v33 }
 0x247   :  { %2240 = vst [vmem:[%s3663_s5 + $0x28] sm:$0xff] %v3282_v58  ;;  %v1077_v27 = vpack.c.bf16 %v3282_v58, %v3282_v58 }
 0x248   :  { %1205 = vmatpush.bf16.msra.mxu2 %v2835_v50 }
 0x249   :  { %1086 = vmatmul.bf16.vlgmr.msrb.gmra.mxu1 %v1077_v27  ;;  %1099 = vmatmul.bf16.vlgmr.msrb.gmra.mxu2 %v1077_v27 }
 0x24a   :  { %1112 = vmatmul.bf16.vlgmr.msrb.gmra.mxu3 %v1077_v27  ;;  %1296 = vmatpush.bf16.msrb.mxu1 %v2825_v45  ;;  %v2246_v27 = vld [vmem:[%s3661_s1 + $0x90] sm:$0xff] }
 0x24b   :  { %1275 = vmatpush.bf16.msra.mxu3 %v2729_v63  ;;  %1288 = vmatpush.bf16.msrb.mxu0 %v2940_v49  ;;  %v1074_v48 = vunpack.c.l.bf16 %v2246_v27 }
 0x24c   :  { %1206 = vmatpush.bf16.msra.mxu2 %v2867_v2 }
 0x24e   :  { %1297 = vmatpush.bf16.msrb.mxu1 %v2857_v61 }
 0x24f   :  { %1276 = vmatpush.bf16.msra.mxu3 %v2765_v15  ;;  %1289 = vmatpush.bf16.msrb.mxu0 %v2960_v1 }
 0x250   :  { %1207 = vmatpush.bf16.msra.mxu2 %v2896_v21 }
 0x252   :  { %1298 = vmatpush.bf16.msrb.mxu1 %v2887_v14 }
 0x253   :  { %1277 = vmatpush.bf16.msra.mxu3 %v2807_v35  ;;  %1290 = vmatpush.bf16.msrb.mxu0 %v2980_v20 }
 0x254   :  { %1366 = vmatpush.bf16.msrb.mxu2 %v2551_v3 }
 0x256   :  { %1299 = vmatpush.bf16.msrb.mxu1 %v2909_v28 }
 0x257   :  { %1379 = vmatpush.bf16.msrb.mxu3 %v2564_v8 }
 0x258   :  { %1367 = vmatpush.bf16.msrb.mxu2 %v2576_v12 }
 0x25a   :  { %1300 = vmatpush.bf16.msrb.mxu1 %v2930_v42 }
 0x25b   :  { %1380 = vmatpush.bf16.msrb.mxu3 %v2591_v17 }
 0x25c   :  { %1368 = vmatpush.bf16.msrb.mxu2 %v2612_v24 }
 0x25e   :  { %1301 = vmatpush.bf16.msrb.mxu1 %v3743_v6 }
 0x25f   :  { %1381 = vmatpush.bf16.msrb.mxu3 %v3729_v13 }
 0x260   :  { %1369 = vmatpush.bf16.msrb.mxu2 %v3742_v41 }
 0x262   :  { %1302 = vmatpush.bf16.msrb.mxu1 %v3746_v31 }
 0x263   :  { %1382 = vmatpush.bf16.msrb.mxu3 %v3744_v5 }
 0x264   :  { %1370 = vmatpush.bf16.msrb.mxu2 %v3745_v37 }
 0x266   :  { %1303 = vmatpush.bf16.msrb.mxu1 %v3749_v60 }
 0x267   :  { %1383 = vmatpush.bf16.msrb.mxu3 %v3747_v32 }
 0x268   :  { %1371 = vmatpush.bf16.msrb.mxu2 %v3748_v46 }
 0x26b   :  { %1384 = vmatpush.bf16.msrb.mxu3 %v3750_v57 }
 0x26c   :  { %1372 = vmatpush.bf16.msrb.mxu2 %v3751_v29 }
 0x26f   :  { %1385 = vmatpush.bf16.msrb.mxu3 %v3752_v44 }
 0x270   :  { %1373 = vmatpush.bf16.msrb.mxu2 %v3753_v62 }
 0x273   :  { %1386 = vmatpush.bf16.msrb.mxu3 %v3754_v11 }
 0x2b1   :  { %v1017_v9 = vpop.f32.mrf.mxu0 }
 0x2b6   :  { %v991_v19 = vpop.f32.mrf.mxu2  ;;  %v1004_v39 = vpop.f32.mrf.mxu3 }
 0x2b7   :  { %v1021_v54 = vadd.f32 %v991_v19, %v978_v34  ;;  %v1041_v18 = vadd.f32 %v1004_v39, %v979_v26  ;;  %v1075_v39 = vunpack.c.h.bf16 %v2246_v27  ;;  %v2242_v27 = vld [vmem:[%s3660_s0 + $0x2c] sm:$0xf] }
 0x2b9   :  { %v2243_v40 = vmul.f32 -1.442695, %v1021_v54  ;;  %v2244_v52 = vmul.f32 -1.442695, %v1041_v18  ;;  %v1019_v55 = vpop.f32.mrf.mxu0 }
 0x2bb   :  { %2402 = vpow2.f32 %v2243_v40 }
 0x2bc   :  { %2404 = vpow2.f32 %v2244_v52 }
 0x2be   :  { %v993_v23 = vpop.f32.mrf.mxu2  ;;  %v1006_v56 = vpop.f32.mrf.mxu3 }
 0x2c1   :  { %v2403_v11 = vpop.eup %2402 }
 0x2c2   :  { %v2405_v62 = vpop.eup %2404  ;;  %v1025_v44 = vadd.f32 1.0, %v2403_v11 }
 0x2c3   :  { %v1045_v29 = vadd.f32 1.0, %v2405_v62 }
 0x2c4   :  { %2406 = vrcp.f32 %v1025_v44  ;;  %v1037_v46 = vand.u32 2147483648, %v1025_v44  ;;  %v1035_v37 = vand.u32 2147483647, %v1025_v44  ;;  %vm1031_vm1 = vweird.f32 %v1025_v44 }
 0x2c5   :  { %2408 = vrcp.f32 %v1045_v29  ;;  %vm1051_vm5 = vweird.f32 %v1045_v29 }
 0x2c6   :  { %v1087_v34 = vpop.f32.mrf.mxu1  ;;  %vm1036_vm3 = vcmp.eq.f32.partialorder %v1035_v37, 8.507059e+37 }
 0x2c7   :  { %v1117_v26 = vadd.f32 %v1087_v34, %v1074_v48 }
 0x2c9   :  { %v2248_v19 = vmul.f32 -1.442695, %v1117_v26 }
 0x2ca   :  { %v2407_v54 = vpop.eup %2406 }
 0x2cb   :  { %v2409_v18 = vpop.eup %2408  ;;  %v1027_v40 = vmul.f32 %v2407_v54, %v1025_v44  ;;  %2410 = vpow2.f32 %v2248_v19  ;;  %vm1032_vm0 = vweird.f32 %v2407_v54  ;;  %v1038_v19 = vor.u32 1.1754944e-38, %v1037_v46 }
 0x2cc   :  { %v1047_v52 = vmul.f32 %v2409_v18, %v1045_v29  ;;  %v1100_v55 = vpop.f32.mrf.mxu2  ;;  %vm1033_vm2 = vmor %vm1031_vm1, %vm1032_vm0  ;;  %vm1052_vm4 = vweird.f32 %v2409_v18  ;;  %v1055_v46 = vand.u32 2147483647, %v1045_v29 }
 0x2cd   :  { %v1028_v23 = vsub.f32 1.0, %v1027_v40  ;;  %v1137_v56 = vadd.f32 %v1100_v55, %v1075_v39  ;;  %v3331_v57 = vpop.f32.mrf.mxu3  ;;  %v3339_v40 = vld [vmem:[%s3659_s3] ss:$0 sm:$0xff]  ;;  %vm1053_vm6 = vmor %vm1051_vm5, %vm1052_vm4 }
 0x2ce   :  { %v1048_v11 = vsub.f32 1.0, %v1047_v52  ;;  %v1089_v62 = vpop.f32.mrf.mxu1  ;;  %v1061_v52 = vadd.f32 %v3339_v40, %v1017_v9  ;;  %vm1056_vm7 = vcmp.eq.f32.partialorder %v1055_v46, 8.507059e+37 }
 0x2cf   :  { %v1029_v32 = vmul.f32 %v2407_v54, %v1028_v23  ;;  %v2249_v60 = vmul.f32 -1.442695, %v1137_v56  ;;  %v980_v23 = vunpack.c.l.bf16 %v2242_v27 }
 0x2d0   :  { %v1049_v48 = vmul.f32 %v2409_v18, %v1048_v11 }
 0x2d1   :  { %v2411_v34 = vpop.eup %2410  ;;  %v1030_v26 = vadd.f32 %v2407_v54, %v1029_v32  ;;  %2412 = vpow2.f32 %v2249_v60  ;;  %v1057_v60 = vand.u32 2147483648, %v1045_v29  ;;  %v2247_v29 = vld [vmem:[%s3661_s1 + $0x98] sm:$0xf] }
 0x2d2   :  { %v1121_v39 = vadd.f32 1.0, %v2411_v34  ;;  %v1050_v11 = vadd.f32 %v2409_v18, %v1049_v48 }
 0x2d3   :  { %v1034_v55 = vsel %vm1033_vm2, %v2407_v54, %v1030_v26  ;;  %v1058_v13 = vor.u32 1.1754944e-38, %v1057_v60 }
 0x2d4   :  { %v1039_v56 = vsel %vm1036_vm3, %v1038_v19, %v1034_v55  ;;  %2414 = vrcp.f32 %v1121_v39  ;;  %v1102_v32 = vpop.f32.mrf.mxu2  ;;  %v1054_v31 = vsel %vm1053_vm6, %v2409_v18, %v1050_v11  ;;  %v1133_v27 = vand.u32 2147483648, %v1121_v39 }
 0x2d5   :  { %v1062_v44 = vmul.f32 %v1061_v52, %v1039_v56  ;;  %v1115_v62 = vpop.f32.mrf.mxu3  ;;  %v1059_v54 = vsel %vm1056_vm7, %v1058_v13, %v1054_v31  ;;  %v1131_v55 = vand.u32 2147483647, %v1121_v39  ;;  %vm1127_vm9 = vweird.f32 %v1121_v39 }
 0x2d6   :  { %v1065_v26 = vsub.f32 1.0, %v1059_v54  ;;  %v1076_v32 = vunpack.c.l.bf16 %v2247_v29  ;;  %v1134_v13 = vor.u32 1.1754944e-38, %v1133_v27  ;;  %v3351_v62 = vld [vmem:[%s3659_s3 + $0x1] ss:$0 sm:$0xff] }
 0x2d7   :  { %v2413_v34 = vpop.eup %2412  ;;  %v1063_v5 = vadd.f32 %v1062_v44, %v980_v23  ;;  %vm1132_vm11 = vcmp.eq.f32.partialorder %v1131_v55, 8.507059e+37  ;;  %v1157_v46 = vadd.f32 %v3351_v62, %v3331_v57 }
 0x2d8   :  { %v1141_v41 = vadd.f32 1.0, %v2413_v34 }
 0x2d9   :  { %2416 = vtanh.f32 %v1063_v5  ;;  %v1067_v5 = vmul.f32 %v1059_v54, %v3252_v0 }
 0x2da   :  { %v2415_v9 = vpop.eup %2414  ;;  %2418 = vrcp.f32 %v1141_v41  ;;  %v1151_v54 = vand.u32 2147483647, %v1141_v41  ;;  %vm1147_vm13 = vweird.f32 %v1141_v41 }
 0x2db   :  { %v1123_v37 = vmul.f32 %v2415_v9, %v1121_v39  ;;  %vm1128_vm8 = vweird.f32 %v2415_v9 }
 0x2dc   :  { %vm1129_vm10 = vmor %vm1127_vm9, %vm1128_vm8  ;;  %vm1152_vm15 = vcmp.eq.f32.partialorder %v1151_v54, 8.507059e+37 }
 0x2dd   :  { %v1124_v48 = vsub.f32 1.0, %v1123_v37 }
 0x2df   :  { %v2417_v19 = vpop.eup %2416  ;;  %v1125_v52 = vmul.f32 %v2415_v9, %v1124_v48 }
 0x2e0   :  { %v2419_v23 = vpop.eup %2418  ;;  %v1066_v18 = vmul.f32 %v2417_v19, %v1065_v26 }
 0x2e1   :  { %v1143_v56 = vmul.f32 %v2419_v23, %v1141_v41  ;;  %v1126_v11 = vadd.f32 %v2415_v9, %v1125_v52  ;;  %vm1148_vm12 = vweird.f32 %v2419_v23 }
 0x2e2   :  { %v3346_v31 = vadd.f32 %v1067_v5, %v1066_v18  ;;  %vm1149_vm14 = vmor %vm1147_vm13, %vm1148_vm12  ;;  %v3756_v5 = vld [vmem:[#allocation14_spill] sm:$0xff] }
 0x2e3   :  { %v1144_v44 = vsub.f32 1.0, %v1143_v56  ;;  %v1130_v60 = vsel %vm1129_vm10, %v2415_v9, %v1126_v11  ;;  %v1153_v9 = vand.u32 2147483648, %v1141_v41  ;;  %v3757_v56 = vld [vmem:[#allocation3_spill] sm:$0xff]  ;;  %v3758_v11 = vld [vmem:[#allocation4_spill] sm:$0xff] }
 0x2e4   :  { %v1135_v0 = vsel %vm1132_vm11, %v1134_v13, %v1130_v60  ;;  %2245 = vst [vmem:[%s3662_s4 + $0x18] sm:$0xff] %v3346_v31  ;;  %v1173_v39 = vpack.c.bf16 %v3346_v31, %v3346_v31  ;;  %v3760_v13 = vld [vmem:[#allocation5_spill] sm:$0xff]  ;;  %v3762_v60 = vld [vmem:[#allocation7_spill] sm:$0xff] }
 0x2e5   :  { %v1145_v34 = vmul.f32 %v2419_v23, %v1144_v44  ;;  %v1158_v37 = vmul.f32 %v1157_v46, %v1135_v0  ;;  %v1154_v57 = vor.u32 1.1754944e-38, %v1153_v9  ;;  %v3761_v44 = vld [vmem:[#allocation6_spill] sm:$0xff]  ;;  %v3763_v46 = vld [vmem:[#allocation8_spill] sm:$0xff]  ;;  %v3764_v0 = vld [vmem:[#allocation9_spill] sm:$0xff] }
 0x2e6   :  { %1182 = vmatmul.bf16.vlgmr.msra.gmra.mxu0 %v1173_v39  ;;  %1195 = vmatmul.bf16.vlgmr.msra.gmra.mxu1 %v1173_v39  ;;  %v3767_v9 = vld [vmem:[#allocation12_spill] sm:$0xff] }
 0x2e7   :  { %v1146_v48 = vadd.f32 %v2419_v23, %v1145_v34  ;;  %v1159_v27 = vadd.f32 %v1158_v37, %v1076_v32  ;;  %1208 = vmatmul.bf16.vlgmr.msra.gmra.mxu2 %v1173_v39  ;;  %1392 = vmatpush.bf16.msra.mxu0 %v2668_v43  ;;  %v3759_v32 = vld [vmem:[#allocation15_spill] sm:$0xff]  ;;  %v3765_v39 = vld [vmem:[#allocation10_spill] sm:$0xff] }
 0x2e8   :  { %1462 = vmatpush.bf16.msra.mxu1 %v2562_v7  ;;  %1475 = vmatpush.bf16.msra.mxu2 %v2809_v36  ;;  %v3766_v34 = vld [vmem:[#allocation11_spill] sm:$0xff]  ;;  %v2251_v37 = vld [vmem:[%s3660_s0 + $0x30] sm:$0xff] }
 0x2e9   :  { %v1150_v26 = vsel %vm1149_vm14, %v2419_v23, %v1146_v48  ;;  %2420 = vtanh.f32 %v1159_v27  ;;  %v1170_v54 = vunpack.c.l.bf16 %v2251_v37  ;;  %v1171_v48 = vunpack.c.h.bf16 %v2251_v37 }
 0x2ea   :  { %v1155_v19 = vsel %vm1152_vm15, %v1154_v57, %v1150_v26 }
 0x2eb   :  { %1393 = vmatpush.bf16.msra.mxu0 %v2680_v47  ;;  %v1161_v41 = vsub.f32 1.0, %v1155_v19  ;;  %v1163_v55 = vmul.f32 %v1155_v19, %v3282_v58  ;;  %v3755_v58 = vld [vmem:[#allocation2_spill] sm:$0xff] }
 0x2ec   :  { %1463 = vmatpush.bf16.msra.mxu1 %v2589_v16  ;;  %1476 = vmatpush.bf16.msra.mxu2 %v2839_v53 }
 0x2ef   :  { %v2421_v29 = vpop.eup %2420  ;;  %1394 = vmatpush.bf16.msra.mxu0 %v2716_v59 }
 0x2f0   :  { %v1162_v52 = vmul.f32 %v2421_v29, %v1161_v41  ;;  %1464 = vmatpush.bf16.msra.mxu1 %v2616_v25  ;;  %1477 = vmatpush.bf16.msra.mxu2 %v2871_v4 }
 0x2f2   :  { %v3371_v23 = vadd.f32 %v1163_v55, %v1162_v52 }
 0x2f3   :  { %1395 = vmatpush.bf16.msra.mxu0 %v2752_v10 }
 0x2f4   :  { %2250 = vst [vmem:[%s3663_s5 + $0x20] sm:$0xff] %v3371_v23  ;;  %v1269_v18 = vpack.c.bf16 %v3371_v23, %v3371_v23  ;;  %1465 = vmatpush.bf16.msra.mxu1 %v2655_v38  ;;  %1478 = vmatpush.bf16.msra.mxu2 %v2899_v22 }
 0x2f6   :  { %1278 = vmatmul.bf16.vlgmr.msra.gmra.mxu3 %v1269_v18  ;;  %1291 = vmatmul.bf16.vlgmr.msrb.gmra.mxu0 %v1269_v18 }
 0x2f7   :  { %1304 = vmatmul.bf16.vlgmr.msrb.gmra.mxu1 %v1269_v18  ;;  %1396 = vmatpush.bf16.msra.mxu0 %v2794_v30 }
 0x2f8   :  { %1488 = vmatpush.bf16.msra.mxu3 %v2825_v45  ;;  %1466 = vmatpush.bf16.msra.mxu1 %v2693_v51 }
 0x2f9   :  { %1479 = vmatpush.bf16.msra.mxu2 %v2919_v33 }
 0x2fb   :  { %1397 = vmatpush.bf16.msra.mxu0 %v2835_v50 }
 0x2fc   :  { %1489 = vmatpush.bf16.msra.mxu3 %v2857_v61  ;;  %1467 = vmatpush.bf16.msra.mxu1 %v2729_v63 }
 0x2fd   :  { %1480 = vmatpush.bf16.msra.mxu2 %v2940_v49 }
 0x2ff   :  { %1398 = vmatpush.bf16.msra.mxu0 %v2867_v2 }
 0x300   :  { %1490 = vmatpush.bf16.msra.mxu3 %v2887_v14  ;;  %1468 = vmatpush.bf16.msra.mxu1 %v2765_v15 }
 0x301   :  { %1481 = vmatpush.bf16.msra.mxu2 %v2960_v1 }
 0x303   :  { %1399 = vmatpush.bf16.msra.mxu0 %v2896_v21 }
 0x304   :  { %1491 = vmatpush.bf16.msra.mxu3 %v2909_v28  ;;  %1469 = vmatpush.bf16.msra.mxu1 %v2807_v35 }
 0x305   :  { %1482 = vmatpush.bf16.msra.mxu2 %v2980_v20 }
 0x307   :  { %1558 = vmatpush.bf16.msrb.mxu0 %v2551_v3 }
 0x308   :  { %1571 = vmatpush.bf16.msrb.mxu1 %v2564_v8  ;;  %1492 = vmatpush.bf16.msra.mxu3 %v2930_v42 }
 0x30b   :  { %1559 = vmatpush.bf16.msrb.mxu0 %v2576_v12 }
 0x30c   :  { %1572 = vmatpush.bf16.msrb.mxu1 %v2591_v17  ;;  %1493 = vmatpush.bf16.msra.mxu3 %v3743_v6 }
 0x30f   :  { %1560 = vmatpush.bf16.msrb.mxu0 %v2612_v24 }
 0x310   :  { %1573 = vmatpush.bf16.msrb.mxu1 %v3755_v58  ;;  %1494 = vmatpush.bf16.msra.mxu3 %v3756_v5 }
 0x313   :  { %1561 = vmatpush.bf16.msrb.mxu0 %v3757_v56 }
 0x314   :  { %1574 = vmatpush.bf16.msrb.mxu1 %v3758_v11  ;;  %1495 = vmatpush.bf16.msra.mxu3 %v3759_v32 }
 0x317   :  { %1562 = vmatpush.bf16.msrb.mxu0 %v3760_v13 }
 0x318   :  { %1575 = vmatpush.bf16.msrb.mxu1 %v3761_v44 }
 0x31b   :  { %1563 = vmatpush.bf16.msrb.mxu0 %v3762_v60 }
 0x31c   :  { %1576 = vmatpush.bf16.msrb.mxu1 %v3763_v46 }
 0x31f   :  { %1564 = vmatpush.bf16.msrb.mxu0 %v3764_v0 }
 0x320   :  { %1577 = vmatpush.bf16.msrb.mxu1 %v3765_v39 }
 0x323   :  { %1565 = vmatpush.bf16.msrb.mxu0 %v3766_v34 }
 0x324   :  { %1578 = vmatpush.bf16.msrb.mxu1 %v3767_v9  ;;  %v2256_v9 = vld [vmem:[%s3661_s1 + $0x84] sm:$0xff] }
 0x325   :  { %v1267_v37 = vunpack.c.h.bf16 %v2256_v9 }
 0x363   :  { %v1183_v27 = vpop.f32.mrf.mxu0  ;;  %v1196_v57 = vpop.f32.mrf.mxu1 }
 0x364   :  { %v1213_v26 = vadd.f32 %v1183_v27, %v1170_v54  ;;  %v1233_v19 = vadd.f32 %v1196_v57, %v1171_v48 }
 0x366   :  { %v2253_v41 = vmul.f32 -1.442695, %v1213_v26  ;;  %v2254_v29 = vmul.f32 -1.442695, %v1233_v19  ;;  %v1266_v19 = vunpack.c.l.bf16 %v2256_v9  ;;  %v2252_v9 = vld [vmem:[%s3660_s0 + $0x38] sm:$0xf] }
 0x368   :  { %2422 = vpow2.f32 %v2253_v41 }
 0x369   :  { %2424 = vpow2.f32 %v2254_v29 }
 0x36a   :  { %v1209_v52 = vpop.f32.mrf.mxu2 }
 0x36b   :  { %v1185_v55 = vpop.f32.mrf.mxu0  ;;  %v1198_v18 = vpop.f32.mrf.mxu1 }
 0x36e   :  { %v2423_v34 = vpop.eup %2422 }
 0x36f   :  { %v2425_v39 = vpop.eup %2424  ;;  %v1217_v0 = vadd.f32 1.0, %v2423_v34 }
 0x370   :  { %v1237_v46 = vadd.f32 1.0, %v2425_v39 }
 0x371   :  { %2426 = vrcp.f32 %v1217_v0  ;;  %v1229_v39 = vand.u32 2147483648, %v1217_v0  ;;  %vm1223_vm1 = vweird.f32 %v1217_v0 }
 0x372   :  { %2428 = vrcp.f32 %v1237_v46  ;;  %v1211_v54 = vpop.f32.mrf.mxu2  ;;  %vm1243_vm5 = vweird.f32 %v1237_v46 }
 0x373   :  { %v1292_v48 = vpop.f32.mrf.mxu0  ;;  %v1227_v54 = vand.u32 2147483647, %v1217_v0 }
 0x374   :  { %v1329_v27 = vadd.f32 %v1292_v48, %v1267_v37  ;;  %v3424_v57 = vpop.f32.mrf.mxu1 }
 0x375   :  { %vm1228_vm3 = vcmp.eq.f32.partialorder %v1227_v54, 8.507059e+37 }
 0x376   :  { %v2259_v26 = vmul.f32 -1.442695, %v1329_v27 }
 0x377   :  { %v2427_v41 = vpop.eup %2426 }
 0x378   :  { %v2429_v29 = vpop.eup %2428  ;;  %v1219_v55 = vmul.f32 %v2427_v41, %v1217_v0  ;;  %2430 = vpow2.f32 %v2259_v26  ;;  %vm1224_vm0 = vweird.f32 %v2427_v41  ;;  %v1230_v26 = vor.u32 1.1754944e-38, %v1229_v39 }
 0x379   :  { %v1239_v18 = vmul.f32 %v2429_v29, %v1237_v46  ;;  %v1279_v32 = vpop.f32.mrf.mxu3  ;;  %vm1225_vm2 = vmor %vm1223_vm1, %vm1224_vm0  ;;  %vm1244_vm4 = vweird.f32 %v2429_v29 }
 0x37a   :  { %v1220_v60 = vsub.f32 1.0, %v1219_v55  ;;  %v1309_v44 = vadd.f32 %v1279_v32, %v1266_v19  ;;  %v1172_v19 = vunpack.c.l.bf16 %v2252_v9  ;;  %vm1245_vm6 = vmor %vm1243_vm5, %vm1244_vm4 }
 0x37b   :  { %v1240_v34 = vsub.f32 1.0, %v1239_v18  ;;  %v1294_v5 = vpop.f32.mrf.mxu0 }
 0x37c   :  { %v1221_v13 = vmul.f32 %v2427_v41, %v1220_v60  ;;  %v2258_v11 = vmul.f32 -1.442695, %v1309_v44  ;;  %v1307_v37 = vpop.f32.mrf.mxu1  ;;  %v1253_v60 = vadd.f32 %v3339_v40, %v1209_v52 }
 0x37d   :  { %v1241_v48 = vmul.f32 %v2429_v29, %v1240_v34  ;;  %v1249_v34 = vand.u32 2147483648, %v1237_v46 }
 0x37e   :  { %v2431_v27 = vpop.eup %2430  ;;  %v1222_v6 = vadd.f32 %v2427_v41, %v1221_v13  ;;  %2432 = vpow2.f32 %v2258_v11  ;;  %v1247_v13 = vand.u32 2147483647, %v1237_v46 }
 0x37f   :  { %v3429_v32 = vadd.f32 1.0, %v2431_v27  ;;  %v1242_v44 = vadd.f32 %v2429_v29, %v1241_v48  ;;  %v1250_v9 = vor.u32 1.1754944e-38, %v1249_v34 }
 0x380   :  { %v1226_v5 = vsel %vm1225_vm2, %v2427_v41, %v1222_v6  ;;  %vm1248_vm7 = vcmp.eq.f32.partialorder %v1247_v13, 8.507059e+37 }
 0x381   :  { %v1231_v55 = vsel %vm1228_vm3, %v1230_v26, %v1226_v5  ;;  %v1281_v18 = vpop.f32.mrf.mxu3  ;;  %2434 = vrcp.f32 %v3429_v32  ;;  %v1246_v39 = vsel %vm1245_vm6, %v2429_v29, %v1242_v44  ;;  %vm1339_vm13 = vweird.f32 %v3429_v32 }
 0x382   :  { %v1254_v37 = vmul.f32 %v1253_v60, %v1231_v55  ;;  %v1251_v52 = vsel %vm1248_vm7, %v1250_v9, %v1246_v39  ;;  %v1349_v39 = vadd.f32 %v3351_v62, %v3424_v57 }
 0x383   :  { %v1257_v41 = vsub.f32 1.0, %v1251_v52  ;;  %v1259_v60 = vmul.f32 %v1251_v52, %v3346_v31  ;;  %v2257_v31 = vld [vmem:[%s3661_s1 + $0x8c] sm:$0xf] }
 0x384   :  { %v2433_v11 = vpop.eup %2432  ;;  %v1255_v0 = vadd.f32 %v1254_v37, %v1172_v19  ;;  %v1268_v52 = vunpack.c.l.bf16 %v2257_v31  ;;  %v3779_v31 = vld [vmem:[#allocation12_spill] sm:$0xff] }
 0x385   :  { %v1313_v27 = vadd.f32 1.0, %v2433_v11 }
 0x386   :  { %2436 = vtanh.f32 %v1255_v0 }
 0x387   :  { %2438 = vrcp.f32 %v1313_v27  ;;  %v2435_v6 = vpop.eup %2434  ;;  %v1325_v19 = vand.u32 2147483648, %v1313_v27  ;;  %v1323_v37 = vand.u32 2147483647, %v1313_v27  ;;  %vm1319_vm9 = vweird.f32 %v1313_v27 }
 0x388   :  { %v1335_v54 = vmul.f32 %v2435_v6, %v3429_v32  ;;  %vm1340_vm12 = vweird.f32 %v2435_v6 }
 0x389   :  { %v1326_v0 = vor.u32 1.1754944e-38, %v1325_v19  ;;  %vm1324_vm11 = vcmp.eq.f32.partialorder %v1323_v37, 8.507059e+37  ;;  %vm1341_vm14 = vmor %vm1339_vm13, %vm1340_vm12  ;;  %v3773_v37 = vld [vmem:[#allocation7_spill] sm:$0xff] }
 0x38a   :  { %v1336_v55 = vsub.f32 1.0, %v1335_v54 }
 0x38c   :  { %v2437_v48 = vpop.eup %2436  ;;  %v1337_v13 = vmul.f32 %v2435_v6, %v1336_v55 }
 0x38d   :  { %v2439_v26 = vpop.eup %2438  ;;  %v1258_v5 = vmul.f32 %v2437_v48, %v1257_v41 }
 0x38e   :  { %v1315_v46 = vmul.f32 %v2439_v26, %v1313_v27  ;;  %vm1320_vm8 = vweird.f32 %v2439_v26  ;;  %v1338_v41 = vadd.f32 %v2435_v6, %v1337_v13  ;;  %v1345_v27 = vand.u32 2147483648, %v3429_v32  ;;  %v3776_v13 = vld [vmem:[#allocation9_spill] sm:$0xff] }
 0x38f   :  { %v3435_v18 = vadd.f32 %v1259_v60, %v1258_v5  ;;  %vm1321_vm10 = vmor %vm1319_vm9, %vm1320_vm8  ;;  %v1343_v5 = vand.u32 2147483647, %v3429_v32 }
 0x390   :  { %v1316_v29 = vsub.f32 1.0, %v1315_v46  ;;  %v1346_v60 = vor.u32 1.1754944e-38, %v1345_v27 }
 0x391   :  { %2255 = vst [vmem:[%s3662_s4 + $0x20] sm:$0xff] %v3435_v18  ;;  %v1365_v44 = vpack.c.bf16 %v3435_v18, %v3435_v18  ;;  %vm1344_vm15 = vcmp.eq.f32.partialorder %v1343_v5, 8.507059e+37 }
 0x392   :  { %v1317_v34 = vmul.f32 %v2439_v26, %v1316_v29 }
 0x393   :  { %1374 = vmatmul.bf16.vlgmr.msrb.gmra.mxu2 %v1365_v44  ;;  %1387 = vmatmul.bf16.vlgmr.msrb.gmra.mxu3 %v1365_v44 }
 0x394   :  { %v1318_v11 = vadd.f32 %v2439_v26, %v1317_v34  ;;  %1400 = vmatmul.bf16.vlgmr.msra.gmra.mxu0 %v1365_v44  ;;  %1584 = vmatpush.bf16.msrb.mxu2 %v2668_v43  ;;  %v3770_v34 = vld [vmem:[#allocation5_spill] sm:$0xff] }
 0x395   :  { %1654 = vmatpush.bf16.msrb.mxu3 %v2562_v7  ;;  %1667 = vmatpush.bf16.msra.mxu0 %v2809_v36 }
 0x396   :  { %v1322_v9 = vsel %vm1321_vm10, %v2439_v26, %v1318_v11  ;;  %v1342_v26 = vsel %vm1341_vm14, %v2435_v6, %v1338_v41  ;;  %v2261_v11 = vld [vmem:[%s3660_s0 + $0x3c] sm:$0xff] }
 0x397   :  { %v1327_v54 = vsel %vm1324_vm11, %v1326_v0, %v1322_v9  ;;  %v1347_v46 = vsel %vm1344_vm15, %v1346_v60, %v1342_v26  ;;  %v1363_v9 = vunpack.c.h.bf16 %v2261_v11 }
 0x398   :  { %v1350_v48 = vmul.f32 %v1349_v39, %v1327_v54  ;;  %1585 = vmatpush.bf16.msrb.mxu2 %v2680_v47  ;;  %v1353_v32 = vsub.f32 1.0, %v1347_v46  ;;  %v1355_v6 = vmul.f32 %v1347_v46, %v3371_v23  ;;  %v3769_v23 = vld [vmem:[#allocation4_spill] sm:$0xff]  ;;  %v1362_v39 = vunpack.c.l.bf16 %v2261_v11  ;;  %v2266_v46 = vld [vmem:[%s3661_s1 + $0x78] sm:$0xff] }
 0x399   :  { %1655 = vmatpush.bf16.msrb.mxu3 %v2589_v16  ;;  %1668 = vmatpush.bf16.msra.mxu0 %v2839_v53 }
 0x39a   :  { %v1351_v57 = vadd.f32 %v1350_v48, %v1268_v52 }
 0x39c   :  { %2440 = vtanh.f32 %v1351_v57  ;;  %1586 = vmatpush.bf16.msrb.mxu2 %v2716_v59 }
 0x39d   :  { %1656 = vmatpush.bf16.msrb.mxu3 %v2616_v25  ;;  %1669 = vmatpush.bf16.msra.mxu0 %v2871_v4 }
 0x3a0   :  { %1587 = vmatpush.bf16.msrb.mxu2 %v2752_v10 }
 0x3a1   :  { %1657 = vmatpush.bf16.msrb.mxu3 %v2655_v38  ;;  %1670 = vmatpush.bf16.msra.mxu0 %v2899_v22 }
 0x3a2   :  { %v2441_v55 = vpop.eup %2440 }
 0x3a3   :  { %v1354_v29 = vmul.f32 %v2441_v55, %v1353_v32 }
 0x3a4   :  { %1588 = vmatpush.bf16.msrb.mxu2 %v2794_v30 }
 0x3a5   :  { %v3465_v19 = vadd.f32 %v1355_v6, %v1354_v29  ;;  %1658 = vmatpush.bf16.msrb.mxu3 %v2693_v51  ;;  %1671 = vmatpush.bf16.msra.mxu0 %v2919_v33 }
 0x3a7   :  { %2260 = vst [vmem:[%s3663_s5 + $0x18] sm:$0xff] %v3465_v19  ;;  %v1461_v44 = vpack.c.bf16 %v3465_v19, %v3465_v19 }
 0x3a8   :  { %1589 = vmatpush.bf16.msrb.mxu2 %v2835_v50 }
 0x3a9   :  { %1470 = vmatmul.bf16.vlgmr.msra.gmra.mxu1 %v1461_v44  ;;  %1483 = vmatmul.bf16.vlgmr.msra.gmra.mxu2 %v1461_v44 }
 0x3aa   :  { %1496 = vmatmul.bf16.vlgmr.msra.gmra.mxu3 %v1461_v44  ;;  %1680 = vmatpush.bf16.msra.mxu1 %v2825_v45  ;;  %v1458_v44 = vunpack.c.l.bf16 %v2266_v46 }
 0x3ab   :  { %1659 = vmatpush.bf16.msrb.mxu3 %v2729_v63  ;;  %1672 = vmatpush.bf16.msra.mxu0 %v2940_v49 }
 0x3ac   :  { %1590 = vmatpush.bf16.msrb.mxu2 %v2867_v2 }
 0x3ae   :  { %1681 = vmatpush.bf16.msra.mxu1 %v2857_v61 }
 0x3af   :  { %1660 = vmatpush.bf16.msrb.mxu3 %v2765_v15  ;;  %1673 = vmatpush.bf16.msra.mxu0 %v2960_v1 }
 0x3b0   :  { %1591 = vmatpush.bf16.msrb.mxu2 %v2896_v21 }
 0x3b2   :  { %1682 = vmatpush.bf16.msra.mxu1 %v2887_v14 }
 0x3b3   :  { %1661 = vmatpush.bf16.msrb.mxu3 %v2807_v35  ;;  %1674 = vmatpush.bf16.msra.mxu0 %v2980_v20 }
 0x3b4   :  { %1750 = vmatpush.bf16.msra.mxu2 %v2551_v3  ;;  %v3768_v3 = vld [vmem:[#allocation13_spill] sm:$0xff] }
 0x3b6   :  { %1683 = vmatpush.bf16.msra.mxu1 %v2909_v28 }
 0x3b7   :  { %1763 = vmatpush.bf16.msra.mxu3 %v2564_v8  ;;  %v3771_v8 = vld [vmem:[#allocation14_spill] sm:$0xff] }
 0x3b8   :  { %1751 = vmatpush.bf16.msra.mxu2 %v2576_v12  ;;  %v3772_v12 = vld [vmem:[#allocation6_spill] sm:$0xff] }
 0x3ba   :  { %1684 = vmatpush.bf16.msra.mxu1 %v2930_v42 }
 0x3bb   :  { %1764 = vmatpush.bf16.msra.mxu3 %v2591_v17  ;;  %v3774_v17 = vld [vmem:[#allocation15_spill] sm:$0xff] }
 0x3bc   :  { %1752 = vmatpush.bf16.msra.mxu2 %v2612_v24  ;;  %v3775_v24 = vld [vmem:[#allocation8_spill] sm:$0xff] }
 0x3be   :  { %1685 = vmatpush.bf16.msra.mxu1 %v3768_v3 }
 0x3bf   :  { %1765 = vmatpush.bf16.msra.mxu3 %v3755_v58  ;;  %v3777_v58 = vld [vmem:[#allocation10_spill] sm:$0xff] }
 0x3c0   :  { %1753 = vmatpush.bf16.msra.mxu2 %v3757_v56  ;;  %v3778_v56 = vld [vmem:[#allocation11_spill] sm:$0xff] }
 0x3c2   :  { %1686 = vmatpush.bf16.msra.mxu1 %v3771_v8 }
 0x3c3   :  { %1766 = vmatpush.bf16.msra.mxu3 %v3769_v23 }
 0x3c4   :  { %1754 = vmatpush.bf16.msra.mxu2 %v3770_v34 }
 0x3c6   :  { %1687 = vmatpush.bf16.msra.mxu1 %v3774_v17 }
 0x3c7   :  { %1767 = vmatpush.bf16.msra.mxu3 %v3772_v12 }
 0x3c8   :  { %1755 = vmatpush.bf16.msra.mxu2 %v3773_v37  ;;  %v1459_v37 = vunpack.c.h.bf16 %v2266_v46 }
 0x3cb   :  { %1768 = vmatpush.bf16.msra.mxu3 %v3775_v24 }
 0x3cc   :  { %1756 = vmatpush.bf16.msra.mxu2 %v3776_v13 }
 0x3cf   :  { %1769 = vmatpush.bf16.msra.mxu3 %v3777_v58 }
 0x3d0   :  { %1757 = vmatpush.bf16.msra.mxu2 %v3778_v56 }
 0x3d3   :  { %1770 = vmatpush.bf16.msra.mxu3 %v3779_v31 }
 0x411   :  { %v1401_v0 = vpop.f32.mrf.mxu0 }
 0x416   :  { %v1375_v52 = vpop.f32.mrf.mxu2  ;;  %v1388_v41 = vpop.f32.mrf.mxu3 }
 0x417   :  { %v1405_v54 = vadd.f32 %v1375_v52, %v1362_v39  ;;  %v1425_v27 = vadd.f32 %v1388_v41, %v1363_v9 }
 0x419   :  { %v2263_v48 = vmul.f32 -1.442695, %v1405_v54  ;;  %v2264_v5 = vmul.f32 -1.442695, %v1425_v27  ;;  %v1403_v57 = vpop.f32.mrf.mxu0 }
 0x41b   :  { %2442 = vpow2.f32 %v2263_v48 }
 0x41c   :  { %2444 = vpow2.f32 %v2264_v5 }
 0x41e   :  { %v1377_v26 = vpop.f32.mrf.mxu2  ;;  %v1390_v60 = vpop.f32.mrf.mxu3 }
 0x41f   :  { %v2262_v26 = vld [vmem:[%s3660_s0 + $0x44] sm:$0xf] }
 0x421   :  { %v2443_v32 = vpop.eup %2442 }
 0x422   :  { %v2445_v55 = vpop.eup %2444  ;;  %v1409_v29 = vadd.f32 1.0, %v2443_v32 }
 0x423   :  { %v1429_v6 = vadd.f32 1.0, %v2445_v55 }
 0x424   :  { %2446 = vrcp.f32 %v1409_v29  ;;  %v1421_v52 = vand.u32 2147483648, %v1409_v29  ;;  %v1419_v48 = vand.u32 2147483647, %v1409_v29  ;;  %vm1415_vm1 = vweird.f32 %v1409_v29 }
 0x425   :  { %2448 = vrcp.f32 %v1429_v6  ;;  %vm1435_vm5 = vweird.f32 %v1429_v6 }
 0x426   :  { %v1471_v23 = vpop.f32.mrf.mxu1  ;;  %v1422_v32 = vor.u32 1.1754944e-38, %v1421_v52  ;;  %vm1420_vm3 = vcmp.eq.f32.partialorder %v1419_v48, 8.507059e+37 }
 0x427   :  { %v1501_v34 = vadd.f32 %v1471_v23, %v1458_v44  ;;  %v1445_v44 = vadd.f32 %v3339_v40, %v1401_v0 }
 0x429   :  { %v2268_v12 = vmul.f32 -1.442695, %v1501_v34  ;;  %v1364_v34 = vunpack.c.l.bf16 %v2262_v26 }
 0x42a   :  { %v2447_v24 = vpop.eup %2446 }
 0x42b   :  { %v2449_v13 = vpop.eup %2448  ;;  %v1411_v58 = vmul.f32 %v2447_v24, %v1409_v29  ;;  %2450 = vpow2.f32 %v2268_v12  ;;  %vm1416_vm0 = vweird.f32 %v2447_v24 }
 0x42c   :  { %v1431_v56 = vmul.f32 %v2449_v13, %v1429_v6  ;;  %v1484_v31 = vpop.f32.mrf.mxu2  ;;  %vm1417_vm2 = vmor %vm1415_vm1, %vm1416_vm0  ;;  %vm1436_vm4 = vweird.f32 %v2449_v13 }
 0x42d   :  { %v1412_v11 = vsub.f32 1.0, %v1411_v58  ;;  %v1521_v39 = vadd.f32 %v1484_v31, %v1459_v37  ;;  %v3514_v9 = vpop.f32.mrf.mxu3  ;;  %v1441_v31 = vand.u32 2147483648, %v1429_v6  ;;  %vm1437_vm6 = vmor %vm1435_vm5, %vm1436_vm4 }
 0x42e   :  { %v1432_v41 = vsub.f32 1.0, %v1431_v56  ;;  %v1473_v54 = vpop.f32.mrf.mxu1 }
 0x42f   :  { %v1413_v27 = vmul.f32 %v2447_v24, %v1412_v11  ;;  %v2269_v5 = vmul.f32 -1.442695, %v1521_v39  ;;  %v1439_v39 = vand.u32 2147483647, %v1429_v6  ;;  %v2267_v6 = vld [vmem:[%s3661_s1 + $0x80] sm:$0xf] }
 0x430   :  { %v1433_v57 = vmul.f32 %v2449_v13, %v1432_v41 }
 0x431   :  { %v2451_v60 = vpop.eup %2450  ;;  %v1414_v46 = vadd.f32 %v2447_v24, %v1413_v27  ;;  %2452 = vpow2.f32 %v2269_v5  ;;  %v1442_v27 = vor.u32 1.1754944e-38, %v1441_v31  ;;  %vm1440_vm7 = vcmp.eq.f32.partialorder %v1439_v39, 8.507059e+37 }
 0x432   :  { %v1505_v55 = vadd.f32 1.0, %v2451_v60  ;;  %v1434_v37 = vadd.f32 %v2449_v13, %v1433_v57 }
 0x433   :  { %v1418_v23 = vsel %vm1417_vm2, %v2447_v24, %v1414_v46 }
 0x434   :  { %v1423_v12 = vsel %vm1420_vm3, %v1422_v32, %v1418_v23  ;;  %2454 = vrcp.f32 %v1505_v55  ;;  %v1486_v58 = vpop.f32.mrf.mxu2  ;;  %v1438_v54 = vsel %vm1437_vm6, %v2449_v13, %v1434_v37  ;;  %v1517_v5 = vand.u32 2147483648, %v1505_v55 }
 0x435   :  { %v1446_v56 = vmul.f32 %v1445_v44, %v1423_v12  ;;  %v1499_v11 = vpop.f32.mrf.mxu3  ;;  %v1443_v24 = vsel %vm1440_vm7, %v1442_v27, %v1438_v54  ;;  %v1515_v46 = vand.u32 2147483647, %v1505_v55  ;;  %vm1511_vm9 = vweird.f32 %v1505_v55 }
 0x436   :  { %v1449_v57 = vsub.f32 1.0, %v1443_v24  ;;  %v1451_v44 = vmul.f32 %v1443_v24, %v3435_v18  ;;  %v1460_v12 = vunpack.c.l.bf16 %v2267_v6  ;;  %v1518_v37 = vor.u32 1.1754944e-38, %v1517_v5 }
 0x437   :  { %v2453_v29 = vpop.eup %2452  ;;  %v1447_v41 = vadd.f32 %v1446_v56, %v1364_v34  ;;  %vm1516_vm11 = vcmp.eq.f32.partialorder %v1515_v46, 8.507059e+37  ;;  %v1541_v11 = vadd.f32 %v3351_v62, %v3514_v9 }
 0x438   :  { %v1525_v52 = vadd.f32 1.0, %v2453_v29 }
 0x439   :  { %2456 = vtanh.f32 %v1447_v41 }
 0x43a   :  { %v2455_v40 = vpop.eup %2454  ;;  %2458 = vrcp.f32 %v1525_v52  ;;  %v1537_v29 = vand.u32 2147483648, %v1525_v52  ;;  %v1535_v54 = vand.u32 2147483647, %v1525_v52  ;;  %vm1531_vm13 = vweird.f32 %v1525_v52 }
 0x43b   :  { %v1507_v0 = vmul.f32 %v2455_v40, %v1505_v55  ;;  %vm1512_vm8 = vweird.f32 %v2455_v40 }
 0x43c   :  { %vm1513_vm10 = vmor %vm1511_vm9, %vm1512_vm8  ;;  %v1538_v62 = vor.u32 1.1754944e-38, %v1537_v29  ;;  %vm1536_vm15 = vcmp.eq.f32.partialorder %v1535_v54, 8.507059e+37 }
 0x43d   :  { %v1508_v48 = vsub.f32 1.0, %v1507_v0 }
 0x43f   :  { %v2457_v26 = vpop.eup %2456  ;;  %v1509_v60 = vmul.f32 %v2455_v40, %v1508_v48 }
 0x440   :  { %v2459_v32 = vpop.eup %2458  ;;  %v1450_v13 = vmul.f32 %v2457_v26, %v1449_v57 }
 0x441   :  { %v1527_v23 = vmul.f32 %v2459_v32, %v1525_v52  ;;  %v1510_v34 = vadd.f32 %v2455_v40, %v1509_v60  ;;  %vm1532_vm12 = vweird.f32 %v2459_v32 }
 0x442   :  { %v3524_v58 = vadd.f32 %v1451_v44, %v1450_v13  ;;  %vm1533_vm14 = vmor %vm1531_vm13, %vm1532_vm12 }
 0x443   :  { %v1528_v56 = vsub.f32 1.0, %v1527_v23  ;;  %v1514_v31 = vsel %vm1513_vm10, %v2455_v40, %v1510_v34  ;;  %v2272_v23 = vld [vmem:[%s3660_s0 + $0x50] sm:$0xf] }
 0x444   :  { %v1519_v39 = vsel %vm1516_vm11, %v1518_v37, %v1514_v31  ;;  %2265 = vst [vmem:[%s3662_s4 + $0x28] sm:$0xff] %v3524_v58  ;;  %v1557_v18 = vpack.c.bf16 %v3524_v58, %v3524_v58  ;;  %v1556_v31 = vunpack.c.l.bf16 %v2272_v23 }
 0x445   :  { %v1529_v55 = vmul.f32 %v2459_v32, %v1528_v56  ;;  %v1542_v41 = vmul.f32 %v1541_v11, %v1519_v39  ;;  %v3591_v39 = vld [vmem:[%s3659_s3] ss:$0 sm:$0xff] }
 0x446   :  { %1566 = vmatmul.bf16.vlgmr.msrb.gmra.mxu0 %v1557_v18  ;;  %1579 = vmatmul.bf16.vlgmr.msrb.gmra.mxu1 %v1557_v18 }
 0x447   :  { %v1530_v27 = vadd.f32 %v2459_v32, %v1529_v55  ;;  %v1543_v40 = vadd.f32 %v1542_v41, %v1460_v12  ;;  %1592 = vmatmul.bf16.vlgmr.msrb.gmra.mxu2 %v1557_v18  ;;  %1776 = vmatpush.bf16.msrb.mxu0 %v2668_v43 }
 0x448   :  { %1845 = vmatpush.bf16.msrb.mxu1 %v2562_v7  ;;  %1858 = vmatpush.bf16.msrb.mxu2 %v2809_v36 }
 0x449   :  { %v1534_v9 = vsel %vm1533_vm14, %v2459_v32, %v1530_v27  ;;  %2460 = vtanh.f32 %v1543_v40 }
 0x44a   :  { %v1539_v0 = vsel %vm1536_vm15, %v1538_v62, %v1534_v9 }
 0x44b   :  { %1777 = vmatpush.bf16.msrb.mxu0 %v2680_v47  ;;  %v1545_v52 = vsub.f32 1.0, %v1539_v0  ;;  %v1547_v7 = vmul.f32 %v1539_v0, %v3465_v19 }
 0x44c   :  { %1846 = vmatpush.bf16.msrb.mxu1 %v2589_v16  ;;  %1859 = vmatpush.bf16.msrb.mxu2 %v2839_v53  ;;  %v2276_v53 = vld [vmem:[%s3661_s1 + $0x6c] sm:$0xff] }
 0x44f   :  { %v2461_v24 = vpop.eup %2460  ;;  %1778 = vmatpush.bf16.msrb.mxu0 %v2716_v59 }
 0x450   :  { %v1546_v43 = vmul.f32 %v2461_v24, %v1545_v52  ;;  %1847 = vmatpush.bf16.msrb.mxu1 %v2616_v25  ;;  %1860 = vmatpush.bf16.msrb.mxu2 %v2871_v4  ;;  %v2271_v25 = vld [vmem:[%s3660_s0 + $0x48] sm:$0xff] }
 0x451   :  { %v1555_v47 = vunpack.c.h.bf16 %v2271_v25 }
 0x452   :  { %v3544_v36 = vadd.f32 %v1547_v7, %v1546_v43 }
 0x453   :  { %1779 = vmatpush.bf16.msrb.mxu0 %v2752_v10 }
 0x454   :  { %2270 = vst [vmem:[%s3663_s5 + $0x10] sm:$0xff] %v3544_v36  ;;  %v1653_v16 = vpack.c.bf16 %v3544_v36, %v3544_v36  ;;  %1848 = vmatpush.bf16.msrb.mxu1 %v2655_v38  ;;  %1861 = vmatpush.bf16.msrb.mxu2 %v2899_v22  ;;  %v1554_v38 = vunpack.c.l.bf16 %v2271_v25 }
 0x456   :  { %1662 = vmatmul.bf16.vlgmr.msrb.gmra.mxu3 %v1653_v16  ;;  %1675 = vmatmul.bf16.vlgmr.msra.gmra.mxu0 %v1653_v16 }
 0x457   :  { %1688 = vmatmul.bf16.vlgmr.msra.gmra.mxu1 %v1653_v16  ;;  %1780 = vmatpush.bf16.msrb.mxu0 %v2794_v30 }
 0x458   :  { %1871 = vmatpush.bf16.msrb.mxu3 %v2825_v45  ;;  %1849 = vmatpush.bf16.msrb.mxu1 %v2693_v51 }
 0x459   :  { %1862 = vmatpush.bf16.msrb.mxu2 %v2919_v33 }
 0x45b   :  { %1781 = vmatpush.bf16.msrb.mxu0 %v2835_v50 }
 0x45c   :  { %1872 = vmatpush.bf16.msrb.mxu3 %v2857_v61  ;;  %1850 = vmatpush.bf16.msrb.mxu1 %v2729_v63 }
 0x45d   :  { %1863 = vmatpush.bf16.msrb.mxu2 %v2940_v49 }
 0x45f   :  { %1782 = vmatpush.bf16.msrb.mxu0 %v2867_v2 }
 0x460   :  { %1873 = vmatpush.bf16.msrb.mxu3 %v2887_v14  ;;  %1851 = vmatpush.bf16.msrb.mxu1 %v2765_v15 }
 0x461   :  { %1864 = vmatpush.bf16.msrb.mxu2 %v2960_v1  ;;  %v1650_v1 = vunpack.c.l.bf16 %v2276_v53 }
 0x463   :  { %1783 = vmatpush.bf16.msrb.mxu0 %v2896_v21  ;;  %v1651_v21 = vunpack.c.h.bf16 %v2276_v53 }
 0x464   :  { %1874 = vmatpush.bf16.msrb.mxu3 %v2909_v28  ;;  %1852 = vmatpush.bf16.msrb.mxu1 %v2807_v35 }
 0x465   :  { %1865 = vmatpush.bf16.msrb.mxu2 %v2980_v20 }
 0x468   :  { %1875 = vmatpush.bf16.msrb.mxu3 %v2930_v42 }
 0x46c   :  { %1876 = vmatpush.bf16.msrb.mxu3 %v3768_v3 }
 0x470   :  { %1877 = vmatpush.bf16.msrb.mxu3 %v3771_v8 }
 0x474   :  { %1878 = vmatpush.bf16.msrb.mxu3 %v3774_v17 }
 0x4c3   :  { %v1567_v51 = vpop.f32.mrf.mxu0  ;;  %v1580_v59 = vpop.f32.mrf.mxu1 }
 0x4c4   :  { %v1597_v63 = vadd.f32 %v1567_v51, %v1554_v38  ;;  %v1617_v10 = vadd.f32 %v1580_v59, %v1555_v47 }
 0x4c6   :  { %v2273_v15 = vmul.f32 -1.442695, %v1597_v63  ;;  %v2274_v30 = vmul.f32 -1.442695, %v1617_v10 }
 0x4c8   :  { %2462 = vpow2.f32 %v2273_v15 }
 0x4c9   :  { %2464 = vpow2.f32 %v2274_v30 }
 0x4ca   :  { %v1593_v35 = vpop.f32.mrf.mxu2 }
 0x4cb   :  { %v1569_v45 = vpop.f32.mrf.mxu0  ;;  %v1582_v50 = vpop.f32.mrf.mxu1  ;;  %v1637_v18 = vadd.f32 %v3591_v39, %v1593_v35 }
 0x4ce   :  { %v2463_v61 = vpop.eup %2462 }
 0x4cf   :  { %v2465_v2 = vpop.eup %2464  ;;  %v1601_v4 = vadd.f32 1.0, %v2463_v61 }
 0x4d0   :  { %v1621_v14 = vadd.f32 1.0, %v2465_v2 }
 0x4d1   :  { %2466 = vrcp.f32 %v1601_v4  ;;  %v1613_v26 = vand.u32 2147483648, %v1601_v4  ;;  %v1611_v46 = vand.u32 2147483647, %v1601_v4  ;;  %vm1607_vm1 = vweird.f32 %v1601_v4 }
 0x4d2   :  { %2468 = vrcp.f32 %v1621_v14  ;;  %v1595_v22 = vpop.f32.mrf.mxu2  ;;  %v1633_v54 = vand.u32 2147483648, %v1621_v14  ;;  %vm1627_vm5 = vweird.f32 %v1621_v14  ;;  %v1631_v40 = vand.u32 2147483647, %v1621_v14 }
 0x4d3   :  { %v1676_v28 = vpop.f32.mrf.mxu0  ;;  %v1614_v37 = vor.u32 1.1754944e-38, %v1613_v26  ;;  %vm1612_vm3 = vcmp.eq.f32.partialorder %v1611_v46, 8.507059e+37  ;;  %v2281_v46 = vld [vmem:[%s3660_s0 + $0x54] sm:$0xff] }
 0x4d4   :  { %v1713_v33 = vadd.f32 %v1676_v28, %v1651_v21  ;;  %v3581_v42 = vpop.f32.mrf.mxu1  ;;  %v1634_v24 = vor.u32 1.1754944e-38, %v1633_v54  ;;  %vm1632_vm7 = vcmp.eq.f32.partialorder %v1631_v40, 8.507059e+37 }
 0x4d6   :  { %v2279_v49 = vmul.f32 -1.442695, %v1713_v33 }
 0x4d7   :  { %v2467_v20 = vpop.eup %2466 }
 0x4d8   :  { %v2469_v19 = vpop.eup %2468  ;;  %v1603_v3 = vmul.f32 %v2467_v20, %v1601_v4  ;;  %2470 = vpow2.f32 %v2279_v49  ;;  %vm1608_vm0 = vweird.f32 %v2467_v20 }
 0x4d9   :  { %v1623_v8 = vmul.f32 %v2469_v19, %v1621_v14  ;;  %v1663_v17 = vpop.f32.mrf.mxu3  ;;  %vm1609_vm2 = vmor %vm1607_vm1, %vm1608_vm0  ;;  %vm1628_vm4 = vweird.f32 %v2469_v19  ;;  %v3611_v14 = vld [vmem:[%s3659_s3 + $0x1] ss:$0 sm:$0xff] }
 0x4da   :  { %v1604_v48 = vsub.f32 1.0, %v1603_v3  ;;  %v1693_v5 = vadd.f32 %v1663_v17, %v1650_v1  ;;  %vm1629_vm6 = vmor %vm1627_vm5, %vm1628_vm4  ;;  %v1733_v21 = vadd.f32 %v3611_v14, %v3581_v42 }
 0x4db   :  { %v1624_v57 = vsub.f32 1.0, %v1623_v8  ;;  %v1678_v6 = vpop.f32.mrf.mxu0 }
 0x4dc   :  { %v1605_v60 = vmul.f32 %v2467_v20, %v1604_v48  ;;  %v2278_v32 = vmul.f32 -1.442695, %v1693_v5  ;;  %v1691_v13 = vpop.f32.mrf.mxu1 }
 0x4dd   :  { %v1625_v44 = vmul.f32 %v2469_v19, %v1624_v57  ;;  %v1746_v13 = vunpack.c.l.bf16 %v2281_v46 }
 0x4de   :  { %v2471_v34 = vpop.eup %2470  ;;  %v1606_v12 = vadd.f32 %v2467_v20, %v1605_v60  ;;  %2472 = vpow2.f32 %v2278_v32 }
 0x4df   :  { %v3586_v56 = vadd.f32 1.0, %v2471_v34  ;;  %v1626_v55 = vadd.f32 %v2469_v19, %v1625_v44 }
 0x4e0   :  { %v1610_v11 = vsel %vm1609_vm2, %v2467_v20, %v1606_v12 }
 0x4e1   :  { %v1615_v29 = vsel %vm1612_vm3, %v1614_v37, %v1610_v11  ;;  %v1665_v41 = vpop.f32.mrf.mxu3  ;;  %2474 = vrcp.f32 %v3586_v56  ;;  %v1630_v0 = vsel %vm1629_vm6, %v2469_v19, %v1626_v55  ;;  %v1729_v1 = vand.u32 2147483648, %v3586_v56  ;;  %v2286_v55 = vld [vmem:[%s3661_s1 + $0x60] sm:$0xff] }
 0x4e2   :  { %v1638_v27 = vmul.f32 %v1637_v18, %v1615_v29  ;;  %v1635_v7 = vsel %vm1632_vm7, %v1634_v24, %v1630_v0  ;;  %vm1723_vm13 = vweird.f32 %v3586_v56  ;;  %v1727_v19 = vand.u32 2147483647, %v3586_v56 }
 0x4e3   :  { %v1641_v16 = vsub.f32 1.0, %v1635_v7  ;;  %v1643_v59 = vmul.f32 %v1635_v7, %v3524_v58  ;;  %v2277_v58 = vld [vmem:[%s3661_s1 + $0x74] sm:$0xf]  ;;  %v1730_v17 = vor.u32 1.1754944e-38, %v1729_v1  ;;  %v1841_v40 = vunpack.c.l.bf16 %v2286_v55 }
 0x4e4   :  { %v2473_v62 = vpop.eup %2472  ;;  %v1639_v9 = vadd.f32 %v1638_v27, %v1556_v31  ;;  %v1652_v28 = vunpack.c.l.bf16 %v2277_v58  ;;  %vm1728_vm15 = vcmp.eq.f32.partialorder %v1727_v19, 8.507059e+37 }
 0x4e5   :  { %v1697_v52 = vadd.f32 1.0, %v2473_v62 }
 0x4e6   :  { %2476 = vtanh.f32 %v1639_v9 }
 0x4e7   :  { %2478 = vrcp.f32 %v1697_v52  ;;  %v2475_v43 = vpop.eup %2474  ;;  %v1709_v35 = vand.u32 2147483648, %v1697_v52  ;;  %v1707_v53 = vand.u32 2147483647, %v1697_v52  ;;  %vm1703_vm9 = vweird.f32 %v1697_v52 }
 0x4e8   :  { %v1719_v25 = vmul.f32 %v2475_v43, %v3586_v56  ;;  %vm1724_vm12 = vweird.f32 %v2475_v43 }
 0x4e9   :  { %v1710_v4 = vor.u32 1.1754944e-38, %v1709_v35  ;;  %vm1708_vm11 = vcmp.eq.f32.partialorder %v1707_v53, 8.507059e+37  ;;  %vm1725_vm14 = vmor %vm1723_vm13, %vm1724_vm12 }
 0x4ea   :  { %v1720_v10 = vsub.f32 1.0, %v1719_v25 }
 0x4ec   :  { %v2477_v38 = vpop.eup %2476  ;;  %v1721_v61 = vmul.f32 %v2475_v43, %v1720_v10 }
 0x4ed   :  { %v2479_v47 = vpop.eup %2478  ;;  %v1642_v51 = vmul.f32 %v2477_v38, %v1641_v16 }
 0x4ee   :  { %v1699_v63 = vmul.f32 %v2479_v47, %v1697_v52  ;;  %vm1704_vm8 = vweird.f32 %v2479_v47  ;;  %v1722_v33 = vadd.f32 %v2475_v43, %v1721_v61  ;;  %v1842_v52 = vunpack.c.h.bf16 %v2286_v55 }
 0x4ef   :  { %v3597_v15 = vadd.f32 %v1643_v59, %v1642_v51  ;;  %vm1705_vm10 = vmor %vm1703_vm9, %vm1704_vm8 }
 0x4f0   :  { %v1700_v30 = vsub.f32 1.0, %v1699_v63  ;;  %v1726_v8 = vsel %vm1725_vm14, %v2475_v43, %v1722_v33 }
 0x4f1   :  { %2275 = vst [vmem:[%s3662_s4 + $0x30] sm:$0xff] %v3597_v15  ;;  %v1749_v45 = vpack.c.bf16 %v3597_v15, %v3597_v15  ;;  %v1731_v42 = vsel %vm1728_vm15, %v1730_v17, %v1726_v8 }
 0x4f2   :  { %v1701_v50 = vmul.f32 %v2479_v47, %v1700_v30  ;;  %v1737_v48 = vsub.f32 1.0, %v1731_v42  ;;  %v1739_v26 = vmul.f32 %v1731_v42, %v3544_v36  ;;  %v1747_v36 = vunpack.c.h.bf16 %v2281_v46 }
 0x4f3   :  { %1758 = vmatmul.bf16.vlgmr.msra.gmra.mxu2 %v1749_v45  ;;  %1771 = vmatmul.bf16.vlgmr.msra.gmra.mxu3 %v1749_v45 }
 0x4f4   :  { %v1702_v2 = vadd.f32 %v2479_v47, %v1701_v50  ;;  %1784 = vmatmul.bf16.vlgmr.msrb.gmra.mxu0 %v1749_v45  ;;  %v2282_v50 = vld [vmem:[%s3660_s0 + $0x5c] sm:$0xf] }
 0x4f6   :  { %v1706_v22 = vsel %vm1705_vm10, %v2479_v47, %v1702_v2 }
 0x4f7   :  { %v1711_v49 = vsel %vm1708_vm11, %v1710_v4, %v1706_v22  ;;  %v1748_v22 = vunpack.c.l.bf16 %v2282_v50 }
 0x4f8   :  { %v1734_v20 = vmul.f32 %v1733_v21, %v1711_v49 }
 0x4fa   :  { %v1735_v3 = vadd.f32 %v1734_v20, %v1652_v28 }
 0x4fc   :  { %2480 = vtanh.f32 %v1735_v3 }
 0x502   :  { %v2481_v5 = vpop.eup %2480 }
 0x503   :  { %v1738_v57 = vmul.f32 %v2481_v5, %v1737_v48 }
 0x505   :  { %v3619_v6 = vadd.f32 %v1739_v26, %v1738_v57 }
 0x507   :  { %2280 = vst [vmem:[%s3663_s5 + $0x8] sm:$0xff] %v3619_v6  ;;  %v1844_v60 = vpack.c.bf16 %v3619_v6, %v3619_v6 }
 0x509   :  { %1853 = vmatmul.bf16.vlgmr.msrb.gmra.mxu1 %v1844_v60  ;;  %1866 = vmatmul.bf16.vlgmr.msrb.gmra.mxu2 %v1844_v60 }
 0x50a   :  { %1879 = vmatmul.bf16.vlgmr.msrb.gmra.mxu3 %v1844_v60 }
 0x571   :  { %v1785_v32 = vpop.f32.mrf.mxu0 }
 0x572   :  { %v1829_v21 = vadd.f32 %v3591_v39, %v1785_v32 }
 0x576   :  { %v1759_v44 = vpop.f32.mrf.mxu2  ;;  %v1772_v23 = vpop.f32.mrf.mxu3 }
 0x577   :  { %v1789_v34 = vadd.f32 %v1759_v44, %v1746_v13  ;;  %v1809_v12 = vadd.f32 %v1772_v23, %v1747_v36  ;;  %v2287_v44 = vld [vmem:[%s3661_s1 + $0x68] sm:$0xf] }
 0x578   :  { %v1843_v55 = vunpack.c.l.bf16 %v2287_v44 }
 0x579   :  { %v2283_v37 = vmul.f32 -1.442695, %v1789_v34  ;;  %v2284_v56 = vmul.f32 -1.442695, %v1809_v12  ;;  %v1787_v31 = vpop.f32.mrf.mxu0 }
 0x57b   :  { %2482 = vpow2.f32 %v2283_v37 }
 0x57c   :  { %2484 = vpow2.f32 %v2284_v56 }
 0x57e   :  { %v1761_v11 = vpop.f32.mrf.mxu2  ;;  %v1774_v18 = vpop.f32.mrf.mxu3 }
 0x581   :  { %v2483_v29 = vpop.eup %2482 }
 0x582   :  { %v2485_v41 = vpop.eup %2484  ;;  %v1793_v54 = vadd.f32 1.0, %v2483_v29 }
 0x583   :  { %v1813_v27 = vadd.f32 1.0, %v2485_v41 }
 0x584   :  { %2486 = vrcp.f32 %v1793_v54  ;;  %v1805_v59 = vand.u32 2147483648, %v1793_v54  ;;  %v1803_v35 = vand.u32 2147483647, %v1793_v54  ;;  %vm1799_vm1 = vweird.f32 %v1793_v54 }
 0x585   :  { %2488 = vrcp.f32 %v1813_v27  ;;  %v1825_v19 = vand.u32 2147483648, %v1813_v27  ;;  %vm1819_vm5 = vweird.f32 %v1813_v27  ;;  %v1823_v8 = vand.u32 2147483647, %v1813_v27 }
 0x586   :  { %v1854_v62 = vpop.f32.mrf.mxu1  ;;  %v1806_v2 = vor.u32 1.1754944e-38, %v1805_v59  ;;  %vm1804_vm3 = vcmp.eq.f32.partialorder %v1803_v35, 8.507059e+37 }
 0x587   :  { %v1884_v9 = vadd.f32 %v1854_v62, %v1841_v40  ;;  %v1826_v39 = vor.u32 1.1754944e-38, %v1825_v19  ;;  %vm1824_vm7 = vcmp.eq.f32.partialorder %v1823_v8, 8.507059e+37 }
 0x589   :  { %v2288_v0 = vmul.f32 -1.442695, %v1884_v9 }
 0x58a   :  { %v2487_v24 = vpop.eup %2486 }
 0x58b   :  { %v2489_v43 = vpop.eup %2488  ;;  %v1795_v7 = vmul.f32 %v2487_v24, %v1793_v54  ;;  %2490 = vpow2.f32 %v2288_v0  ;;  %vm1800_vm0 = vweird.f32 %v2487_v24 }
 0x58c   :  { %v1815_v16 = vmul.f32 %v2489_v43, %v1813_v27  ;;  %v1867_v25 = vpop.f32.mrf.mxu2  ;;  %vm1801_vm2 = vmor %vm1799_vm1, %vm1800_vm0  ;;  %vm1820_vm4 = vweird.f32 %v2489_v43 }
 0x58d   :  { %v1796_v38 = vsub.f32 1.0, %v1795_v7  ;;  %v1904_v47 = vadd.f32 %v1867_v25, %v1842_v52  ;;  %v3633_v51 = vpop.f32.mrf.mxu3  ;;  %vm1821_vm6 = vmor %vm1819_vm5, %vm1820_vm4 }
 0x58e   :  { %v1816_v63 = vsub.f32 1.0, %v1815_v16  ;;  %v1856_v10 = vpop.f32.mrf.mxu1  ;;  %v1924_v27 = vadd.f32 %v3611_v14, %v3633_v51 }
 0x58f   :  { %v1797_v30 = vmul.f32 %v2487_v24, %v1796_v38  ;;  %v2289_v45 = vmul.f32 -1.442695, %v1904_v47 }
 0x590   :  { %v1817_v53 = vmul.f32 %v2489_v43, %v1816_v63 }
 0x591   :  { %v2491_v61 = vpop.eup %2490  ;;  %v1798_v58 = vadd.f32 %v2487_v24, %v1797_v30  ;;  %2492 = vpow2.f32 %v2289_v45 }
 0x592   :  { %v1888_v4 = vadd.f32 1.0, %v2491_v61  ;;  %v1818_v49 = vadd.f32 %v2489_v43, %v1817_v53 }
 0x593   :  { %v1802_v28 = vsel %vm1801_vm2, %v2487_v24, %v1798_v58 }
 0x594   :  { %v1807_v33 = vsel %vm1804_vm3, %v1806_v2, %v1802_v28  ;;  %2494 = vrcp.f32 %v1888_v4  ;;  %v1869_v1 = vpop.f32.mrf.mxu2  ;;  %v1822_v48 = vsel %vm1821_vm6, %v2489_v43, %v1818_v49  ;;  %v1900_v13 = vand.u32 2147483648, %v1888_v4 }
 0x595   :  { %v1830_v20 = vmul.f32 %v1829_v21, %v1807_v33  ;;  %v1882_v3 = vpop.f32.mrf.mxu3  ;;  %v1827_v26 = vsel %vm1824_vm7, %v1826_v39, %v1822_v48  ;;  %v1898_v34 = vand.u32 2147483647, %v1888_v4  ;;  %vm1894_vm9 = vweird.f32 %v1888_v4 }
 0x596   :  { %v1833_v32 = vsub.f32 1.0, %v1827_v26  ;;  %v1835_v56 = vmul.f32 %v1827_v26, %v3597_v15  ;;  %v1901_v29 = vor.u32 1.1754944e-38, %v1900_v13 }
 0x597   :  { %v2493_v17 = vpop.eup %2492  ;;  %v1831_v42 = vadd.f32 %v1830_v20, %v1748_v22  ;;  %vm1899_vm11 = vcmp.eq.f32.partialorder %v1898_v34, 8.507059e+37 }
 0x598   :  { %v1908_v5 = vadd.f32 1.0, %v2493_v17 }
 0x599   :  { %2496 = vtanh.f32 %v1831_v42 }
 0x59a   :  { %v2495_v57 = vpop.eup %2494  ;;  %2498 = vrcp.f32 %v1908_v5  ;;  %v1920_v62 = vand.u32 2147483648, %v1908_v5  ;;  %v1918_v0 = vand.u32 2147483647, %v1908_v5  ;;  %vm1914_vm13 = vweird.f32 %v1908_v5 }
 0x59b   :  { %v1890_v60 = vmul.f32 %v2495_v57, %v1888_v4  ;;  %vm1895_vm8 = vweird.f32 %v2495_v57 }
 0x59c   :  { %vm1896_vm10 = vmor %vm1894_vm9, %vm1895_vm8  ;;  %v1921_v43 = vor.u32 1.1754944e-38, %v1920_v62  ;;  %vm1919_vm15 = vcmp.eq.f32.partialorder %v1918_v0, 8.507059e+37 }
 0x59d   :  { %v1891_v46 = vsub.f32 1.0, %v1890_v60 }
 0x59f   :  { %v2497_v36 = vpop.eup %2496  ;;  %v1892_v23 = vmul.f32 %v2495_v57, %v1891_v46 }
 0x5a0   :  { %v2499_v12 = vpop.eup %2498  ;;  %v1834_v37 = vmul.f32 %v2497_v36, %v1833_v32 }
 0x5a1   :  { %v1910_v31 = vmul.f32 %v2499_v12, %v1908_v5  ;;  %v1893_v11 = vadd.f32 %v2495_v57, %v1892_v23  ;;  %vm1915_vm12 = vweird.f32 %v2499_v12 }
 0x5a2   :  { %v1836_v18 = vadd.f32 %v1835_v56, %v1834_v37  ;;  %vm1916_vm14 = vmor %vm1914_vm13, %vm1915_vm12 }
 0x5a3   :  { %v1911_v41 = vsub.f32 1.0, %v1910_v31  ;;  %v1897_v54 = vsel %vm1896_vm10, %v2495_v57, %v1893_v11 }
 0x5a4   :  { %2285 = vst [vmem:[%s3662_s4 + $0x38] sm:$0xff] %v1836_v18  ;;  %v1902_v40 = vsel %vm1899_vm11, %v1901_v29, %v1897_v54 }
 0x5a5   :  { %1933 = vst [vmem:[%s3664_s6] sm:$0xff] %v1836_v18  ;;  %v1912_v15 = vmul.f32 %v2499_v12, %v1911_v41  ;;  %v1925_v9 = vmul.f32 %v1924_v27, %v1902_v40 }
 0x5a7   :  { %v1913_v52 = vadd.f32 %v2499_v12, %v1912_v15  ;;  %v1926_v24 = vadd.f32 %v1925_v9, %v1843_v55 }
 0x5a9   :  { %v1917_v14 = vsel %vm1916_vm14, %v2499_v12, %v1913_v52  ;;  %2500 = vtanh.f32 %v1926_v24 }
 0x5aa   :  { %v1922_v7 = vsel %vm1919_vm15, %v1921_v43, %v1917_v14 }
 0x5ab   :  { %v1928_v16 = vsub.f32 1.0, %v1922_v7  ;;  %v1930_v47 = vmul.f32 %v1922_v7, %v3619_v6 }
 0x5af   :  { %v2501_v25 = vpop.eup %2500 }
 0x5b0   :  { %v1929_v38 = vmul.f32 %v2501_v25, %v1928_v16 }
 0x5b2   :  { %v1931_v51 = vadd.f32 %v1930_v47, %v1929_v38 }
 0x5b4   :  { %1932 = vst [vmem:[%s3663_s5] sm:$0xff] %v1931_v51 }
 0x5b5   :  { %2290 = vst [vmem:[%s3664_s6 + $0x8] sm:$0xff] %v1931_v51 }

</bundles_post_ra>
